<compile_context>
chip_gen: v6e
topology: v6e:2x2x1
jax: 0.10.0
libtpu: 0.0.40
codegen_flags: <defaults>
</compile_context>

<pallas_src>
import functools

import jax
import jax.numpy as jnp
from jax.experimental import pallas as pl
from jax.experimental.pallas import tpu as pltpu


LEAKY_SLOPE = 1.0   # nn.LeakyReLU(True): negative_slope == 1.0 -> identity
RELU_SLOPE = 0.0    # nn.ReLU(True)


def _round_up(x, m):
    return (x + m - 1) // m * m


# ----------------------------- Pallas GEMM ---------------------------------

def _gemm_kernel(a_ref, b_ref, o_ref, acc_ref, *, act_slope):
    """bf16 x bf16 -> f32-acc tiled GEMM.  Grid = (M/tm, N/tn, K/tk)."""
    @pl.when(pl.program_id(2) == 0)
    def _():
        acc_ref[...] = jnp.zeros_like(acc_ref)

    acc_ref[...] += jnp.dot(a_ref[...], b_ref[...],
                            preferred_element_type=jnp.float32)

    @pl.when(pl.program_id(2) == pl.num_programs(2) - 1)
    def _():
        y = acc_ref[...]
        if act_slope is not None:
            y = jnp.where(y >= 0, y, act_slope * y)
        o_ref[...] = y.astype(o_ref.dtype)


def _gemm_bias_kernel(a_ref, b_ref, bias_ref, o_ref, acc_ref, *, act_slope):
    @pl.when(pl.program_id(2) == 0)
    def _():
        acc_ref[...] = jnp.zeros_like(acc_ref)

    acc_ref[...] += jnp.dot(a_ref[...], b_ref[...],
                            preferred_element_type=jnp.float32)

    @pl.when(pl.program_id(2) == pl.num_programs(2) - 1)
    def _():
        y = acc_ref[...] + bias_ref[...]
        if act_slope is not None:
            y = jnp.where(y >= 0, y, act_slope * y)
        o_ref[...] = y.astype(o_ref.dtype)


def gemm(a, b, bias=None, act_slope=None, out_dtype=jnp.float32):
    """a:(M,K) @ b:(K,N) [+ bias] [+ (leaky)ReLU] via a Pallas tiled MXU GEMM.

    Operands are cast to bf16 (MXU-native); accumulation stays f32 in VMEM scratch.
    """
    M, K = a.shape
    _, N = b.shape
    # 256-wide tiles feed the full systolic width on v6e/v7x; still fine on v5e.
    tm = 256 if M >= 256 else _round_up(M, 16)     # 16: bf16 sublane packing
    tn = 256 if N >= 256 else _round_up(N, 128)
    tk = 512 if K >= 512 else _round_up(K, 128)
    Mp, Kp, Np = _round_up(M, tm), _round_up(K, tk), _round_up(N, tn)

    ap = jnp.pad(a.astype(jnp.bfloat16), ((0, Mp - M), (0, Kp - K)))
    bp = jnp.pad(b.astype(jnp.bfloat16), ((0, Kp - K), (0, Np - N)))

    grid = (Mp // tm, Np // tn, Kp // tk)
    a_spec = pl.BlockSpec((tm, tk), lambda i, j, k: (i, k))
    b_spec = pl.BlockSpec((tk, tn), lambda i, j, k: (k, j))
    o_spec = pl.BlockSpec((tm, tn), lambda i, j, k: (i, j))
    cparams = pltpu.CompilerParams(
        dimension_semantics=("parallel", "parallel", "arbitrary"))
    scratch = [pltpu.VMEM((tm, tn), jnp.float32)]

    if bias is None:
        out = pl.pallas_call(
            functools.partial(_gemm_kernel, act_slope=act_slope),
            out_shape=jax.ShapeDtypeStruct((Mp, Np), out_dtype),
            grid_spec=pltpu.PrefetchScalarGridSpec(
                num_scalar_prefetch=0, grid=grid,
                in_specs=[a_spec, b_spec],
                out_specs=o_spec,
                scratch_shapes=scratch),
            compiler_params=cparams,
        )(ap, bp)
    else:
        biasp = jnp.pad(bias.astype(jnp.float32), (0, Np - N)).reshape(1, Np)
        out = pl.pallas_call(
            functools.partial(_gemm_bias_kernel, act_slope=act_slope),
            out_shape=jax.ShapeDtypeStruct((Mp, Np), out_dtype),
            grid_spec=pltpu.PrefetchScalarGridSpec(
                num_scalar_prefetch=0, grid=grid,
                in_specs=[a_spec, b_spec,
                          pl.BlockSpec((1, tn), lambda i, j, k: (0, j))],
                out_specs=o_spec,
                scratch_shapes=scratch),
            compiler_params=cparams,
        )(ap, bp, biasp)
    return out[:M, :N]


# ------------------------- BatchNorm + activation ---------------------------
# Two-pass tiled formulation: pass 1 reduces per-channel sum / sum-of-squares
# over M-tiles (output blocks are resident accumulators); pass 2 applies the
# precomputed scale/shift plus the activation, tile by tile.

def _bn_stats_kernel(x_ref, sum_ref, sq_ref):
    @pl.when(pl.program_id(0) == 0)
    def _():
        sum_ref[...] = jnp.zeros_like(sum_ref)
        sq_ref[...] = jnp.zeros_like(sq_ref)
    x = x_ref[...].astype(jnp.float32)
    sum_ref[...] += jnp.sum(x, axis=0, keepdims=True)
    sq_ref[...] += jnp.sum(x * x, axis=0, keepdims=True)


def _scale_shift_act_kernel(x_ref, scale_ref, shift_ref, o_ref, *, neg_slope):
    y = x_ref[...].astype(jnp.float32) * scale_ref[...] + shift_ref[...]
    o_ref[...] = jnp.where(y >= 0, y, neg_slope * y).astype(o_ref.dtype)


def bn_act(x2d, gamma, beta, neg_slope, out_dtype=jnp.bfloat16, eps=1e-5):
    """Training-mode BatchNorm (batch stats over axis 0) + (leaky)ReLU, tiled."""
    M, C = x2d.shape
    Cp = _round_up(C, 128)
    tm = 512 if M >= 512 else _round_up(M, 16)
    Mp = _round_up(M, tm)
    xp = jnp.pad(x2d, ((0, Mp - M), (0, Cp - C)))   # zero pad rows: stats use true M

    s, sq = pl.pallas_call(
        _bn_stats_kernel,
        out_shape=(jax.ShapeDtypeStruct((1, Cp), jnp.float32),
                   jax.ShapeDtypeStruct((1, Cp), jnp.float32)),
        grid=(Mp // tm,),
        in_specs=[pl.BlockSpec((tm, Cp), lambda i: (i, 0))],
        out_specs=(pl.BlockSpec((1, Cp), lambda i: (0, 0)),
                   pl.BlockSpec((1, Cp), lambda i: (0, 0))),
        compiler_params=pltpu.CompilerParams(dimension_semantics=("arbitrary",)),
    )(xp)

    # Tiny per-channel math in plain JAX (C-sized vectors; negligible).
    mean = s / M
    var = jnp.maximum(sq / M - mean * mean, 0.0)          # biased variance
    gp = jnp.pad(gamma.astype(jnp.float32), (0, Cp - C)).reshape(1, Cp)
    bp = jnp.pad(beta.astype(jnp.float32), (0, Cp - C)).reshape(1, Cp)
    scale = gp * jax.lax.rsqrt(var + eps)
    shift = bp - mean * scale

    out = pl.pallas_call(
        functools.partial(_scale_shift_act_kernel, neg_slope=neg_slope),
        out_shape=jax.ShapeDtypeStruct((Mp, Cp), out_dtype),
        grid=(Mp // tm,),
        in_specs=[pl.BlockSpec((tm, Cp), lambda i: (i, 0)),
                  pl.BlockSpec((1, Cp), lambda i: (0, 0)),
                  pl.BlockSpec((1, Cp), lambda i: (0, 0))],
        out_specs=pl.BlockSpec((tm, Cp), lambda i: (i, 0)),
        compiler_params=pltpu.CompilerParams(dimension_semantics=("parallel",)),
    )(xp, scale, shift)
    return out[:M, :C]


# ------------------------------ conv glue (NHWC) -----------------------------

def _im2col_s2_k4(xp):
    """xp: (N, H+2, W+2, C) spatially padded NHWC -> (N*Ho*Wo, 16*C), Ho, Wo."""
    N, Hp, Wp, C = xp.shape
    Ho, Wo = (Hp - 4) // 2 + 1, (Wp - 4) // 2 + 1
    taps = []
    for kh in range(4):
        for kw in range(4):
            taps.append(xp[:, kh:kh + 2 * Ho:2, kw:kw + 2 * Wo:2, :])
    col = jnp.stack(taps, axis=3)                       # (N, Ho, Wo, 16, C)
    return col.reshape(N * Ho * Wo, 16 * C), Ho, Wo


def conv_down(x, layer):
    """Conv2d(k=4, s=2, p=1) [+ BN] + LeakyReLU on NHWC input; returns NHWC bf16."""
    N, H, W, C = x.shape
    w = layer["w"]                                      # (Cout, Cin, 4, 4)
    Cout = w.shape[0]
    xp = jnp.pad(x, ((0, 0), (1, 1), (1, 1), (0, 0)))
    # TODO(synk): im2col still materializes a (M, 16*C) column matrix in HBM; a
    # fully fused direct-conv GEMM (A operand gathered in-kernel) would remove it.
    col, Ho, Wo = _im2col_s2_k4(xp)
    wm = w.transpose(2, 3, 1, 0).reshape(16 * C, Cout)  # K order: (kh,kw)-major, c
    if "gamma" in layer:
        # Conv bias is a no-op under training-mode BN (mean subtraction) -> skipped.
        y = gemm(col, wm, out_dtype=jnp.float32)
        y = bn_act(y, layer["gamma"], layer["beta"], neg_slope=LEAKY_SLOPE)
    else:
        y = gemm(col, wm, bias=layer["b"], act_slope=LEAKY_SLOPE,
                 out_dtype=jnp.bfloat16)
    return y.reshape(N, Ho, Wo, Cout)


def conv_up(x, layer, out_dtype=jnp.bfloat16):
    """ConvTranspose2d(k=4, s=2, p=1) [+ BN / Dropout] + ReLU, NHWC in/out.

    Sub-pixel decomposition: output parity class (dy, dx) is a stride-1 2x2 conv
    over the (undilated) padded input with sub-kernel w[:, :, 3-dy-2a, 3-dx-2b],
    so no zero-dilated input is ever materialized (4x fewer FLOPs / bytes).
    """
    N, H, W, C = x.shape
    w = layer["w"]                                      # (Cin, Cout, 4, 4)
    Cout = w.shape[1]
    has_bn = "gamma" in layer
    xp = jnp.pad(x, ((0, 0), (1, 1), (1, 1), (0, 0)))

    subs = []
    for dy in (0, 1):
        for dx in (0, 1):
            taps = [xp[:, dy + a:dy + a + H, dx + b:dx + b + W, :]
                    for a in (0, 1) for b in (0, 1)]
            col = jnp.stack(taps, axis=3).reshape(N * H * W, 4 * C)
            wsub = jnp.stack([w[:, :, 3 - dy - 2 * a, 3 - dx - 2 * b]
                              for a in (0, 1) for b in (0, 1)],
                             axis=0).reshape(4 * C, Cout)
            if has_bn:
                y = gemm(col, wsub, out_dtype=jnp.float32)     # bias cancelled by BN
            else:
                # TODO(synk): Dropout(0.5) (train-mode stochastic) modeled as identity.
                y = gemm(col, wsub, bias=layer["b"], act_slope=RELU_SLOPE,
                         out_dtype=out_dtype)
            subs.append(y.reshape(N, H, W, Cout))

    # Interleave the 4 parity outputs: out[n, 2m+dy, 2k+dx, c] = sub[dy,dx][n, m, k, c]
    y = jnp.stack(subs, axis=0).reshape(2, 2, N, H, W, Cout)
    y = y.transpose(2, 3, 0, 4, 1, 5).reshape(N, 2 * H, 2 * W, Cout)

    if has_bn:
        y2d = bn_act(y.reshape(N * 2 * H * 2 * W, Cout), layer["gamma"],
                     layer["beta"], neg_slope=RELU_SLOPE, out_dtype=out_dtype)
        y = y2d.reshape(N, 2 * H, 2 * W, Cout)
    return y


# -------------------------- parameter construction --------------------------

def make_params(key, input_channel, K=128, downsample_num=4):
    keys = iter(jax.random.split(key, 128))

    def conv_p(cin, cout, bn, transpose=False):
        wk, bk = next(keys), next(keys)
        fan_in = cin * 16
        shape = (cin, cout, 4, 4) if transpose else (cout, cin, 4, 4)
        p = {
            "w": jax.random.normal(wk, shape, jnp.float32) / jnp.sqrt(fan_in),
            "b": jax.random.normal(bk, (cout,), jnp.float32) * 0.01,
        }
        if bn:  # BatchNorm2d default init
            p["gamma"] = jnp.ones((cout,), jnp.float32)
            p["beta"] = jnp.zeros((cout,), jnp.float32)
        return p

    # --- downstack (mirrors the PyTorch constructor) ---
    down = []
    temp_k = K
    down.append(conv_p(input_channel, temp_k, bn=False))          # Conv + LeakyReLU
    for _ in range(1, downsample_num):
        cout = min(512, temp_k * 2)
        down.append(conv_p(temp_k, cout, bn=True))                # Conv + BN + LeakyReLU
        temp_k = cout

    # --- upstack ---
    up = []
    for i in range(1, downsample_num):
        thresh = 2 ** (downsample_num - i) * (K / 2)
        if i == 1 and thresh >= 512:
            up.append(conv_p(temp_k, temp_k, bn=False, transpose=True))      # ConvT + Dropout + ReLU
        elif thresh >= 512:
            up.append(conv_p(temp_k * 2, temp_k, bn=False, transpose=True))  # ConvT + Dropout + ReLU
        else:
            up.append(conv_p(temp_k * 2, temp_k // 2, bn=True, transpose=True))  # ConvT + BN + ReLU
            temp_k //= 2

    last = conv_p(temp_k * 2, 3, bn=True, transpose=True)          # ConvT + BN + ReLU
    return {"down": down, "up": up, "last": last}


# -------------------------------- forward -----------------------------------

def pix2pix_forward(x_nchw, params):
    # Module boundary is NCHW (PyTorch); internally everything is channels-last
    # bf16 so no per-layer layout round-trips are needed.
    h = jnp.transpose(x_nchw, (0, 2, 3, 1)).astype(jnp.bfloat16)

    skips = []
    for layer in params["down"]:
        h = conv_down(h, layer)
        skips.append(h)

    for layer, skip in zip(params["up"], skips[:-1][::-1]):
        h = conv_up(h, layer)
        # TODO(synk): this channel concat could be folded into the next layer's GEMM
        # as two K-partials; kept as a fast-axis (channels-last) concat for clarity.
        h = jnp.concatenate([h, skip], axis=-1)

    h = conv_up(h, params["last"], out_dtype=jnp.float32)
    return jnp.transpose(h, (0, 3, 1, 2))               # back to NCHW at the output


# --------------------------------- main --------------------------------------

if __name__ == "__main__":
    key = jax.random.PRNGKey(0)
    kx, kp = jax.random.split(key)

    # Small but structurally valid config: input_channel=4, K=128, downsample_num=4
    # (requires 2**(dn-2)*K >= 512 so the constructor's channel bookkeeping stays
    #  consistent, as with the PyTorch defaults K=64, downsample_num=6).
    x = jax.random.normal(kx, (2, 4, 16, 16), jnp.float32)
    params = make_params(kp, input_channel=4, K=128, downsample_num=4)

    out = jax.jit(pix2pix_forward)(x, params)
    out = jax.block_until_ready(out)

    assert out.shape == (2, 3, 16, 16), out.shape
    assert bool(jnp.isfinite(out).all())
    print("KERNEL_OK")
</pallas_src>

<mosaic_0001>
module attributes {stable_mosaic.version = 11 : i64} {
  func.func @_gemm_bias_kernel(%arg0: i32, %arg1: i32, %arg2: i32, %arg3: memref<128x128xbf16, #tpu.memory_space<vmem>>, %arg4: memref<128x128xbf16, #tpu.memory_space<vmem>>, %arg5: memref<1x128xf32, #tpu.memory_space<vmem>>, %arg6: memref<128x128xbf16, #tpu.memory_space<vmem>>, %arg7: memref<128x128xf32, #tpu.memory_space<vmem>>) attributes {dimension_semantics = [#tpu.dimension_semantics<parallel>, #tpu.dimension_semantics<parallel>, #tpu.dimension_semantics<arbitrary>], iteration_bounds = array<i64: 1, 1, 1>, scalar_prefetch = 0 : i64, scratch_operands = 1 : i64, tpu.core_type = #tpu.core_type<tc>, window_params = [{transform_indices = @transform_0, window_bounds = array<i64: 128, 128>}, {transform_indices = @transform_1, window_bounds = array<i64: 128, 128>}, {transform_indices = @transform_2, window_bounds = array<i64: 1, 128>}, {transform_indices = @transform_3, window_bounds = array<i64: 128, 128>}]} {
    %c0_i32 = arith.constant 0 : i32
    %0 = arith.cmpi eq, %arg2, %c0_i32 : i32
    %1 = arith.extui %0 : i1 to i32
    %c0_i32_0 = arith.constant 0 : i32
    %2 = arith.cmpi ne, %1, %c0_i32_0 : i32
    scf.if %2 {
      %cst_10 = arith.constant 0.000000e+00 : f32
      %12 = vector.broadcast %cst_10 : f32 to vector<128x128xf32>
      %c0_11 = arith.constant 0 : index
      %c0_12 = arith.constant 0 : index
      %13 = vector.load %arg7[%c0_11, %c0_12] : memref<128x128xf32, #tpu.memory_space<vmem>>, vector<128x128xf32>
      tpu.vector_store %arg7[%c0_11, %c0_12], %12 {strides = array<i32>} : memref<128x128xf32, #tpu.memory_space<vmem>>, vector<128x128xf32>,
    } else {
    }
    %c0 = arith.constant 0 : index
    %c0_1 = arith.constant 0 : index
    %3 = vector.load %arg7[%c0, %c0_1] : memref<128x128xf32, #tpu.memory_space<vmem>>, vector<128x128xf32>
    %c0_2 = arith.constant 0 : index
    %c0_3 = arith.constant 0 : index
    %4 = vector.load %arg3[%c0_2, %c0_3] : memref<128x128xbf16, #tpu.memory_space<vmem>>, vector<128x128xbf16>
    %c0_4 = arith.constant 0 : index
    %c0_5 = arith.constant 0 : index
    %5 = vector.load %arg4[%c0_4, %c0_5] : memref<128x128xbf16, #tpu.memory_space<vmem>>, vector<128x128xbf16>
    %cst = arith.constant dense<0.000000e+00> : vector<128x128xf32>
    %6 = tpu.matmul %4, %5, %cst {dimension_numbers = #tpu.dot_dimension_numbers<[1], [0], [0], [1], [0, 0, 1, 1], [], []>} : vector<128x128xbf16>, vector<128x128xbf16>, vector<128x128xf32> -> vector<128x128xf32>
    %7 = arith.addf %3, %6 : vector<128x128xf32>
    %c0_6 = arith.constant 0 : index
    %c0_7 = arith.constant 0 : index
    %8 = vector.load %arg7[%c0_6, %c0_7] : memref<128x128xf32, #tpu.memory_space<vmem>>, vector<128x128xf32>
    tpu.vector_store %arg7[%c0_6, %c0_7], %7 {strides = array<i32>} : memref<128x128xf32, #tpu.memory_space<vmem>>, vector<128x128xf32>,
    %c0_i32_8 = arith.constant 0 : i32
    %9 = arith.cmpi eq, %arg2, %c0_i32_8 : i32
    %10 = arith.extui %9 : i1 to i32
    %c0_i32_9 = arith.constant 0 : i32
    %11 = arith.cmpi ne, %10, %c0_i32_9 : i32
    scf.if %11 {
      %c0_10 = arith.constant 0 : index
      %c0_11 = arith.constant 0 : index
      %12 = vector.load %arg7[%c0_10, %c0_11] : memref<128x128xf32, #tpu.memory_space<vmem>>, vector<128x128xf32>
      %c0_12 = arith.constant 0 : index
      %c0_13 = arith.constant 0 : index
      %13 = vector.load %arg5[%c0_12, %c0_13] : memref<1x128xf32, #tpu.memory_space<vmem>>, vector<1x128xf32>
      %14 = vector.broadcast %13 : vector<1x128xf32> to vector<128x128xf32>
      %15 = arith.addf %12, %14 : vector<128x128xf32>
      %cst_14 = arith.constant 0.000000e+00 : f32
      %16 = vector.broadcast %cst_14 : f32 to vector<128x128xf32>
      %17 = arith.cmpf oge, %15, %16 : vector<128x128xf32>
      %cst_15 = arith.constant 1.000000e+00 : f32
      %18 = vector.broadcast %cst_15 : f32 to vector<128x128xf32>
      %19 = arith.mulf %18, %15 : vector<128x128xf32>
      %20 = arith.select %17, %15, %19 : vector<128x128xi1>, vector<128x128xf32>
      %21 = arith.truncf %20 : vector<128x128xf32> to vector<128x128xbf16>
      %c0_16 = arith.constant 0 : index
      %c0_17 = arith.constant 0 : index
      %22 = vector.load %arg6[%c0_16, %c0_17] : memref<128x128xbf16, #tpu.memory_space<vmem>>, vector<128x128xbf16>
      tpu.vector_store %arg6[%c0_16, %c0_17], %21 {strides = array<i32>} : memref<128x128xbf16, #tpu.memory_space<vmem>>, vector<128x128xbf16>,
    } else {
    }
    return
  }
  func.func @transform_0(%arg0: i32, %arg1: i32, %arg2: i32) -> (i32, i32) {
    %c0_i32 = arith.constant 0 : i32
    return %arg0, %arg2 : i32, i32
  }
  func.func @transform_1(%arg0: i32, %arg1: i32, %arg2: i32) -> (i32, i32) {
    %c0_i32 = arith.constant 0 : i32
    return %arg2, %arg1 : i32, i32
  }
  func.func @transform_2(%arg0: i32, %arg1: i32, %arg2: i32) -> (i32, i32) {
    %c0_i32 = arith.constant 0 : i32
    %c0_i32_0 = arith.constant 0 : i32
    return %c0_i32, %arg1 : i32, i32
  }
  func.func @transform_3(%arg0: i32, %arg1: i32, %arg2: i32) -> (i32, i32) {
    %c0_i32 = arith.constant 0 : i32
    return %arg0, %arg1 : i32, i32
  }
}

module attributes {stable_mosaic.version = 11 : i64} {
  func.func @_gemm_kernel(%arg0: i32, %arg1: i32, %arg2: i32, %arg3: memref<32x512xbf16, #tpu.memory_space<vmem>>, %arg4: memref<512x256xbf16, #tpu.memory_space<vmem>>, %arg5: memref<32x256xf32, #tpu.memory_space<vmem>>, %arg6: memref<32x256xf32, #tpu.memory_space<vmem>>) attributes {dimension_semantics = [#tpu.dimension_semantics<parallel>, #tpu.dimension_semantics<parallel>, #tpu.dimension_semantics<arbitrary>], iteration_bounds = array<i64: 1, 1, 4>, scalar_prefetch = 0 : i64, scratch_operands = 1 : i64, tpu.core_type = #tpu.core_type<tc>, window_params = [{transform_indices = @transform_0, window_bounds = array<i64: 32, 512>}, {transform_indices = @transform_1, window_bounds = array<i64: 512, 256>}, {transform_indices = @transform_2, window_bounds = array<i64: 32, 256>}]} {
    %c0_i32 = arith.constant 0 : i32
    %0 = arith.cmpi eq, %arg2, %c0_i32 : i32
    %1 = arith.extui %0 : i1 to i32
    %c0_i32_0 = arith.constant 0 : i32
    %2 = arith.cmpi ne, %1, %c0_i32_0 : i32
    scf.if %2 {
      %cst_9 = arith.constant 0.000000e+00 : f32
      %12 = vector.broadcast %cst_9 : f32 to vector<32x256xf32>
      %c0_10 = arith.constant 0 : index
      %c0_11 = arith.constant 0 : index
      %13 = vector.load %arg6[%c0_10, %c0_11] : memref<32x256xf32, #tpu.memory_space<vmem>>, vector<32x256xf32>
      tpu.vector_store %arg6[%c0_10, %c0_11], %12 {strides = array<i32>} : memref<32x256xf32, #tpu.memory_space<vmem>>, vector<32x256xf32>,
    } else {
    }
    %c0 = arith.constant 0 : index
    %c0_1 = arith.constant 0 : index
    %3 = vector.load %arg6[%c0, %c0_1] : memref<32x256xf32, #tpu.memory_space<vmem>>, vector<32x256xf32>
    %c0_2 = arith.constant 0 : index
    %c0_3 = arith.constant 0 : index
    %4 = vector.load %arg3[%c0_2, %c0_3] : memref<32x512xbf16, #tpu.memory_space<vmem>>, vector<32x512xbf16>
    %c0_4 = arith.constant 0 : index
    %c0_5 = arith.constant 0 : index
    %5 = vector.load %arg4[%c0_4, %c0_5] : memref<512x256xbf16, #tpu.memory_space<vmem>>, vector<512x256xbf16>
    %cst = arith.constant dense<0.000000e+00> : vector<32x256xf32>
    %6 = tpu.matmul %4, %5, %cst {dimension_numbers = #tpu.dot_dimension_numbers<[1], [0], [0], [1], [0, 0, 1, 1], [], []>} : vector<32x512xbf16>, vector<512x256xbf16>, vector<32x256xf32> -> vector<32x256xf32>
    %7 = arith.addf %3, %6 : vector<32x256xf32>
    %c0_6 = arith.constant 0 : index
    %c0_7 = arith.constant 0 : index
    %8 = vector.load %arg6[%c0_6, %c0_7] : memref<32x256xf32, #tpu.memory_space<vmem>>, vector<32x256xf32>
    tpu.vector_store %arg6[%c0_6, %c0_7], %7 {strides = array<i32>} : memref<32x256xf32, #tpu.memory_space<vmem>>, vector<32x256xf32>,
    %c3_i32 = arith.constant 3 : i32
    %9 = arith.cmpi eq, %arg2, %c3_i32 : i32
    %10 = arith.extui %9 : i1 to i32
    %c0_i32_8 = arith.constant 0 : i32
    %11 = arith.cmpi ne, %10, %c0_i32_8 : i32
    scf.if %11 {
      %c0_9 = arith.constant 0 : index
      %c0_10 = arith.constant 0 : index
      %12 = vector.load %arg6[%c0_9, %c0_10] : memref<32x256xf32, #tpu.memory_space<vmem>>, vector<32x256xf32>
      %c0_11 = arith.constant 0 : index
      %c0_12 = arith.constant 0 : index
      %13 = vector.load %arg5[%c0_11, %c0_12] : memref<32x256xf32, #tpu.memory_space<vmem>>, vector<32x256xf32>
      tpu.vector_store %arg5[%c0_11, %c0_12], %12 {strides = array<i32>} : memref<32x256xf32, #tpu.memory_space<vmem>>, vector<32x256xf32>,
    } else {
    }
    return
  }
  func.func @transform_0(%arg0: i32, %arg1: i32, %arg2: i32) -> (i32, i32) {
    %c0_i32 = arith.constant 0 : i32
    return %arg0, %arg2 : i32, i32
  }
  func.func @transform_1(%arg0: i32, %arg1: i32, %arg2: i32) -> (i32, i32) {
    %c0_i32 = arith.constant 0 : i32
    return %arg2, %arg1 : i32, i32
  }
  func.func @transform_2(%arg0: i32, %arg1: i32, %arg2: i32) -> (i32, i32) {
    %c0_i32 = arith.constant 0 : i32
    return %arg0, %arg1 : i32, i32
  }
}

module attributes {stable_mosaic.version = 11 : i64} {
  func.func @_bn_stats_kernel(%arg0: i32, %arg1: memref<32x256xf32, #tpu.memory_space<vmem>>, %arg2: memref<1x256xf32, #tpu.memory_space<vmem>>, %arg3: memref<1x256xf32, #tpu.memory_space<vmem>>) attributes {dimension_semantics = [#tpu.dimension_semantics<arbitrary>], iteration_bounds = array<i64: 1>, scalar_prefetch = 0 : i64, scratch_operands = 0 : i64, tpu.core_type = #tpu.core_type<tc>, window_params = [{transform_indices = @transform_0, window_bounds = array<i64: 32, 256>}, {pipeline_mode = #tpu.pipeline_mode<synchronous>, transform_indices = @transform_1, window_bounds = array<i64: 1, 256>}, {pipeline_mode = #tpu.pipeline_mode<synchronous>, transform_indices = @transform_2, window_bounds = array<i64: 1, 256>}]} {
    %c0_i32 = arith.constant 0 : i32
    %0 = arith.cmpi eq, %arg0, %c0_i32 : i32
    %1 = arith.extui %0 : i1 to i32
    %c0_i32_0 = arith.constant 0 : i32
    %2 = arith.cmpi ne, %1, %c0_i32_0 : i32
    scf.if %2 {
      %cst_11 = arith.constant 0.000000e+00 : f32
      %15 = vector.broadcast %cst_11 : f32 to vector<1x256xf32>
      %c0_12 = arith.constant 0 : index
      %c0_13 = arith.constant 0 : index
      %16 = vector.load %arg2[%c0_12, %c0_13] : memref<1x256xf32, #tpu.memory_space<vmem>>, vector<1x256xf32>
      tpu.vector_store %arg2[%c0_12, %c0_13], %15 {strides = array<i32>} : memref<1x256xf32, #tpu.memory_space<vmem>>, vector<1x256xf32>,
      %cst_14 = arith.constant 0.000000e+00 : f32
      %17 = vector.broadcast %cst_14 : f32 to vector<1x256xf32>
      %c0_15 = arith.constant 0 : index
      %c0_16 = arith.constant 0 : index
      %18 = vector.load %arg3[%c0_15, %c0_16] : memref<1x256xf32, #tpu.memory_space<vmem>>, vector<1x256xf32>
      tpu.vector_store %arg3[%c0_15, %c0_16], %17 {strides = array<i32>} : memref<1x256xf32, #tpu.memory_space<vmem>>, vector<1x256xf32>,
    } else {
    }
    %c0 = arith.constant 0 : index
    %c0_1 = arith.constant 0 : index
    %3 = vector.load %arg1[%c0, %c0_1] : memref<32x256xf32, #tpu.memory_space<vmem>>, vector<32x256xf32>
    %c0_2 = arith.constant 0 : index
    %c0_3 = arith.constant 0 : index
    %4 = vector.load %arg2[%c0_2, %c0_3] : memref<1x256xf32, #tpu.memory_space<vmem>>, vector<1x256xf32>
    %cst = arith.constant dense<0.000000e+00> : vector<256xf32>
    %5 = vector.multi_reduction <add>, %3, %cst [0] : vector<32x256xf32> to vector<256xf32>
    %6 = vector.shape_cast %5 : vector<256xf32> to vector<1x256xf32>
    %7 = arith.addf %4, %6 : vector<1x256xf32>
    %c0_4 = arith.constant 0 : index
    %c0_5 = arith.constant 0 : index
    %8 = vector.load %arg2[%c0_4, %c0_5] : memref<1x256xf32, #tpu.memory_space<vmem>>, vector<1x256xf32>
    tpu.vector_store %arg2[%c0_4, %c0_5], %7 {strides = array<i32>} : memref<1x256xf32, #tpu.memory_space<vmem>>, vector<1x256xf32>,
    %c0_6 = arith.constant 0 : index
    %c0_7 = arith.constant 0 : index
    %9 = vector.load %arg3[%c0_6, %c0_7] : memref<1x256xf32, #tpu.memory_space<vmem>>, vector<1x256xf32>
    %10 = arith.mulf %3, %3 : vector<32x256xf32>
    %cst_8 = arith.constant dense<0.000000e+00> : vector<256xf32>
    %11 = vector.multi_reduction <add>, %10, %cst_8 [0] : vector<32x256xf32> to vector<256xf32>
    %12 = vector.shape_cast %11 : vector<256xf32> to vector<1x256xf32>
    %13 = arith.addf %9, %12 : vector<1x256xf32>
    %c0_9 = arith.constant 0 : index
    %c0_10 = arith.constant 0 : index
    %14 = vector.load %arg3[%c0_9, %c0_10] : memref<1x256xf32, #tpu.memory_space<vmem>>, vector<1x256xf32>
    tpu.vector_store %arg3[%c0_9, %c0_10], %13 {strides = array<i32>} : memref<1x256xf32, #tpu.memory_space<vmem>>, vector<1x256xf32>,
    return
  }
  func.func @transform_0(%arg0: i32) -> (i32, i32) {
    %c0_i32 = arith.constant 0 : i32
    %c0_i32_0 = arith.constant 0 : i32
    return %arg0, %c0_i32 : i32, i32
  }
  func.func @transform_1(%arg0: i32) -> (i32, i32) {
    %c0_i32 = arith.constant 0 : i32
    %c0_i32_0 = arith.constant 0 : i32
    %c0_i32_1 = arith.constant 0 : i32
    return %c0_i32, %c0_i32_0 : i32, i32
  }
  func.func @transform_2(%arg0: i32) -> (i32, i32) {
    %c0_i32 = arith.constant 0 : i32
    %c0_i32_0 = arith.constant 0 : i32
    %c0_i32_1 = arith.constant 0 : i32
    return %c0_i32, %c0_i32_0 : i32, i32
  }
}

module attributes {stable_mosaic.version = 11 : i64} {
  func.func @_scale_shift_act_kernel(%arg0: i32, %arg1: memref<32x256xf32, #tpu.memory_space<vmem>>, %arg2: memref<1x256xf32, #tpu.memory_space<vmem>>, %arg3: memref<1x256xf32, #tpu.memory_space<vmem>>, %arg4: memref<32x256xbf16, #tpu.memory_space<vmem>>) attributes {dimension_semantics = [#tpu.dimension_semantics<parallel>], iteration_bounds = array<i64: 1>, scalar_prefetch = 0 : i64, scratch_operands = 0 : i64, tpu.core_type = #tpu.core_type<tc>, window_params = [{transform_indices = @transform_0, window_bounds = array<i64: 32, 256>}, {pipeline_mode = #tpu.pipeline_mode<synchronous>, transform_indices = @transform_1, window_bounds = array<i64: 1, 256>}, {pipeline_mode = #tpu.pipeline_mode<synchronous>, transform_indices = @transform_2, window_bounds = array<i64: 1, 256>}, {transform_indices = @transform_3, window_bounds = array<i64: 32, 256>}]} {
    %c0 = arith.constant 0 : index
    %c0_0 = arith.constant 0 : index
    %0 = vector.load %arg1[%c0, %c0_0] : memref<32x256xf32, #tpu.memory_space<vmem>>, vector<32x256xf32>
    %c0_1 = arith.constant 0 : index
    %c0_2 = arith.constant 0 : index
    %1 = vector.load %arg2[%c0_1, %c0_2] : memref<1x256xf32, #tpu.memory_space<vmem>>, vector<1x256xf32>
    %2 = vector.broadcast %1 : vector<1x256xf32> to vector<32x256xf32>
    %3 = arith.mulf %0, %2 : vector<32x256xf32>
    %c0_3 = arith.constant 0 : index
    %c0_4 = arith.constant 0 : index
    %4 = vector.load %arg3[%c0_3, %c0_4] : memref<1x256xf32, #tpu.memory_space<vmem>>, vector<1x256xf32>
    %5 = vector.broadcast %4 : vector<1x256xf32> to vector<32x256xf32>
    %6 = arith.addf %3, %5 : vector<32x256xf32>
    %cst = arith.constant 0.000000e+00 : f32
    %7 = vector.broadcast %cst : f32 to vector<32x256xf32>
    %8 = arith.cmpf oge, %6, %7 : vector<32x256xf32>
    %cst_5 = arith.constant 1.000000e+00 : f32
    %9 = vector.broadcast %cst_5 : f32 to vector<32x256xf32>
    %10 = arith.mulf %9, %6 : vector<32x256xf32>
    %11 = arith.select %8, %6, %10 : vector<32x256xi1>, vector<32x256xf32>
    %12 = arith.truncf %11 : vector<32x256xf32> to vector<32x256xbf16>
    %c0_6 = arith.constant 0 : index
    %c0_7 = arith.constant 0 : index
    %13 = vector.load %arg4[%c0_6, %c0_7] : memref<32x256xbf16, #tpu.memory_space<vmem>>, vector<32x256xbf16>
    tpu.vector_store %arg4[%c0_6, %c0_7], %12 {strides = array<i32>} : memref<32x256xbf16, #tpu.memory_space<vmem>>, vector<32x256xbf16>,
    return
  }
  func.func @transform_0(%arg0: i32) -> (i32, i32) {
    %c0_i32 = arith.constant 0 : i32
    %c0_i32_0 = arith.constant 0 : i32
    return %arg0, %c0_i32 : i32, i32
  }
  func.func @transform_1(%arg0: i32) -> (i32, i32) {
    %c0_i32 = arith.constant 0 : i32
    %c0_i32_0 = arith.constant 0 : i32
    %c0_i32_1 = arith.constant 0 : i32
    return %c0_i32, %c0_i32_0 : i32, i32
  }
  func.func @transform_2(%arg0: i32) -> (i32, i32) {
    %c0_i32 = arith.constant 0 : i32
    %c0_i32_0 = arith.constant 0 : i32
    %c0_i32_1 = arith.constant 0 : i32
    return %c0_i32, %c0_i32_0 : i32, i32
  }
  func.func @transform_3(%arg0: i32) -> (i32, i32) {
    %c0_i32 = arith.constant 0 : i32
    %c0_i32_0 = arith.constant 0 : i32
    return %arg0, %c0_i32 : i32, i32
  }
}

module attributes {stable_mosaic.version = 11 : i64} {
  func.func @_bn_stats_kernel(%arg0: i32, %arg1: memref<16x512xf32, #tpu.memory_space<vmem>>, %arg2: memref<1x512xf32, #tpu.memory_space<vmem>>, %arg3: memref<1x512xf32, #tpu.memory_space<vmem>>) attributes {dimension_semantics = [#tpu.dimension_semantics<arbitrary>], iteration_bounds = array<i64: 1>, scalar_prefetch = 0 : i64, scratch_operands = 0 : i64, tpu.core_type = #tpu.core_type<tc>, window_params = [{transform_indices = @transform_0, window_bounds = array<i64: 16, 512>}, {pipeline_mode = #tpu.pipeline_mode<synchronous>, transform_indices = @transform_1, window_bounds = array<i64: 1, 512>}, {pipeline_mode = #tpu.pipeline_mode<synchronous>, transform_indices = @transform_2, window_bounds = array<i64: 1, 512>}]} {
    %c0_i32 = arith.constant 0 : i32
    %0 = arith.cmpi eq, %arg0, %c0_i32 : i32
    %1 = arith.extui %0 : i1 to i32
    %c0_i32_0 = arith.constant 0 : i32
    %2 = arith.cmpi ne, %1, %c0_i32_0 : i32
    scf.if %2 {
      %cst_11 = arith.constant 0.000000e+00 : f32
      %15 = vector.broadcast %cst_11 : f32 to vector<1x512xf32>
      %c0_12 = arith.constant 0 : index
      %c0_13 = arith.constant 0 : index
      %16 = vector.load %arg2[%c0_12, %c0_13] : memref<1x512xf32, #tpu.memory_space<vmem>>, vector<1x512xf32>
      tpu.vector_store %arg2[%c0_12, %c0_13], %15 {strides = array<i32>} : memref<1x512xf32, #tpu.memory_space<vmem>>, vector<1x512xf32>,
      %cst_14 = arith.constant 0.000000e+00 : f32
      %17 = vector.broadcast %cst_14 : f32 to vector<1x512xf32>
      %c0_15 = arith.constant 0 : index
      %c0_16 = arith.constant 0 : index
      %18 = vector.load %arg3[%c0_15, %c0_16] : memref<1x512xf32, #tpu.memory_space<vmem>>, vector<1x512xf32>
      tpu.vector_store %arg3[%c0_15, %c0_16], %17 {strides = array<i32>} : memref<1x512xf32, #tpu.memory_space<vmem>>, vector<1x512xf32>,
    } else {
    }
    %c0 = arith.constant 0 : index
    %c0_1 = arith.constant 0 : index
    %3 = vector.load %arg1[%c0, %c0_1] : memref<16x512xf32, #tpu.memory_space<vmem>>, vector<16x512xf32>
    %c0_2 = arith.constant 0 : index
    %c0_3 = arith.constant 0 : index
    %4 = vector.load %arg2[%c0_2, %c0_3] : memref<1x512xf32, #tpu.memory_space<vmem>>, vector<1x512xf32>
    %cst = arith.constant dense<0.000000e+00> : vector<512xf32>
    %5 = vector.multi_reduction <add>, %3, %cst [0] : vector<16x512xf32> to vector<512xf32>
    %6 = vector.shape_cast %5 : vector<512xf32> to vector<1x512xf32>
    %7 = arith.addf %4, %6 : vector<1x512xf32>
    %c0_4 = arith.constant 0 : index
    %c0_5 = arith.constant 0 : index
    %8 = vector.load %arg2[%c0_4, %c0_5] : memref<1x512xf32, #tpu.memory_space<vmem>>, vector<1x512xf32>
    tpu.vector_store %arg2[%c0_4, %c0_5], %7 {strides = array<i32>} : memref<1x512xf32, #tpu.memory_space<vmem>>, vector<1x512xf32>,
    %c0_6 = arith.constant 0 : index
    %c0_7 = arith.constant 0 : index
    %9 = vector.load %arg3[%c0_6, %c0_7] : memref<1x512xf32, #tpu.memory_space<vmem>>, vector<1x512xf32>
    %10 = arith.mulf %3, %3 : vector<16x512xf32>
    %cst_8 = arith.constant dense<0.000000e+00> : vector<512xf32>
    %11 = vector.multi_reduction <add>, %10, %cst_8 [0] : vector<16x512xf32> to vector<512xf32>
    %12 = vector.shape_cast %11 : vector<512xf32> to vector<1x512xf32>
    %13 = arith.addf %9, %12 : vector<1x512xf32>
    %c0_9 = arith.constant 0 : index
    %c0_10 = arith.constant 0 : index
    %14 = vector.load %arg3[%c0_9, %c0_10] : memref<1x512xf32, #tpu.memory_space<vmem>>, vector<1x512xf32>
    tpu.vector_store %arg3[%c0_9, %c0_10], %13 {strides = array<i32>} : memref<1x512xf32, #tpu.memory_space<vmem>>, vector<1x512xf32>,
    return
  }
  func.func @transform_0(%arg0: i32) -> (i32, i32) {
    %c0_i32 = arith.constant 0 : i32
    %c0_i32_0 = arith.constant 0 : i32
    return %arg0, %c0_i32 : i32, i32
  }
  func.func @transform_1(%arg0: i32) -> (i32, i32) {
    %c0_i32 = arith.constant 0 : i32
    %c0_i32_0 = arith.constant 0 : i32
    %c0_i32_1 = arith.constant 0 : i32
    return %c0_i32, %c0_i32_0 : i32, i32
  }
  func.func @transform_2(%arg0: i32) -> (i32, i32) {
    %c0_i32 = arith.constant 0 : i32
    %c0_i32_0 = arith.constant 0 : i32
    %c0_i32_1 = arith.constant 0 : i32
    return %c0_i32, %c0_i32_0 : i32, i32
  }
}

module attributes {stable_mosaic.version = 11 : i64} {
  func.func @_gemm_kernel(%arg0: i32, %arg1: i32, %arg2: i32, %arg3: memref<16x512xbf16, #tpu.memory_space<vmem>>, %arg4: memref<512x256xbf16, #tpu.memory_space<vmem>>, %arg5: memref<16x256xf32, #tpu.memory_space<vmem>>, %arg6: memref<16x256xf32, #tpu.memory_space<vmem>>) attributes {dimension_semantics = [#tpu.dimension_semantics<parallel>, #tpu.dimension_semantics<parallel>, #tpu.dimension_semantics<arbitrary>], iteration_bounds = array<i64: 1, 2, 8>, scalar_prefetch = 0 : i64, scratch_operands = 1 : i64, tpu.core_type = #tpu.core_type<tc>, window_params = [{transform_indices = @transform_0, window_bounds = array<i64: 16, 512>}, {transform_indices = @transform_1, window_bounds = array<i64: 512, 256>}, {transform_indices = @transform_2, window_bounds = array<i64: 16, 256>}]} {
    %c0_i32 = arith.constant 0 : i32
    %0 = arith.cmpi eq, %arg2, %c0_i32 : i32
    %1 = arith.extui %0 : i1 to i32
    %c0_i32_0 = arith.constant 0 : i32
    %2 = arith.cmpi ne, %1, %c0_i32_0 : i32
    scf.if %2 {
      %cst_9 = arith.constant 0.000000e+00 : f32
      %12 = vector.broadcast %cst_9 : f32 to vector<16x256xf32>
      %c0_10 = arith.constant 0 : index
      %c0_11 = arith.constant 0 : index
      %13 = vector.load %arg6[%c0_10, %c0_11] : memref<16x256xf32, #tpu.memory_space<vmem>>, vector<16x256xf32>
      tpu.vector_store %arg6[%c0_10, %c0_11], %12 {strides = array<i32>} : memref<16x256xf32, #tpu.memory_space<vmem>>, vector<16x256xf32>,
    } else {
    }
    %c0 = arith.constant 0 : index
    %c0_1 = arith.constant 0 : index
    %3 = vector.load %arg6[%c0, %c0_1] : memref<16x256xf32, #tpu.memory_space<vmem>>, vector<16x256xf32>
    %c0_2 = arith.constant 0 : index
    %c0_3 = arith.constant 0 : index
    %4 = vector.load %arg3[%c0_2, %c0_3] : memref<16x512xbf16, #tpu.memory_space<vmem>>, vector<16x512xbf16>
    %c0_4 = arith.constant 0 : index
    %c0_5 = arith.constant 0 : index
    %5 = vector.load %arg4[%c0_4, %c0_5] : memref<512x256xbf16, #tpu.memory_space<vmem>>, vector<512x256xbf16>
    %cst = arith.constant dense<0.000000e+00> : vector<16x256xf32>
    %6 = tpu.matmul %4, %5, %cst {dimension_numbers = #tpu.dot_dimension_numbers<[1], [0], [0], [1], [0, 0, 1, 1], [], []>} : vector<16x512xbf16>, vector<512x256xbf16>, vector<16x256xf32> -> vector<16x256xf32>
    %7 = arith.addf %3, %6 : vector<16x256xf32>
    %c0_6 = arith.constant 0 : index
    %c0_7 = arith.constant 0 : index
    %8 = vector.load %arg6[%c0_6, %c0_7] : memref<16x256xf32, #tpu.memory_space<vmem>>, vector<16x256xf32>
    tpu.vector_store %arg6[%c0_6, %c0_7], %7 {strides = array<i32>} : memref<16x256xf32, #tpu.memory_space<vmem>>, vector<16x256xf32>,
    %c7_i32 = arith.constant 7 : i32
    %9 = arith.cmpi eq, %arg2, %c7_i32 : i32
    %10 = arith.extui %9 : i1 to i32
    %c0_i32_8 = arith.constant 0 : i32
    %11 = arith.cmpi ne, %10, %c0_i32_8 : i32
    scf.if %11 {
      %c0_9 = arith.constant 0 : index
      %c0_10 = arith.constant 0 : index
      %12 = vector.load %arg6[%c0_9, %c0_10] : memref<16x256xf32, #tpu.memory_space<vmem>>, vector<16x256xf32>
      %c0_11 = arith.constant 0 : index
      %c0_12 = arith.constant 0 : index
      %13 = vector.load %arg5[%c0_11, %c0_12] : memref<16x256xf32, #tpu.memory_space<vmem>>, vector<16x256xf32>
      tpu.vector_store %arg5[%c0_11, %c0_12], %12 {strides = array<i32>} : memref<16x256xf32, #tpu.memory_space<vmem>>, vector<16x256xf32>,
    } else {
    }
    return
  }
  func.func @transform_0(%arg0: i32, %arg1: i32, %arg2: i32) -> (i32, i32) {
    %c0_i32 = arith.constant 0 : i32
    return %arg0, %arg2 : i32, i32
  }
  func.func @transform_1(%arg0: i32, %arg1: i32, %arg2: i32) -> (i32, i32) {
    %c0_i32 = arith.constant 0 : i32
    return %arg2, %arg1 : i32, i32
  }
  func.func @transform_2(%arg0: i32, %arg1: i32, %arg2: i32) -> (i32, i32) {
    %c0_i32 = arith.constant 0 : i32
    return %arg0, %arg1 : i32, i32
  }
}

module attributes {stable_mosaic.version = 11 : i64} {
  func.func @_scale_shift_act_kernel(%arg0: i32, %arg1: memref<16x512xf32, #tpu.memory_space<vmem>>, %arg2: memref<1x512xf32, #tpu.memory_space<vmem>>, %arg3: memref<1x512xf32, #tpu.memory_space<vmem>>, %arg4: memref<16x512xbf16, #tpu.memory_space<vmem>>) attributes {dimension_semantics = [#tpu.dimension_semantics<parallel>], iteration_bounds = array<i64: 1>, scalar_prefetch = 0 : i64, scratch_operands = 0 : i64, tpu.core_type = #tpu.core_type<tc>, window_params = [{transform_indices = @transform_0, window_bounds = array<i64: 16, 512>}, {pipeline_mode = #tpu.pipeline_mode<synchronous>, transform_indices = @transform_1, window_bounds = array<i64: 1, 512>}, {pipeline_mode = #tpu.pipeline_mode<synchronous>, transform_indices = @transform_2, window_bounds = array<i64: 1, 512>}, {transform_indices = @transform_3, window_bounds = array<i64: 16, 512>}]} {
    %c0 = arith.constant 0 : index
    %c0_0 = arith.constant 0 : index
    %0 = vector.load %arg1[%c0, %c0_0] : memref<16x512xf32, #tpu.memory_space<vmem>>, vector<16x512xf32>
    %c0_1 = arith.constant 0 : index
    %c0_2 = arith.constant 0 : index
    %1 = vector.load %arg2[%c0_1, %c0_2] : memref<1x512xf32, #tpu.memory_space<vmem>>, vector<1x512xf32>
    %2 = vector.broadcast %1 : vector<1x512xf32> to vector<16x512xf32>
    %3 = arith.mulf %0, %2 : vector<16x512xf32>
    %c0_3 = arith.constant 0 : index
    %c0_4 = arith.constant 0 : index
    %4 = vector.load %arg3[%c0_3, %c0_4] : memref<1x512xf32, #tpu.memory_space<vmem>>, vector<1x512xf32>
    %5 = vector.broadcast %4 : vector<1x512xf32> to vector<16x512xf32>
    %6 = arith.addf %3, %5 : vector<16x512xf32>
    %cst = arith.constant 0.000000e+00 : f32
    %7 = vector.broadcast %cst : f32 to vector<16x512xf32>
    %8 = arith.cmpf oge, %6, %7 : vector<16x512xf32>
    %cst_5 = arith.constant 1.000000e+00 : f32
    %9 = vector.broadcast %cst_5 : f32 to vector<16x512xf32>
    %10 = arith.mulf %9, %6 : vector<16x512xf32>
    %11 = arith.select %8, %6, %10 : vector<16x512xi1>, vector<16x512xf32>
    %12 = arith.truncf %11 : vector<16x512xf32> to vector<16x512xbf16>
    %c0_6 = arith.constant 0 : index
    %c0_7 = arith.constant 0 : index
    %13 = vector.load %arg4[%c0_6, %c0_7] : memref<16x512xbf16, #tpu.memory_space<vmem>>, vector<16x512xbf16>
    tpu.vector_store %arg4[%c0_6, %c0_7], %12 {strides = array<i32>} : memref<16x512xbf16, #tpu.memory_space<vmem>>, vector<16x512xbf16>,
    return
  }
  func.func @transform_0(%arg0: i32) -> (i32, i32) {
    %c0_i32 = arith.constant 0 : i32
    %c0_i32_0 = arith.constant 0 : i32
    return %arg0, %c0_i32 : i32, i32
  }
  func.func @transform_1(%arg0: i32) -> (i32, i32) {
    %c0_i32 = arith.constant 0 : i32
    %c0_i32_0 = arith.constant 0 : i32
    %c0_i32_1 = arith.constant 0 : i32
    return %c0_i32, %c0_i32_0 : i32, i32
  }
  func.func @transform_2(%arg0: i32) -> (i32, i32) {
    %c0_i32 = arith.constant 0 : i32
    %c0_i32_0 = arith.constant 0 : i32
    %c0_i32_1 = arith.constant 0 : i32
    return %c0_i32, %c0_i32_0 : i32, i32
  }
  func.func @transform_3(%arg0: i32) -> (i32, i32) {
    %c0_i32 = arith.constant 0 : i32
    %c0_i32_0 = arith.constant 0 : i32
    return %arg0, %c0_i32 : i32, i32
  }
}

module attributes {stable_mosaic.version = 11 : i64} {
  func.func @_gemm_kernel(%arg0: i32, %arg1: i32, %arg2: i32, %arg3: memref<16x512xbf16, #tpu.memory_space<vmem>>, %arg4: memref<512x256xbf16, #tpu.memory_space<vmem>>, %arg5: memref<16x256xf32, #tpu.memory_space<vmem>>, %arg6: memref<16x256xf32, #tpu.memory_space<vmem>>) attributes {dimension_semantics = [#tpu.dimension_semantics<parallel>, #tpu.dimension_semantics<parallel>, #tpu.dimension_semantics<arbitrary>], iteration_bounds = array<i64: 1, 2, 16>, scalar_prefetch = 0 : i64, scratch_operands = 1 : i64, tpu.core_type = #tpu.core_type<tc>, window_params = [{transform_indices = @transform_0, window_bounds = array<i64: 16, 512>}, {transform_indices = @transform_1, window_bounds = array<i64: 512, 256>}, {transform_indices = @transform_2, window_bounds = array<i64: 16, 256>}]} {
    %c0_i32 = arith.constant 0 : i32
    %0 = arith.cmpi eq, %arg2, %c0_i32 : i32
    %1 = arith.extui %0 : i1 to i32
    %c0_i32_0 = arith.constant 0 : i32
    %2 = arith.cmpi ne, %1, %c0_i32_0 : i32
    scf.if %2 {
      %cst_9 = arith.constant 0.000000e+00 : f32
      %12 = vector.broadcast %cst_9 : f32 to vector<16x256xf32>
      %c0_10 = arith.constant 0 : index
      %c0_11 = arith.constant 0 : index
      %13 = vector.load %arg6[%c0_10, %c0_11] : memref<16x256xf32, #tpu.memory_space<vmem>>, vector<16x256xf32>
      tpu.vector_store %arg6[%c0_10, %c0_11], %12 {strides = array<i32>} : memref<16x256xf32, #tpu.memory_space<vmem>>, vector<16x256xf32>,
    } else {
    }
    %c0 = arith.constant 0 : index
    %c0_1 = arith.constant 0 : index
    %3 = vector.load %arg6[%c0, %c0_1] : memref<16x256xf32, #tpu.memory_space<vmem>>, vector<16x256xf32>
    %c0_2 = arith.constant 0 : index
    %c0_3 = arith.constant 0 : index
    %4 = vector.load %arg3[%c0_2, %c0_3] : memref<16x512xbf16, #tpu.memory_space<vmem>>, vector<16x512xbf16>
    %c0_4 = arith.constant 0 : index
    %c0_5 = arith.constant 0 : index
    %5 = vector.load %arg4[%c0_4, %c0_5] : memref<512x256xbf16, #tpu.memory_space<vmem>>, vector<512x256xbf16>
    %cst = arith.constant dense<0.000000e+00> : vector<16x256xf32>
    %6 = tpu.matmul %4, %5, %cst {dimension_numbers = #tpu.dot_dimension_numbers<[1], [0], [0], [1], [0, 0, 1, 1], [], []>} : vector<16x512xbf16>, vector<512x256xbf16>, vector<16x256xf32> -> vector<16x256xf32>
    %7 = arith.addf %3, %6 : vector<16x256xf32>
    %c0_6 = arith.constant 0 : index
    %c0_7 = arith.constant 0 : index
    %8 = vector.load %arg6[%c0_6, %c0_7] : memref<16x256xf32, #tpu.memory_space<vmem>>, vector<16x256xf32>
    tpu.vector_store %arg6[%c0_6, %c0_7], %7 {strides = array<i32>} : memref<16x256xf32, #tpu.memory_space<vmem>>, vector<16x256xf32>,
    %c15_i32 = arith.constant 15 : i32
    %9 = arith.cmpi eq, %arg2, %c15_i32 : i32
    %10 = arith.extui %9 : i1 to i32
    %c0_i32_8 = arith.constant 0 : i32
    %11 = arith.cmpi ne, %10, %c0_i32_8 : i32
    scf.if %11 {
      %c0_9 = arith.constant 0 : index
      %c0_10 = arith.constant 0 : index
      %12 = vector.load %arg6[%c0_9, %c0_10] : memref<16x256xf32, #tpu.memory_space<vmem>>, vector<16x256xf32>
      %c0_11 = arith.constant 0 : index
      %c0_12 = arith.constant 0 : index
      %13 = vector.load %arg5[%c0_11, %c0_12] : memref<16x256xf32, #tpu.memory_space<vmem>>, vector<16x256xf32>
      tpu.vector_store %arg5[%c0_11, %c0_12], %12 {strides = array<i32>} : memref<16x256xf32, #tpu.memory_space<vmem>>, vector<16x256xf32>,
    } else {
    }
    return
  }
  func.func @transform_0(%arg0: i32, %arg1: i32, %arg2: i32) -> (i32, i32) {
    %c0_i32 = arith.constant 0 : i32
    return %arg0, %arg2 : i32, i32
  }
  func.func @transform_1(%arg0: i32, %arg1: i32, %arg2: i32) -> (i32, i32) {
    %c0_i32 = arith.constant 0 : i32
    return %arg2, %arg1 : i32, i32
  }
  func.func @transform_2(%arg0: i32, %arg1: i32, %arg2: i32) -> (i32, i32) {
    %c0_i32 = arith.constant 0 : i32
    return %arg0, %arg1 : i32, i32
  }
}

module attributes {stable_mosaic.version = 11 : i64} {
  func.func @_gemm_bias_kernel(%arg0: i32, %arg1: i32, %arg2: i32, %arg3: memref<16x512xbf16, #tpu.memory_space<vmem>>, %arg4: memref<512x256xbf16, #tpu.memory_space<vmem>>, %arg5: memref<1x256xf32, #tpu.memory_space<vmem>>, %arg6: memref<16x256xbf16, #tpu.memory_space<vmem>>, %arg7: memref<16x256xf32, #tpu.memory_space<vmem>>) attributes {dimension_semantics = [#tpu.dimension_semantics<parallel>, #tpu.dimension_semantics<parallel>, #tpu.dimension_semantics<arbitrary>], iteration_bounds = array<i64: 1, 2, 4>, scalar_prefetch = 0 : i64, scratch_operands = 1 : i64, tpu.core_type = #tpu.core_type<tc>, window_params = [{transform_indices = @transform_0, window_bounds = array<i64: 16, 512>}, {transform_indices = @transform_1, window_bounds = array<i64: 512, 256>}, {transform_indices = @transform_2, window_bounds = array<i64: 1, 256>}, {transform_indices = @transform_3, window_bounds = array<i64: 16, 256>}]} {
    %c0_i32 = arith.constant 0 : i32
    %0 = arith.cmpi eq, %arg2, %c0_i32 : i32
    %1 = arith.extui %0 : i1 to i32
    %c0_i32_0 = arith.constant 0 : i32
    %2 = arith.cmpi ne, %1, %c0_i32_0 : i32
    scf.if %2 {
      %cst_9 = arith.constant 0.000000e+00 : f32
      %12 = vector.broadcast %cst_9 : f32 to vector<16x256xf32>
      %c0_10 = arith.constant 0 : index
      %c0_11 = arith.constant 0 : index
      %13 = vector.load %arg7[%c0_10, %c0_11] : memref<16x256xf32, #tpu.memory_space<vmem>>, vector<16x256xf32>
      tpu.vector_store %arg7[%c0_10, %c0_11], %12 {strides = array<i32>} : memref<16x256xf32, #tpu.memory_space<vmem>>, vector<16x256xf32>,
    } else {
    }
    %c0 = arith.constant 0 : index
    %c0_1 = arith.constant 0 : index
    %3 = vector.load %arg7[%c0, %c0_1] : memref<16x256xf32, #tpu.memory_space<vmem>>, vector<16x256xf32>
    %c0_2 = arith.constant 0 : index
    %c0_3 = arith.constant 0 : index
    %4 = vector.load %arg3[%c0_2, %c0_3] : memref<16x512xbf16, #tpu.memory_space<vmem>>, vector<16x512xbf16>
    %c0_4 = arith.constant 0 : index
    %c0_5 = arith.constant 0 : index
    %5 = vector.load %arg4[%c0_4, %c0_5] : memref<512x256xbf16, #tpu.memory_space<vmem>>, vector<512x256xbf16>
    %cst = arith.constant dense<0.000000e+00> : vector<16x256xf32>
    %6 = tpu.matmul %4, %5, %cst {dimension_numbers = #tpu.dot_dimension_numbers<[1], [0], [0], [1], [0, 0, 1, 1], [], []>} : vector<16x512xbf16>, vector<512x256xbf16>, vector<16x256xf32> -> vector<16x256xf32>
    %7 = arith.addf %3, %6 : vector<16x256xf32>
    %c0_6 = arith.constant 0 : index
    %c0_7 = arith.constant 0 : index
    %8 = vector.load %arg7[%c0_6, %c0_7] : memref<16x256xf32, #tpu.memory_space<vmem>>, vector<16x256xf32>
    tpu.vector_store %arg7[%c0_6, %c0_7], %7 {strides = array<i32>} : memref<16x256xf32, #tpu.memory_space<vmem>>, vector<16x256xf32>,
    %c3_i32 = arith.constant 3 : i32
    %9 = arith.cmpi eq, %arg2, %c3_i32 : i32
    %10 = arith.extui %9 : i1 to i32
    %c0_i32_8 = arith.constant 0 : i32
    %11 = arith.cmpi ne, %10, %c0_i32_8 : i32
    scf.if %11 {
      %c0_9 = arith.constant 0 : index
      %c0_10 = arith.constant 0 : index
      %12 = vector.load %arg7[%c0_9, %c0_10] : memref<16x256xf32, #tpu.memory_space<vmem>>, vector<16x256xf32>
      %c0_11 = arith.constant 0 : index
      %c0_12 = arith.constant 0 : index
      %13 = vector.load %arg5[%c0_11, %c0_12] : memref<1x256xf32, #tpu.memory_space<vmem>>, vector<1x256xf32>
      %14 = vector.broadcast %13 : vector<1x256xf32> to vector<16x256xf32>
      %15 = arith.addf %12, %14 : vector<16x256xf32>
      %cst_13 = arith.constant 0.000000e+00 : f32
      %16 = vector.broadcast %cst_13 : f32 to vector<16x256xf32>
      %17 = arith.cmpf oge, %15, %16 : vector<16x256xf32>
      %cst_14 = arith.constant 0.000000e+00 : f32
      %18 = vector.broadcast %cst_14 : f32 to vector<16x256xf32>
      %19 = arith.mulf %18, %15 : vector<16x256xf32>
      %20 = arith.select %17, %15, %19 : vector<16x256xi1>, vector<16x256xf32>
      %21 = arith.truncf %20 : vector<16x256xf32> to vector<16x256xbf16>
      %c0_15 = arith.constant 0 : index
      %c0_16 = arith.constant 0 : index
      %22 = vector.load %arg6[%c0_15, %c0_16] : memref<16x256xbf16, #tpu.memory_space<vmem>>, vector<16x256xbf16>
      tpu.vector_store %arg6[%c0_15, %c0_16], %21 {strides = array<i32>} : memref<16x256xbf16, #tpu.memory_space<vmem>>, vector<16x256xbf16>,
    } else {
    }
    return
  }
  func.func @transform_0(%arg0: i32, %arg1: i32, %arg2: i32) -> (i32, i32) {
    %c0_i32 = arith.constant 0 : i32
    return %arg0, %arg2 : i32, i32
  }
  func.func @transform_1(%arg0: i32, %arg1: i32, %arg2: i32) -> (i32, i32) {
    %c0_i32 = arith.constant 0 : i32
    return %arg2, %arg1 : i32, i32
  }
  func.func @transform_2(%arg0: i32, %arg1: i32, %arg2: i32) -> (i32, i32) {
    %c0_i32 = arith.constant 0 : i32
    %c0_i32_0 = arith.constant 0 : i32
    return %c0_i32, %arg1 : i32, i32
  }
  func.func @transform_3(%arg0: i32, %arg1: i32, %arg2: i32) -> (i32, i32) {
    %c0_i32 = arith.constant 0 : i32
    return %arg0, %arg1 : i32, i32
  }
}

module attributes {stable_mosaic.version = 11 : i64} {
  func.func @_gemm_kernel(%arg0: i32, %arg1: i32, %arg2: i32, %arg3: memref<16x512xbf16, #tpu.memory_space<vmem>>, %arg4: memref<512x256xbf16, #tpu.memory_space<vmem>>, %arg5: memref<16x256xf32, #tpu.memory_space<vmem>>, %arg6: memref<16x256xf32, #tpu.memory_space<vmem>>) attributes {dimension_semantics = [#tpu.dimension_semantics<parallel>, #tpu.dimension_semantics<parallel>, #tpu.dimension_semantics<arbitrary>], iteration_bounds = array<i64: 1, 1, 8>, scalar_prefetch = 0 : i64, scratch_operands = 1 : i64, tpu.core_type = #tpu.core_type<tc>, window_params = [{transform_indices = @transform_0, window_bounds = array<i64: 16, 512>}, {transform_indices = @transform_1, window_bounds = array<i64: 512, 256>}, {transform_indices = @transform_2, window_bounds = array<i64: 16, 256>}]} {
    %c0_i32 = arith.constant 0 : i32
    %0 = arith.cmpi eq, %arg2, %c0_i32 : i32
    %1 = arith.extui %0 : i1 to i32
    %c0_i32_0 = arith.constant 0 : i32
    %2 = arith.cmpi ne, %1, %c0_i32_0 : i32
    scf.if %2 {
      %cst_9 = arith.constant 0.000000e+00 : f32
      %12 = vector.broadcast %cst_9 : f32 to vector<16x256xf32>
      %c0_10 = arith.constant 0 : index
      %c0_11 = arith.constant 0 : index
      %13 = vector.load %arg6[%c0_10, %c0_11] : memref<16x256xf32, #tpu.memory_space<vmem>>, vector<16x256xf32>
      tpu.vector_store %arg6[%c0_10, %c0_11], %12 {strides = array<i32>} : memref<16x256xf32, #tpu.memory_space<vmem>>, vector<16x256xf32>,
    } else {
    }
    %c0 = arith.constant 0 : index
    %c0_1 = arith.constant 0 : index
    %3 = vector.load %arg6[%c0, %c0_1] : memref<16x256xf32, #tpu.memory_space<vmem>>, vector<16x256xf32>
    %c0_2 = arith.constant 0 : index
    %c0_3 = arith.constant 0 : index
    %4 = vector.load %arg3[%c0_2, %c0_3] : memref<16x512xbf16, #tpu.memory_space<vmem>>, vector<16x512xbf16>
    %c0_4 = arith.constant 0 : index
    %c0_5 = arith.constant 0 : index
    %5 = vector.load %arg4[%c0_4, %c0_5] : memref<512x256xbf16, #tpu.memory_space<vmem>>, vector<512x256xbf16>
    %cst = arith.constant dense<0.000000e+00> : vector<16x256xf32>
    %6 = tpu.matmul %4, %5, %cst {dimension_numbers = #tpu.dot_dimension_numbers<[1], [0], [0], [1], [0, 0, 1, 1], [], []>} : vector<16x512xbf16>, vector<512x256xbf16>, vector<16x256xf32> -> vector<16x256xf32>
    %7 = arith.addf %3, %6 : vector<16x256xf32>
    %c0_6 = arith.constant 0 : index
    %c0_7 = arith.constant 0 : index
    %8 = vector.load %arg6[%c0_6, %c0_7] : memref<16x256xf32, #tpu.memory_space<vmem>>, vector<16x256xf32>
    tpu.vector_store %arg6[%c0_6, %c0_7], %7 {strides = array<i32>} : memref<16x256xf32, #tpu.memory_space<vmem>>, vector<16x256xf32>,
    %c7_i32 = arith.constant 7 : i32
    %9 = arith.cmpi eq, %arg2, %c7_i32 : i32
    %10 = arith.extui %9 : i1 to i32
    %c0_i32_8 = arith.constant 0 : i32
    %11 = arith.cmpi ne, %10, %c0_i32_8 : i32
    scf.if %11 {
      %c0_9 = arith.constant 0 : index
      %c0_10 = arith.constant 0 : index
      %12 = vector.load %arg6[%c0_9, %c0_10] : memref<16x256xf32, #tpu.memory_space<vmem>>, vector<16x256xf32>
      %c0_11 = arith.constant 0 : index
      %c0_12 = arith.constant 0 : index
      %13 = vector.load %arg5[%c0_11, %c0_12] : memref<16x256xf32, #tpu.memory_space<vmem>>, vector<16x256xf32>
      tpu.vector_store %arg5[%c0_11, %c0_12], %12 {strides = array<i32>} : memref<16x256xf32, #tpu.memory_space<vmem>>, vector<16x256xf32>,
    } else {
    }
    return
  }
  func.func @transform_0(%arg0: i32, %arg1: i32, %arg2: i32) -> (i32, i32) {
    %c0_i32 = arith.constant 0 : i32
    return %arg0, %arg2 : i32, i32
  }
  func.func @transform_1(%arg0: i32, %arg1: i32, %arg2: i32) -> (i32, i32) {
    %c0_i32 = arith.constant 0 : i32
    return %arg2, %arg1 : i32, i32
  }
  func.func @transform_2(%arg0: i32, %arg1: i32, %arg2: i32) -> (i32, i32) {
    %c0_i32 = arith.constant 0 : i32
    return %arg0, %arg1 : i32, i32
  }
}

module attributes {stable_mosaic.version = 11 : i64} {
  func.func @_scale_shift_act_kernel(%arg0: i32, %arg1: memref<32x256xf32, #tpu.memory_space<vmem>>, %arg2: memref<1x256xf32, #tpu.memory_space<vmem>>, %arg3: memref<1x256xf32, #tpu.memory_space<vmem>>, %arg4: memref<32x256xbf16, #tpu.memory_space<vmem>>) attributes {dimension_semantics = [#tpu.dimension_semantics<parallel>], iteration_bounds = array<i64: 1>, scalar_prefetch = 0 : i64, scratch_operands = 0 : i64, tpu.core_type = #tpu.core_type<tc>, window_params = [{transform_indices = @transform_0, window_bounds = array<i64: 32, 256>}, {pipeline_mode = #tpu.pipeline_mode<synchronous>, transform_indices = @transform_1, window_bounds = array<i64: 1, 256>}, {pipeline_mode = #tpu.pipeline_mode<synchronous>, transform_indices = @transform_2, window_bounds = array<i64: 1, 256>}, {transform_indices = @transform_3, window_bounds = array<i64: 32, 256>}]} {
    %c0 = arith.constant 0 : index
    %c0_0 = arith.constant 0 : index
    %0 = vector.load %arg1[%c0, %c0_0] : memref<32x256xf32, #tpu.memory_space<vmem>>, vector<32x256xf32>
    %c0_1 = arith.constant 0 : index
    %c0_2 = arith.constant 0 : index
    %1 = vector.load %arg2[%c0_1, %c0_2] : memref<1x256xf32, #tpu.memory_space<vmem>>, vector<1x256xf32>
    %2 = vector.broadcast %1 : vector<1x256xf32> to vector<32x256xf32>
    %3 = arith.mulf %0, %2 : vector<32x256xf32>
    %c0_3 = arith.constant 0 : index
    %c0_4 = arith.constant 0 : index
    %4 = vector.load %arg3[%c0_3, %c0_4] : memref<1x256xf32, #tpu.memory_space<vmem>>, vector<1x256xf32>
    %5 = vector.broadcast %4 : vector<1x256xf32> to vector<32x256xf32>
    %6 = arith.addf %3, %5 : vector<32x256xf32>
    %cst = arith.constant 0.000000e+00 : f32
    %7 = vector.broadcast %cst : f32 to vector<32x256xf32>
    %8 = arith.cmpf oge, %6, %7 : vector<32x256xf32>
    %cst_5 = arith.constant 0.000000e+00 : f32
    %9 = vector.broadcast %cst_5 : f32 to vector<32x256xf32>
    %10 = arith.mulf %9, %6 : vector<32x256xf32>
    %11 = arith.select %8, %6, %10 : vector<32x256xi1>, vector<32x256xf32>
    %12 = arith.truncf %11 : vector<32x256xf32> to vector<32x256xbf16>
    %c0_6 = arith.constant 0 : index
    %c0_7 = arith.constant 0 : index
    %13 = vector.load %arg4[%c0_6, %c0_7] : memref<32x256xbf16, #tpu.memory_space<vmem>>, vector<32x256xbf16>
    tpu.vector_store %arg4[%c0_6, %c0_7], %12 {strides = array<i32>} : memref<32x256xbf16, #tpu.memory_space<vmem>>, vector<32x256xbf16>,
    return
  }
  func.func @transform_0(%arg0: i32) -> (i32, i32) {
    %c0_i32 = arith.constant 0 : i32
    %c0_i32_0 = arith.constant 0 : i32
    return %arg0, %c0_i32 : i32, i32
  }
  func.func @transform_1(%arg0: i32) -> (i32, i32) {
    %c0_i32 = arith.constant 0 : i32
    %c0_i32_0 = arith.constant 0 : i32
    %c0_i32_1 = arith.constant 0 : i32
    return %c0_i32, %c0_i32_0 : i32, i32
  }
  func.func @transform_2(%arg0: i32) -> (i32, i32) {
    %c0_i32 = arith.constant 0 : i32
    %c0_i32_0 = arith.constant 0 : i32
    %c0_i32_1 = arith.constant 0 : i32
    return %c0_i32, %c0_i32_0 : i32, i32
  }
  func.func @transform_3(%arg0: i32) -> (i32, i32) {
    %c0_i32 = arith.constant 0 : i32
    %c0_i32_0 = arith.constant 0 : i32
    return %arg0, %c0_i32 : i32, i32
  }
}

module attributes {stable_mosaic.version = 11 : i64} {
  func.func @_gemm_kernel(%arg0: i32, %arg1: i32, %arg2: i32, %arg3: memref<32x512xbf16, #tpu.memory_space<vmem>>, %arg4: memref<512x128xbf16, #tpu.memory_space<vmem>>, %arg5: memref<32x128xf32, #tpu.memory_space<vmem>>, %arg6: memref<32x128xf32, #tpu.memory_space<vmem>>) attributes {dimension_semantics = [#tpu.dimension_semantics<parallel>, #tpu.dimension_semantics<parallel>, #tpu.dimension_semantics<arbitrary>], iteration_bounds = array<i64: 1, 1, 4>, scalar_prefetch = 0 : i64, scratch_operands = 1 : i64, tpu.core_type = #tpu.core_type<tc>, window_params = [{transform_indices = @transform_0, window_bounds = array<i64: 32, 512>}, {transform_indices = @transform_1, window_bounds = array<i64: 512, 128>}, {transform_indices = @transform_2, window_bounds = array<i64: 32, 128>}]} {
    %c0_i32 = arith.constant 0 : i32
    %0 = arith.cmpi eq, %arg2, %c0_i32 : i32
    %1 = arith.extui %0 : i1 to i32
    %c0_i32_0 = arith.constant 0 : i32
    %2 = arith.cmpi ne, %1, %c0_i32_0 : i32
    scf.if %2 {
      %cst_9 = arith.constant 0.000000e+00 : f32
      %12 = vector.broadcast %cst_9 : f32 to vector<32x128xf32>
      %c0_10 = arith.constant 0 : index
      %c0_11 = arith.constant 0 : index
      %13 = vector.load %arg6[%c0_10, %c0_11] : memref<32x128xf32, #tpu.memory_space<vmem>>, vector<32x128xf32>
      tpu.vector_store %arg6[%c0_10, %c0_11], %12 {strides = array<i32>} : memref<32x128xf32, #tpu.memory_space<vmem>>, vector<32x128xf32>,
    } else {
    }
    %c0 = arith.constant 0 : index
    %c0_1 = arith.constant 0 : index
    %3 = vector.load %arg6[%c0, %c0_1] : memref<32x128xf32, #tpu.memory_space<vmem>>, vector<32x128xf32>
    %c0_2 = arith.constant 0 : index
    %c0_3 = arith.constant 0 : index
    %4 = vector.load %arg3[%c0_2, %c0_3] : memref<32x512xbf16, #tpu.memory_space<vmem>>, vector<32x512xbf16>
    %c0_4 = arith.constant 0 : index
    %c0_5 = arith.constant 0 : index
    %5 = vector.load %arg4[%c0_4, %c0_5] : memref<512x128xbf16, #tpu.memory_space<vmem>>, vector<512x128xbf16>
    %cst = arith.constant dense<0.000000e+00> : vector<32x128xf32>
    %6 = tpu.matmul %4, %5, %cst {dimension_numbers = #tpu.dot_dimension_numbers<[1], [0], [0], [1], [0, 0, 1, 1], [], []>} : vector<32x512xbf16>, vector<512x128xbf16>, vector<32x128xf32> -> vector<32x128xf32>
    %7 = arith.addf %3, %6 : vector<32x128xf32>
    %c0_6 = arith.constant 0 : index
    %c0_7 = arith.constant 0 : index
    %8 = vector.load %arg6[%c0_6, %c0_7] : memref<32x128xf32, #tpu.memory_space<vmem>>, vector<32x128xf32>
    tpu.vector_store %arg6[%c0_6, %c0_7], %7 {strides = array<i32>} : memref<32x128xf32, #tpu.memory_space<vmem>>, vector<32x128xf32>,
    %c3_i32 = arith.constant 3 : i32
    %9 = arith.cmpi eq, %arg2, %c3_i32 : i32
    %10 = arith.extui %9 : i1 to i32
    %c0_i32_8 = arith.constant 0 : i32
    %11 = arith.cmpi ne, %10, %c0_i32_8 : i32
    scf.if %11 {
      %c0_9 = arith.constant 0 : index
      %c0_10 = arith.constant 0 : index
      %12 = vector.load %arg6[%c0_9, %c0_10] : memref<32x128xf32, #tpu.memory_space<vmem>>, vector<32x128xf32>
      %c0_11 = arith.constant 0 : index
      %c0_12 = arith.constant 0 : index
      %13 = vector.load %arg5[%c0_11, %c0_12] : memref<32x128xf32, #tpu.memory_space<vmem>>, vector<32x128xf32>
      tpu.vector_store %arg5[%c0_11, %c0_12], %12 {strides = array<i32>} : memref<32x128xf32, #tpu.memory_space<vmem>>, vector<32x128xf32>,
    } else {
    }
    return
  }
  func.func @transform_0(%arg0: i32, %arg1: i32, %arg2: i32) -> (i32, i32) {
    %c0_i32 = arith.constant 0 : i32
    return %arg0, %arg2 : i32, i32
  }
  func.func @transform_1(%arg0: i32, %arg1: i32, %arg2: i32) -> (i32, i32) {
    %c0_i32 = arith.constant 0 : i32
    return %arg2, %arg1 : i32, i32
  }
  func.func @transform_2(%arg0: i32, %arg1: i32, %arg2: i32) -> (i32, i32) {
    %c0_i32 = arith.constant 0 : i32
    return %arg0, %arg1 : i32, i32
  }
}

module attributes {stable_mosaic.version = 11 : i64} {
  func.func @_bn_stats_kernel(%arg0: i32, %arg1: memref<128x128xf32, #tpu.memory_space<vmem>>, %arg2: memref<1x128xf32, #tpu.memory_space<vmem>>, %arg3: memref<1x128xf32, #tpu.memory_space<vmem>>) attributes {dimension_semantics = [#tpu.dimension_semantics<arbitrary>], iteration_bounds = array<i64: 1>, scalar_prefetch = 0 : i64, scratch_operands = 0 : i64, tpu.core_type = #tpu.core_type<tc>, window_params = [{transform_indices = @transform_0, window_bounds = array<i64: 128, 128>}, {pipeline_mode = #tpu.pipeline_mode<synchronous>, transform_indices = @transform_1, window_bounds = array<i64: 1, 128>}, {pipeline_mode = #tpu.pipeline_mode<synchronous>, transform_indices = @transform_2, window_bounds = array<i64: 1, 128>}]} {
    %c0_i32 = arith.constant 0 : i32
    %0 = arith.cmpi eq, %arg0, %c0_i32 : i32
    %1 = arith.extui %0 : i1 to i32
    %c0_i32_0 = arith.constant 0 : i32
    %2 = arith.cmpi ne, %1, %c0_i32_0 : i32
    scf.if %2 {
      %cst_11 = arith.constant 0.000000e+00 : f32
      %15 = vector.broadcast %cst_11 : f32 to vector<1x128xf32>
      %c0_12 = arith.constant 0 : index
      %c0_13 = arith.constant 0 : index
      %16 = vector.load %arg2[%c0_12, %c0_13] : memref<1x128xf32, #tpu.memory_space<vmem>>, vector<1x128xf32>
      tpu.vector_store %arg2[%c0_12, %c0_13], %15 {strides = array<i32>} : memref<1x128xf32, #tpu.memory_space<vmem>>, vector<1x128xf32>,
      %cst_14 = arith.constant 0.000000e+00 : f32
      %17 = vector.broadcast %cst_14 : f32 to vector<1x128xf32>
      %c0_15 = arith.constant 0 : index
      %c0_16 = arith.constant 0 : index
      %18 = vector.load %arg3[%c0_15, %c0_16] : memref<1x128xf32, #tpu.memory_space<vmem>>, vector<1x128xf32>
      tpu.vector_store %arg3[%c0_15, %c0_16], %17 {strides = array<i32>} : memref<1x128xf32, #tpu.memory_space<vmem>>, vector<1x128xf32>,
    } else {
    }
    %c0 = arith.constant 0 : index
    %c0_1 = arith.constant 0 : index
    %3 = vector.load %arg1[%c0, %c0_1] : memref<128x128xf32, #tpu.memory_space<vmem>>, vector<128x128xf32>
    %c0_2 = arith.constant 0 : index
    %c0_3 = arith.constant 0 : index
    %4 = vector.load %arg2[%c0_2, %c0_3] : memref<1x128xf32, #tpu.memory_space<vmem>>, vector<1x128xf32>
    %cst = arith.constant dense<0.000000e+00> : vector<128xf32>
    %5 = vector.multi_reduction <add>, %3, %cst [0] : vector<128x128xf32> to vector<128xf32>
    %6 = vector.shape_cast %5 : vector<128xf32> to vector<1x128xf32>
    %7 = arith.addf %4, %6 : vector<1x128xf32>
    %c0_4 = arith.constant 0 : index
    %c0_5 = arith.constant 0 : index
    %8 = vector.load %arg2[%c0_4, %c0_5] : memref<1x128xf32, #tpu.memory_space<vmem>>, vector<1x128xf32>
    tpu.vector_store %arg2[%c0_4, %c0_5], %7 {strides = array<i32>} : memref<1x128xf32, #tpu.memory_space<vmem>>, vector<1x128xf32>,
    %c0_6 = arith.constant 0 : index
    %c0_7 = arith.constant 0 : index
    %9 = vector.load %arg3[%c0_6, %c0_7] : memref<1x128xf32, #tpu.memory_space<vmem>>, vector<1x128xf32>
    %10 = arith.mulf %3, %3 : vector<128x128xf32>
    %cst_8 = arith.constant dense<0.000000e+00> : vector<128xf32>
    %11 = vector.multi_reduction <add>, %10, %cst_8 [0] : vector<128x128xf32> to vector<128xf32>
    %12 = vector.shape_cast %11 : vector<128xf32> to vector<1x128xf32>
    %13 = arith.addf %9, %12 : vector<1x128xf32>
    %c0_9 = arith.constant 0 : index
    %c0_10 = arith.constant 0 : index
    %14 = vector.load %arg3[%c0_9, %c0_10] : memref<1x128xf32, #tpu.memory_space<vmem>>, vector<1x128xf32>
    tpu.vector_store %arg3[%c0_9, %c0_10], %13 {strides = array<i32>} : memref<1x128xf32, #tpu.memory_space<vmem>>, vector<1x128xf32>,
    return
  }
  func.func @transform_0(%arg0: i32) -> (i32, i32) {
    %c0_i32 = arith.constant 0 : i32
    %c0_i32_0 = arith.constant 0 : i32
    return %arg0, %c0_i32 : i32, i32
  }
  func.func @transform_1(%arg0: i32) -> (i32, i32) {
    %c0_i32 = arith.constant 0 : i32
    %c0_i32_0 = arith.constant 0 : i32
    %c0_i32_1 = arith.constant 0 : i32
    return %c0_i32, %c0_i32_0 : i32, i32
  }
  func.func @transform_2(%arg0: i32) -> (i32, i32) {
    %c0_i32 = arith.constant 0 : i32
    %c0_i32_0 = arith.constant 0 : i32
    %c0_i32_1 = arith.constant 0 : i32
    return %c0_i32, %c0_i32_0 : i32, i32
  }
}

module attributes {stable_mosaic.version = 11 : i64} {
  func.func @_scale_shift_act_kernel(%arg0: i32, %arg1: memref<128x128xf32, #tpu.memory_space<vmem>>, %arg2: memref<1x128xf32, #tpu.memory_space<vmem>>, %arg3: memref<1x128xf32, #tpu.memory_space<vmem>>, %arg4: memref<128x128xbf16, #tpu.memory_space<vmem>>) attributes {dimension_semantics = [#tpu.dimension_semantics<parallel>], iteration_bounds = array<i64: 1>, scalar_prefetch = 0 : i64, scratch_operands = 0 : i64, tpu.core_type = #tpu.core_type<tc>, window_params = [{transform_indices = @transform_0, window_bounds = array<i64: 128, 128>}, {pipeline_mode = #tpu.pipeline_mode<synchronous>, transform_indices = @transform_1, window_bounds = array<i64: 1, 128>}, {pipeline_mode = #tpu.pipeline_mode<synchronous>, transform_indices = @transform_2, window_bounds = array<i64: 1, 128>}, {transform_indices = @transform_3, window_bounds = array<i64: 128, 128>}]} {
    %c0 = arith.constant 0 : index
    %c0_0 = arith.constant 0 : index
    %0 = vector.load %arg1[%c0, %c0_0] : memref<128x128xf32, #tpu.memory_space<vmem>>, vector<128x128xf32>
    %c0_1 = arith.constant 0 : index
    %c0_2 = arith.constant 0 : index
    %1 = vector.load %arg2[%c0_1, %c0_2] : memref<1x128xf32, #tpu.memory_space<vmem>>, vector<1x128xf32>
    %2 = vector.broadcast %1 : vector<1x128xf32> to vector<128x128xf32>
    %3 = arith.mulf %0, %2 : vector<128x128xf32>
    %c0_3 = arith.constant 0 : index
    %c0_4 = arith.constant 0 : index
    %4 = vector.load %arg3[%c0_3, %c0_4] : memref<1x128xf32, #tpu.memory_space<vmem>>, vector<1x128xf32>
    %5 = vector.broadcast %4 : vector<1x128xf32> to vector<128x128xf32>
    %6 = arith.addf %3, %5 : vector<128x128xf32>
    %cst = arith.constant 0.000000e+00 : f32
    %7 = vector.broadcast %cst : f32 to vector<128x128xf32>
    %8 = arith.cmpf oge, %6, %7 : vector<128x128xf32>
    %cst_5 = arith.constant 0.000000e+00 : f32
    %9 = vector.broadcast %cst_5 : f32 to vector<128x128xf32>
    %10 = arith.mulf %9, %6 : vector<128x128xf32>
    %11 = arith.select %8, %6, %10 : vector<128x128xi1>, vector<128x128xf32>
    %12 = arith.truncf %11 : vector<128x128xf32> to vector<128x128xbf16>
    %c0_6 = arith.constant 0 : index
    %c0_7 = arith.constant 0 : index
    %13 = vector.load %arg4[%c0_6, %c0_7] : memref<128x128xbf16, #tpu.memory_space<vmem>>, vector<128x128xbf16>
    tpu.vector_store %arg4[%c0_6, %c0_7], %12 {strides = array<i32>} : memref<128x128xbf16, #tpu.memory_space<vmem>>, vector<128x128xbf16>,
    return
  }
  func.func @transform_0(%arg0: i32) -> (i32, i32) {
    %c0_i32 = arith.constant 0 : i32
    %c0_i32_0 = arith.constant 0 : i32
    return %arg0, %c0_i32 : i32, i32
  }
  func.func @transform_1(%arg0: i32) -> (i32, i32) {
    %c0_i32 = arith.constant 0 : i32
    %c0_i32_0 = arith.constant 0 : i32
    %c0_i32_1 = arith.constant 0 : i32
    return %c0_i32, %c0_i32_0 : i32, i32
  }
  func.func @transform_2(%arg0: i32) -> (i32, i32) {
    %c0_i32 = arith.constant 0 : i32
    %c0_i32_0 = arith.constant 0 : i32
    %c0_i32_1 = arith.constant 0 : i32
    return %c0_i32, %c0_i32_0 : i32, i32
  }
  func.func @transform_3(%arg0: i32) -> (i32, i32) {
    %c0_i32 = arith.constant 0 : i32
    %c0_i32_0 = arith.constant 0 : i32
    return %arg0, %c0_i32 : i32, i32
  }
}

module attributes {stable_mosaic.version = 11 : i64} {
  func.func @_gemm_kernel(%arg0: i32, %arg1: i32, %arg2: i32, %arg3: memref<128x512xbf16, #tpu.memory_space<vmem>>, %arg4: memref<512x128xbf16, #tpu.memory_space<vmem>>, %arg5: memref<128x128xf32, #tpu.memory_space<vmem>>, %arg6: memref<128x128xf32, #tpu.memory_space<vmem>>) attributes {dimension_semantics = [#tpu.dimension_semantics<parallel>, #tpu.dimension_semantics<parallel>, #tpu.dimension_semantics<arbitrary>], iteration_bounds = array<i64: 1, 1, 2>, scalar_prefetch = 0 : i64, scratch_operands = 1 : i64, tpu.core_type = #tpu.core_type<tc>, window_params = [{transform_indices = @transform_0, window_bounds = array<i64: 128, 512>}, {transform_indices = @transform_1, window_bounds = array<i64: 512, 128>}, {transform_indices = @transform_2, window_bounds = array<i64: 128, 128>}]} {
    %c0_i32 = arith.constant 0 : i32
    %0 = arith.cmpi eq, %arg2, %c0_i32 : i32
    %1 = arith.extui %0 : i1 to i32
    %c0_i32_0 = arith.constant 0 : i32
    %2 = arith.cmpi ne, %1, %c0_i32_0 : i32
    scf.if %2 {
      %cst_9 = arith.constant 0.000000e+00 : f32
      %12 = vector.broadcast %cst_9 : f32 to vector<128x128xf32>
      %c0_10 = arith.constant 0 : index
      %c0_11 = arith.constant 0 : index
      %13 = vector.load %arg6[%c0_10, %c0_11] : memref<128x128xf32, #tpu.memory_space<vmem>>, vector<128x128xf32>
      tpu.vector_store %arg6[%c0_10, %c0_11], %12 {strides = array<i32>} : memref<128x128xf32, #tpu.memory_space<vmem>>, vector<128x128xf32>,
    } else {
    }
    %c0 = arith.constant 0 : index
    %c0_1 = arith.constant 0 : index
    %3 = vector.load %arg6[%c0, %c0_1] : memref<128x128xf32, #tpu.memory_space<vmem>>, vector<128x128xf32>
    %c0_2 = arith.constant 0 : index
    %c0_3 = arith.constant 0 : index
    %4 = vector.load %arg3[%c0_2, %c0_3] : memref<128x512xbf16, #tpu.memory_space<vmem>>, vector<128x512xbf16>
    %c0_4 = arith.constant 0 : index
    %c0_5 = arith.constant 0 : index
    %5 = vector.load %arg4[%c0_4, %c0_5] : memref<512x128xbf16, #tpu.memory_space<vmem>>, vector<512x128xbf16>
    %cst = arith.constant dense<0.000000e+00> : vector<128x128xf32>
    %6 = tpu.matmul %4, %5, %cst {dimension_numbers = #tpu.dot_dimension_numbers<[1], [0], [0], [1], [0, 0, 1, 1], [], []>} : vector<128x512xbf16>, vector<512x128xbf16>, vector<128x128xf32> -> vector<128x128xf32>
    %7 = arith.addf %3, %6 : vector<128x128xf32>
    %c0_6 = arith.constant 0 : index
    %c0_7 = arith.constant 0 : index
    %8 = vector.load %arg6[%c0_6, %c0_7] : memref<128x128xf32, #tpu.memory_space<vmem>>, vector<128x128xf32>
    tpu.vector_store %arg6[%c0_6, %c0_7], %7 {strides = array<i32>} : memref<128x128xf32, #tpu.memory_space<vmem>>, vector<128x128xf32>,
    %c1_i32 = arith.constant 1 : i32
    %9 = arith.cmpi eq, %arg2, %c1_i32 : i32
    %10 = arith.extui %9 : i1 to i32
    %c0_i32_8 = arith.constant 0 : i32
    %11 = arith.cmpi ne, %10, %c0_i32_8 : i32
    scf.if %11 {
      %c0_9 = arith.constant 0 : index
      %c0_10 = arith.constant 0 : index
      %12 = vector.load %arg6[%c0_9, %c0_10] : memref<128x128xf32, #tpu.memory_space<vmem>>, vector<128x128xf32>
      %c0_11 = arith.constant 0 : index
      %c0_12 = arith.constant 0 : index
      %13 = vector.load %arg5[%c0_11, %c0_12] : memref<128x128xf32, #tpu.memory_space<vmem>>, vector<128x128xf32>
      tpu.vector_store %arg5[%c0_11, %c0_12], %12 {strides = array<i32>} : memref<128x128xf32, #tpu.memory_space<vmem>>, vector<128x128xf32>,
    } else {
    }
    return
  }
  func.func @transform_0(%arg0: i32, %arg1: i32, %arg2: i32) -> (i32, i32) {
    %c0_i32 = arith.constant 0 : i32
    return %arg0, %arg2 : i32, i32
  }
  func.func @transform_1(%arg0: i32, %arg1: i32, %arg2: i32) -> (i32, i32) {
    %c0_i32 = arith.constant 0 : i32
    return %arg2, %arg1 : i32, i32
  }
  func.func @transform_2(%arg0: i32, %arg1: i32, %arg2: i32) -> (i32, i32) {
    %c0_i32 = arith.constant 0 : i32
    return %arg0, %arg1 : i32, i32
  }
}

module attributes {stable_mosaic.version = 11 : i64} {
  func.func @_bn_stats_kernel(%arg0: i32, %arg1: memref<512x128xf32, #tpu.memory_space<vmem>>, %arg2: memref<1x128xf32, #tpu.memory_space<vmem>>, %arg3: memref<1x128xf32, #tpu.memory_space<vmem>>) attributes {dimension_semantics = [#tpu.dimension_semantics<arbitrary>], iteration_bounds = array<i64: 1>, scalar_prefetch = 0 : i64, scratch_operands = 0 : i64, tpu.core_type = #tpu.core_type<tc>, window_params = [{transform_indices = @transform_0, window_bounds = array<i64: 512, 128>}, {pipeline_mode = #tpu.pipeline_mode<synchronous>, transform_indices = @transform_1, window_bounds = array<i64: 1, 128>}, {pipeline_mode = #tpu.pipeline_mode<synchronous>, transform_indices = @transform_2, window_bounds = array<i64: 1, 128>}]} {
    %c0_i32 = arith.constant 0 : i32
    %0 = arith.cmpi eq, %arg0, %c0_i32 : i32
    %1 = arith.extui %0 : i1 to i32
    %c0_i32_0 = arith.constant 0 : i32
    %2 = arith.cmpi ne, %1, %c0_i32_0 : i32
    scf.if %2 {
      %cst_11 = arith.constant 0.000000e+00 : f32
      %15 = vector.broadcast %cst_11 : f32 to vector<1x128xf32>
      %c0_12 = arith.constant 0 : index
      %c0_13 = arith.constant 0 : index
      %16 = vector.load %arg2[%c0_12, %c0_13] : memref<1x128xf32, #tpu.memory_space<vmem>>, vector<1x128xf32>
      tpu.vector_store %arg2[%c0_12, %c0_13], %15 {strides = array<i32>} : memref<1x128xf32, #tpu.memory_space<vmem>>, vector<1x128xf32>,
      %cst_14 = arith.constant 0.000000e+00 : f32
      %17 = vector.broadcast %cst_14 : f32 to vector<1x128xf32>
      %c0_15 = arith.constant 0 : index
      %c0_16 = arith.constant 0 : index
      %18 = vector.load %arg3[%c0_15, %c0_16] : memref<1x128xf32, #tpu.memory_space<vmem>>, vector<1x128xf32>
      tpu.vector_store %arg3[%c0_15, %c0_16], %17 {strides = array<i32>} : memref<1x128xf32, #tpu.memory_space<vmem>>, vector<1x128xf32>,
    } else {
    }
    %c0 = arith.constant 0 : index
    %c0_1 = arith.constant 0 : index
    %3 = vector.load %arg1[%c0, %c0_1] : memref<512x128xf32, #tpu.memory_space<vmem>>, vector<512x128xf32>
    %c0_2 = arith.constant 0 : index
    %c0_3 = arith.constant 0 : index
    %4 = vector.load %arg2[%c0_2, %c0_3] : memref<1x128xf32, #tpu.memory_space<vmem>>, vector<1x128xf32>
    %cst = arith.constant dense<0.000000e+00> : vector<128xf32>
    %5 = vector.multi_reduction <add>, %3, %cst [0] : vector<512x128xf32> to vector<128xf32>
    %6 = vector.shape_cast %5 : vector<128xf32> to vector<1x128xf32>
    %7 = arith.addf %4, %6 : vector<1x128xf32>
    %c0_4 = arith.constant 0 : index
    %c0_5 = arith.constant 0 : index
    %8 = vector.load %arg2[%c0_4, %c0_5] : memref<1x128xf32, #tpu.memory_space<vmem>>, vector<1x128xf32>
    tpu.vector_store %arg2[%c0_4, %c0_5], %7 {strides = array<i32>} : memref<1x128xf32, #tpu.memory_space<vmem>>, vector<1x128xf32>,
    %c0_6 = arith.constant 0 : index
    %c0_7 = arith.constant 0 : index
    %9 = vector.load %arg3[%c0_6, %c0_7] : memref<1x128xf32, #tpu.memory_space<vmem>>, vector<1x128xf32>
    %10 = arith.mulf %3, %3 : vector<512x128xf32>
    %cst_8 = arith.constant dense<0.000000e+00> : vector<128xf32>
    %11 = vector.multi_reduction <add>, %10, %cst_8 [0] : vector<512x128xf32> to vector<128xf32>
    %12 = vector.shape_cast %11 : vector<128xf32> to vector<1x128xf32>
    %13 = arith.addf %9, %12 : vector<1x128xf32>
    %c0_9 = arith.constant 0 : index
    %c0_10 = arith.constant 0 : index
    %14 = vector.load %arg3[%c0_9, %c0_10] : memref<1x128xf32, #tpu.memory_space<vmem>>, vector<1x128xf32>
    tpu.vector_store %arg3[%c0_9, %c0_10], %13 {strides = array<i32>} : memref<1x128xf32, #tpu.memory_space<vmem>>, vector<1x128xf32>,
    return
  }
  func.func @transform_0(%arg0: i32) -> (i32, i32) {
    %c0_i32 = arith.constant 0 : i32
    %c0_i32_0 = arith.constant 0 : i32
    return %arg0, %c0_i32 : i32, i32
  }
  func.func @transform_1(%arg0: i32) -> (i32, i32) {
    %c0_i32 = arith.constant 0 : i32
    %c0_i32_0 = arith.constant 0 : i32
    %c0_i32_1 = arith.constant 0 : i32
    return %c0_i32, %c0_i32_0 : i32, i32
  }
  func.func @transform_2(%arg0: i32) -> (i32, i32) {
    %c0_i32 = arith.constant 0 : i32
    %c0_i32_0 = arith.constant 0 : i32
    %c0_i32_1 = arith.constant 0 : i32
    return %c0_i32, %c0_i32_0 : i32, i32
  }
}

module attributes {stable_mosaic.version = 11 : i64} {
  func.func @_scale_shift_act_kernel(%arg0: i32, %arg1: memref<512x128xf32, #tpu.memory_space<vmem>>, %arg2: memref<1x128xf32, #tpu.memory_space<vmem>>, %arg3: memref<1x128xf32, #tpu.memory_space<vmem>>, %arg4: memref<512x128xf32, #tpu.memory_space<vmem>>) attributes {dimension_semantics = [#tpu.dimension_semantics<parallel>], iteration_bounds = array<i64: 1>, scalar_prefetch = 0 : i64, scratch_operands = 0 : i64, tpu.core_type = #tpu.core_type<tc>, window_params = [{transform_indices = @transform_0, window_bounds = array<i64: 512, 128>}, {pipeline_mode = #tpu.pipeline_mode<synchronous>, transform_indices = @transform_1, window_bounds = array<i64: 1, 128>}, {pipeline_mode = #tpu.pipeline_mode<synchronous>, transform_indices = @transform_2, window_bounds = array<i64: 1, 128>}, {transform_indices = @transform_3, window_bounds = array<i64: 512, 128>}]} {
    %c0 = arith.constant 0 : index
    %c0_0 = arith.constant 0 : index
    %0 = vector.load %arg1[%c0, %c0_0] : memref<512x128xf32, #tpu.memory_space<vmem>>, vector<512x128xf32>
    %c0_1 = arith.constant 0 : index
    %c0_2 = arith.constant 0 : index
    %1 = vector.load %arg2[%c0_1, %c0_2] : memref<1x128xf32, #tpu.memory_space<vmem>>, vector<1x128xf32>
    %2 = vector.broadcast %1 : vector<1x128xf32> to vector<512x128xf32>
    %3 = arith.mulf %0, %2 : vector<512x128xf32>
    %c0_3 = arith.constant 0 : index
    %c0_4 = arith.constant 0 : index
    %4 = vector.load %arg3[%c0_3, %c0_4] : memref<1x128xf32, #tpu.memory_space<vmem>>, vector<1x128xf32>
    %5 = vector.broadcast %4 : vector<1x128xf32> to vector<512x128xf32>
    %6 = arith.addf %3, %5 : vector<512x128xf32>
    %cst = arith.constant 0.000000e+00 : f32
    %7 = vector.broadcast %cst : f32 to vector<512x128xf32>
    %8 = arith.cmpf oge, %6, %7 : vector<512x128xf32>
    %cst_5 = arith.constant 0.000000e+00 : f32
    %9 = vector.broadcast %cst_5 : f32 to vector<512x128xf32>
    %10 = arith.mulf %9, %6 : vector<512x128xf32>
    %11 = arith.select %8, %6, %10 : vector<512x128xi1>, vector<512x128xf32>
    %c0_6 = arith.constant 0 : index
    %c0_7 = arith.constant 0 : index
    %12 = vector.load %arg4[%c0_6, %c0_7] : memref<512x128xf32, #tpu.memory_space<vmem>>, vector<512x128xf32>
    tpu.vector_store %arg4[%c0_6, %c0_7], %11 {strides = array<i32>} : memref<512x128xf32, #tpu.memory_space<vmem>>, vector<512x128xf32>,
    return
  }
  func.func @transform_0(%arg0: i32) -> (i32, i32) {
    %c0_i32 = arith.constant 0 : i32
    %c0_i32_0 = arith.constant 0 : i32
    return %arg0, %c0_i32 : i32, i32
  }
  func.func @transform_1(%arg0: i32) -> (i32, i32) {
    %c0_i32 = arith.constant 0 : i32
    %c0_i32_0 = arith.constant 0 : i32
    %c0_i32_1 = arith.constant 0 : i32
    return %c0_i32, %c0_i32_0 : i32, i32
  }
  func.func @transform_2(%arg0: i32) -> (i32, i32) {
    %c0_i32 = arith.constant 0 : i32
    %c0_i32_0 = arith.constant 0 : i32
    %c0_i32_1 = arith.constant 0 : i32
    return %c0_i32, %c0_i32_0 : i32, i32
  }
  func.func @transform_3(%arg0: i32) -> (i32, i32) {
    %c0_i32 = arith.constant 0 : i32
    %c0_i32_0 = arith.constant 0 : i32
    return %arg0, %c0_i32 : i32, i32
  }
}

</mosaic_0001>

<bundles_post_ra>
// kernel: pix2pix_forward.32
= control target key start
LH: loop header
LB: loop body
LE: loop exit
PB: predicated region body
PF: predicated region fallthrough
CT: control target
= control target key end

     0   :  { %s705_s1 = inlined_call_operand.vmem [shape: bf16[128,128], index: 1, kind: input, shape index: {}]   ;;  %s706_s0 = inlined_call_operand.vmem [shape: bf16[128,128], index: 0, kind: input, shape index: {}]   ;;  %s707_s2 = inlined_call_operand.vmem [shape: f32[1,128], index: 2, kind: input, shape index: {}]   ;;  %s708_s3 = inlined_call_operand.vmem [shape: bf16[128,128], index: 3, kind: output, shape index: {}]  }
   0x1   :  { %v594_v0 = vld [vmem:[%s705_s1 + $0x38] sm:$0xff]   ;;  %v595_v1 = vld [vmem:[%s705_s1 + $0x30] sm:$0xff]   ;;  %v596_v2 = vld [vmem:[%s705_s1 + $0x28] sm:$0xff]  }
   0x2   :  { %546 = vmatprep.subr.bf16.mxu0 %v594_v0  ;;  %578 = vmatprep.subr.bf16.mxu1 %v594_v0  ;;  %v597_v3 = vld [vmem:[%s705_s1 + $0x20] sm:$0xff]   ;;  %v598_v6 = vld [vmem:[%s705_s1 + $0x18] sm:$0xff]   ;;  %v599_v7 = vld [vmem:[%s705_s1 + $0x10] sm:$0xff]  }
   0x3   :  { %547 = vmatpush3.bf16.msra.mxu0 %v594_v0  ;;  %586 = vmatpush3.bf16.msra.mxu1 %v594_v0  ;;  %v602_v4 = vld [vmem:[%s706_s0] sm:$0xff]   ;;  %v600_v8 = vld [vmem:[%s705_s1 + $0x8] sm:$0xff]   ;;  %v606_v12 = vld [vmem:[%s706_s0 + $0x10] sm:$0xff]  }
   0x4   :  { %548 = vmatprep.subr.bf16.mxu0 %v595_v1  ;;  %579 = vmatprep.subr.bf16.mxu1 %v595_v1  ;;  %v603_v5 = vld [vmem:[%s706_s0 + $0x20] sm:$0xff]   ;;  %v604_v10 = vld [vmem:[%s706_s0 + $0x8] sm:$0xff]   ;;  %v607_v13 = vld [vmem:[%s706_s0 + $0x30] sm:$0xff]  }
   0x5   :  { %562 = vmatprep.mubr.bf16.mxu0 %v602_v4  ;;  %570 = vmatprep.mubr.bf16.mxu1 %v603_v5  ;;  %v601_v9 = vld [vmem:[%s705_s1] sm:$0xff]   ;;  %v605_v11 = vld [vmem:[%s706_s0 + $0x28] sm:$0xff]   ;;  %v608_v14 = vld [vmem:[%s706_s0 + $0x18] sm:$0xff]  }
   0x6   :  { %v609_v15 = vld [vmem:[%s706_s0 + $0x38] sm:$0xff]   ;;  %v450_v18 = vld [vmem:[%s707_s2] ss:$0 sm:$0xff] }
   0x7   :  { %549 = vmatpush3.bf16.msra.mxu0 %v595_v1  ;;  %587 = vmatpush3.bf16.msra.mxu1 %v595_v1 }
   0x8   :  { %550 = vmatprep.subr.bf16.mxu0 %v596_v2  ;;  %580 = vmatprep.subr.bf16.mxu1 %v596_v2 }
   0xb   :  { %551 = vmatpush3.bf16.msra.mxu0 %v596_v2  ;;  %588 = vmatpush3.bf16.msra.mxu1 %v596_v2 }
   0xc   :  { %552 = vmatprep.subr.bf16.mxu0 %v597_v3  ;;  %581 = vmatprep.subr.bf16.mxu1 %v597_v3 }
   0xf   :  { %553 = vmatpush3.bf16.msra.mxu0 %v597_v3  ;;  %589 = vmatpush3.bf16.msra.mxu1 %v597_v3 }
  0x10   :  { %554 = vmatprep.subr.bf16.mxu0 %v598_v6  ;;  %582 = vmatprep.subr.bf16.mxu1 %v598_v6 }
  0x13   :  { %555 = vmatpush3.bf16.msra.mxu0 %v598_v6  ;;  %590 = vmatpush3.bf16.msra.mxu1 %v598_v6 }
  0x14   :  { %556 = vmatprep.subr.bf16.mxu0 %v599_v7  ;;  %583 = vmatprep.subr.bf16.mxu1 %v599_v7 }
  0x17   :  { %557 = vmatpush3.bf16.msra.mxu0 %v599_v7  ;;  %591 = vmatpush3.bf16.msra.mxu1 %v599_v7 }
  0x18   :  { %558 = vmatprep.subr.bf16.mxu0 %v600_v8  ;;  %584 = vmatprep.subr.bf16.mxu1 %v600_v8 }
  0x1b   :  { %559 = vmatpush3.bf16.msra.mxu0 %v600_v8  ;;  %592 = vmatpush3.bf16.msra.mxu1 %v600_v8 }
  0x1c   :  { %560 = vmatprep.subr.bf16.mxu0 %v601_v9  ;;  %585 = vmatprep.subr.bf16.mxu1 %v601_v9 }
  0x1f   :  { %561 = vmatpush3.bf16.msra.mxu0 %v601_v9  ;;  %593 = vmatpush3.bf16.msra.mxu1 %v601_v9 }
  0x22   :  { %563 = vmatmul.mubr.bf16.vlgmr.msra.gmra.mxu0 %v604_v10  ;;  %571 = vmatmul.mubr.bf16.vlgmr.msra.gmra.mxu1 %v605_v11 }
  0x23   :  { %566 = vmatprep.mubr.bf16.mxu0 %v606_v12  ;;  %574 = vmatprep.mubr.bf16.mxu1 %v607_v13 }
  0x2a   :  { %567 = vmatmul.mubr.bf16.gmra.mxu0 %v608_v14  ;;  %575 = vmatmul.mubr.bf16.gmra.mxu1 %v609_v15 }
  0xe2   :  { %v564_v16 = vpop.f32.mrf.mxu0  ;;  %v572_v17 = vpop.f32.mrf.mxu1 }
  0xe3   :  { %v336_v23 = vadd.f32 %v564_v16, %v450_v18  ;;  %v344_v24 = vadd.f32 %v572_v17, %v450_v18 }
  0xe4   :  { %v213_v19 = vpop.f32.mrf.mxu0  ;;  %v245_v20 = vpop.f32.mrf.mxu1 }
  0xe5   :  { %v334_v27 = vadd.f32 %v450_v18, %v213_v19  ;;  %v342_v28 = vadd.f32 %v450_v18, %v245_v20 }
  0xe6   :  { %v565_v21 = vpop.f32.mrf.mxu0  ;;  %v573_v22 = vpop.f32.mrf.mxu1 }
  0xe7   :  { %v337_v25 = vadd.f32 %v565_v21, %v450_v18  ;;  %v345_v26 = vadd.f32 %v573_v22, %v450_v18 }
  0xe8   :  { %v216_v29 = vpop.f32.mrf.mxu0  ;;  %v248_v30 = vpop.f32.mrf.mxu1 }
  0xe9   :  { %v491_v31 = vpack.c.bf16 %v337_v25, %v336_v23  ;;  %v511_v32 = vpack.c.bf16 %v345_v26, %v344_v24  ;;  %v335_v33 = vadd.f32 %v450_v18, %v216_v29  ;;  %v343_v34 = vadd.f32 %v450_v18, %v248_v30 }
  0xea   :  { %v568_v35 = vpop.f32.mrf.mxu0  ;;  %v576_v36 = vpop.f32.mrf.mxu1 }
  0xeb   :  { %523 = vst [vmem:[%s708_s3 + $0x8] sm:$0xff] %v491_v31   ;;  %527 = vst [vmem:[%s708_s3 + $0x28] sm:$0xff] %v511_v32   ;;  %v486_v37 = vpack.c.bf16 %v335_v33, %v334_v27  ;;  %v506_v38 = vpack.c.bf16 %v343_v34, %v342_v28  ;;  %v340_v43 = vadd.f32 %v568_v35, %v450_v18 }
  0xec   :  { %v229_v39 = vpop.f32.mrf.mxu0  ;;  %v261_v40 = vpop.f32.mrf.mxu1  ;;  %v348_v44 = vadd.f32 %v576_v36, %v450_v18 }
  0xed   :  { %487 = vst [vmem:[%s708_s3] sm:$0xff] %v486_v37   ;;  %526 = vst [vmem:[%s708_s3 + $0x20] sm:$0xff] %v506_v38   ;;  %v338_v47 = vadd.f32 %v450_v18, %v229_v39  ;;  %v346_v48 = vadd.f32 %v450_v18, %v261_v40 }
  0xee   :  { %v569_v41 = vpop.f32.mrf.mxu0  ;;  %v577_v42 = vpop.f32.mrf.mxu1 }
  0xef   :  { %v341_v45 = vadd.f32 %v569_v41, %v450_v18  ;;  %v349_v46 = vadd.f32 %v577_v42, %v450_v18 }
  0xf0   :  { %v232_v49 = vpop.f32.mrf.mxu0  ;;  %v264_v50 = vpop.f32.mrf.mxu1 }
  0xf1   :  { %v501_v51 = vpack.c.bf16 %v341_v45, %v340_v43  ;;  %v521_v52 = vpack.c.bf16 %v349_v46, %v348_v44  ;;  %v339_v53 = vadd.f32 %v450_v18, %v232_v49  ;;  %v347_v54 = vadd.f32 %v450_v18, %v264_v50 }
  0xf3   :  { %525 = vst [vmem:[%s708_s3 + $0x18] sm:$0xff] %v501_v51   ;;  %529 = vst [vmem:[%s708_s3 + $0x38] sm:$0xff] %v521_v52   ;;  %v496_v55 = vpack.c.bf16 %v339_v53, %v338_v47  ;;  %v516_v56 = vpack.c.bf16 %v347_v54, %v346_v48 }
  0xf5   :  { %524 = vst [vmem:[%s708_s3 + $0x10] sm:$0xff] %v496_v55   ;;  %528 = vst [vmem:[%s708_s3 + $0x30] sm:$0xff] %v516_v56  }

// kernel: pix2pix_forward.33
= control target key start
LH: loop header
LB: loop body
LE: loop exit
PB: predicated region body
PF: predicated region fallthrough
CT: control target
= control target key end

     0   :  { %s1260_s9 = smov 0   ;;  %s1262_s10 = smov 0   ;;  %s1427_s0 = inlined_call_operand.vmem [shape: bf16[32,2048], index: 0, kind: input, shape index: {}]   ;;  %s1428_s1 = inlined_call_operand.vmem [shape: bf16[2048,256], index: 1, kind: input, shape index: {}]   ;;  %s1429_s2 = inlined_call_operand.vmem [shape: f32[32,256], index: 2, kind: output, shape index: {}]  }
   0x1   :  { %s1264_s11 = smov 0   ;;  %s1266_s12 = smov 0  }
   0x2   :  { %s1268_s13 = smov 0  }
   0x3 LB: > { %s24_s14 = sadd.s32 1, %s1238_s12  ;;  %p47_p1 = scmp.ne.s32.totalorder %s1230_s10, %s1226_s9  ;;  %s1242_s13 = sphi %s1268_s13, %s12_s13   ;;  %s1238_s12 = sphi %s1266_s12, %s1433_s12   ;;  %s1234_s11 = sphi %s1264_s11, %s1432_s11   ;;  %s1230_s10 = sphi %s1262_s10, %s1431_s10   ;;  %s1226_s9 = sphi %s1260_s9, %s1430_s9  }
   0x4   : > { %p25_p0 = scmp.ge.s32.totalorder %s24_s14, 4  ;;  %p48_p2 = scmp.eq.s32.totalorder %s1242_s13, 0 }
   0x5   : > { %s40_s16 = sadd.s32 1, %s1230_s10  ;;  %p966_p5 = scmp.ge.s32.totalorder %s1242_s13, 4 }
   0x6   : > { %s1435_s14 = smov (%p25_p0, %s24_s14), 0  ;;  %p49_p3 = por %p48_p2, %p47_p1 }
   0x7   : > { %s36_s15 = ssub.s32 %s1238_s12, %s1435_s14  ;;  %129 = sbr.rel (%p966_p5) target bundleno = 20 (0x14), region = 16 }
   0x8   : > { %p38_p4 = scmp.eq.s32.totalorder %s36_s15, 0 }
   0xa   : > { %s1295_s17 = scalar_select %p38_p4, %s1230_s10, %s40_s16  }
   0xc   : > { %132 = sbr.rel (!%p49_p3) target bundleno = 20 (0x14), region = 20  ;;  %s134_s18 = sand.u32 (%p49_p3), 1, %s1230_s10  }
   0xd   : > { %s1053_s19 = sshll.u32 (%p49_p3), %s1238_s12, 4  ;;  %s967_s20 = sshll.u32 (%p49_p3), %s134_s18, 6 }
   0xe   : > { %s142_s23 = scalar_lea.vmem (%p49_p3), %s1427_s0, %s1053_s19  ;;  %s136_s24 = scalar_lea.vmem (%p49_p3), [#allocation3], %s967_s20 }
   0xf   : > { %v155_v0 = vld [vmem:[%s142_s23] sm:$0xff] (%p49_p3)  ;;  %v157_v1 = vld [vmem:[%s142_s23 + $0x8] sm:$0xff] (%p49_p3) }
  0x10   : > { %v159_v2 = vld [vmem:[%s142_s23 + $0x40] sm:$0xff] (%p49_p3)  ;;  %156 = vst [vmem:[%s136_s24] sm:$0xff] (%p49_p3), %v155_v0  ;;  %158 = vst [vmem:[%s136_s24 + $0x8] sm:$0xff] (%p49_p3), %v157_v1  ;;  %v161_v3 = vld [vmem:[%s142_s23 + $0x48] sm:$0xff] (%p49_p3) }
  0x11   : > { %160 = vst [vmem:[%s136_s24 + $0x10] sm:$0xff] %v159_v2  ;;  %v163_v4 = vld [vmem:[%s142_s23 + $0x80] sm:$0xff]  ;;  %v165_v5 = vld [vmem:[%s142_s23 + $0x88] sm:$0xff]  ;;  %162 = vst [vmem:[%s136_s24 + $0x18] sm:$0xff] %v161_v3 }
  0x12   : > { %164 = vst [vmem:[%s136_s24 + $0x20] sm:$0xff] %v163_v4  ;;  %166 = vst [vmem:[%s136_s24 + $0x28] sm:$0xff] %v165_v5  ;;  %v167_v6 = vld [vmem:[%s142_s23 + $0xc0] sm:$0xff]  ;;  %v169_v7 = vld [vmem:[%s142_s23 + $0xc8] sm:$0xff] }
  0x13   : > { %168 = vst [vmem:[%s136_s24 + $0x30] sm:$0xff] %v167_v6  ;;  %170 = vst [vmem:[%s136_s24 + $0x38] sm:$0xff] %v169_v7 }
  0x14 PF: > { %p970_p6 = scmp.ge.s32.totalorder %s1242_s13, 1  ;;  %p190_p7 = scmp.lt.s32.totalorder %s1242_s13, 5 }
  0x16   : > { %p191_p8 = pnand %p970_p6, %p190_p7 }
  0x17   : > { %s197_s25 = sand.u32 (!%p191_p8), 1, %s1226_s9   ;;  %s972_s26 = sshll.u32 (!%p191_p8), %s1234_s11, 6 }
  0x18   : > { %194 = sbr.rel (%p191_p8) target bundleno = 325 (0x145), region = 47  ;;  %s971_s27 = sshll.u32 (!%p191_p8), %s197_s25, 6 }
  0x19   : > { %p237_p9 = scmp.lt.s32.totalorder (!%p191_p8), %s972_s26, 255  ;;  %s1312_s4 = scalar_lea.vmem (!%p191_p8), [#allocation3], %s971_s27 }
  0x1a   : > { %p975_p10 = scmp.ne.s32.totalorder (!%p191_p8), %s1234_s11, 0 }
  0x1d   : > { %s1437_s26 = smov (!%p237_p9, %s972_s26), 255  ;;  %262 = sbr.rel (%p975_p10) target bundleno = 39 (0x27), region = 55 }
  0x1e   : > { %s1054_s28 = sshll.u32 %s1437_s26, 3 }
  0x1f   : > { %s1310_s3 = scalar_lea.vmem %s1428_s1, %s1054_s28 }
  0x22   : > { %v1244_v8 = vmov 0.0  }
  0x23   : > { %263 = vst [vmem:[#allocation2 + $0x30] sm:$0xff] %v1244_v8  ;;  %264 = vst [vmem:[#allocation2] sm:$0xff] %v1244_v8 }
  0x24   : > { %265 = vst [vmem:[#allocation2 + $0x18] sm:$0xff] %v1244_v8  ;;  %266 = vst [vmem:[#allocation2 + $0x10] sm:$0xff] %v1244_v8 }
  0x25   : > { %267 = vst [vmem:[#allocation2 + $0x8] sm:$0xff] %v1244_v8  ;;  %268 = vst [vmem:[#allocation2 + $0x20] sm:$0xff] %v1244_v8 }
  0x26   : > { %269 = vst [vmem:[#allocation2 + $0x28] sm:$0xff] %v1244_v8  ;;  %270 = vst [vmem:[#allocation2 + $0x38] sm:$0xff] %v1244_v8 }
  0x27 PF: > { %v1096_v9 = vld [vmem:[%s1310_s3 + $0x74] ss:$8 sps:$4 sm:$0xff]   ;;  %v1100_v11 = vld [vmem:[%s1310_s3 + $0x70] ss:$8 sps:$4 sm:$0xff]   ;;  %v1102_v13 = vld [vmem:[%s1310_s3 + $0x64] ss:$8 sps:$4 sm:$0xff]  }
  0x28   : > { %v1098_v10 = vld [vmem:[%s1310_s3 + $0x174] ss:$8 sps:$4 sm:$0xff]   ;;  %711 = vmatprep.subr.bf16.mxu0 %v1096_v9  ;;  %v1101_v12 = vld [vmem:[%s1310_s3 + $0x170] ss:$8 sps:$4 sm:$0xff]   ;;  %v1104_v14 = vld [vmem:[%s1310_s3 + $0x164] ss:$8 sps:$4 sm:$0xff]  }
  0x29   : > { %764 = vmatprep.subr.bf16.mxu1 %v1098_v10  ;;  %712 = vmatpush1.bf16.msra.mxu0 %v1100_v11  ;;  %v1106_v15 = vld [vmem:[%s1310_s3 + $0x60] ss:$8 sps:$4 sm:$0xff]   ;;  %v1108_v17 = vld [vmem:[%s1310_s3 + $0x54] ss:$8 sps:$4 sm:$0xff]   ;;  %v1112_v19 = vld [vmem:[%s1310_s3 + $0x50] ss:$8 sps:$4 sm:$0xff]  }
  0x2a   : > { %765 = vmatpush1.bf16.msra.mxu1 %v1101_v12  ;;  %713 = vmatprep.subr.bf16.mxu0 %v1102_v13  ;;  %v1107_v16 = vld [vmem:[%s1310_s3 + $0x160] ss:$8 sps:$4 sm:$0xff]   ;;  %v1110_v18 = vld [vmem:[%s1310_s3 + $0x154] ss:$8 sps:$4 sm:$0xff]   ;;  %v1113_v20 = vld [vmem:[%s1310_s3 + $0x150] ss:$8 sps:$4 sm:$0xff]  }
  0x2b   : > { %766 = vmatprep.subr.bf16.mxu1 %v1104_v14  ;;  %v1114_v21 = vld [vmem:[%s1310_s3 + $0x44] ss:$8 sps:$4 sm:$0xff]   ;;  %v1118_v23 = vld [vmem:[%s1310_s3 + $0x40] ss:$8 sps:$4 sm:$0xff]   ;;  %v1120_v25 = vld [vmem:[%s1310_s3 + $0x34] ss:$8 sps:$4 sm:$0xff]  }
  0x2c   : > { %v1116_v22 = vld [vmem:[%s1310_s3 + $0x144] ss:$8 sps:$4 sm:$0xff]   ;;  %v1119_v24 = vld [vmem:[%s1310_s3 + $0x140] ss:$8 sps:$4 sm:$0xff]   ;;  %v1122_v26 = vld [vmem:[%s1310_s3 + $0x134] ss:$8 sps:$4 sm:$0xff]  }
  0x2d   : > { %714 = vmatpush1.bf16.msra.mxu0 %v1106_v15  ;;  %v1124_v27 = vld [vmem:[%s1310_s3 + $0x30] ss:$8 sps:$4 sm:$0xff]   ;;  %v1126_v29 = vld [vmem:[%s1310_s3 + $0x24] ss:$8 sps:$4 sm:$0xff]   ;;  %v1130_v31 = vld [vmem:[%s1310_s3 + $0x20] ss:$8 sps:$4 sm:$0xff]  }
  0x2e   : > { %767 = vmatpush1.bf16.msra.mxu1 %v1107_v16  ;;  %715 = vmatprep.subr.bf16.mxu0 %v1108_v17  ;;  %v1125_v28 = vld [vmem:[%s1310_s3 + $0x130] ss:$8 sps:$4 sm:$0xff]   ;;  %v1128_v30 = vld [vmem:[%s1310_s3 + $0x124] ss:$8 sps:$4 sm:$0xff]   ;;  %v1131_v32 = vld [vmem:[%s1310_s3 + $0x120] ss:$8 sps:$4 sm:$0xff]  }
  0x2f   : > { %768 = vmatprep.subr.bf16.mxu1 %v1110_v18  ;;  %v1132_v33 = vld [vmem:[%s1310_s3 + $0x14] ss:$8 sps:$4 sm:$0xff]   ;;  %v1136_v35 = vld [vmem:[%s1310_s3 + $0x10] ss:$8 sps:$4 sm:$0xff]   ;;  %v1138_v37 = vld [vmem:[%s1310_s3 + $0x4] ss:$8 sps:$4 sm:$0xff]  }
  0x30   : > { %v1134_v34 = vld [vmem:[%s1310_s3 + $0x114] ss:$8 sps:$4 sm:$0xff]   ;;  %v1137_v36 = vld [vmem:[%s1310_s3 + $0x110] ss:$8 sps:$4 sm:$0xff]   ;;  %v1140_v38 = vld [vmem:[%s1310_s3 + $0x104] ss:$8 sps:$4 sm:$0xff]  }
  0x31   : > { %716 = vmatpush1.bf16.msra.mxu0 %v1112_v19  ;;  %v1142_v39 = vld [vmem:[%s1310_s3] ss:$8 sps:$4 sm:$0xff]   ;;  %v1144_v41 = vld [vmem:[%s1310_s3 + $0xf4] ss:$8 sps:$4 sm:$0xff]   ;;  %v1148_v43 = vld [vmem:[%s1310_s3 + $0xf0] ss:$8 sps:$4 sm:$0xff]  }
  0x32   : > { %769 = vmatpush1.bf16.msra.mxu1 %v1113_v20  ;;  %717 = vmatprep.subr.bf16.mxu0 %v1114_v21  ;;  %v1143_v40 = vld [vmem:[%s1310_s3 + $0x100] ss:$8 sps:$4 sm:$0xff]   ;;  %v1146_v42 = vld [vmem:[%s1310_s3 + $0x1f4] ss:$8 sps:$4 sm:$0xff]   ;;  %v1149_v44 = vld [vmem:[%s1310_s3 + $0x1f0] ss:$8 sps:$4 sm:$0xff]  }
  0x33   : > { %770 = vmatprep.subr.bf16.mxu1 %v1116_v22  ;;  %v1150_v45 = vld [vmem:[%s1310_s3 + $0xe4] ss:$8 sps:$4 sm:$0xff]   ;;  %v1154_v47 = vld [vmem:[%s1310_s3 + $0xe0] ss:$8 sps:$4 sm:$0xff]   ;;  %v1156_v49 = vld [vmem:[%s1310_s3 + $0xd4] ss:$8 sps:$4 sm:$0xff]  }
  0x34   : > { %v1152_v46 = vld [vmem:[%s1310_s3 + $0x1e4] ss:$8 sps:$4 sm:$0xff]   ;;  %v1155_v48 = vld [vmem:[%s1310_s3 + $0x1e0] ss:$8 sps:$4 sm:$0xff]   ;;  %v1158_v50 = vld [vmem:[%s1310_s3 + $0x1d4] ss:$8 sps:$4 sm:$0xff]  }
  0x35   : > { %718 = vmatpush1.bf16.msra.mxu0 %v1118_v23  ;;  %v1160_v51 = vld [vmem:[%s1310_s3 + $0xd0] ss:$8 sps:$4 sm:$0xff]   ;;  %v1162_v53 = vld [vmem:[%s1310_s3 + $0xc4] ss:$8 sps:$4 sm:$0xff]   ;;  %v1166_v55 = vld [vmem:[%s1310_s3 + $0xc0] ss:$8 sps:$4 sm:$0xff]  }
  0x36   : > { %771 = vmatpush1.bf16.msra.mxu1 %v1119_v24  ;;  %719 = vmatprep.subr.bf16.mxu0 %v1120_v25  ;;  %v1161_v52 = vld [vmem:[%s1310_s3 + $0x1d0] ss:$8 sps:$4 sm:$0xff]   ;;  %v1164_v54 = vld [vmem:[%s1310_s3 + $0x1c4] ss:$8 sps:$4 sm:$0xff]   ;;  %v1167_v56 = vld [vmem:[%s1310_s3 + $0x1c0] ss:$8 sps:$4 sm:$0xff]  }
  0x37   : > { %772 = vmatprep.subr.bf16.mxu1 %v1122_v26  ;;  %v1168_v57 = vld [vmem:[%s1310_s3 + $0xb4] ss:$8 sps:$4 sm:$0xff]   ;;  %v1172_v61 = vld [vmem:[%s1310_s3 + $0xb0] ss:$8 sps:$4 sm:$0xff]   ;;  %v1174_v63 = vld [vmem:[%s1310_s3 + $0xa4] ss:$8 sps:$4 sm:$0xff]  }
  0x38   : > { %v1194_v58 = vld [vmem:[%s1312_s4 + $0x4] ss:$16 sps:$4 sm:$0xff]   ;;  %v1197_v60 = vld [vmem:[%s1312_s4 + $0xc] ss:$16 sps:$4 sm:$0xff]   ;;  %v1173_v62 = vld [vmem:[%s1310_s3 + $0x1b0] ss:$8 sps:$4 sm:$0xff]  }
  0x39   : > { %720 = vmatpush1.bf16.msra.mxu0 %v1124_v27  ;;  %v1170_v59 = vld [vmem:[%s1310_s3 + $0x1b4] ss:$8 sps:$4 sm:$0xff]   ;;  %743 = vmatprep.mubr.bf16.mxu0 %v1194_v58  ;;  %v1176_v0 = vld [vmem:[%s1310_s3 + $0x1a4] ss:$8 sps:$4 sm:$0xff]   ;;  %v1178_v1 = vld [vmem:[%s1310_s3 + $0xa0] ss:$8 sps:$4 sm:$0xff]  }
  0x3a   : > { %773 = vmatpush1.bf16.msra.mxu1 %v1125_v28  ;;  %721 = vmatprep.subr.bf16.mxu0 %v1126_v29  ;;  %v1179_v2 = vld [vmem:[%s1310_s3 + $0x1a0] ss:$8 sps:$4 sm:$0xff]   ;;  %v1180_v3 = vld [vmem:[%s1310_s3 + $0x94] ss:$8 sps:$4 sm:$0xff]   ;;  %v1184_v5 = vld [vmem:[%s1310_s3 + $0x90] ss:$8 sps:$4 sm:$0xff]  }
  0x3b   : > { %774 = vmatprep.subr.bf16.mxu1 %v1128_v30  ;;  %796 = vmatprep.mubr.bf16.mxu1 %v1197_v60  ;;  %v1182_v4 = vld [vmem:[%s1310_s3 + $0x194] ss:$8 sps:$4 sm:$0xff]   ;;  %v1185_v6 = vld [vmem:[%s1310_s3 + $0x190] ss:$8 sps:$4 sm:$0xff]   ;;  %v1186_v7 = vld [vmem:[%s1310_s3 + $0x84] ss:$8 sps:$4 sm:$0xff]  }
  0x3c   : > { %v1188_v8 = vld [vmem:[%s1310_s3 + $0x184] ss:$8 sps:$4 sm:$0xff]   ;;  %v1190_v9 = vld [vmem:[%s1310_s3 + $0x80] ss:$8 sps:$4 sm:$0xff]   ;;  %v271_v18 = vld [vmem:[#allocation2 + $0x30] sm:$0xff]  ;;  %p1048_p11 = scmp.ne.s32.totalorder %s1234_s11, 3 }
  0x3d   : > { %722 = vmatpush1.bf16.msra.mxu0 %v1130_v31  ;;  %v1191_v10 = vld [vmem:[%s1310_s3 + $0x180] ss:$8 sps:$4 sm:$0xff]   ;;  %v1198_v13 = vld [vmem:[%s1312_s4 + $0x24] ss:$16 sps:$4 sm:$0xff]   ;;  %v1200_v14 = vld [vmem:[%s1312_s4 + $0x2c] ss:$16 sps:$4 sm:$0xff]  }
  0x3e   : > { %775 = vmatpush1.bf16.msra.mxu1 %v1131_v32  ;;  %723 = vmatprep.subr.bf16.mxu0 %v1132_v33  ;;  %v1192_v11 = vld [vmem:[%s1312_s4] ss:$16 sps:$4 sm:$0xff]   ;;  %v1195_v12 = vld [vmem:[%s1312_s4 + $0x8] ss:$16 sps:$4 sm:$0xff]  }
  0x3f   : > { %776 = vmatprep.subr.bf16.mxu1 %v1134_v34  ;;  %v1202_v15 = vld [vmem:[%s1312_s4 + $0x20] ss:$16 sps:$4 sm:$0xff]   ;;  %v1203_v16 = vld [vmem:[%s1312_s4 + $0x28] ss:$16 sps:$4 sm:$0xff]  }
  0x40   : > { %v272_v22 = vld [vmem:[#allocation2] sm:$0xff]  ;;  %v273_v27 = vld [vmem:[#allocation2 + $0x18] sm:$0xff]  ;;  %v274_v32 = vld [vmem:[#allocation2 + $0x10] sm:$0xff] }
  0x41   : > { %724 = vmatpush1.bf16.msra.mxu0 %v1136_v35 }
  0x42   : > { %777 = vmatpush1.bf16.msra.mxu1 %v1137_v36  ;;  %725 = vmatprep.subr.bf16.mxu0 %v1138_v37  ;;  %v275_v37 = vld [vmem:[#allocation2 + $0x8] sm:$0xff] }
  0x43   : > { %778 = vmatprep.subr.bf16.mxu1 %v1140_v38 }
  0x45   : > { %726 = vmatpush1.bf16.msra.mxu0 %v1142_v39 }
  0x46   : > { %779 = vmatpush1.bf16.msra.mxu1 %v1143_v40  ;;  %727 = vmatprep.subr.bf16.mxu0 %v1144_v41 }
  0x47   : > { %780 = vmatprep.subr.bf16.mxu1 %v1146_v42  ;;  %v276_v42 = vld [vmem:[#allocation2 + $0x20] sm:$0xff] }
  0x49   : > { %728 = vmatpush2.bf16.msra.mxu0 %v1148_v43 }
  0x4a   : > { %781 = vmatpush2.bf16.msra.mxu1 %v1149_v44  ;;  %729 = vmatprep.subr.bf16.mxu0 %v1150_v45 }
  0x4b   : > { %782 = vmatprep.subr.bf16.mxu1 %v1152_v46 }
  0x4d   : > { %730 = vmatpush2.bf16.msra.mxu0 %v1154_v47  ;;  %v277_v47 = vld [vmem:[#allocation2 + $0x28] sm:$0xff] }
  0x4e   : > { %783 = vmatpush2.bf16.msra.mxu1 %v1155_v48  ;;  %731 = vmatprep.subr.bf16.mxu0 %v1156_v49 }
  0x4f   : > { %784 = vmatprep.subr.bf16.mxu1 %v1158_v50 }
  0x51   : > { %732 = vmatpush2.bf16.msra.mxu0 %v1160_v51 }
  0x52   : > { %785 = vmatpush2.bf16.msra.mxu1 %v1161_v52  ;;  %733 = vmatprep.subr.bf16.mxu0 %v1162_v53  ;;  %v278_v52 = vld [vmem:[#allocation2 + $0x38] sm:$0xff] }
  0x53   : > { %786 = vmatprep.subr.bf16.mxu1 %v1164_v54 }
  0x55   : > { %734 = vmatpush2.bf16.msra.mxu0 %v1166_v55 }
  0x56   : > { %787 = vmatpush2.bf16.msra.mxu1 %v1167_v56  ;;  %735 = vmatprep.subr.bf16.mxu0 %v1168_v57 }
  0x57   : > { %788 = vmatprep.subr.bf16.mxu1 %v1170_v59 }
  0x59   : > { %736 = vmatpush2.bf16.msra.mxu0 %v1172_v61 }
  0x5a   : > { %789 = vmatpush2.bf16.msra.mxu1 %v1173_v62  ;;  %737 = vmatprep.subr.bf16.mxu0 %v1174_v63 }
  0x5b   : > { %790 = vmatprep.subr.bf16.mxu1 %v1176_v0 }
  0x5d   : > { %738 = vmatpush2.bf16.msra.mxu0 %v1178_v1 }
  0x5e   : > { %791 = vmatpush2.bf16.msra.mxu1 %v1179_v2  ;;  %739 = vmatprep.subr.bf16.mxu0 %v1180_v3 }
  0x5f   : > { %792 = vmatprep.subr.bf16.mxu1 %v1182_v4 }
  0x61   : > { %740 = vmatpush2.bf16.msra.mxu0 %v1184_v5 }
  0x62   : > { %793 = vmatpush2.bf16.msra.mxu1 %v1185_v6  ;;  %741 = vmatprep.subr.bf16.mxu0 %v1186_v7 }
  0x63   : > { %794 = vmatprep.subr.bf16.mxu1 %v1188_v8 }
  0x65   : > { %742 = vmatpush2.bf16.msra.mxu0 %v1190_v9 }
  0x66   : > { %795 = vmatpush2.bf16.msra.mxu1 %v1191_v10 }
  0x68   : > { %744 = vmatmul.mubr.bf16.vlgmr.msra.gmra.mxu0 %v1192_v11 }
  0x69   : > { %797 = vmatmul.mubr.bf16.vlgmr.msra.gmra.mxu1 %v1195_v12  ;;  %753 = vmatprep.mubr.bf16.mxu0 %v1198_v13 }
  0x6a   : > { %806 = vmatprep.mubr.bf16.mxu1 %v1200_v14 }
  0x70   : > { %754 = vmatmul.mubr.bf16.gmra.mxu0 %v1202_v15 }
  0x71   : > { %807 = vmatmul.mubr.bf16.gmra.mxu1 %v1203_v16 }
 0x128   : > { %v745_v17 = vpop.f32.mrf.mxu0 }
 0x129   : > { %v798_v19 = vpop.f32.mrf.mxu1 }
 0x12a   : > { %v799_v20 = vadd.f32 %v798_v19, %v745_v17  ;;  %v747_v21 = vpop.f32.mrf.mxu0 }
 0x12b   : > { %v800_v23 = vpop.f32.mrf.mxu1 }
 0x12c   : > { %v817_v24 = vadd.f32 %v799_v20, %v271_v18  ;;  %v801_v25 = vadd.f32 %v800_v23, %v747_v21  ;;  %v749_v26 = vpop.f32.mrf.mxu0 }
 0x12d   : > { %v802_v28 = vpop.f32.mrf.mxu1 }
 0x12e   : > { %825 = vst [vmem:[#allocation2 + $0x30] sm:$0xff] %v817_v24  ;;  %v818_v29 = vadd.f32 %v801_v25, %v272_v22  ;;  %v803_v30 = vadd.f32 %v802_v28, %v749_v26  ;;  %v751_v31 = vpop.f32.mrf.mxu0 }
 0x12f   : > { %v804_v33 = vpop.f32.mrf.mxu1 }
 0x130   : > { %826 = vst [vmem:[#allocation2] sm:$0xff] %v818_v29  ;;  %v819_v34 = vadd.f32 %v803_v30, %v273_v27  ;;  %v805_v35 = vadd.f32 %v804_v33, %v751_v31  ;;  %v755_v36 = vpop.f32.mrf.mxu0 }
 0x131   : > { %v808_v38 = vpop.f32.mrf.mxu1 }
 0x132   : > { %827 = vst [vmem:[#allocation2 + $0x18] sm:$0xff] %v819_v34  ;;  %v820_v39 = vadd.f32 %v805_v35, %v274_v32  ;;  %v809_v40 = vadd.f32 %v808_v38, %v755_v36  ;;  %v757_v41 = vpop.f32.mrf.mxu0 }
 0x133   : > { %v810_v43 = vpop.f32.mrf.mxu1 }
 0x134   : > { %828 = vst [vmem:[#allocation2 + $0x10] sm:$0xff] %v820_v39  ;;  %v821_v44 = vadd.f32 %v809_v40, %v275_v37  ;;  %v811_v45 = vadd.f32 %v810_v43, %v757_v41  ;;  %v759_v46 = vpop.f32.mrf.mxu0 }
 0x135   : > { %v812_v48 = vpop.f32.mrf.mxu1 }
 0x136   : > { %829 = vst [vmem:[#allocation2 + $0x8] sm:$0xff] %v821_v44  ;;  %v822_v49 = vadd.f32 %v811_v45, %v276_v42  ;;  %v813_v50 = vadd.f32 %v812_v48, %v759_v46  ;;  %v761_v51 = vpop.f32.mrf.mxu0 }
 0x137   : > { %v814_v53 = vpop.f32.mrf.mxu1 }
 0x138   : > { %830 = vst [vmem:[#allocation2 + $0x20] sm:$0xff] %v822_v49  ;;  %v823_v54 = vadd.f32 %v813_v50, %v277_v47  ;;  %v815_v55 = vadd.f32 %v814_v53, %v761_v51  ;;  %836 = sbr.rel (%p1048_p11) target bundleno = 325 (0x145), region = 59 }
 0x13a   : > { %831 = vst [vmem:[#allocation2 + $0x28] sm:$0xff] %v823_v54  ;;  %v824_v56 = vadd.f32 %v815_v55, %v278_v52 }
 0x13c   : > { %832 = vst [vmem:[#allocation2 + $0x38] sm:$0xff] %v824_v56 }
 0x13d   : > { %v837_v57 = vld [vmem:[#allocation2 + $0x30] sm:$0xff]  ;;  %v838_v58 = vld [vmem:[#allocation2] sm:$0xff]  ;;  %v839_v59 = vld [vmem:[#allocation2 + $0x18] sm:$0xff] }
 0x13e   : > { %845 = vst [vmem:[%s1429_s2] sm:$0xff] %v837_v57  ;;  %846 = vst [vmem:[%s1429_s2 + $0x8] sm:$0xff] %v838_v58  ;;  %v840_v60 = vld [vmem:[#allocation2 + $0x10] sm:$0xff]  ;;  %v841_v61 = vld [vmem:[#allocation2 + $0x8] sm:$0xff] }
 0x13f   : > { %847 = vst [vmem:[%s1429_s2 + $0x10] sm:$0xff] %v839_v59  ;;  %v842_v62 = vld [vmem:[#allocation2 + $0x20] sm:$0xff]  ;;  %848 = vst [vmem:[%s1429_s2 + $0x18] sm:$0xff] %v840_v60 }
 0x140   : > { %849 = vst [vmem:[%s1429_s2 + $0x20] sm:$0xff] %v841_v61  ;;  %850 = vst [vmem:[%s1429_s2 + $0x28] sm:$0xff] %v842_v62 }
 0x141   : > { %v843_v63 = vld [vmem:[#allocation2 + $0x28] sm:$0xff] }
 0x142   : > { %851 = vst [vmem:[%s1429_s2 + $0x30] sm:$0xff] %v843_v63 }
 0x143   : > { %v844_v0 = vld [vmem:[#allocation2 + $0x38] sm:$0xff] }
 0x144   : > { %852 = vst [vmem:[%s1429_s2 + $0x38] sm:$0xff] %v844_v0 }
 0x145 PF: > { %s12_s13 = sadd.s32 1, %s1242_s13   ;;  %s1430_s9 = smov %s1230_s10 }
 0x146   : > { %p9_p12 = scmp.ge.s32.totalorder %s12_s13, 6   ;;  %s1431_s10 = smov %s1295_s17 }
 0x147   : > { %s1432_s11 = smov %s1238_s12  ;;  %s1433_s12 = smov %s1435_s14 }
 0x148   :  { %11 = sbr.rel (!%p9_p12) target bundleno = 3 (0x3), region = 97 }

// kernel: pix2pix_forward.34
= control target key start
LH: loop header
LB: loop body
LE: loop exit
PB: predicated region body
PF: predicated region fallthrough
CT: control target
= control target key end

     0   :  { %v14_v0 = vlaneseq  ;;  %v128_v10 = vmov 0.0   ;;  %v129_v35 = vmov 1966171168   ;;  %s199_s0 = inlined_call_operand.vmem [shape: f32[32,256], index: 0, kind: input, shape index: {}]   ;;  %s200_s1 = inlined_call_operand.vmem [shape: f32[1,256], index: 1, kind: output, shape index: {0}]   ;;  %s201_s2 = inlined_call_operand.vmem [shape: f32[1,256], index: 2, kind: output, shape index: {1}]  }
   0x1   :  { %v20_v1 = vld [vmem:[%s199_s0] sm:$0xff]  ;;  %v21_v2 = vld [vmem:[%s199_s0 + $0x8] sm:$0xff]  ;;  %v22_v3 = vld [vmem:[%s199_s0 + $0x10] sm:$0xff]  ;;  %v51_v36 = vunpack.c.l.s4 %v129_v35 }
   0x2   :  { %vm154_vm0 = vcmp.lt.s32.totalorder %v14_v0, 256  ;;  %v23_v5 = vld [vmem:[%s199_s0 + $0x18] sm:$0xff]  ;;  %v24_v6 = vld [vmem:[%s199_s0 + $0x20] sm:$0xff]  ;;  %v25_v7 = vld [vmem:[%s199_s0 + $0x28] sm:$0xff]  ;;  %v29_v8 = vadd.f32 %v22_v3, %v20_v1  ;;  %v72_v9 = vmul.f32 %v20_v1, %v20_v1  ;;  %v73_v14 = vmul.f32 %v21_v2, %v21_v2 }
   0x3   :  { %18 = vst.msk [vmem:[%s200_s1] sm:$0x3] %vm154_vm0, %v128_v10  ;;  %v26_v11 = vld [vmem:[%s199_s0 + $0x30] sm:$0xff]  ;;  %v27_v12 = vld [vmem:[%s199_s0 + $0x38] sm:$0xff]  ;;  %v38_v13 = vadd.f32 %v23_v5, %v21_v2  ;;  %19 = vst.msk [vmem:[%s201_s2] sm:$0x3] %vm154_vm0, %v128_v10  ;;  %v74_v15 = vmul.f32 %v22_v3, %v22_v3  ;;  %v75_v17 = vmul.f32 %v23_v5, %v23_v5  ;;  %v52_v45 = vunpack.c.0.s8 %v51_v36 }
   0x4   :  { %v30_v16 = vadd.f32 %v29_v8, %v24_v6  ;;  %v76_v18 = vmul.f32 %v24_v6, %v24_v6  ;;  %v77_v19 = vmul.f32 %v25_v7, %v25_v7  ;;  %v78_v21 = vmul.f32 %v26_v11, %v26_v11 }
   0x5   :  { %v39_v20 = vadd.f32 %v38_v13, %v25_v7  ;;  %v79_v23 = vmul.f32 %v27_v12, %v27_v12  ;;  %v80_v24 = vadd.f32 %v74_v15, %v72_v9  ;;  %v89_v25 = vadd.f32 %v75_v17, %v73_v14 }
   0x6   :  { %v31_v22 = vadd.f32 %v30_v16, %v26_v11  ;;  %v54_v46 = vshrl.u32 %v14_v0, 7 }
   0x7   :  { %v40_v26 = vadd.f32 %v39_v20, %v27_v12  ;;  %v81_v28 = vadd.f32 %v80_v24, %v76_v18  ;;  %v90_v29 = vadd.f32 %v89_v25, %v77_v19 }
   0x8   :  { %v32_v27 = vrot.slane %v31_v22, 4  ;;  %v55_v55 = vsub.s32 %v52_v45, %v54_v46 }
   0x9   :  { %v41_v30 = vrot.slane %v40_v26, 4  ;;  %v82_v32 = vadd.f32 %v81_v28, %v78_v21  ;;  %v91_v33 = vadd.f32 %v90_v29, %v79_v23 }
   0xa   :  { %v33_v31 = vadd.f32 %v32_v27, %v31_v22  ;;  %v28_v62 = vld [vmem:[%s200_s1] sm:$0x3] }
   0xb   :  { %v42_v34 = vadd.f32 %v41_v30, %v40_v26  ;;  %v83_v38 = vrot.slane %v82_v32, 4  ;;  %v92_v39 = vrot.slane %v91_v33, 4  ;;  %v71_v3 = vld [vmem:[%s201_s2] sm:$0x3] }
   0xc   :  { %v34_v37 = vrot.slane %v33_v31, 2 }
   0xd   :  { %v43_v40 = vrot.slane %v42_v34, 2  ;;  %v84_v42 = vadd.f32 %v83_v38, %v82_v32  ;;  %v93_v43 = vadd.f32 %v92_v39, %v91_v33 }
   0xe   :  { %v35_v41 = vadd.f32 %v34_v37, %v33_v31 }
   0xf   :  { %v44_v44 = vadd.f32 %v43_v40, %v42_v34  ;;  %v85_v48 = vrot.slane %v84_v42, 2  ;;  %v94_v49 = vrot.slane %v93_v43, 2 }
  0x10   :  { %v36_v47 = vrot.slane %v35_v41, 1 }
  0x11   :  { %v45_v50 = vrot.slane %v44_v44, 1  ;;  %v86_v52 = vadd.f32 %v85_v48, %v84_v42  ;;  %v95_v53 = vadd.f32 %v94_v49, %v93_v43 }
  0x12   :  { %v37_v51 = vadd.f32 %v36_v47, %v35_v41 }
  0x13   :  { %v46_v54 = vadd.f32 %v45_v50, %v44_v44  ;;  %v87_v56 = vrot.slane %v86_v52, 1  ;;  %v96_v57 = vrot.slane %v95_v53, 1 }
  0x15   :  { %v49_v58 = vcombine.low %v37_v51, %v46_v54  ;;  %v88_v59 = vadd.f32 %v87_v56, %v86_v52  ;;  %v97_v60 = vadd.f32 %v96_v57, %v95_v53 }
  0x17   :  { %v56_v61 = vrot.slane %v49_v58, %v55_v55  ;;  %v100_v63 = vcombine.low %v88_v59, %v97_v60 }
  0x19   :  { %v63_v0 = vrot.slane %v56_v61, %v55_v55  ;;  %v107_v1 = vrot.slane %v100_v63, %v55_v55 }
  0x1b   :  { %v65_v2 = vadd.f32 %v63_v0, %v28_v62  ;;  %v114_v5 = vrot.slane %v107_v1, %v55_v55 }
  0x1d   :  { %70 = vst.msk [vmem:[%s200_s1] sm:$0x3] %vm154_vm0, %v65_v2  ;;  %v116_v6 = vadd.f32 %v114_v5, %v71_v3 }
  0x1f   :  { %117 = vst.msk [vmem:[%s201_s2] sm:$0x3] %vm154_vm0, %v116_v6 }

// kernel: pix2pix_forward.35
= control target key start
LH: loop header
LB: loop body
LE: loop exit
PB: predicated region body
PF: predicated region fallthrough
CT: control target
= control target key end

     0   :  { %v24_v0 = vlaneseq  ;;  %s164_s1 = inlined_call_operand.vmem [shape: f32[1,256], index: 1, kind: input, shape index: {}]   ;;  %s165_s2 = inlined_call_operand.vmem [shape: f32[1,256], index: 2, kind: input, shape index: {}]   ;;  %s166_s0 = inlined_call_operand.vmem [shape: f32[32,256], index: 0, kind: input, shape index: {}]   ;;  %s167_s3 = inlined_call_operand.vmem [shape: bf16[32,256], index: 3, kind: output, shape index: {}]  }
   0x1   :  { %v22_v2 = vld [vmem:[%s164_s1] sm:$0x3]  ;;  %v15_v5 = vld [vmem:[%s166_s0 + $0x8] sm:$0xff]  ;;  %v16_v8 = vld [vmem:[%s166_s0 + $0x10] sm:$0xff] }
   0x2   :  { %v25_v1 = vshrl.u32 %v24_v0, 7  ;;  %v42_v3 = vld [vmem:[%s165_s2] sm:$0x3]  ;;  %v17_v9 = vld [vmem:[%s166_s0 + $0x18] sm:$0xff]  ;;  %v19_v15 = vld [vmem:[%s166_s0 + $0x28] sm:$0xff] }
   0x3   :  { %v14_v4 = vld [vmem:[%s166_s0] sm:$0xff]  ;;  %v20_v16 = vld [vmem:[%s166_s0 + $0x30] sm:$0xff]  ;;  %v21_v17 = vld [vmem:[%s166_s0 + $0x38] sm:$0xff] }
   0x4   :  { %v26_v6 = vsub.s32 0, %v25_v1  ;;  %v30_v7 = vsub.s32 1, %v25_v1  ;;  %v18_v10 = vld [vmem:[%s166_s0 + $0x20] sm:$0xff] }
   0x6   :  { %v27_v11 = vrot.slane %v22_v2, %v26_v6  ;;  %v31_v12 = vrot.slane %v22_v2, %v30_v7  ;;  %v47_v13 = vrot.slane %v42_v3, %v26_v6  ;;  %v51_v14 = vrot.slane %v42_v3, %v30_v7 }
   0x8   :  { %v34_v18 = vmul.f32 %v27_v11, %v14_v4  ;;  %v35_v19 = vmul.f32 %v31_v12, %v15_v5  ;;  %v36_v20 = vmul.f32 %v27_v11, %v16_v8  ;;  %v37_v21 = vmul.f32 %v31_v12, %v17_v9 }
   0x9   :  { %v38_v22 = vmul.f32 %v27_v11, %v18_v10  ;;  %v39_v23 = vmul.f32 %v31_v12, %v19_v15  ;;  %v40_v24 = vmul.f32 %v27_v11, %v20_v16  ;;  %v41_v25 = vmul.f32 %v31_v12, %v21_v17 }
   0xa   :  { %v54_v26 = vadd.f32 %v47_v13, %v34_v18  ;;  %v55_v27 = vadd.f32 %v51_v14, %v35_v19  ;;  %v56_v28 = vadd.f32 %v47_v13, %v36_v20  ;;  %v57_v29 = vadd.f32 %v51_v14, %v37_v21 }
   0xb   :  { %v58_v30 = vadd.f32 %v47_v13, %v38_v22  ;;  %v59_v31 = vadd.f32 %v51_v14, %v39_v23  ;;  %v60_v32 = vadd.f32 %v47_v13, %v40_v24  ;;  %v61_v33 = vadd.f32 %v51_v14, %v41_v25 }
   0xc   :  { %v98_v34 = vpack.c.bf16 %v55_v27, %v54_v26  ;;  %v99_v35 = vpack.c.bf16 %v57_v29, %v56_v28 }
   0xd   :  { %v100_v36 = vpack.c.bf16 %v59_v31, %v58_v30  ;;  %v101_v37 = vpack.c.bf16 %v61_v33, %v60_v32 }
   0xe   :  { %86 = vst [vmem:[%s167_s3] sm:$0xff] %v98_v34  ;;  %87 = vst [vmem:[%s167_s3 + $0x8] sm:$0xff] %v99_v35 }
   0xf   :  { %88 = vst [vmem:[%s167_s3 + $0x10] sm:$0xff] %v100_v36  ;;  %89 = vst [vmem:[%s167_s3 + $0x18] sm:$0xff] %v101_v37 }

// kernel: pix2pix_forward.37
= control target key start
LH: loop header
LB: loop body
LE: loop exit
PB: predicated region body
PF: predicated region fallthrough
CT: control target
= control target key end

     0   :  { %v14_v0 = vlaneseq  ;;  %v170_v4 = vmov 1966171168   ;;  %v171_v12 = vmov 0.0   ;;  %s241_s0 = inlined_call_operand.vmem [shape: f32[16,512], index: 0, kind: input, shape index: {}]   ;;  %s242_s1 = inlined_call_operand.vmem [shape: f32[1,512], index: 1, kind: output, shape index: {0}]   ;;  %s243_s2 = inlined_call_operand.vmem [shape: f32[1,512], index: 2, kind: output, shape index: {1}]  }
   0x1   :  { %v20_v1 = vld [vmem:[%s241_s0] sm:$0xff]  ;;  %v21_v2 = vld [vmem:[%s241_s0 + $0x8] sm:$0xff]  ;;  %v22_v3 = vld [vmem:[%s241_s0 + $0x10] sm:$0xff]  ;;  %v64_v5 = vunpack.c.l.s4 %v170_v4 }
   0x2   :  { %vm196_vm0 = vcmp.lt.s32.totalorder %v14_v0, 512  ;;  %v23_v7 = vld [vmem:[%s241_s0 + $0x18] sm:$0xff]  ;;  %v24_v8 = vld [vmem:[%s241_s0 + $0x20] sm:$0xff]  ;;  %v25_v9 = vld [vmem:[%s241_s0 + $0x28] sm:$0xff]  ;;  %v67_v10 = vshrl.u32 %v14_v0, 7  ;;  %v93_v11 = vmul.f32 %v20_v1, %v20_v1  ;;  %v94_v17 = vmul.f32 %v21_v2, %v21_v2 }
   0x3   :  { %18 = vst.msk [vmem:[%s242_s1] sm:$0xf] %vm196_vm0, %v171_v12  ;;  %v26_v13 = vld [vmem:[%s241_s0 + $0x30] sm:$0xff]  ;;  %v27_v14 = vld [vmem:[%s241_s0 + $0x38] sm:$0xff]  ;;  %v29_v15 = vadd.f32 %v24_v8, %v20_v1  ;;  %v36_v16 = vadd.f32 %v25_v9, %v21_v2  ;;  %19 = vst.msk [vmem:[%s243_s2] sm:$0xf] %vm196_vm0, %v171_v12  ;;  %v95_v18 = vmul.f32 %v22_v3, %v22_v3  ;;  %v65_v25 = vunpack.c.0.s8 %v64_v5 }
   0x4   :  { %v43_v19 = vadd.f32 %v26_v13, %v22_v3  ;;  %v50_v20 = vadd.f32 %v27_v14, %v23_v7  ;;  %v96_v21 = vmul.f32 %v23_v7, %v23_v7  ;;  %v97_v22 = vmul.f32 %v24_v8, %v24_v8 }
   0x5   :  { %v30_v23 = vrot.slane %v29_v15, 4  ;;  %v37_v24 = vrot.slane %v36_v16, 4  ;;  %v98_v26 = vmul.f32 %v25_v9, %v25_v9  ;;  %v99_v29 = vmul.f32 %v26_v13, %v26_v13 }
   0x6   :  { %v44_v27 = vrot.slane %v43_v19, 4  ;;  %v51_v28 = vrot.slane %v50_v20, 4  ;;  %v100_v30 = vmul.f32 %v27_v14, %v27_v14  ;;  %v101_v33 = vadd.f32 %v97_v22, %v93_v11 }
   0x7   :  { %v31_v31 = vadd.f32 %v30_v23, %v29_v15  ;;  %v38_v32 = vadd.f32 %v37_v24, %v36_v16  ;;  %v108_v34 = vadd.f32 %v98_v26, %v94_v17  ;;  %v115_v37 = vadd.f32 %v99_v29, %v95_v18 }
   0x8   :  { %v45_v35 = vadd.f32 %v44_v27, %v43_v19  ;;  %v52_v36 = vadd.f32 %v51_v28, %v50_v20  ;;  %v122_v38 = vadd.f32 %v100_v30, %v96_v21  ;;  %v102_v41 = vrot.slane %v101_v33, 4 }
   0x9   :  { %v32_v39 = vrot.slane %v31_v31, 2  ;;  %v39_v40 = vrot.slane %v38_v32, 2  ;;  %v109_v42 = vrot.slane %v108_v34, 4  ;;  %v68_v45 = vsub.s32 %v65_v25, %v67_v10 }
   0xa   :  { %v46_v43 = vrot.slane %v45_v35, 2  ;;  %v53_v44 = vrot.slane %v52_v36, 2  ;;  %v103_v48 = vadd.f32 %v102_v41, %v101_v33  ;;  %v116_v52 = vrot.slane %v115_v37, 4  ;;  %v28_v23 = vld [vmem:[%s242_s1] sm:$0xf] }
   0xb   :  { %v33_v46 = vadd.f32 %v32_v39, %v31_v31  ;;  %v40_v47 = vadd.f32 %v39_v40, %v38_v32  ;;  %v110_v49 = vadd.f32 %v109_v42, %v108_v34  ;;  %v123_v53 = vrot.slane %v122_v38, 4  ;;  %v92_v30 = vld [vmem:[%s243_s2] sm:$0xf] }
   0xc   :  { %v47_v50 = vadd.f32 %v46_v43, %v45_v35  ;;  %v54_v51 = vadd.f32 %v53_v44, %v52_v36  ;;  %v104_v56 = vrot.slane %v103_v48, 2  ;;  %v117_v60 = vadd.f32 %v116_v52, %v115_v37 }
   0xd   :  { %v34_v54 = vrot.slane %v33_v46, 1  ;;  %v41_v55 = vrot.slane %v40_v47, 1  ;;  %v111_v57 = vrot.slane %v110_v49, 2  ;;  %v124_v61 = vadd.f32 %v123_v53, %v122_v38 }
   0xe   :  { %v48_v58 = vrot.slane %v47_v50, 1  ;;  %v55_v59 = vrot.slane %v54_v51, 1  ;;  %v105_v0 = vadd.f32 %v104_v56, %v103_v48  ;;  %v118_v4 = vrot.slane %v117_v60, 2 }
   0xf   :  { %v35_v62 = vadd.f32 %v34_v54, %v33_v46  ;;  %v42_v63 = vadd.f32 %v41_v55, %v40_v47  ;;  %v112_v1 = vadd.f32 %v111_v57, %v110_v49  ;;  %v125_v5 = vrot.slane %v124_v61, 2 }
  0x10   :  { %v49_v2 = vadd.f32 %v48_v58, %v47_v50  ;;  %v56_v3 = vadd.f32 %v55_v59, %v54_v51  ;;  %v106_v8 = vrot.slane %v105_v0, 1  ;;  %v119_v11 = vadd.f32 %v118_v4, %v117_v60 }
  0x11   :  { %v61_v7 = vcombine.low %v35_v62, %v42_v63  ;;  %v113_v9 = vrot.slane %v112_v1, 1  ;;  %v126_v12 = vadd.f32 %v125_v5, %v124_v61 }
  0x12   :  { %v62_v10 = vcombine.low %v49_v2, %v56_v3  ;;  %v107_v14 = vadd.f32 %v106_v8, %v105_v0  ;;  %v120_v17 = vrot.slane %v119_v11, 1 }
  0x13   :  { %v69_v13 = vrot.slane %v61_v7, %v68_v45  ;;  %v114_v15 = vadd.f32 %v113_v9, %v112_v1  ;;  %v127_v18 = vrot.slane %v126_v12, 1 }
  0x14   :  { %v76_v16 = vrot.slane %v62_v10, %v68_v45  ;;  %v121_v21 = vadd.f32 %v120_v17, %v119_v11 }
  0x15   :  { %v133_v19 = vcombine.low %v107_v14, %v114_v15  ;;  %v128_v22 = vadd.f32 %v127_v18, %v126_v12 }
  0x16   :  { %v77_v20 = vcombine.low %v69_v13, %v76_v16 }
  0x17   :  { %v134_v25 = vcombine.low %v121_v21, %v128_v22  ;;  %v141_v26 = vrot.slane %v133_v19, %v68_v45 }
  0x18   :  { %v84_v24 = vrot.slane %v77_v20, %v68_v45 }
  0x19   :  { %v148_v28 = vrot.slane %v134_v25, %v68_v45 }
  0x1a   :  { %v86_v27 = vadd.f32 %v84_v24, %v28_v23 }
  0x1b   :  { %v149_v29 = vcombine.low %v141_v26, %v148_v28 }
  0x1c   :  { %91 = vst.msk [vmem:[%s242_s1] sm:$0xf] %vm196_vm0, %v86_v27 }
  0x1d   :  { %v156_v31 = vrot.slane %v149_v29, %v68_v45 }
  0x1f   :  { %v158_v32 = vadd.f32 %v156_v31, %v92_v30 }
  0x21   :  { %159 = vst.msk [vmem:[%s243_s2] sm:$0xf] %vm196_vm0, %v158_v32 }

// kernel: pix2pix_forward.38
= control target key start
LH: loop header
LB: loop body
LE: loop exit
PB: predicated region body
PF: predicated region fallthrough
CT: control target
= control target key end

     0   :  { %v24_v0 = vlaneseq  ;;  %s184_s1 = inlined_call_operand.vmem [shape: f32[1,512], index: 1, kind: input, shape index: {}]   ;;  %s185_s2 = inlined_call_operand.vmem [shape: f32[1,512], index: 2, kind: input, shape index: {}]   ;;  %s186_s0 = inlined_call_operand.vmem [shape: f32[16,512], index: 0, kind: input, shape index: {}]   ;;  %s187_s3 = inlined_call_operand.vmem [shape: bf16[16,512], index: 3, kind: output, shape index: {}]  }
   0x1   :  { %v22_v2 = vld [vmem:[%s184_s1] sm:$0xf]  ;;  %v15_v5 = vld [vmem:[%s186_s0 + $0x8] sm:$0xff]  ;;  %v16_v10 = vld [vmem:[%s186_s0 + $0x10] sm:$0xff] }
   0x2   :  { %v25_v1 = vshrl.u32 %v24_v0, 7  ;;  %v52_v3 = vld [vmem:[%s185_s2] sm:$0xf]  ;;  %v19_v12 = vld [vmem:[%s186_s0 + $0x28] sm:$0xff]  ;;  %v17_v17 = vld [vmem:[%s186_s0 + $0x18] sm:$0xff] }
   0x3   :  { %v14_v4 = vld [vmem:[%s186_s0] sm:$0xff]  ;;  %v20_v18 = vld [vmem:[%s186_s0 + $0x30] sm:$0xff]  ;;  %v21_v19 = vld [vmem:[%s186_s0 + $0x38] sm:$0xff] }
   0x4   :  { %v26_v6 = vsub.s32 0, %v25_v1  ;;  %v30_v7 = vsub.s32 1, %v25_v1  ;;  %v34_v8 = vsub.s32 2, %v25_v1  ;;  %v38_v9 = vsub.s32 3, %v25_v1  ;;  %v18_v11 = vld [vmem:[%s186_s0 + $0x20] sm:$0xff] }
   0x6   :  { %v27_v13 = vrot.slane %v22_v2, %v26_v6  ;;  %v31_v14 = vrot.slane %v22_v2, %v30_v7  ;;  %v57_v15 = vrot.slane %v52_v3, %v26_v6  ;;  %v61_v16 = vrot.slane %v52_v3, %v30_v7 }
   0x7   :  { %v35_v20 = vrot.slane %v22_v2, %v34_v8  ;;  %v39_v21 = vrot.slane %v22_v2, %v38_v9  ;;  %v65_v22 = vrot.slane %v52_v3, %v34_v8  ;;  %v69_v23 = vrot.slane %v52_v3, %v38_v9 }
   0x8   :  { %v44_v24 = vmul.f32 %v27_v13, %v14_v4  ;;  %v45_v25 = vmul.f32 %v31_v14, %v15_v5  ;;  %v48_v26 = vmul.f32 %v27_v13, %v18_v11  ;;  %v49_v27 = vmul.f32 %v31_v14, %v19_v12 }
   0x9   :  { %v46_v28 = vmul.f32 %v35_v20, %v16_v10  ;;  %v47_v29 = vmul.f32 %v39_v21, %v17_v17  ;;  %v50_v30 = vmul.f32 %v35_v20, %v20_v18  ;;  %v51_v31 = vmul.f32 %v39_v21, %v21_v19 }
   0xa   :  { %v74_v32 = vadd.f32 %v57_v15, %v44_v24  ;;  %v75_v33 = vadd.f32 %v61_v16, %v45_v25  ;;  %v78_v34 = vadd.f32 %v57_v15, %v48_v26  ;;  %v79_v35 = vadd.f32 %v61_v16, %v49_v27 }
   0xb   :  { %v76_v36 = vadd.f32 %v65_v22, %v46_v28  ;;  %v77_v37 = vadd.f32 %v69_v23, %v47_v29  ;;  %v80_v38 = vadd.f32 %v65_v22, %v50_v30  ;;  %v81_v39 = vadd.f32 %v69_v23, %v51_v31 }
   0xc   :  { %v118_v40 = vpack.c.bf16 %v75_v33, %v74_v32  ;;  %v120_v41 = vpack.c.bf16 %v79_v35, %v78_v34 }
   0xd   :  { %v119_v42 = vpack.c.bf16 %v77_v37, %v76_v36  ;;  %v121_v43 = vpack.c.bf16 %v81_v39, %v80_v38 }
   0xe   :  { %106 = vst [vmem:[%s187_s3] sm:$0xff] %v118_v40  ;;  %108 = vst [vmem:[%s187_s3 + $0x10] sm:$0xff] %v120_v41 }
   0xf   :  { %107 = vst [vmem:[%s187_s3 + $0x8] sm:$0xff] %v119_v42  ;;  %109 = vst [vmem:[%s187_s3 + $0x18] sm:$0xff] %v121_v43 }

// kernel: pix2pix_forward.36
= control target key start
LH: loop header
LB: loop body
LE: loop exit
PB: predicated region body
PF: predicated region fallthrough
CT: control target
= control target key end

     0   :  { %s1932_s0 = inlined_call_operand.vmem [shape: bf16[16,4096], index: 0, kind: input, shape index: {}]   ;;  %s1933_s1 = inlined_call_operand.vmem [shape: bf16[4096,512], index: 1, kind: input, shape index: {}]   ;;  %s1934_s2 = inlined_call_operand.vmem [shape: f32[16,512], index: 2, kind: output, shape index: {}]  }
   0x1   :  { %1935 = sst [smem:[#allocation6_spill]] %s1932_s0 }
   0x2   :  { %s1558_s9 = smov 0   ;;  %s1560_s10 = smov 0  }
   0x3   :  { %s1562_s11 = smov 0   ;;  %s1564_s12 = smov 0  }
   0x4   :  { %s1566_s13 = smov 0   ;;  %s1568_s14 = smov 0  }
   0x5   :  { %s1570_s15 = smov 0   ;;  %s1572_s16 = smov 0  }
   0x6   :  { %s1574_s17 = smov 0   ;;  %s1576_s18 = smov 0  }
   0x7   :  { %s1578_s19 = smov 0  }
   0x8 LB: > { %s1169_s20 = sadd.s32 4294967295, %s1540_s19   ;;  %s24_s21 = sadd.s32 1, %s1532_s17  ;;  %s1540_s19 = sphi %s1578_s19, %s12_s19   ;;  %s1536_s18 = sphi %s1576_s18, %s1949_s18   ;;  %s1532_s17 = sphi %s1574_s17, %s1948_s17   ;;  %s1528_s16 = sphi %s1572_s16, %s1947_s16   ;;  %s1524_s15 = sphi %s1570_s15, %s1946_s15   ;;  %s1520_s14 = sphi %s1568_s14, %s1945_s14   ;;  %s1516_s13 = sphi %s1566_s13, %s1944_s13   ;;  %s1512_s12 = sphi %s1564_s12, %s1943_s12   ;;  %s1508_s11 = sphi %s1562_s11, %s1942_s11   ;;  %s1504_s10 = sphi %s1560_s10, %s1941_s10   ;;  %s1500_s9 = sphi %s1558_s9, %s1940_s9  }
   0x9   : > { %p25_p0 = scmp.ge.s32.totalorder %s24_s21, 8  ;;  %s27_s22 = sadd.s32 1, %s1536_s18 }
   0xa   : > { %s40_s23 = sadd.s32 1, %s1520_s14  ;;  %p47_p1 = scmp.ne.s32.totalorder %s1520_s14, %s1516_s13 }
   0xb   : > { %s1951_s21 = smov (%p25_p0, %s24_s21), 0  ;;  %s1953_s22 = smov (!%p25_p0, %s27_s22), %s1536_s18 }
   0xc   : > { %s36_s24 = ssub.s32 %s1532_s17, %s1951_s21  ;;  %p48_p2 = scmp.eq.s32.totalorder %s1540_s19, 0 }
   0xd   : > { %p29_p3 = scmp.ge.s32.totalorder %s1953_s22, 2  ;;  %p38_p4 = scmp.eq.s32.totalorder %s36_s24, 0 }
   0xe   : > { %p1625_p5 = por %p48_p2, %p47_p1  ;;  %s68_s26 = sadd.s32 1, %s1512_s12 }
   0xf   : > { %s1955_s22 = smov (%p29_p3, %s1953_s22), 0  ;;  %p75_p6 = scmp.ne.s32.totalorder %s1512_s12, %s1508_s11 }
  0x10   : > { %s1633_s27 = scalar_select %p38_p4, %s1520_s14, %s40_s23  }
  0x11   : > { %s64_s28 = ssub.s32 %s1536_s18, %s1955_s22  ;;  %p1639_p9 = por %p75_p6, %p48_p2 }
  0x12   : > { %s65_s29 = sor.u32 %s64_s28, %s36_s24  ;;  %p94_p7 = scmp.eq.s32.totalorder %s64_s28, 0 }
  0x13   : > { %p66_p8 = scmp.eq.s32.totalorder %s65_s29, 0  ;;  %s96_s3 = sadd.s32 1, %s1504_s10 }
  0x14   : > { %p106_p10 = scmp.ne.s32.totalorder %s1504_s10, %s1500_s9  ;;  %p107_p11 = scmp.eq.s32.totalorder %s1169_s20, 15 }
  0x15   : > { %s1647_s4 = scalar_select %p66_p8, %s1512_s12, %s68_s26  }
  0x16   : > { %s1650_s5 = scalar_select %p94_p7, %s1504_s10, %s96_s3  }
  0x17   : > { %p1652_p12 = por %p107_p11, %p106_p10  ;;  %p1172_p13 = scmp.ge.s32.totalorder %s1540_s19, 16 }
  0x19   : > { %129 = sbr.rel (%p1172_p13) target bundleno = 81 (0x51), region = 16 }
  0x1e   : > { %132 = sbr.rel (!%p1625_p5) target bundleno = 42 (0x2a), region = 20  ;;  %s134_s7 = sand.u32 (%p1625_p5), 1, %s1520_s14  }
  0x1f   : > { %s1260_s8 = sshll.u32 (%p1625_p5), %s1532_s17, 4  ;;  %s1173_s23 = sshll.u32 (%p1625_p5), %s134_s7, 5 }
  0x20   : > { %s1939_s0 = sld [smem:[#allocation6_spill]] (%p1625_p5)  ;;  %s136_s20 = scalar_lea.vmem (%p1625_p5), [#allocation3], %s1173_s23 }
  0x26   : > { %s142_s28 = scalar_lea.vmem %s1939_s0, %s1260_s8 }
  0x27   : > { %v155_v0 = vld [vmem:[%s142_s28] sm:$0xff]  ;;  %v157_v1 = vld [vmem:[%s142_s28 + $0x8] sm:$0xff] }
  0x28   : > { %v159_v2 = vld [vmem:[%s142_s28 + $0x80] sm:$0xff]  ;;  %156 = vst [vmem:[%s136_s20] sm:$0xff] %v155_v0  ;;  %158 = vst [vmem:[%s136_s20 + $0x8] sm:$0xff] %v157_v1  ;;  %v161_v3 = vld [vmem:[%s142_s28 + $0x88] sm:$0xff] }
  0x29   : > { %160 = vst [vmem:[%s136_s20 + $0x10] sm:$0xff] %v159_v2  ;;  %162 = vst [vmem:[%s136_s20 + $0x18] sm:$0xff] %v161_v3 }
  0x2a PF: > { %168 = sbr.rel (!%p1639_p9) target bundleno = 81 (0x51), region = 43  ;;  %s170_s25 = sand.u32 (%p1639_p9), 1, %s1512_s12  }
  0x2b   : > { %s1178_s29 = sshll.u32 (%p1639_p9), %s1536_s18, 1  ;;  %s1176_s3 = sshll.u32 (%p1639_p9), %s170_s25, 9 }
  0x2c   : > { %s1261_s7 = sshll.u32 (%p1639_p9), %s1532_s17, 8  ;;  %s1677_s30 = scalar_lea.vmem (%p1639_p9), [#allocation4], %s1176_s3 }
  0x2d   : > { %s176_s8 = sadd.s32 (%p1639_p9), %s1261_s7, %s1178_s29 }
  0x2e   : > { %s1180_s24 = sshll.u32 (%p1639_p9), %s176_s8, 2 }
  0x2f   : > { %s1672_s0 = scalar_lea.vmem %s1933_s1, %s1180_s24 }
  0x30   : > { %v333_v4 = vld [vmem:[%s1672_s0] sm:$0xff]  ;;  %v335_v5 = vld [vmem:[%s1672_s0 + $0x10] sm:$0xff] }
  0x31   : > { %v337_v6 = vld [vmem:[%s1672_s0 + $0x20] sm:$0xff]  ;;  %334 = vst [vmem:[%s1677_s30] sm:$0xff] %v333_v4  ;;  %336 = vst [vmem:[%s1677_s30 + $0x8] sm:$0xff] %v335_v5  ;;  %v339_v7 = vld [vmem:[%s1672_s0 + $0x30] sm:$0xff] }
  0x32   : > { %338 = vst [vmem:[%s1677_s30 + $0x10] sm:$0xff] %v337_v6  ;;  %v341_v8 = vld [vmem:[%s1672_s0 + $0x40] sm:$0xff]  ;;  %v343_v9 = vld [vmem:[%s1672_s0 + $0x50] sm:$0xff]  ;;  %340 = vst [vmem:[%s1677_s30 + $0x18] sm:$0xff] %v339_v7 }
  0x33   : > { %342 = vst [vmem:[%s1677_s30 + $0x20] sm:$0xff] %v341_v8  ;;  %344 = vst [vmem:[%s1677_s30 + $0x28] sm:$0xff] %v343_v9  ;;  %v345_v10 = vld [vmem:[%s1672_s0 + $0x60] sm:$0xff]  ;;  %v347_v11 = vld [vmem:[%s1672_s0 + $0x70] sm:$0xff] }
  0x34   : > { %v349_v12 = vld [vmem:[%s1672_s0 + $0x80] sm:$0xff]  ;;  %346 = vst [vmem:[%s1677_s30 + $0x30] sm:$0xff] %v345_v10  ;;  %348 = vst [vmem:[%s1677_s30 + $0x38] sm:$0xff] %v347_v11  ;;  %v351_v13 = vld [vmem:[%s1672_s0 + $0x90] sm:$0xff] }
  0x35   : > { %350 = vst [vmem:[%s1677_s30 + $0x40] sm:$0xff] %v349_v12  ;;  %v353_v14 = vld [vmem:[%s1672_s0 + $0xa0] sm:$0xff]  ;;  %v355_v15 = vld [vmem:[%s1672_s0 + $0xb0] sm:$0xff]  ;;  %352 = vst [vmem:[%s1677_s30 + $0x48] sm:$0xff] %v351_v13 }
  0x36   : > { %354 = vst [vmem:[%s1677_s30 + $0x50] sm:$0xff] %v353_v14  ;;  %356 = vst [vmem:[%s1677_s30 + $0x58] sm:$0xff] %v355_v15  ;;  %v357_v16 = vld [vmem:[%s1672_s0 + $0xc0] sm:$0xff]  ;;  %v359_v17 = vld [vmem:[%s1672_s0 + $0xd0] sm:$0xff] }
  0x37   : > { %v361_v18 = vld [vmem:[%s1672_s0 + $0xe0] sm:$0xff]  ;;  %358 = vst [vmem:[%s1677_s30 + $0x60] sm:$0xff] %v357_v16  ;;  %360 = vst [vmem:[%s1677_s30 + $0x68] sm:$0xff] %v359_v17  ;;  %v363_v19 = vld [vmem:[%s1672_s0 + $0xf0] sm:$0xff] }
  0x38   : > { %362 = vst [vmem:[%s1677_s30 + $0x70] sm:$0xff] %v361_v18  ;;  %v365_v20 = vld [vmem:[%s1672_s0 + $0x100] sm:$0xff]  ;;  %v367_v21 = vld [vmem:[%s1672_s0 + $0x110] sm:$0xff]  ;;  %364 = vst [vmem:[%s1677_s30 + $0x78] sm:$0xff] %v363_v19 }
  0x39   : > { %366 = vst [vmem:[%s1677_s30 + $0x80] sm:$0xff] %v365_v20  ;;  %368 = vst [vmem:[%s1677_s30 + $0x88] sm:$0xff] %v367_v21  ;;  %v369_v22 = vld [vmem:[%s1672_s0 + $0x120] sm:$0xff]  ;;  %v371_v23 = vld [vmem:[%s1672_s0 + $0x130] sm:$0xff] }
  0x3a   : > { %v373_v24 = vld [vmem:[%s1672_s0 + $0x140] sm:$0xff]  ;;  %370 = vst [vmem:[%s1677_s30 + $0x90] sm:$0xff] %v369_v22  ;;  %372 = vst [vmem:[%s1677_s30 + $0x98] sm:$0xff] %v371_v23  ;;  %v375_v25 = vld [vmem:[%s1672_s0 + $0x150] sm:$0xff] }
  0x3b   : > { %374 = vst [vmem:[%s1677_s30 + $0xa0] sm:$0xff] %v373_v24  ;;  %v377_v26 = vld [vmem:[%s1672_s0 + $0x160] sm:$0xff]  ;;  %v379_v27 = vld [vmem:[%s1672_s0 + $0x170] sm:$0xff]  ;;  %376 = vst [vmem:[%s1677_s30 + $0xa8] sm:$0xff] %v375_v25 }
  0x3c   : > { %378 = vst [vmem:[%s1677_s30 + $0xb0] sm:$0xff] %v377_v26  ;;  %380 = vst [vmem:[%s1677_s30 + $0xb8] sm:$0xff] %v379_v27  ;;  %v381_v28 = vld [vmem:[%s1672_s0 + $0x180] sm:$0xff]  ;;  %v383_v29 = vld [vmem:[%s1672_s0 + $0x190] sm:$0xff] }
  0x3d   : > { %v385_v30 = vld [vmem:[%s1672_s0 + $0x1a0] sm:$0xff]  ;;  %382 = vst [vmem:[%s1677_s30 + $0xc0] sm:$0xff] %v381_v28  ;;  %384 = vst [vmem:[%s1677_s30 + $0xc8] sm:$0xff] %v383_v29  ;;  %v387_v31 = vld [vmem:[%s1672_s0 + $0x1b0] sm:$0xff] }
  0x3e   : > { %386 = vst [vmem:[%s1677_s30 + $0xd0] sm:$0xff] %v385_v30  ;;  %v389_v32 = vld [vmem:[%s1672_s0 + $0x1c0] sm:$0xff]  ;;  %v391_v33 = vld [vmem:[%s1672_s0 + $0x1d0] sm:$0xff]  ;;  %388 = vst [vmem:[%s1677_s30 + $0xd8] sm:$0xff] %v387_v31 }
  0x3f   : > { %390 = vst [vmem:[%s1677_s30 + $0xe0] sm:$0xff] %v389_v32  ;;  %392 = vst [vmem:[%s1677_s30 + $0xe8] sm:$0xff] %v391_v33  ;;  %v393_v34 = vld [vmem:[%s1672_s0 + $0x1e0] sm:$0xff]  ;;  %v395_v35 = vld [vmem:[%s1672_s0 + $0x1f0] sm:$0xff] }
  0x40   : > { %v397_v36 = vld [vmem:[%s1672_s0 + $0x200] sm:$0xff]  ;;  %394 = vst [vmem:[%s1677_s30 + $0xf0] sm:$0xff] %v393_v34  ;;  %396 = vst [vmem:[%s1677_s30 + $0xf8] sm:$0xff] %v395_v35  ;;  %v399_v37 = vld [vmem:[%s1672_s0 + $0x210] sm:$0xff] }
  0x41   : > { %398 = vst [vmem:[%s1677_s30 + $0x100] sm:$0xff] %v397_v36  ;;  %v401_v38 = vld [vmem:[%s1672_s0 + $0x220] sm:$0xff]  ;;  %v403_v39 = vld [vmem:[%s1672_s0 + $0x230] sm:$0xff]  ;;  %400 = vst [vmem:[%s1677_s30 + $0x108] sm:$0xff] %v399_v37 }
  0x42   : > { %402 = vst [vmem:[%s1677_s30 + $0x110] sm:$0xff] %v401_v38  ;;  %404 = vst [vmem:[%s1677_s30 + $0x118] sm:$0xff] %v403_v39  ;;  %v405_v40 = vld [vmem:[%s1672_s0 + $0x240] sm:$0xff]  ;;  %v407_v41 = vld [vmem:[%s1672_s0 + $0x250] sm:$0xff] }
  0x43   : > { %v409_v42 = vld [vmem:[%s1672_s0 + $0x260] sm:$0xff]  ;;  %406 = vst [vmem:[%s1677_s30 + $0x120] sm:$0xff] %v405_v40  ;;  %408 = vst [vmem:[%s1677_s30 + $0x128] sm:$0xff] %v407_v41  ;;  %v411_v43 = vld [vmem:[%s1672_s0 + $0x270] sm:$0xff] }
  0x44   : > { %410 = vst [vmem:[%s1677_s30 + $0x130] sm:$0xff] %v409_v42  ;;  %v413_v44 = vld [vmem:[%s1672_s0 + $0x280] sm:$0xff]  ;;  %v415_v45 = vld [vmem:[%s1672_s0 + $0x290] sm:$0xff]  ;;  %412 = vst [vmem:[%s1677_s30 + $0x138] sm:$0xff] %v411_v43 }
  0x45   : > { %414 = vst [vmem:[%s1677_s30 + $0x140] sm:$0xff] %v413_v44  ;;  %416 = vst [vmem:[%s1677_s30 + $0x148] sm:$0xff] %v415_v45  ;;  %v417_v46 = vld [vmem:[%s1672_s0 + $0x2a0] sm:$0xff]  ;;  %v419_v47 = vld [vmem:[%s1672_s0 + $0x2b0] sm:$0xff] }
  0x46   : > { %v421_v48 = vld [vmem:[%s1672_s0 + $0x2c0] sm:$0xff]  ;;  %418 = vst [vmem:[%s1677_s30 + $0x150] sm:$0xff] %v417_v46  ;;  %420 = vst [vmem:[%s1677_s30 + $0x158] sm:$0xff] %v419_v47  ;;  %v423_v49 = vld [vmem:[%s1672_s0 + $0x2d0] sm:$0xff] }
  0x47   : > { %422 = vst [vmem:[%s1677_s30 + $0x160] sm:$0xff] %v421_v48  ;;  %v425_v50 = vld [vmem:[%s1672_s0 + $0x2e0] sm:$0xff]  ;;  %v427_v51 = vld [vmem:[%s1672_s0 + $0x2f0] sm:$0xff]  ;;  %424 = vst [vmem:[%s1677_s30 + $0x168] sm:$0xff] %v423_v49 }
  0x48   : > { %426 = vst [vmem:[%s1677_s30 + $0x170] sm:$0xff] %v425_v50  ;;  %428 = vst [vmem:[%s1677_s30 + $0x178] sm:$0xff] %v427_v51  ;;  %v429_v52 = vld [vmem:[%s1672_s0 + $0x300] sm:$0xff]  ;;  %v431_v53 = vld [vmem:[%s1672_s0 + $0x310] sm:$0xff] }
  0x49   : > { %v433_v54 = vld [vmem:[%s1672_s0 + $0x320] sm:$0xff]  ;;  %430 = vst [vmem:[%s1677_s30 + $0x180] sm:$0xff] %v429_v52  ;;  %432 = vst [vmem:[%s1677_s30 + $0x188] sm:$0xff] %v431_v53  ;;  %v435_v55 = vld [vmem:[%s1672_s0 + $0x330] sm:$0xff] }
  0x4a   : > { %434 = vst [vmem:[%s1677_s30 + $0x190] sm:$0xff] %v433_v54  ;;  %v437_v56 = vld [vmem:[%s1672_s0 + $0x340] sm:$0xff]  ;;  %v439_v57 = vld [vmem:[%s1672_s0 + $0x350] sm:$0xff]  ;;  %436 = vst [vmem:[%s1677_s30 + $0x198] sm:$0xff] %v435_v55 }
  0x4b   : > { %438 = vst [vmem:[%s1677_s30 + $0x1a0] sm:$0xff] %v437_v56  ;;  %440 = vst [vmem:[%s1677_s30 + $0x1a8] sm:$0xff] %v439_v57  ;;  %v441_v58 = vld [vmem:[%s1672_s0 + $0x360] sm:$0xff]  ;;  %v443_v59 = vld [vmem:[%s1672_s0 + $0x370] sm:$0xff] }
  0x4c   : > { %v445_v60 = vld [vmem:[%s1672_s0 + $0x380] sm:$0xff]  ;;  %442 = vst [vmem:[%s1677_s30 + $0x1b0] sm:$0xff] %v441_v58  ;;  %444 = vst [vmem:[%s1677_s30 + $0x1b8] sm:$0xff] %v443_v59  ;;  %v447_v61 = vld [vmem:[%s1672_s0 + $0x390] sm:$0xff] }
  0x4d   : > { %446 = vst [vmem:[%s1677_s30 + $0x1c0] sm:$0xff] %v445_v60  ;;  %v449_v62 = vld [vmem:[%s1672_s0 + $0x3a0] sm:$0xff]  ;;  %v451_v63 = vld [vmem:[%s1672_s0 + $0x3b0] sm:$0xff]  ;;  %448 = vst [vmem:[%s1677_s30 + $0x1c8] sm:$0xff] %v447_v61 }
  0x4e   : > { %450 = vst [vmem:[%s1677_s30 + $0x1d0] sm:$0xff] %v449_v62  ;;  %452 = vst [vmem:[%s1677_s30 + $0x1d8] sm:$0xff] %v451_v63  ;;  %v453_v0 = vld [vmem:[%s1672_s0 + $0x3c0] sm:$0xff]  ;;  %v455_v1 = vld [vmem:[%s1672_s0 + $0x3d0] sm:$0xff] }
  0x4f   : > { %v457_v2 = vld [vmem:[%s1672_s0 + $0x3e0] sm:$0xff]  ;;  %454 = vst [vmem:[%s1677_s30 + $0x1e0] sm:$0xff] %v453_v0  ;;  %456 = vst [vmem:[%s1677_s30 + $0x1e8] sm:$0xff] %v455_v1  ;;  %v459_v3 = vld [vmem:[%s1672_s0 + $0x3f0] sm:$0xff] }
  0x50   : > { %458 = vst [vmem:[%s1677_s30 + $0x1f0] sm:$0xff] %v457_v2  ;;  %460 = vst [vmem:[%s1677_s30 + $0x1f8] sm:$0xff] %v459_v3 }
  0x51 PF: > { %p1181_p0 = scmp.ge.s32.totalorder %s1540_s19, 1  ;;  %p465_p1 = scmp.lt.s32.totalorder %s1540_s19, 17 }
  0x53   : > { %p466_p2 = pnand %p1181_p0, %p465_p1 }
  0x54   : > { %s472_s28 = sand.u32 (!%p466_p2), 1, %s1516_s13   ;;  %s479_s20 = sand.u32 (!%p466_p2), 1, %s1508_s11  }
  0x55   : > { %469 = sbr.rel (%p466_p2) target bundleno = 385 (0x181), region = 81  ;;  %s1182_s25 = sshll.u32 (!%p466_p2), %s472_s28, 5 }
  0x56   : > { %s1183_s29 = sshll.u32 (!%p466_p2), %s479_s20, 9  ;;  %s500_s3 = sand.u32 (!%p466_p2), 1, %s1500_s9  }
  0x57   : > { %s1184_s7 = sshll.u32 (!%p466_p2), %s500_s3, 5  ;;  %s1809_s8 = scalar_lea.vmem (!%p466_p2), [#allocation3], %s1182_s25 }
  0x58   : > { %s1811_s0 = scalar_lea.vmem (!%p466_p2), [#allocation4], %s1183_s29  ;;  %s1813_s24 = scalar_lea.vmem (!%p466_p2), [#allocation5], %s1184_s7 }
  0x59   : > { %p1185_p3 = scmp.ne.s32.totalorder (!%p466_p2), %s1524_s15, 0 }
  0x5b   : > { %512 = sbr.rel (%p1185_p3) target bundleno = 99 (0x63), region = 93 }
  0x60   : > { %v1542_v4 = vmov 0.0  }
  0x61   : > { %513 = vst [vmem:[#allocation2 + $0x10] sm:$0xff] %v1542_v4  ;;  %514 = vst [vmem:[#allocation2] sm:$0xff] %v1542_v4 }
  0x62   : > { %515 = vst [vmem:[#allocation2 + $0x18] sm:$0xff] %v1542_v4  ;;  %516 = vst [vmem:[#allocation2 + $0x8] sm:$0xff] %v1542_v4 }
  0x63 PF: > { %v1352_v5 = vld [vmem:[%s1811_s0 + $0x74] ss:$8 sps:$4 sm:$0xff]   ;;  %v1356_v7 = vld [vmem:[%s1811_s0 + $0x70] ss:$8 sps:$4 sm:$0xff]   ;;  %v1358_v9 = vld [vmem:[%s1811_s0 + $0x64] ss:$8 sps:$4 sm:$0xff]  }
  0x64   : > { %v1354_v6 = vld [vmem:[%s1811_s0 + $0x174] ss:$8 sps:$4 sm:$0xff]   ;;  %929 = vmatprep.subr.bf16.mxu0 %v1352_v5  ;;  %v1357_v8 = vld [vmem:[%s1811_s0 + $0x170] ss:$8 sps:$4 sm:$0xff]   ;;  %v1360_v10 = vld [vmem:[%s1811_s0 + $0x164] ss:$8 sps:$4 sm:$0xff]  }
  0x65   : > { %972 = vmatprep.subr.bf16.mxu1 %v1354_v6  ;;  %930 = vmatpush1.bf16.msra.mxu0 %v1356_v7  ;;  %v1362_v11 = vld [vmem:[%s1811_s0 + $0x60] ss:$8 sps:$4 sm:$0xff]   ;;  %v1364_v13 = vld [vmem:[%s1811_s0 + $0x54] ss:$8 sps:$4 sm:$0xff]   ;;  %v1368_v15 = vld [vmem:[%s1811_s0 + $0x50] ss:$8 sps:$4 sm:$0xff]  }
  0x66   : > { %973 = vmatpush1.bf16.msra.mxu1 %v1357_v8  ;;  %931 = vmatprep.subr.bf16.mxu0 %v1358_v9  ;;  %v1363_v12 = vld [vmem:[%s1811_s0 + $0x160] ss:$8 sps:$4 sm:$0xff]   ;;  %v1366_v14 = vld [vmem:[%s1811_s0 + $0x154] ss:$8 sps:$4 sm:$0xff]   ;;  %v1369_v16 = vld [vmem:[%s1811_s0 + $0x150] ss:$8 sps:$4 sm:$0xff]  }
  0x67   : > { %974 = vmatprep.subr.bf16.mxu1 %v1360_v10  ;;  %v1370_v17 = vld [vmem:[%s1811_s0 + $0x44] ss:$8 sps:$4 sm:$0xff]   ;;  %v1374_v19 = vld [vmem:[%s1811_s0 + $0x40] ss:$8 sps:$4 sm:$0xff]   ;;  %v1376_v21 = vld [vmem:[%s1811_s0 + $0x34] ss:$8 sps:$4 sm:$0xff]  }
  0x68   : > { %v1372_v18 = vld [vmem:[%s1811_s0 + $0x144] ss:$8 sps:$4 sm:$0xff]   ;;  %v1375_v20 = vld [vmem:[%s1811_s0 + $0x140] ss:$8 sps:$4 sm:$0xff]   ;;  %v1378_v22 = vld [vmem:[%s1811_s0 + $0x134] ss:$8 sps:$4 sm:$0xff]  }
  0x69   : > { %932 = vmatpush1.bf16.msra.mxu0 %v1362_v11  ;;  %v1380_v23 = vld [vmem:[%s1811_s0 + $0x30] ss:$8 sps:$4 sm:$0xff]   ;;  %v1382_v25 = vld [vmem:[%s1811_s0 + $0x24] ss:$8 sps:$4 sm:$0xff]   ;;  %v1386_v27 = vld [vmem:[%s1811_s0 + $0x20] ss:$8 sps:$4 sm:$0xff]  }
  0x6a   : > { %975 = vmatpush1.bf16.msra.mxu1 %v1363_v12  ;;  %933 = vmatprep.subr.bf16.mxu0 %v1364_v13  ;;  %v1381_v24 = vld [vmem:[%s1811_s0 + $0x130] ss:$8 sps:$4 sm:$0xff]   ;;  %v1384_v26 = vld [vmem:[%s1811_s0 + $0x124] ss:$8 sps:$4 sm:$0xff]   ;;  %v1387_v28 = vld [vmem:[%s1811_s0 + $0x120] ss:$8 sps:$4 sm:$0xff]  }
  0x6b   : > { %976 = vmatprep.subr.bf16.mxu1 %v1366_v14  ;;  %v1388_v29 = vld [vmem:[%s1811_s0 + $0x14] ss:$8 sps:$4 sm:$0xff]   ;;  %v1392_v31 = vld [vmem:[%s1811_s0 + $0x10] ss:$8 sps:$4 sm:$0xff]   ;;  %v1394_v33 = vld [vmem:[%s1811_s0 + $0x4] ss:$8 sps:$4 sm:$0xff]  }
  0x6c   : > { %v1390_v30 = vld [vmem:[%s1811_s0 + $0x114] ss:$8 sps:$4 sm:$0xff]   ;;  %v1393_v32 = vld [vmem:[%s1811_s0 + $0x110] ss:$8 sps:$4 sm:$0xff]   ;;  %v1396_v34 = vld [vmem:[%s1811_s0 + $0x104] ss:$8 sps:$4 sm:$0xff]  }
  0x6d   : > { %934 = vmatpush1.bf16.msra.mxu0 %v1368_v15  ;;  %v1398_v35 = vld [vmem:[%s1811_s0] ss:$8 sps:$4 sm:$0xff]   ;;  %v1400_v37 = vld [vmem:[%s1811_s0 + $0xf4] ss:$8 sps:$4 sm:$0xff]   ;;  %v1404_v39 = vld [vmem:[%s1811_s0 + $0xf0] ss:$8 sps:$4 sm:$0xff]  }
  0x6e   : > { %977 = vmatpush1.bf16.msra.mxu1 %v1369_v16  ;;  %935 = vmatprep.subr.bf16.mxu0 %v1370_v17  ;;  %v1399_v36 = vld [vmem:[%s1811_s0 + $0x100] ss:$8 sps:$4 sm:$0xff]   ;;  %v1402_v38 = vld [vmem:[%s1811_s0 + $0x1f4] ss:$8 sps:$4 sm:$0xff]   ;;  %v1405_v40 = vld [vmem:[%s1811_s0 + $0x1f0] ss:$8 sps:$4 sm:$0xff]  }
  0x6f   : > { %978 = vmatprep.subr.bf16.mxu1 %v1372_v18  ;;  %v1406_v41 = vld [vmem:[%s1811_s0 + $0xe4] ss:$8 sps:$4 sm:$0xff]   ;;  %v1410_v43 = vld [vmem:[%s1811_s0 + $0xe0] ss:$8 sps:$4 sm:$0xff]   ;;  %v1412_v45 = vld [vmem:[%s1811_s0 + $0xd4] ss:$8 sps:$4 sm:$0xff]  }
  0x70   : > { %v1408_v42 = vld [vmem:[%s1811_s0 + $0x1e4] ss:$8 sps:$4 sm:$0xff]   ;;  %v1411_v44 = vld [vmem:[%s1811_s0 + $0x1e0] ss:$8 sps:$4 sm:$0xff]   ;;  %v1414_v46 = vld [vmem:[%s1811_s0 + $0x1d4] ss:$8 sps:$4 sm:$0xff]  }
  0x71   : > { %936 = vmatpush1.bf16.msra.mxu0 %v1374_v19  ;;  %v1416_v47 = vld [vmem:[%s1811_s0 + $0xd0] ss:$8 sps:$4 sm:$0xff]   ;;  %v1418_v49 = vld [vmem:[%s1811_s0 + $0xc4] ss:$8 sps:$4 sm:$0xff]   ;;  %v1422_v51 = vld [vmem:[%s1811_s0 + $0xc0] ss:$8 sps:$4 sm:$0xff]  }
  0x72   : > { %979 = vmatpush1.bf16.msra.mxu1 %v1375_v20  ;;  %937 = vmatprep.subr.bf16.mxu0 %v1376_v21  ;;  %v1417_v48 = vld [vmem:[%s1811_s0 + $0x1d0] ss:$8 sps:$4 sm:$0xff]   ;;  %v1420_v50 = vld [vmem:[%s1811_s0 + $0x1c4] ss:$8 sps:$4 sm:$0xff]   ;;  %v1423_v53 = vld [vmem:[%s1811_s0 + $0x1c0] ss:$8 sps:$4 sm:$0xff]  }
  0x73   : > { %980 = vmatprep.subr.bf16.mxu1 %v1378_v22  ;;  %v1450_v52 = vld [vmem:[%s1809_s8 + $0x4] ss:$16 sps:$4 sm:$0xff]   ;;  %v1453_v56 = vld [vmem:[%s1809_s8 + $0xc] ss:$16 sps:$4 sm:$0xff]   ;;  %v1428_v57 = vld [vmem:[%s1811_s0 + $0xb0] ss:$8 sps:$4 sm:$0xff]  }
  0x74   : > { %v1424_v54 = vld [vmem:[%s1811_s0 + $0xb4] ss:$8 sps:$4 sm:$0xff]   ;;  %961 = vmatprep.mubr.bf16.mxu0 %v1450_v52  ;;  %1004 = vmatprep.mubr.bf16.mxu1 %v1453_v56  ;;  %v1429_v58 = vld [vmem:[%s1811_s0 + $0x1b0] ss:$8 sps:$4 sm:$0xff]   ;;  %v1430_v59 = vld [vmem:[%s1811_s0 + $0xa4] ss:$8 sps:$4 sm:$0xff]  }
  0x75   : > { %938 = vmatpush1.bf16.msra.mxu0 %v1380_v23  ;;  %v1426_v55 = vld [vmem:[%s1811_s0 + $0x1b4] ss:$8 sps:$4 sm:$0xff]   ;;  %v1432_v60 = vld [vmem:[%s1811_s0 + $0x1a4] ss:$8 sps:$4 sm:$0xff]   ;;  %v1434_v61 = vld [vmem:[%s1811_s0 + $0xa0] ss:$8 sps:$4 sm:$0xff]  }
  0x76   : > { %981 = vmatpush1.bf16.msra.mxu1 %v1381_v24  ;;  %939 = vmatprep.subr.bf16.mxu0 %v1382_v25  ;;  %v1435_v62 = vld [vmem:[%s1811_s0 + $0x1a0] ss:$8 sps:$4 sm:$0xff]   ;;  %v1436_v63 = vld [vmem:[%s1811_s0 + $0x94] ss:$8 sps:$4 sm:$0xff]   ;;  %v1440_v1 = vld [vmem:[%s1811_s0 + $0x90] ss:$8 sps:$4 sm:$0xff]  }
  0x77   : > { %982 = vmatprep.subr.bf16.mxu1 %v1384_v26  ;;  %v1438_v0 = vld [vmem:[%s1811_s0 + $0x194] ss:$8 sps:$4 sm:$0xff]   ;;  %v1441_v2 = vld [vmem:[%s1811_s0 + $0x190] ss:$8 sps:$4 sm:$0xff]   ;;  %v1442_v3 = vld [vmem:[%s1811_s0 + $0x84] ss:$8 sps:$4 sm:$0xff]  }
  0x78   : > { %v1444_v4 = vld [vmem:[%s1811_s0 + $0x184] ss:$8 sps:$4 sm:$0xff]   ;;  %v1446_v5 = vld [vmem:[%s1811_s0 + $0x80] ss:$8 sps:$4 sm:$0xff]   ;;  %v517_v10 = vld [vmem:[#allocation2 + $0x10] sm:$0xff]  ;;  %p1254_p4 = scmp.ne.s32.totalorder %s1524_s15, 7 }
  0x79   : > { %940 = vmatpush1.bf16.msra.mxu0 %v1386_v27  ;;  %v1447_v6 = vld [vmem:[%s1811_s0 + $0x180] ss:$8 sps:$4 sm:$0xff]   ;;  %v519_v19 = vld [vmem:[#allocation2 + $0x18] sm:$0xff] }
  0x7a   : > { %983 = vmatpush1.bf16.msra.mxu1 %v1387_v28  ;;  %941 = vmatprep.subr.bf16.mxu0 %v1388_v29  ;;  %v1448_v7 = vld [vmem:[%s1809_s8] ss:$16 sps:$4 sm:$0xff]   ;;  %v1451_v8 = vld [vmem:[%s1809_s8 + $0x8] ss:$16 sps:$4 sm:$0xff]  }
  0x7b   : > { %984 = vmatprep.subr.bf16.mxu1 %v1390_v30  ;;  %v518_v14 = vld [vmem:[#allocation2] sm:$0xff]  ;;  %v520_v24 = vld [vmem:[#allocation2 + $0x8] sm:$0xff] }
  0x7d   : > { %942 = vmatpush1.bf16.msra.mxu0 %v1392_v31 }
  0x7e   : > { %985 = vmatpush1.bf16.msra.mxu1 %v1393_v32  ;;  %943 = vmatprep.subr.bf16.mxu0 %v1394_v33 }
  0x7f   : > { %986 = vmatprep.subr.bf16.mxu1 %v1396_v34 }
  0x81   : > { %944 = vmatpush1.bf16.msra.mxu0 %v1398_v35 }
  0x82   : > { %987 = vmatpush1.bf16.msra.mxu1 %v1399_v36  ;;  %945 = vmatprep.subr.bf16.mxu0 %v1400_v37 }
  0x83   : > { %988 = vmatprep.subr.bf16.mxu1 %v1402_v38 }
  0x85   : > { %946 = vmatpush2.bf16.msra.mxu0 %v1404_v39 }
  0x86   : > { %989 = vmatpush2.bf16.msra.mxu1 %v1405_v40  ;;  %947 = vmatprep.subr.bf16.mxu0 %v1406_v41 }
  0x87   : > { %990 = vmatprep.subr.bf16.mxu1 %v1408_v42 }
  0x89   : > { %948 = vmatpush2.bf16.msra.mxu0 %v1410_v43 }
  0x8a   : > { %991 = vmatpush2.bf16.msra.mxu1 %v1411_v44  ;;  %949 = vmatprep.subr.bf16.mxu0 %v1412_v45 }
  0x8b   : > { %992 = vmatprep.subr.bf16.mxu1 %v1414_v46 }
  0x8d   : > { %950 = vmatpush2.bf16.msra.mxu0 %v1416_v47 }
  0x8e   : > { %993 = vmatpush2.bf16.msra.mxu1 %v1417_v48  ;;  %951 = vmatprep.subr.bf16.mxu0 %v1418_v49 }
  0x8f   : > { %994 = vmatprep.subr.bf16.mxu1 %v1420_v50 }
  0x91   : > { %952 = vmatpush2.bf16.msra.mxu0 %v1422_v51 }
  0x92   : > { %995 = vmatpush2.bf16.msra.mxu1 %v1423_v53  ;;  %953 = vmatprep.subr.bf16.mxu0 %v1424_v54 }
  0x93   : > { %996 = vmatprep.subr.bf16.mxu1 %v1426_v55 }
  0x95   : > { %954 = vmatpush2.bf16.msra.mxu0 %v1428_v57 }
  0x96   : > { %997 = vmatpush2.bf16.msra.mxu1 %v1429_v58  ;;  %955 = vmatprep.subr.bf16.mxu0 %v1430_v59 }
  0x97   : > { %998 = vmatprep.subr.bf16.mxu1 %v1432_v60 }
  0x99   : > { %956 = vmatpush2.bf16.msra.mxu0 %v1434_v61 }
  0x9a   : > { %999 = vmatpush2.bf16.msra.mxu1 %v1435_v62  ;;  %957 = vmatprep.subr.bf16.mxu0 %v1436_v63 }
  0x9b   : > { %1000 = vmatprep.subr.bf16.mxu1 %v1438_v0 }
  0x9d   : > { %958 = vmatpush2.bf16.msra.mxu0 %v1440_v1 }
  0x9e   : > { %1001 = vmatpush2.bf16.msra.mxu1 %v1441_v2  ;;  %959 = vmatprep.subr.bf16.mxu0 %v1442_v3 }
  0x9f   : > { %1002 = vmatprep.subr.bf16.mxu1 %v1444_v4 }
  0xa1   : > { %960 = vmatpush2.bf16.msra.mxu0 %v1446_v5 }
  0xa2   : > { %1003 = vmatpush2.bf16.msra.mxu1 %v1447_v6 }
  0xa4   : > { %962 = vmatmul.mubr.bf16.vlgmr.msra.gmra.mxu0 %v1448_v7 }
  0xa5   : > { %1005 = vmatmul.mubr.bf16.vlgmr.msra.gmra.mxu1 %v1451_v8 }
 0x164   : > { %v963_v9 = vpop.f32.mrf.mxu0 }
 0x165   : > { %v1006_v11 = vpop.f32.mrf.mxu1 }
 0x166   : > { %v1007_v12 = vadd.f32 %v1006_v11, %v963_v9  ;;  %v965_v13 = vpop.f32.mrf.mxu0 }
 0x167   : > { %v1008_v15 = vpop.f32.mrf.mxu1 }
 0x168   : > { %v1015_v16 = vadd.f32 %v1007_v12, %v517_v10  ;;  %v1009_v17 = vadd.f32 %v1008_v15, %v965_v13  ;;  %v967_v18 = vpop.f32.mrf.mxu0 }
 0x169   : > { %v1010_v20 = vpop.f32.mrf.mxu1 }
 0x16a   : > { %1019 = vst [vmem:[#allocation2 + $0x10] sm:$0xff] %v1015_v16  ;;  %v1016_v21 = vadd.f32 %v1009_v17, %v518_v14  ;;  %v1011_v22 = vadd.f32 %v1010_v20, %v967_v18  ;;  %v969_v23 = vpop.f32.mrf.mxu0 }
 0x16b   : > { %v1012_v25 = vpop.f32.mrf.mxu1 }
 0x16c   : > { %1020 = vst [vmem:[#allocation2] sm:$0xff] %v1016_v21  ;;  %v1017_v26 = vadd.f32 %v1011_v22, %v519_v19  ;;  %v1013_v27 = vadd.f32 %v1012_v25, %v969_v23  ;;  %1026 = sbr.rel (%p1254_p4) target bundleno = 377 (0x179), region = 97 }
 0x16e   : > { %1021 = vst [vmem:[#allocation2 + $0x18] sm:$0xff] %v1017_v26  ;;  %v1018_v28 = vadd.f32 %v1013_v27, %v520_v24 }
 0x170   : > { %1022 = vst [vmem:[#allocation2 + $0x8] sm:$0xff] %v1018_v28 }
 0x171   : > { %v1027_v29 = vld [vmem:[#allocation2 + $0x10] sm:$0xff] }
 0x172   : > { %1031 = vst [vmem:[%s1813_s24] sm:$0xff] %v1027_v29 }
 0x173   : > { %v1028_v30 = vld [vmem:[#allocation2] sm:$0xff] }
 0x174   : > { %1032 = vst [vmem:[%s1813_s24 + $0x8] sm:$0xff] %v1028_v30 }
 0x175   : > { %v1029_v31 = vld [vmem:[#allocation2 + $0x18] sm:$0xff] }
 0x176   : > { %1033 = vst [vmem:[%s1813_s24 + $0x10] sm:$0xff] %v1029_v31 }
 0x177   : > { %v1030_v32 = vld [vmem:[#allocation2 + $0x8] sm:$0xff] }
 0x178   : > { %1034 = vst [vmem:[%s1813_s24 + $0x18] sm:$0xff] %v1030_v32 }
 0x179 PF: > { %1041 = sbr.rel (!%p1652_p12) target bundleno = 385 (0x181), region = 101  ;;  %s1262_s9 = sshll.u32 (%p1652_p12), %s1528_s16, 4  ;;  %v1060_v33 = vld [vmem:[%s1813_s24] sm:$0xff] (%p1652_p12) }
 0x17a   : > { %s1047_s15 = scalar_lea.vmem (%p1652_p12), %s1934_s2, %s1262_s9 }
 0x17b   : > { %v1062_v34 = vld [vmem:[%s1813_s24 + $0x8] sm:$0xff] (%p1652_p12)  ;;  %1061 = vst [vmem:[%s1047_s15] sm:$0xff] (%p1652_p12), %v1060_v33 }
 0x17c   : > { %1063 = vst [vmem:[%s1047_s15 + $0x8] sm:$0xff] (%p1652_p12), %v1062_v34 }
 0x17d   : > { %v1064_v35 = vld [vmem:[%s1813_s24 + $0x10] sm:$0xff] (%p1652_p12) }
 0x17e   : > { %1065 = vst [vmem:[%s1047_s15 + $0x20] sm:$0xff] %v1064_v35 }
 0x17f   : > { %v1066_v36 = vld [vmem:[%s1813_s24 + $0x18] sm:$0xff] }
 0x180   : > { %1067 = vst [vmem:[%s1047_s15 + $0x28] sm:$0xff] %v1066_v36 }
 0x181 PF: > { %s12_s19 = sadd.s32 1, %s1540_s19   ;;  %s1940_s9 = smov %s1504_s10 }
 0x182   : > { %p9_p5 = scmp.ge.s32.totalorder %s12_s19, 18   ;;  %s1941_s10 = smov %s1650_s5 }
 0x183   : > { %s1942_s11 = smov %s1512_s12  ;;  %s1943_s12 = smov %s1647_s4 }
 0x184   : > { %s1944_s13 = smov %s1520_s14  ;;  %s1945_s14 = smov %s1633_s27 }
 0x185   : > { %s1946_s15 = smov %s1532_s17  ;;  %s1947_s16 = smov %s1536_s18 }
 0x186   : > { %s1948_s17 = smov %s1951_s21  ;;  %s1949_s18 = smov %s1955_s22 }
 0x187   :  { %11 = sbr.rel (!%p9_p5) target bundleno = 8 (0x8), region = 163 }

// kernel: pix2pix_forward.39
= control target key start
LH: loop header
LB: loop body
LE: loop exit
PB: predicated region body
PF: predicated region fallthrough
CT: control target
= control target key end

     0   :  { %s1932_s0 = inlined_call_operand.vmem [shape: bf16[16,8192], index: 0, kind: input, shape index: {}]   ;;  %s1933_s1 = inlined_call_operand.vmem [shape: bf16[8192,512], index: 1, kind: input, shape index: {}]   ;;  %s1934_s2 = inlined_call_operand.vmem [shape: f32[16,512], index: 2, kind: output, shape index: {}]  }
   0x1   :  { %1935 = sst [smem:[#allocation6_spill]] %s1932_s0 }
   0x2   :  { %s1558_s9 = smov 0   ;;  %s1560_s10 = smov 0  }
   0x3   :  { %s1562_s11 = smov 0   ;;  %s1564_s12 = smov 0  }
   0x4   :  { %s1566_s13 = smov 0   ;;  %s1568_s14 = smov 0  }
   0x5   :  { %s1570_s15 = smov 0   ;;  %s1572_s16 = smov 0  }
   0x6   :  { %s1574_s17 = smov 0   ;;  %s1576_s18 = smov 0  }
   0x7   :  { %s1578_s19 = smov 0  }
   0x8 LB: > { %s1169_s20 = sadd.s32 4294967295, %s1540_s19   ;;  %s24_s21 = sadd.s32 1, %s1532_s17  ;;  %s1540_s19 = sphi %s1578_s19, %s12_s19   ;;  %s1536_s18 = sphi %s1576_s18, %s1949_s18   ;;  %s1532_s17 = sphi %s1574_s17, %s1948_s17   ;;  %s1528_s16 = sphi %s1572_s16, %s1947_s16   ;;  %s1524_s15 = sphi %s1570_s15, %s1946_s15   ;;  %s1520_s14 = sphi %s1568_s14, %s1945_s14   ;;  %s1516_s13 = sphi %s1566_s13, %s1944_s13   ;;  %s1512_s12 = sphi %s1564_s12, %s1943_s12   ;;  %s1508_s11 = sphi %s1562_s11, %s1942_s11   ;;  %s1504_s10 = sphi %s1560_s10, %s1941_s10   ;;  %s1500_s9 = sphi %s1558_s9, %s1940_s9  }
   0x9   : > { %p25_p0 = scmp.ge.s32.totalorder %s24_s21, 16  ;;  %s27_s22 = sadd.s32 1, %s1536_s18 }
   0xa   : > { %s40_s23 = sadd.s32 1, %s1520_s14  ;;  %p47_p1 = scmp.ne.s32.totalorder %s1520_s14, %s1516_s13 }
   0xb   : > { %s1951_s21 = smov (%p25_p0, %s24_s21), 0  ;;  %s1953_s22 = smov (!%p25_p0, %s27_s22), %s1536_s18 }
   0xc   : > { %s36_s24 = ssub.s32 %s1532_s17, %s1951_s21  ;;  %p48_p2 = scmp.eq.s32.totalorder %s1540_s19, 0 }
   0xd   : > { %p29_p3 = scmp.ge.s32.totalorder %s1953_s22, 2  ;;  %p38_p4 = scmp.eq.s32.totalorder %s36_s24, 0 }
   0xe   : > { %p1625_p5 = por %p48_p2, %p47_p1  ;;  %s68_s26 = sadd.s32 1, %s1512_s12 }
   0xf   : > { %s1955_s22 = smov (%p29_p3, %s1953_s22), 0  ;;  %p75_p6 = scmp.ne.s32.totalorder %s1512_s12, %s1508_s11 }
  0x10   : > { %s1633_s27 = scalar_select %p38_p4, %s1520_s14, %s40_s23  }
  0x11   : > { %s64_s28 = ssub.s32 %s1536_s18, %s1955_s22  ;;  %p1639_p9 = por %p75_p6, %p48_p2 }
  0x12   : > { %s65_s29 = sor.u32 %s64_s28, %s36_s24  ;;  %p94_p7 = scmp.eq.s32.totalorder %s64_s28, 0 }
  0x13   : > { %p66_p8 = scmp.eq.s32.totalorder %s65_s29, 0  ;;  %s96_s3 = sadd.s32 1, %s1504_s10 }
  0x14   : > { %p106_p10 = scmp.ne.s32.totalorder %s1504_s10, %s1500_s9  ;;  %p107_p11 = scmp.eq.s32.totalorder %s1169_s20, 31 }
  0x15   : > { %s1647_s4 = scalar_select %p66_p8, %s1512_s12, %s68_s26  }
  0x16   : > { %s1650_s5 = scalar_select %p94_p7, %s1504_s10, %s96_s3  }
  0x17   : > { %p1652_p12 = por %p107_p11, %p106_p10  ;;  %p1172_p13 = scmp.ge.s32.totalorder %s1540_s19, 32 }
  0x19   : > { %129 = sbr.rel (%p1172_p13) target bundleno = 81 (0x51), region = 16 }
  0x1e   : > { %132 = sbr.rel (!%p1625_p5) target bundleno = 42 (0x2a), region = 20  ;;  %s134_s7 = sand.u32 (%p1625_p5), 1, %s1520_s14  }
  0x1f   : > { %s1260_s8 = sshll.u32 (%p1625_p5), %s1532_s17, 4  ;;  %s1173_s23 = sshll.u32 (%p1625_p5), %s134_s7, 5 }
  0x20   : > { %s1939_s0 = sld [smem:[#allocation6_spill]] (%p1625_p5)  ;;  %s136_s20 = scalar_lea.vmem (%p1625_p5), [#allocation3], %s1173_s23 }
  0x26   : > { %s142_s28 = scalar_lea.vmem %s1939_s0, %s1260_s8 }
  0x27   : > { %v155_v0 = vld [vmem:[%s142_s28] sm:$0xff]  ;;  %v157_v1 = vld [vmem:[%s142_s28 + $0x8] sm:$0xff] }
  0x28   : > { %v159_v2 = vld [vmem:[%s142_s28 + $0x100] sm:$0xff]  ;;  %156 = vst [vmem:[%s136_s20] sm:$0xff] %v155_v0  ;;  %158 = vst [vmem:[%s136_s20 + $0x8] sm:$0xff] %v157_v1  ;;  %v161_v3 = vld [vmem:[%s142_s28 + $0x108] sm:$0xff] }
  0x29   : > { %160 = vst [vmem:[%s136_s20 + $0x10] sm:$0xff] %v159_v2  ;;  %162 = vst [vmem:[%s136_s20 + $0x18] sm:$0xff] %v161_v3 }
  0x2a PF: > { %168 = sbr.rel (!%p1639_p9) target bundleno = 81 (0x51), region = 43  ;;  %s170_s25 = sand.u32 (%p1639_p9), 1, %s1512_s12  }
  0x2b   : > { %s1178_s29 = sshll.u32 (%p1639_p9), %s1536_s18, 1  ;;  %s1176_s3 = sshll.u32 (%p1639_p9), %s170_s25, 9 }
  0x2c   : > { %s1261_s7 = sshll.u32 (%p1639_p9), %s1532_s17, 8  ;;  %s1677_s30 = scalar_lea.vmem (%p1639_p9), [#allocation4], %s1176_s3 }
  0x2d   : > { %s176_s8 = sadd.s32 (%p1639_p9), %s1261_s7, %s1178_s29 }
  0x2e   : > { %s1180_s24 = sshll.u32 (%p1639_p9), %s176_s8, 2 }
  0x2f   : > { %s1672_s0 = scalar_lea.vmem %s1933_s1, %s1180_s24 }
  0x30   : > { %v333_v4 = vld [vmem:[%s1672_s0] sm:$0xff]  ;;  %v335_v5 = vld [vmem:[%s1672_s0 + $0x10] sm:$0xff] }
  0x31   : > { %v337_v6 = vld [vmem:[%s1672_s0 + $0x20] sm:$0xff]  ;;  %334 = vst [vmem:[%s1677_s30] sm:$0xff] %v333_v4  ;;  %336 = vst [vmem:[%s1677_s30 + $0x8] sm:$0xff] %v335_v5  ;;  %v339_v7 = vld [vmem:[%s1672_s0 + $0x30] sm:$0xff] }
  0x32   : > { %338 = vst [vmem:[%s1677_s30 + $0x10] sm:$0xff] %v337_v6  ;;  %v341_v8 = vld [vmem:[%s1672_s0 + $0x40] sm:$0xff]  ;;  %v343_v9 = vld [vmem:[%s1672_s0 + $0x50] sm:$0xff]  ;;  %340 = vst [vmem:[%s1677_s30 + $0x18] sm:$0xff] %v339_v7 }
  0x33   : > { %342 = vst [vmem:[%s1677_s30 + $0x20] sm:$0xff] %v341_v8  ;;  %344 = vst [vmem:[%s1677_s30 + $0x28] sm:$0xff] %v343_v9  ;;  %v345_v10 = vld [vmem:[%s1672_s0 + $0x60] sm:$0xff]  ;;  %v347_v11 = vld [vmem:[%s1672_s0 + $0x70] sm:$0xff] }
  0x34   : > { %v349_v12 = vld [vmem:[%s1672_s0 + $0x80] sm:$0xff]  ;;  %346 = vst [vmem:[%s1677_s30 + $0x30] sm:$0xff] %v345_v10  ;;  %348 = vst [vmem:[%s1677_s30 + $0x38] sm:$0xff] %v347_v11  ;;  %v351_v13 = vld [vmem:[%s1672_s0 + $0x90] sm:$0xff] }
  0x35   : > { %350 = vst [vmem:[%s1677_s30 + $0x40] sm:$0xff] %v349_v12  ;;  %v353_v14 = vld [vmem:[%s1672_s0 + $0xa0] sm:$0xff]  ;;  %v355_v15 = vld [vmem:[%s1672_s0 + $0xb0] sm:$0xff]  ;;  %352 = vst [vmem:[%s1677_s30 + $0x48] sm:$0xff] %v351_v13 }
  0x36   : > { %354 = vst [vmem:[%s1677_s30 + $0x50] sm:$0xff] %v353_v14  ;;  %356 = vst [vmem:[%s1677_s30 + $0x58] sm:$0xff] %v355_v15  ;;  %v357_v16 = vld [vmem:[%s1672_s0 + $0xc0] sm:$0xff]  ;;  %v359_v17 = vld [vmem:[%s1672_s0 + $0xd0] sm:$0xff] }
  0x37   : > { %v361_v18 = vld [vmem:[%s1672_s0 + $0xe0] sm:$0xff]  ;;  %358 = vst [vmem:[%s1677_s30 + $0x60] sm:$0xff] %v357_v16  ;;  %360 = vst [vmem:[%s1677_s30 + $0x68] sm:$0xff] %v359_v17  ;;  %v363_v19 = vld [vmem:[%s1672_s0 + $0xf0] sm:$0xff] }
  0x38   : > { %362 = vst [vmem:[%s1677_s30 + $0x70] sm:$0xff] %v361_v18  ;;  %v365_v20 = vld [vmem:[%s1672_s0 + $0x100] sm:$0xff]  ;;  %v367_v21 = vld [vmem:[%s1672_s0 + $0x110] sm:$0xff]  ;;  %364 = vst [vmem:[%s1677_s30 + $0x78] sm:$0xff] %v363_v19 }
  0x39   : > { %366 = vst [vmem:[%s1677_s30 + $0x80] sm:$0xff] %v365_v20  ;;  %368 = vst [vmem:[%s1677_s30 + $0x88] sm:$0xff] %v367_v21  ;;  %v369_v22 = vld [vmem:[%s1672_s0 + $0x120] sm:$0xff]  ;;  %v371_v23 = vld [vmem:[%s1672_s0 + $0x130] sm:$0xff] }
  0x3a   : > { %v373_v24 = vld [vmem:[%s1672_s0 + $0x140] sm:$0xff]  ;;  %370 = vst [vmem:[%s1677_s30 + $0x90] sm:$0xff] %v369_v22  ;;  %372 = vst [vmem:[%s1677_s30 + $0x98] sm:$0xff] %v371_v23  ;;  %v375_v25 = vld [vmem:[%s1672_s0 + $0x150] sm:$0xff] }
  0x3b   : > { %374 = vst [vmem:[%s1677_s30 + $0xa0] sm:$0xff] %v373_v24  ;;  %v377_v26 = vld [vmem:[%s1672_s0 + $0x160] sm:$0xff]  ;;  %v379_v27 = vld [vmem:[%s1672_s0 + $0x170] sm:$0xff]  ;;  %376 = vst [vmem:[%s1677_s30 + $0xa8] sm:$0xff] %v375_v25 }
  0x3c   : > { %378 = vst [vmem:[%s1677_s30 + $0xb0] sm:$0xff] %v377_v26  ;;  %380 = vst [vmem:[%s1677_s30 + $0xb8] sm:$0xff] %v379_v27  ;;  %v381_v28 = vld [vmem:[%s1672_s0 + $0x180] sm:$0xff]  ;;  %v383_v29 = vld [vmem:[%s1672_s0 + $0x190] sm:$0xff] }
  0x3d   : > { %v385_v30 = vld [vmem:[%s1672_s0 + $0x1a0] sm:$0xff]  ;;  %382 = vst [vmem:[%s1677_s30 + $0xc0] sm:$0xff] %v381_v28  ;;  %384 = vst [vmem:[%s1677_s30 + $0xc8] sm:$0xff] %v383_v29  ;;  %v387_v31 = vld [vmem:[%s1672_s0 + $0x1b0] sm:$0xff] }
  0x3e   : > { %386 = vst [vmem:[%s1677_s30 + $0xd0] sm:$0xff] %v385_v30  ;;  %v389_v32 = vld [vmem:[%s1672_s0 + $0x1c0] sm:$0xff]  ;;  %v391_v33 = vld [vmem:[%s1672_s0 + $0x1d0] sm:$0xff]  ;;  %388 = vst [vmem:[%s1677_s30 + $0xd8] sm:$0xff] %v387_v31 }
  0x3f   : > { %390 = vst [vmem:[%s1677_s30 + $0xe0] sm:$0xff] %v389_v32  ;;  %392 = vst [vmem:[%s1677_s30 + $0xe8] sm:$0xff] %v391_v33  ;;  %v393_v34 = vld [vmem:[%s1672_s0 + $0x1e0] sm:$0xff]  ;;  %v395_v35 = vld [vmem:[%s1672_s0 + $0x1f0] sm:$0xff] }
  0x40   : > { %v397_v36 = vld [vmem:[%s1672_s0 + $0x200] sm:$0xff]  ;;  %394 = vst [vmem:[%s1677_s30 + $0xf0] sm:$0xff] %v393_v34  ;;  %396 = vst [vmem:[%s1677_s30 + $0xf8] sm:$0xff] %v395_v35  ;;  %v399_v37 = vld [vmem:[%s1672_s0 + $0x210] sm:$0xff] }
  0x41   : > { %398 = vst [vmem:[%s1677_s30 + $0x100] sm:$0xff] %v397_v36  ;;  %v401_v38 = vld [vmem:[%s1672_s0 + $0x220] sm:$0xff]  ;;  %v403_v39 = vld [vmem:[%s1672_s0 + $0x230] sm:$0xff]  ;;  %400 = vst [vmem:[%s1677_s30 + $0x108] sm:$0xff] %v399_v37 }
  0x42   : > { %402 = vst [vmem:[%s1677_s30 + $0x110] sm:$0xff] %v401_v38  ;;  %404 = vst [vmem:[%s1677_s30 + $0x118] sm:$0xff] %v403_v39  ;;  %v405_v40 = vld [vmem:[%s1672_s0 + $0x240] sm:$0xff]  ;;  %v407_v41 = vld [vmem:[%s1672_s0 + $0x250] sm:$0xff] }
  0x43   : > { %v409_v42 = vld [vmem:[%s1672_s0 + $0x260] sm:$0xff]  ;;  %406 = vst [vmem:[%s1677_s30 + $0x120] sm:$0xff] %v405_v40  ;;  %408 = vst [vmem:[%s1677_s30 + $0x128] sm:$0xff] %v407_v41  ;;  %v411_v43 = vld [vmem:[%s1672_s0 + $0x270] sm:$0xff] }
  0x44   : > { %410 = vst [vmem:[%s1677_s30 + $0x130] sm:$0xff] %v409_v42  ;;  %v413_v44 = vld [vmem:[%s1672_s0 + $0x280] sm:$0xff]  ;;  %v415_v45 = vld [vmem:[%s1672_s0 + $0x290] sm:$0xff]  ;;  %412 = vst [vmem:[%s1677_s30 + $0x138] sm:$0xff] %v411_v43 }
  0x45   : > { %414 = vst [vmem:[%s1677_s30 + $0x140] sm:$0xff] %v413_v44  ;;  %416 = vst [vmem:[%s1677_s30 + $0x148] sm:$0xff] %v415_v45  ;;  %v417_v46 = vld [vmem:[%s1672_s0 + $0x2a0] sm:$0xff]  ;;  %v419_v47 = vld [vmem:[%s1672_s0 + $0x2b0] sm:$0xff] }
  0x46   : > { %v421_v48 = vld [vmem:[%s1672_s0 + $0x2c0] sm:$0xff]  ;;  %418 = vst [vmem:[%s1677_s30 + $0x150] sm:$0xff] %v417_v46  ;;  %420 = vst [vmem:[%s1677_s30 + $0x158] sm:$0xff] %v419_v47  ;;  %v423_v49 = vld [vmem:[%s1672_s0 + $0x2d0] sm:$0xff] }
  0x47   : > { %422 = vst [vmem:[%s1677_s30 + $0x160] sm:$0xff] %v421_v48  ;;  %v425_v50 = vld [vmem:[%s1672_s0 + $0x2e0] sm:$0xff]  ;;  %v427_v51 = vld [vmem:[%s1672_s0 + $0x2f0] sm:$0xff]  ;;  %424 = vst [vmem:[%s1677_s30 + $0x168] sm:$0xff] %v423_v49 }
  0x48   : > { %426 = vst [vmem:[%s1677_s30 + $0x170] sm:$0xff] %v425_v50  ;;  %428 = vst [vmem:[%s1677_s30 + $0x178] sm:$0xff] %v427_v51  ;;  %v429_v52 = vld [vmem:[%s1672_s0 + $0x300] sm:$0xff]  ;;  %v431_v53 = vld [vmem:[%s1672_s0 + $0x310] sm:$0xff] }
  0x49   : > { %v433_v54 = vld [vmem:[%s1672_s0 + $0x320] sm:$0xff]  ;;  %430 = vst [vmem:[%s1677_s30 + $0x180] sm:$0xff] %v429_v52  ;;  %432 = vst [vmem:[%s1677_s30 + $0x188] sm:$0xff] %v431_v53  ;;  %v435_v55 = vld [vmem:[%s1672_s0 + $0x330] sm:$0xff] }
  0x4a   : > { %434 = vst [vmem:[%s1677_s30 + $0x190] sm:$0xff] %v433_v54  ;;  %v437_v56 = vld [vmem:[%s1672_s0 + $0x340] sm:$0xff]  ;;  %v439_v57 = vld [vmem:[%s1672_s0 + $0x350] sm:$0xff]  ;;  %436 = vst [vmem:[%s1677_s30 + $0x198] sm:$0xff] %v435_v55 }
  0x4b   : > { %438 = vst [vmem:[%s1677_s30 + $0x1a0] sm:$0xff] %v437_v56  ;;  %440 = vst [vmem:[%s1677_s30 + $0x1a8] sm:$0xff] %v439_v57  ;;  %v441_v58 = vld [vmem:[%s1672_s0 + $0x360] sm:$0xff]  ;;  %v443_v59 = vld [vmem:[%s1672_s0 + $0x370] sm:$0xff] }
  0x4c   : > { %v445_v60 = vld [vmem:[%s1672_s0 + $0x380] sm:$0xff]  ;;  %442 = vst [vmem:[%s1677_s30 + $0x1b0] sm:$0xff] %v441_v58  ;;  %444 = vst [vmem:[%s1677_s30 + $0x1b8] sm:$0xff] %v443_v59  ;;  %v447_v61 = vld [vmem:[%s1672_s0 + $0x390] sm:$0xff] }
  0x4d   : > { %446 = vst [vmem:[%s1677_s30 + $0x1c0] sm:$0xff] %v445_v60  ;;  %v449_v62 = vld [vmem:[%s1672_s0 + $0x3a0] sm:$0xff]  ;;  %v451_v63 = vld [vmem:[%s1672_s0 + $0x3b0] sm:$0xff]  ;;  %448 = vst [vmem:[%s1677_s30 + $0x1c8] sm:$0xff] %v447_v61 }
  0x4e   : > { %450 = vst [vmem:[%s1677_s30 + $0x1d0] sm:$0xff] %v449_v62  ;;  %452 = vst [vmem:[%s1677_s30 + $0x1d8] sm:$0xff] %v451_v63  ;;  %v453_v0 = vld [vmem:[%s1672_s0 + $0x3c0] sm:$0xff]  ;;  %v455_v1 = vld [vmem:[%s1672_s0 + $0x3d0] sm:$0xff] }
  0x4f   : > { %v457_v2 = vld [vmem:[%s1672_s0 + $0x3e0] sm:$0xff]  ;;  %454 = vst [vmem:[%s1677_s30 + $0x1e0] sm:$0xff] %v453_v0  ;;  %456 = vst [vmem:[%s1677_s30 + $0x1e8] sm:$0xff] %v455_v1  ;;  %v459_v3 = vld [vmem:[%s1672_s0 + $0x3f0] sm:$0xff] }
  0x50   : > { %458 = vst [vmem:[%s1677_s30 + $0x1f0] sm:$0xff] %v457_v2  ;;  %460 = vst [vmem:[%s1677_s30 + $0x1f8] sm:$0xff] %v459_v3 }
  0x51 PF: > { %p1181_p0 = scmp.ge.s32.totalorder %s1540_s19, 1  ;;  %p465_p1 = scmp.lt.s32.totalorder %s1540_s19, 33 }
  0x53   : > { %p466_p2 = pnand %p1181_p0, %p465_p1 }
  0x54   : > { %s472_s28 = sand.u32 (!%p466_p2), 1, %s1516_s13   ;;  %s479_s20 = sand.u32 (!%p466_p2), 1, %s1508_s11  }
  0x55   : > { %469 = sbr.rel (%p466_p2) target bundleno = 385 (0x181), region = 81  ;;  %s1182_s25 = sshll.u32 (!%p466_p2), %s472_s28, 5 }
  0x56   : > { %s1183_s29 = sshll.u32 (!%p466_p2), %s479_s20, 9  ;;  %s500_s3 = sand.u32 (!%p466_p2), 1, %s1500_s9  }
  0x57   : > { %s1184_s7 = sshll.u32 (!%p466_p2), %s500_s3, 5  ;;  %s1809_s8 = scalar_lea.vmem (!%p466_p2), [#allocation3], %s1182_s25 }
  0x58   : > { %s1811_s0 = scalar_lea.vmem (!%p466_p2), [#allocation4], %s1183_s29  ;;  %s1813_s24 = scalar_lea.vmem (!%p466_p2), [#allocation5], %s1184_s7 }
  0x59   : > { %p1185_p3 = scmp.ne.s32.totalorder (!%p466_p2), %s1524_s15, 0 }
  0x5b   : > { %512 = sbr.rel (%p1185_p3) target bundleno = 99 (0x63), region = 93 }
  0x60   : > { %v1542_v4 = vmov 0.0  }
  0x61   : > { %513 = vst [vmem:[#allocation2 + $0x10] sm:$0xff] %v1542_v4  ;;  %514 = vst [vmem:[#allocation2] sm:$0xff] %v1542_v4 }
  0x62   : > { %515 = vst [vmem:[#allocation2 + $0x18] sm:$0xff] %v1542_v4  ;;  %516 = vst [vmem:[#allocation2 + $0x8] sm:$0xff] %v1542_v4 }
  0x63 PF: > { %v1352_v5 = vld [vmem:[%s1811_s0 + $0x74] ss:$8 sps:$4 sm:$0xff]   ;;  %v1356_v7 = vld [vmem:[%s1811_s0 + $0x70] ss:$8 sps:$4 sm:$0xff]   ;;  %v1358_v9 = vld [vmem:[%s1811_s0 + $0x64] ss:$8 sps:$4 sm:$0xff]  }
  0x64   : > { %v1354_v6 = vld [vmem:[%s1811_s0 + $0x174] ss:$8 sps:$4 sm:$0xff]   ;;  %929 = vmatprep.subr.bf16.mxu0 %v1352_v5  ;;  %v1357_v8 = vld [vmem:[%s1811_s0 + $0x170] ss:$8 sps:$4 sm:$0xff]   ;;  %v1360_v10 = vld [vmem:[%s1811_s0 + $0x164] ss:$8 sps:$4 sm:$0xff]  }
  0x65   : > { %972 = vmatprep.subr.bf16.mxu1 %v1354_v6  ;;  %930 = vmatpush1.bf16.msra.mxu0 %v1356_v7  ;;  %v1362_v11 = vld [vmem:[%s1811_s0 + $0x60] ss:$8 sps:$4 sm:$0xff]   ;;  %v1364_v13 = vld [vmem:[%s1811_s0 + $0x54] ss:$8 sps:$4 sm:$0xff]   ;;  %v1368_v15 = vld [vmem:[%s1811_s0 + $0x50] ss:$8 sps:$4 sm:$0xff]  }
  0x66   : > { %973 = vmatpush1.bf16.msra.mxu1 %v1357_v8  ;;  %931 = vmatprep.subr.bf16.mxu0 %v1358_v9  ;;  %v1363_v12 = vld [vmem:[%s1811_s0 + $0x160] ss:$8 sps:$4 sm:$0xff]   ;;  %v1366_v14 = vld [vmem:[%s1811_s0 + $0x154] ss:$8 sps:$4 sm:$0xff]   ;;  %v1369_v16 = vld [vmem:[%s1811_s0 + $0x150] ss:$8 sps:$4 sm:$0xff]  }
  0x67   : > { %974 = vmatprep.subr.bf16.mxu1 %v1360_v10  ;;  %v1370_v17 = vld [vmem:[%s1811_s0 + $0x44] ss:$8 sps:$4 sm:$0xff]   ;;  %v1374_v19 = vld [vmem:[%s1811_s0 + $0x40] ss:$8 sps:$4 sm:$0xff]   ;;  %v1376_v21 = vld [vmem:[%s1811_s0 + $0x34] ss:$8 sps:$4 sm:$0xff]  }
  0x68   : > { %v1372_v18 = vld [vmem:[%s1811_s0 + $0x144] ss:$8 sps:$4 sm:$0xff]   ;;  %v1375_v20 = vld [vmem:[%s1811_s0 + $0x140] ss:$8 sps:$4 sm:$0xff]   ;;  %v1378_v22 = vld [vmem:[%s1811_s0 + $0x134] ss:$8 sps:$4 sm:$0xff]  }
  0x69   : > { %932 = vmatpush1.bf16.msra.mxu0 %v1362_v11  ;;  %v1380_v23 = vld [vmem:[%s1811_s0 + $0x30] ss:$8 sps:$4 sm:$0xff]   ;;  %v1382_v25 = vld [vmem:[%s1811_s0 + $0x24] ss:$8 sps:$4 sm:$0xff]   ;;  %v1386_v27 = vld [vmem:[%s1811_s0 + $0x20] ss:$8 sps:$4 sm:$0xff]  }
  0x6a   : > { %975 = vmatpush1.bf16.msra.mxu1 %v1363_v12  ;;  %933 = vmatprep.subr.bf16.mxu0 %v1364_v13  ;;  %v1381_v24 = vld [vmem:[%s1811_s0 + $0x130] ss:$8 sps:$4 sm:$0xff]   ;;  %v1384_v26 = vld [vmem:[%s1811_s0 + $0x124] ss:$8 sps:$4 sm:$0xff]   ;;  %v1387_v28 = vld [vmem:[%s1811_s0 + $0x120] ss:$8 sps:$4 sm:$0xff]  }
  0x6b   : > { %976 = vmatprep.subr.bf16.mxu1 %v1366_v14  ;;  %v1388_v29 = vld [vmem:[%s1811_s0 + $0x14] ss:$8 sps:$4 sm:$0xff]   ;;  %v1392_v31 = vld [vmem:[%s1811_s0 + $0x10] ss:$8 sps:$4 sm:$0xff]   ;;  %v1394_v33 = vld [vmem:[%s1811_s0 + $0x4] ss:$8 sps:$4 sm:$0xff]  }
  0x6c   : > { %v1390_v30 = vld [vmem:[%s1811_s0 + $0x114] ss:$8 sps:$4 sm:$0xff]   ;;  %v1393_v32 = vld [vmem:[%s1811_s0 + $0x110] ss:$8 sps:$4 sm:$0xff]   ;;  %v1396_v34 = vld [vmem:[%s1811_s0 + $0x104] ss:$8 sps:$4 sm:$0xff]  }
  0x6d   : > { %934 = vmatpush1.bf16.msra.mxu0 %v1368_v15  ;;  %v1398_v35 = vld [vmem:[%s1811_s0] ss:$8 sps:$4 sm:$0xff]   ;;  %v1400_v37 = vld [vmem:[%s1811_s0 + $0xf4] ss:$8 sps:$4 sm:$0xff]   ;;  %v1404_v39 = vld [vmem:[%s1811_s0 + $0xf0] ss:$8 sps:$4 sm:$0xff]  }
  0x6e   : > { %977 = vmatpush1.bf16.msra.mxu1 %v1369_v16  ;;  %935 = vmatprep.subr.bf16.mxu0 %v1370_v17  ;;  %v1399_v36 = vld [vmem:[%s1811_s0 + $0x100] ss:$8 sps:$4 sm:$0xff]   ;;  %v1402_v38 = vld [vmem:[%s1811_s0 + $0x1f4] ss:$8 sps:$4 sm:$0xff]   ;;  %v1405_v40 = vld [vmem:[%s1811_s0 + $0x1f0] ss:$8 sps:$4 sm:$0xff]  }
  0x6f   : > { %978 = vmatprep.subr.bf16.mxu1 %v1372_v18  ;;  %v1406_v41 = vld [vmem:[%s1811_s0 + $0xe4] ss:$8 sps:$4 sm:$0xff]   ;;  %v1410_v43 = vld [vmem:[%s1811_s0 + $0xe0] ss:$8 sps:$4 sm:$0xff]   ;;  %v1412_v45 = vld [vmem:[%s1811_s0 + $0xd4] ss:$8 sps:$4 sm:$0xff]  }
  0x70   : > { %v1408_v42 = vld [vmem:[%s1811_s0 + $0x1e4] ss:$8 sps:$4 sm:$0xff]   ;;  %v1411_v44 = vld [vmem:[%s1811_s0 + $0x1e0] ss:$8 sps:$4 sm:$0xff]   ;;  %v1414_v46 = vld [vmem:[%s1811_s0 + $0x1d4] ss:$8 sps:$4 sm:$0xff]  }
  0x71   : > { %936 = vmatpush1.bf16.msra.mxu0 %v1374_v19  ;;  %v1416_v47 = vld [vmem:[%s1811_s0 + $0xd0] ss:$8 sps:$4 sm:$0xff]   ;;  %v1418_v49 = vld [vmem:[%s1811_s0 + $0xc4] ss:$8 sps:$4 sm:$0xff]   ;;  %v1422_v51 = vld [vmem:[%s1811_s0 + $0xc0] ss:$8 sps:$4 sm:$0xff]  }
  0x72   : > { %979 = vmatpush1.bf16.msra.mxu1 %v1375_v20  ;;  %937 = vmatprep.subr.bf16.mxu0 %v1376_v21  ;;  %v1417_v48 = vld [vmem:[%s1811_s0 + $0x1d0] ss:$8 sps:$4 sm:$0xff]   ;;  %v1420_v50 = vld [vmem:[%s1811_s0 + $0x1c4] ss:$8 sps:$4 sm:$0xff]   ;;  %v1423_v53 = vld [vmem:[%s1811_s0 + $0x1c0] ss:$8 sps:$4 sm:$0xff]  }
  0x73   : > { %980 = vmatprep.subr.bf16.mxu1 %v1378_v22  ;;  %v1450_v52 = vld [vmem:[%s1809_s8 + $0x4] ss:$16 sps:$4 sm:$0xff]   ;;  %v1453_v56 = vld [vmem:[%s1809_s8 + $0xc] ss:$16 sps:$4 sm:$0xff]   ;;  %v1428_v57 = vld [vmem:[%s1811_s0 + $0xb0] ss:$8 sps:$4 sm:$0xff]  }
  0x74   : > { %v1424_v54 = vld [vmem:[%s1811_s0 + $0xb4] ss:$8 sps:$4 sm:$0xff]   ;;  %961 = vmatprep.mubr.bf16.mxu0 %v1450_v52  ;;  %1004 = vmatprep.mubr.bf16.mxu1 %v1453_v56  ;;  %v1429_v58 = vld [vmem:[%s1811_s0 + $0x1b0] ss:$8 sps:$4 sm:$0xff]   ;;  %v1430_v59 = vld [vmem:[%s1811_s0 + $0xa4] ss:$8 sps:$4 sm:$0xff]  }
  0x75   : > { %938 = vmatpush1.bf16.msra.mxu0 %v1380_v23  ;;  %v1426_v55 = vld [vmem:[%s1811_s0 + $0x1b4] ss:$8 sps:$4 sm:$0xff]   ;;  %v1432_v60 = vld [vmem:[%s1811_s0 + $0x1a4] ss:$8 sps:$4 sm:$0xff]   ;;  %v1434_v61 = vld [vmem:[%s1811_s0 + $0xa0] ss:$8 sps:$4 sm:$0xff]  }
  0x76   : > { %981 = vmatpush1.bf16.msra.mxu1 %v1381_v24  ;;  %939 = vmatprep.subr.bf16.mxu0 %v1382_v25  ;;  %v1435_v62 = vld [vmem:[%s1811_s0 + $0x1a0] ss:$8 sps:$4 sm:$0xff]   ;;  %v1436_v63 = vld [vmem:[%s1811_s0 + $0x94] ss:$8 sps:$4 sm:$0xff]   ;;  %v1440_v1 = vld [vmem:[%s1811_s0 + $0x90] ss:$8 sps:$4 sm:$0xff]  }
  0x77   : > { %982 = vmatprep.subr.bf16.mxu1 %v1384_v26  ;;  %v1438_v0 = vld [vmem:[%s1811_s0 + $0x194] ss:$8 sps:$4 sm:$0xff]   ;;  %v1441_v2 = vld [vmem:[%s1811_s0 + $0x190] ss:$8 sps:$4 sm:$0xff]   ;;  %v1442_v3 = vld [vmem:[%s1811_s0 + $0x84] ss:$8 sps:$4 sm:$0xff]  }
  0x78   : > { %v1444_v4 = vld [vmem:[%s1811_s0 + $0x184] ss:$8 sps:$4 sm:$0xff]   ;;  %v1446_v5 = vld [vmem:[%s1811_s0 + $0x80] ss:$8 sps:$4 sm:$0xff]   ;;  %v517_v10 = vld [vmem:[#allocation2 + $0x10] sm:$0xff]  ;;  %p1254_p4 = scmp.ne.s32.totalorder %s1524_s15, 15 }
  0x79   : > { %940 = vmatpush1.bf16.msra.mxu0 %v1386_v27  ;;  %v1447_v6 = vld [vmem:[%s1811_s0 + $0x180] ss:$8 sps:$4 sm:$0xff]   ;;  %v519_v19 = vld [vmem:[#allocation2 + $0x18] sm:$0xff] }
  0x7a   : > { %983 = vmatpush1.bf16.msra.mxu1 %v1387_v28  ;;  %941 = vmatprep.subr.bf16.mxu0 %v1388_v29  ;;  %v1448_v7 = vld [vmem:[%s1809_s8] ss:$16 sps:$4 sm:$0xff]   ;;  %v1451_v8 = vld [vmem:[%s1809_s8 + $0x8] ss:$16 sps:$4 sm:$0xff]  }
  0x7b   : > { %984 = vmatprep.subr.bf16.mxu1 %v1390_v30  ;;  %v518_v14 = vld [vmem:[#allocation2] sm:$0xff]  ;;  %v520_v24 = vld [vmem:[#allocation2 + $0x8] sm:$0xff] }
  0x7d   : > { %942 = vmatpush1.bf16.msra.mxu0 %v1392_v31 }
  0x7e   : > { %985 = vmatpush1.bf16.msra.mxu1 %v1393_v32  ;;  %943 = vmatprep.subr.bf16.mxu0 %v1394_v33 }
  0x7f   : > { %986 = vmatprep.subr.bf16.mxu1 %v1396_v34 }
  0x81   : > { %944 = vmatpush1.bf16.msra.mxu0 %v1398_v35 }
  0x82   : > { %987 = vmatpush1.bf16.msra.mxu1 %v1399_v36  ;;  %945 = vmatprep.subr.bf16.mxu0 %v1400_v37 }
  0x83   : > { %988 = vmatprep.subr.bf16.mxu1 %v1402_v38 }
  0x85   : > { %946 = vmatpush2.bf16.msra.mxu0 %v1404_v39 }
  0x86   : > { %989 = vmatpush2.bf16.msra.mxu1 %v1405_v40  ;;  %947 = vmatprep.subr.bf16.mxu0 %v1406_v41 }
  0x87   : > { %990 = vmatprep.subr.bf16.mxu1 %v1408_v42 }
  0x89   : > { %948 = vmatpush2.bf16.msra.mxu0 %v1410_v43 }
  0x8a   : > { %991 = vmatpush2.bf16.msra.mxu1 %v1411_v44  ;;  %949 = vmatprep.subr.bf16.mxu0 %v1412_v45 }
  0x8b   : > { %992 = vmatprep.subr.bf16.mxu1 %v1414_v46 }
  0x8d   : > { %950 = vmatpush2.bf16.msra.mxu0 %v1416_v47 }
  0x8e   : > { %993 = vmatpush2.bf16.msra.mxu1 %v1417_v48  ;;  %951 = vmatprep.subr.bf16.mxu0 %v1418_v49 }
  0x8f   : > { %994 = vmatprep.subr.bf16.mxu1 %v1420_v50 }
  0x91   : > { %952 = vmatpush2.bf16.msra.mxu0 %v1422_v51 }
  0x92   : > { %995 = vmatpush2.bf16.msra.mxu1 %v1423_v53  ;;  %953 = vmatprep.subr.bf16.mxu0 %v1424_v54 }
  0x93   : > { %996 = vmatprep.subr.bf16.mxu1 %v1426_v55 }
  0x95   : > { %954 = vmatpush2.bf16.msra.mxu0 %v1428_v57 }
  0x96   : > { %997 = vmatpush2.bf16.msra.mxu1 %v1429_v58  ;;  %955 = vmatprep.subr.bf16.mxu0 %v1430_v59 }
  0x97   : > { %998 = vmatprep.subr.bf16.mxu1 %v1432_v60 }
  0x99   : > { %956 = vmatpush2.bf16.msra.mxu0 %v1434_v61 }
  0x9a   : > { %999 = vmatpush2.bf16.msra.mxu1 %v1435_v62  ;;  %957 = vmatprep.subr.bf16.mxu0 %v1436_v63 }
  0x9b   : > { %1000 = vmatprep.subr.bf16.mxu1 %v1438_v0 }
  0x9d   : > { %958 = vmatpush2.bf16.msra.mxu0 %v1440_v1 }
  0x9e   : > { %1001 = vmatpush2.bf16.msra.mxu1 %v1441_v2  ;;  %959 = vmatprep.subr.bf16.mxu0 %v1442_v3 }
  0x9f   : > { %1002 = vmatprep.subr.bf16.mxu1 %v1444_v4 }
  0xa1   : > { %960 = vmatpush2.bf16.msra.mxu0 %v1446_v5 }
  0xa2   : > { %1003 = vmatpush2.bf16.msra.mxu1 %v1447_v6 }
  0xa4   : > { %962 = vmatmul.mubr.bf16.vlgmr.msra.gmra.mxu0 %v1448_v7 }
  0xa5   : > { %1005 = vmatmul.mubr.bf16.vlgmr.msra.gmra.mxu1 %v1451_v8 }
 0x164   : > { %v963_v9 = vpop.f32.mrf.mxu0 }
 0x165   : > { %v1006_v11 = vpop.f32.mrf.mxu1 }
 0x166   : > { %v1007_v12 = vadd.f32 %v1006_v11, %v963_v9  ;;  %v965_v13 = vpop.f32.mrf.mxu0 }
 0x167   : > { %v1008_v15 = vpop.f32.mrf.mxu1 }
 0x168   : > { %v1015_v16 = vadd.f32 %v1007_v12, %v517_v10  ;;  %v1009_v17 = vadd.f32 %v1008_v15, %v965_v13  ;;  %v967_v18 = vpop.f32.mrf.mxu0 }
 0x169   : > { %v1010_v20 = vpop.f32.mrf.mxu1 }
 0x16a   : > { %1019 = vst [vmem:[#allocation2 + $0x10] sm:$0xff] %v1015_v16  ;;  %v1016_v21 = vadd.f32 %v1009_v17, %v518_v14  ;;  %v1011_v22 = vadd.f32 %v1010_v20, %v967_v18  ;;  %v969_v23 = vpop.f32.mrf.mxu0 }
 0x16b   : > { %v1012_v25 = vpop.f32.mrf.mxu1 }
 0x16c   : > { %1020 = vst [vmem:[#allocation2] sm:$0xff] %v1016_v21  ;;  %v1017_v26 = vadd.f32 %v1011_v22, %v519_v19  ;;  %v1013_v27 = vadd.f32 %v1012_v25, %v969_v23  ;;  %1026 = sbr.rel (%p1254_p4) target bundleno = 377 (0x179), region = 97 }
 0x16e   : > { %1021 = vst [vmem:[#allocation2 + $0x18] sm:$0xff] %v1017_v26  ;;  %v1018_v28 = vadd.f32 %v1013_v27, %v520_v24 }
 0x170   : > { %1022 = vst [vmem:[#allocation2 + $0x8] sm:$0xff] %v1018_v28 }
 0x171   : > { %v1027_v29 = vld [vmem:[#allocation2 + $0x10] sm:$0xff] }
 0x172   : > { %1031 = vst [vmem:[%s1813_s24] sm:$0xff] %v1027_v29 }
 0x173   : > { %v1028_v30 = vld [vmem:[#allocation2] sm:$0xff] }
 0x174   : > { %1032 = vst [vmem:[%s1813_s24 + $0x8] sm:$0xff] %v1028_v30 }
 0x175   : > { %v1029_v31 = vld [vmem:[#allocation2 + $0x18] sm:$0xff] }
 0x176   : > { %1033 = vst [vmem:[%s1813_s24 + $0x10] sm:$0xff] %v1029_v31 }
 0x177   : > { %v1030_v32 = vld [vmem:[#allocation2 + $0x8] sm:$0xff] }
 0x178   : > { %1034 = vst [vmem:[%s1813_s24 + $0x18] sm:$0xff] %v1030_v32 }
 0x179 PF: > { %1041 = sbr.rel (!%p1652_p12) target bundleno = 385 (0x181), region = 101  ;;  %s1262_s9 = sshll.u32 (%p1652_p12), %s1528_s16, 4  ;;  %v1060_v33 = vld [vmem:[%s1813_s24] sm:$0xff] (%p1652_p12) }
 0x17a   : > { %s1047_s15 = scalar_lea.vmem (%p1652_p12), %s1934_s2, %s1262_s9 }
 0x17b   : > { %v1062_v34 = vld [vmem:[%s1813_s24 + $0x8] sm:$0xff] (%p1652_p12)  ;;  %1061 = vst [vmem:[%s1047_s15] sm:$0xff] (%p1652_p12), %v1060_v33 }
 0x17c   : > { %1063 = vst [vmem:[%s1047_s15 + $0x8] sm:$0xff] (%p1652_p12), %v1062_v34 }
 0x17d   : > { %v1064_v35 = vld [vmem:[%s1813_s24 + $0x10] sm:$0xff] (%p1652_p12) }
 0x17e   : > { %1065 = vst [vmem:[%s1047_s15 + $0x20] sm:$0xff] %v1064_v35 }
 0x17f   : > { %v1066_v36 = vld [vmem:[%s1813_s24 + $0x18] sm:$0xff] }
 0x180   : > { %1067 = vst [vmem:[%s1047_s15 + $0x28] sm:$0xff] %v1066_v36 }
 0x181 PF: > { %s12_s19 = sadd.s32 1, %s1540_s19   ;;  %s1940_s9 = smov %s1504_s10 }
 0x182   : > { %p9_p5 = scmp.ge.s32.totalorder %s12_s19, 34   ;;  %s1941_s10 = smov %s1650_s5 }
 0x183   : > { %s1942_s11 = smov %s1512_s12  ;;  %s1943_s12 = smov %s1647_s4 }
 0x184   : > { %s1944_s13 = smov %s1520_s14  ;;  %s1945_s14 = smov %s1633_s27 }
 0x185   : > { %s1946_s15 = smov %s1532_s17  ;;  %s1947_s16 = smov %s1536_s18 }
 0x186   : > { %s1948_s17 = smov %s1951_s21  ;;  %s1949_s18 = smov %s1955_s22 }
 0x187   :  { %11 = sbr.rel (!%p9_p5) target bundleno = 8 (0x8), region = 163 }

// kernel: pix2pix_forward.42
= control target key start
LH: loop header
LB: loop body
LE: loop exit
PB: predicated region body
PF: predicated region fallthrough
CT: control target
= control target key end

     0   :  { %s2057_s0 = inlined_call_operand.vmem [shape: bf16[16,2048], index: 0, kind: input, shape index: {}]   ;;  %s2058_s1 = inlined_call_operand.vmem [shape: bf16[2048,512], index: 1, kind: input, shape index: {}]   ;;  %s2059_s2 = inlined_call_operand.vmem [shape: f32[1,512], index: 2, kind: input, shape index: {}]   ;;  %s2060_s3 = inlined_call_operand.vmem [shape: bf16[16,512], index: 3, kind: output, shape index: {}]  }
   0x1   :  { %2062 = sst [smem:[#allocation7_spill]] %s2057_s0 }
   0x2   :  { %2063 = sst [smem:[#allocation8_spill]] %s2058_s1 }
   0x3   :  { %s1675_s12 = smov 0   ;;  %s1677_s13 = smov 0  }
   0x4   :  { %s1679_s14 = smov 0   ;;  %s1681_s15 = smov 0  }
   0x5   :  { %s1683_s16 = smov 0   ;;  %s1685_s17 = smov 0  }
   0x6   :  { %s1687_s18 = smov 0   ;;  %s1689_s19 = smov 0  }
   0x7   :  { %s1691_s20 = smov 0   ;;  %s1693_s21 = smov 0  }
   0x8   :  { %s1695_s22 = smov 0  }
   0x9 LB: > { %s1276_s23 = sadd.s32 4294967295, %s1652_s22   ;;  %s25_s24 = sadd.s32 1, %s1644_s20  ;;  %s1652_s22 = sphi %s1695_s22, %s13_s22   ;;  %s1648_s21 = sphi %s1693_s21, %s2080_s21   ;;  %s1644_s20 = sphi %s1691_s20, %s2079_s20   ;;  %s1640_s19 = sphi %s1689_s19, %s2078_s19   ;;  %s1636_s18 = sphi %s1687_s18, %s2077_s18   ;;  %s1632_s17 = sphi %s1685_s17, %s2076_s17   ;;  %s1628_s16 = sphi %s1683_s16, %s2075_s16   ;;  %s1624_s15 = sphi %s1681_s15, %s2074_s15   ;;  %s1620_s14 = sphi %s1679_s14, %s2073_s14   ;;  %s1616_s13 = sphi %s1677_s13, %s2072_s13   ;;  %s1612_s12 = sphi %s1675_s12, %s2071_s12  }
   0xa   : > { %p26_p0 = scmp.ge.s32.totalorder %s25_s24, 4  ;;  %s28_s25 = sadd.s32 1, %s1648_s21 }
   0xb   : > { %s41_s26 = sadd.s32 1, %s1632_s17  ;;  %p48_p1 = scmp.ne.s32.totalorder %s1632_s17, %s1628_s16 }
   0xc   : > { %s2082_s24 = smov (%p26_p0, %s25_s24), 0  ;;  %s2084_s25 = smov (!%p26_p0, %s28_s25), %s1648_s21 }
   0xd   : > { %s37_s27 = ssub.s32 %s1644_s20, %s2082_s24  ;;  %p49_p2 = scmp.eq.s32.totalorder %s1652_s22, 0 }
   0xe   : > { %p30_p3 = scmp.ge.s32.totalorder %s2084_s25, 2  ;;  %p39_p4 = scmp.eq.s32.totalorder %s37_s27, 0 }
   0xf   : > { %p1742_p5 = por %p49_p2, %p48_p1  ;;  %s69_s29 = sadd.s32 1, %s1624_s15 }
  0x10   : > { %s2086_s25 = smov (%p30_p3, %s2084_s25), 0  ;;  %p76_p6 = scmp.ne.s32.totalorder %s1624_s15, %s1620_s14 }
  0x11   : > { %2065 = sst [smem:[#allocation6_spill]] %s2086_s25  ;;  %s65_s4 = ssub.s32 %s1648_s21, %s2086_s25 }
  0x12   : > { %s1750_s30 = scalar_select %p39_p4, %s1632_s17, %s41_s26  }
  0x13   : > { %s66_s5 = sor.u32 %s65_s4, %s37_s27  ;;  %p121_p7 = scmp.eq.s32.totalorder %s65_s4, 0 }
  0x14   : > { %p67_p8 = scmp.eq.s32.totalorder %s66_s5, 0  ;;  %p1756_p9 = por %p76_p6, %p49_p2 }
  0x15   : > { %s123_s7 = sadd.s32 1, %s1616_s13  ;;  %p133_p10 = scmp.ne.s32.totalorder %s1616_s13, %s1612_s12 }
  0x16   : > { %s1764_s8 = scalar_select %p67_p8, %s1624_s15, %s69_s29  }
  0x17   : > { %s1767_s9 = scalar_select %p121_p7, %s1616_s13, %s123_s7  }
  0x18   : > { %p134_p11 = scmp.eq.s32.totalorder %s1276_s23, 7  ;;  %p1279_p13 = scmp.ge.s32.totalorder %s1652_s22, 8 }
  0x1a   : > { %p1769_p12 = por %p134_p11, %p133_p10  ;;  %156 = sbr.rel (%p1279_p13) target bundleno = 85 (0x55), region = 16 }
  0x1f   : > { %159 = sbr.rel (!%p1742_p5) target bundleno = 43 (0x2b), region = 20  ;;  %s161_s11 = sand.u32 (%p1742_p5), 1, %s1632_s17  }
  0x20   : > { %s1370_s26 = sshll.u32 (%p1742_p5), %s1644_s20, 4  ;;  %s1280_s27 = sshll.u32 (%p1742_p5), %s161_s11, 5 }
  0x21   : > { %s2068_s0 = sld [smem:[#allocation7_spill]] (%p1742_p5)  ;;  %s163_s23 = scalar_lea.vmem (%p1742_p5), [#allocation3], %s1280_s27 }
  0x27   : > { %s169_s5 = scalar_lea.vmem %s2068_s0, %s1370_s26 }
  0x28   : > { %v182_v0 = vld [vmem:[%s169_s5] sm:$0xff]  ;;  %v184_v1 = vld [vmem:[%s169_s5 + $0x8] sm:$0xff] }
  0x29   : > { %v186_v2 = vld [vmem:[%s169_s5 + $0x40] sm:$0xff]  ;;  %183 = vst [vmem:[%s163_s23] sm:$0xff] %v182_v0  ;;  %185 = vst [vmem:[%s163_s23 + $0x8] sm:$0xff] %v184_v1  ;;  %v188_v3 = vld [vmem:[%s169_s5 + $0x48] sm:$0xff] }
  0x2a   : > { %187 = vst [vmem:[%s163_s23 + $0x10] sm:$0xff] %v186_v2  ;;  %189 = vst [vmem:[%s163_s23 + $0x18] sm:$0xff] %v188_v3 }
  0x2b PF: > { %195 = sbr.rel (!%p1756_p9) target bundleno = 85 (0x55), region = 43  ;;  %s197_s28 = sand.u32 (%p1756_p9), 1, %s1624_s15  }
  0x2c   : > { %s1285_s7 = sshll.u32 (%p1756_p9), %s1648_s21, 1  ;;  %s1283_s11 = sshll.u32 (%p1756_p9), %s197_s28, 9 }
  0x2d   : > { %s1371_s26 = sshll.u32 (%p1756_p9), %s1644_s20, 8  ;;  %s2069_s1 = sld [smem:[#allocation8_spill]] (%p1756_p9) }
  0x2e   : > { %s203_s29 = sadd.s32 (%p1756_p9), %s1371_s26, %s1285_s7  ;;  %s1794_s6 = scalar_lea.vmem (%p1756_p9), [#allocation4], %s1283_s11 }
  0x2f   : > { %s1287_s4 = sshll.u32 (%p1756_p9), %s203_s29, 2 }
  0x33   : > { %s1789_s25 = scalar_lea.vmem %s2069_s1, %s1287_s4 }
  0x34   : > { %v360_v4 = vld [vmem:[%s1789_s25] sm:$0xff]  ;;  %v362_v5 = vld [vmem:[%s1789_s25 + $0x10] sm:$0xff] }
  0x35   : > { %v364_v6 = vld [vmem:[%s1789_s25 + $0x20] sm:$0xff]  ;;  %361 = vst [vmem:[%s1794_s6] sm:$0xff] %v360_v4  ;;  %363 = vst [vmem:[%s1794_s6 + $0x8] sm:$0xff] %v362_v5  ;;  %v366_v7 = vld [vmem:[%s1789_s25 + $0x30] sm:$0xff] }
  0x36   : > { %365 = vst [vmem:[%s1794_s6 + $0x10] sm:$0xff] %v364_v6  ;;  %v368_v8 = vld [vmem:[%s1789_s25 + $0x40] sm:$0xff]  ;;  %v370_v9 = vld [vmem:[%s1789_s25 + $0x50] sm:$0xff]  ;;  %367 = vst [vmem:[%s1794_s6 + $0x18] sm:$0xff] %v366_v7 }
  0x37   : > { %369 = vst [vmem:[%s1794_s6 + $0x20] sm:$0xff] %v368_v8  ;;  %371 = vst [vmem:[%s1794_s6 + $0x28] sm:$0xff] %v370_v9  ;;  %v372_v10 = vld [vmem:[%s1789_s25 + $0x60] sm:$0xff]  ;;  %v374_v11 = vld [vmem:[%s1789_s25 + $0x70] sm:$0xff] }
  0x38   : > { %v376_v12 = vld [vmem:[%s1789_s25 + $0x80] sm:$0xff]  ;;  %373 = vst [vmem:[%s1794_s6 + $0x30] sm:$0xff] %v372_v10  ;;  %375 = vst [vmem:[%s1794_s6 + $0x38] sm:$0xff] %v374_v11  ;;  %v378_v13 = vld [vmem:[%s1789_s25 + $0x90] sm:$0xff] }
  0x39   : > { %377 = vst [vmem:[%s1794_s6 + $0x40] sm:$0xff] %v376_v12  ;;  %v380_v14 = vld [vmem:[%s1789_s25 + $0xa0] sm:$0xff]  ;;  %v382_v15 = vld [vmem:[%s1789_s25 + $0xb0] sm:$0xff]  ;;  %379 = vst [vmem:[%s1794_s6 + $0x48] sm:$0xff] %v378_v13 }
  0x3a   : > { %381 = vst [vmem:[%s1794_s6 + $0x50] sm:$0xff] %v380_v14  ;;  %383 = vst [vmem:[%s1794_s6 + $0x58] sm:$0xff] %v382_v15  ;;  %v384_v16 = vld [vmem:[%s1789_s25 + $0xc0] sm:$0xff]  ;;  %v386_v17 = vld [vmem:[%s1789_s25 + $0xd0] sm:$0xff] }
  0x3b   : > { %v388_v18 = vld [vmem:[%s1789_s25 + $0xe0] sm:$0xff]  ;;  %385 = vst [vmem:[%s1794_s6 + $0x60] sm:$0xff] %v384_v16  ;;  %387 = vst [vmem:[%s1794_s6 + $0x68] sm:$0xff] %v386_v17  ;;  %v390_v19 = vld [vmem:[%s1789_s25 + $0xf0] sm:$0xff] }
  0x3c   : > { %389 = vst [vmem:[%s1794_s6 + $0x70] sm:$0xff] %v388_v18  ;;  %v392_v20 = vld [vmem:[%s1789_s25 + $0x100] sm:$0xff]  ;;  %v394_v21 = vld [vmem:[%s1789_s25 + $0x110] sm:$0xff]  ;;  %391 = vst [vmem:[%s1794_s6 + $0x78] sm:$0xff] %v390_v19 }
  0x3d   : > { %393 = vst [vmem:[%s1794_s6 + $0x80] sm:$0xff] %v392_v20  ;;  %395 = vst [vmem:[%s1794_s6 + $0x88] sm:$0xff] %v394_v21  ;;  %v396_v22 = vld [vmem:[%s1789_s25 + $0x120] sm:$0xff]  ;;  %v398_v23 = vld [vmem:[%s1789_s25 + $0x130] sm:$0xff] }
  0x3e   : > { %v400_v24 = vld [vmem:[%s1789_s25 + $0x140] sm:$0xff]  ;;  %397 = vst [vmem:[%s1794_s6 + $0x90] sm:$0xff] %v396_v22  ;;  %399 = vst [vmem:[%s1794_s6 + $0x98] sm:$0xff] %v398_v23  ;;  %v402_v25 = vld [vmem:[%s1789_s25 + $0x150] sm:$0xff] }
  0x3f   : > { %401 = vst [vmem:[%s1794_s6 + $0xa0] sm:$0xff] %v400_v24  ;;  %v404_v26 = vld [vmem:[%s1789_s25 + $0x160] sm:$0xff]  ;;  %v406_v27 = vld [vmem:[%s1789_s25 + $0x170] sm:$0xff]  ;;  %403 = vst [vmem:[%s1794_s6 + $0xa8] sm:$0xff] %v402_v25 }
  0x40   : > { %405 = vst [vmem:[%s1794_s6 + $0xb0] sm:$0xff] %v404_v26  ;;  %407 = vst [vmem:[%s1794_s6 + $0xb8] sm:$0xff] %v406_v27  ;;  %v408_v28 = vld [vmem:[%s1789_s25 + $0x180] sm:$0xff]  ;;  %v410_v29 = vld [vmem:[%s1789_s25 + $0x190] sm:$0xff] }
  0x41   : > { %v412_v30 = vld [vmem:[%s1789_s25 + $0x1a0] sm:$0xff]  ;;  %409 = vst [vmem:[%s1794_s6 + $0xc0] sm:$0xff] %v408_v28  ;;  %411 = vst [vmem:[%s1794_s6 + $0xc8] sm:$0xff] %v410_v29  ;;  %v414_v31 = vld [vmem:[%s1789_s25 + $0x1b0] sm:$0xff] }
  0x42   : > { %413 = vst [vmem:[%s1794_s6 + $0xd0] sm:$0xff] %v412_v30  ;;  %v416_v32 = vld [vmem:[%s1789_s25 + $0x1c0] sm:$0xff]  ;;  %v418_v33 = vld [vmem:[%s1789_s25 + $0x1d0] sm:$0xff]  ;;  %415 = vst [vmem:[%s1794_s6 + $0xd8] sm:$0xff] %v414_v31 }
  0x43   : > { %417 = vst [vmem:[%s1794_s6 + $0xe0] sm:$0xff] %v416_v32  ;;  %419 = vst [vmem:[%s1794_s6 + $0xe8] sm:$0xff] %v418_v33  ;;  %v420_v34 = vld [vmem:[%s1789_s25 + $0x1e0] sm:$0xff]  ;;  %v422_v35 = vld [vmem:[%s1789_s25 + $0x1f0] sm:$0xff] }
  0x44   : > { %v424_v36 = vld [vmem:[%s1789_s25 + $0x200] sm:$0xff]  ;;  %421 = vst [vmem:[%s1794_s6 + $0xf0] sm:$0xff] %v420_v34  ;;  %423 = vst [vmem:[%s1794_s6 + $0xf8] sm:$0xff] %v422_v35  ;;  %v426_v37 = vld [vmem:[%s1789_s25 + $0x210] sm:$0xff] }
  0x45   : > { %425 = vst [vmem:[%s1794_s6 + $0x100] sm:$0xff] %v424_v36  ;;  %v428_v38 = vld [vmem:[%s1789_s25 + $0x220] sm:$0xff]  ;;  %v430_v39 = vld [vmem:[%s1789_s25 + $0x230] sm:$0xff]  ;;  %427 = vst [vmem:[%s1794_s6 + $0x108] sm:$0xff] %v426_v37 }
  0x46   : > { %429 = vst [vmem:[%s1794_s6 + $0x110] sm:$0xff] %v428_v38  ;;  %431 = vst [vmem:[%s1794_s6 + $0x118] sm:$0xff] %v430_v39  ;;  %v432_v40 = vld [vmem:[%s1789_s25 + $0x240] sm:$0xff]  ;;  %v434_v41 = vld [vmem:[%s1789_s25 + $0x250] sm:$0xff] }
  0x47   : > { %v436_v42 = vld [vmem:[%s1789_s25 + $0x260] sm:$0xff]  ;;  %433 = vst [vmem:[%s1794_s6 + $0x120] sm:$0xff] %v432_v40  ;;  %435 = vst [vmem:[%s1794_s6 + $0x128] sm:$0xff] %v434_v41  ;;  %v438_v43 = vld [vmem:[%s1789_s25 + $0x270] sm:$0xff] }
  0x48   : > { %437 = vst [vmem:[%s1794_s6 + $0x130] sm:$0xff] %v436_v42  ;;  %v440_v44 = vld [vmem:[%s1789_s25 + $0x280] sm:$0xff]  ;;  %v442_v45 = vld [vmem:[%s1789_s25 + $0x290] sm:$0xff]  ;;  %439 = vst [vmem:[%s1794_s6 + $0x138] sm:$0xff] %v438_v43 }
  0x49   : > { %441 = vst [vmem:[%s1794_s6 + $0x140] sm:$0xff] %v440_v44  ;;  %443 = vst [vmem:[%s1794_s6 + $0x148] sm:$0xff] %v442_v45  ;;  %v444_v46 = vld [vmem:[%s1789_s25 + $0x2a0] sm:$0xff]  ;;  %v446_v47 = vld [vmem:[%s1789_s25 + $0x2b0] sm:$0xff] }
  0x4a   : > { %v448_v48 = vld [vmem:[%s1789_s25 + $0x2c0] sm:$0xff]  ;;  %445 = vst [vmem:[%s1794_s6 + $0x150] sm:$0xff] %v444_v46  ;;  %447 = vst [vmem:[%s1794_s6 + $0x158] sm:$0xff] %v446_v47  ;;  %v450_v49 = vld [vmem:[%s1789_s25 + $0x2d0] sm:$0xff] }
  0x4b   : > { %449 = vst [vmem:[%s1794_s6 + $0x160] sm:$0xff] %v448_v48  ;;  %v452_v50 = vld [vmem:[%s1789_s25 + $0x2e0] sm:$0xff]  ;;  %v454_v51 = vld [vmem:[%s1789_s25 + $0x2f0] sm:$0xff]  ;;  %451 = vst [vmem:[%s1794_s6 + $0x168] sm:$0xff] %v450_v49 }
  0x4c   : > { %453 = vst [vmem:[%s1794_s6 + $0x170] sm:$0xff] %v452_v50  ;;  %455 = vst [vmem:[%s1794_s6 + $0x178] sm:$0xff] %v454_v51  ;;  %v456_v52 = vld [vmem:[%s1789_s25 + $0x300] sm:$0xff]  ;;  %v458_v53 = vld [vmem:[%s1789_s25 + $0x310] sm:$0xff] }
  0x4d   : > { %v460_v54 = vld [vmem:[%s1789_s25 + $0x320] sm:$0xff]  ;;  %457 = vst [vmem:[%s1794_s6 + $0x180] sm:$0xff] %v456_v52  ;;  %459 = vst [vmem:[%s1794_s6 + $0x188] sm:$0xff] %v458_v53  ;;  %v462_v55 = vld [vmem:[%s1789_s25 + $0x330] sm:$0xff] }
  0x4e   : > { %461 = vst [vmem:[%s1794_s6 + $0x190] sm:$0xff] %v460_v54  ;;  %v464_v56 = vld [vmem:[%s1789_s25 + $0x340] sm:$0xff]  ;;  %v466_v57 = vld [vmem:[%s1789_s25 + $0x350] sm:$0xff]  ;;  %463 = vst [vmem:[%s1794_s6 + $0x198] sm:$0xff] %v462_v55 }
  0x4f   : > { %465 = vst [vmem:[%s1794_s6 + $0x1a0] sm:$0xff] %v464_v56  ;;  %467 = vst [vmem:[%s1794_s6 + $0x1a8] sm:$0xff] %v466_v57  ;;  %v468_v58 = vld [vmem:[%s1789_s25 + $0x360] sm:$0xff]  ;;  %v470_v59 = vld [vmem:[%s1789_s25 + $0x370] sm:$0xff] }
  0x50   : > { %v472_v60 = vld [vmem:[%s1789_s25 + $0x380] sm:$0xff]  ;;  %469 = vst [vmem:[%s1794_s6 + $0x1b0] sm:$0xff] %v468_v58  ;;  %471 = vst [vmem:[%s1794_s6 + $0x1b8] sm:$0xff] %v470_v59  ;;  %v474_v61 = vld [vmem:[%s1789_s25 + $0x390] sm:$0xff] }
  0x51   : > { %473 = vst [vmem:[%s1794_s6 + $0x1c0] sm:$0xff] %v472_v60  ;;  %v476_v62 = vld [vmem:[%s1789_s25 + $0x3a0] sm:$0xff]  ;;  %v478_v63 = vld [vmem:[%s1789_s25 + $0x3b0] sm:$0xff]  ;;  %475 = vst [vmem:[%s1794_s6 + $0x1c8] sm:$0xff] %v474_v61 }
  0x52   : > { %477 = vst [vmem:[%s1794_s6 + $0x1d0] sm:$0xff] %v476_v62  ;;  %479 = vst [vmem:[%s1794_s6 + $0x1d8] sm:$0xff] %v478_v63  ;;  %v480_v0 = vld [vmem:[%s1789_s25 + $0x3c0] sm:$0xff]  ;;  %v482_v1 = vld [vmem:[%s1789_s25 + $0x3d0] sm:$0xff] }
  0x53   : > { %v484_v2 = vld [vmem:[%s1789_s25 + $0x3e0] sm:$0xff]  ;;  %481 = vst [vmem:[%s1794_s6 + $0x1e0] sm:$0xff] %v480_v0  ;;  %483 = vst [vmem:[%s1794_s6 + $0x1e8] sm:$0xff] %v482_v1  ;;  %v486_v3 = vld [vmem:[%s1789_s25 + $0x3f0] sm:$0xff] }
  0x54   : > { %485 = vst [vmem:[%s1794_s6 + $0x1f0] sm:$0xff] %v484_v2  ;;  %487 = vst [vmem:[%s1794_s6 + $0x1f8] sm:$0xff] %v486_v3 }
  0x55 PF: > { %p1288_p0 = scmp.ge.s32.totalorder %s1652_s22, 1  ;;  %p500_p1 = scmp.lt.s32.totalorder %s1652_s22, 9 }
  0x57   : > { %p501_p2 = pnand %p1288_p0, %p500_p1 }
  0x58   : > { %s507_s0 = sand.u32 (!%p501_p2), 1, %s1628_s16   ;;  %s514_s5 = sand.u32 (!%p501_p2), 1, %s1620_s14  }
  0x59   : > { %504 = sbr.rel (%p501_p2) target bundleno = 399 (0x18f), region = 85  ;;  %s1289_s23 = sshll.u32 (!%p501_p2), %s507_s0, 5 }
  0x5a   : > { %s1290_s28 = sshll.u32 (!%p501_p2), %s514_s5, 9  ;;  %s541_s7 = sand.u32 (!%p501_p2), 1, %s1612_s12  }
  0x5b   : > { %s1292_s11 = sshll.u32 (!%p501_p2), %s1640_s19, 1  ;;  %s1291_s25 = sshll.u32 (!%p501_p2), %s541_s7, 4 }
  0x5c   : > { %p549_p3 = scmp.lt.s32.totalorder (!%p501_p2), %s1292_s11, 3  ;;  %s1933_s27 = scalar_lea.vmem (!%p501_p2), [#allocation3], %s1289_s23 }
  0x5d   : > { %s1935_s6 = scalar_lea.vmem (!%p501_p2), [#allocation4], %s1290_s28  ;;  %s1937_s1 = scalar_lea.vmem (!%p501_p2), [#allocation5], %s1291_s25 }
  0x5e   : > { %s2088_s11 = smov (!%p549_p3, %s1292_s11), 3  ;;  %p1293_p4 = scmp.ne.s32.totalorder %s1636_s18, 0 }
  0x5f   : > { %s551_s4 = scalar_lea.vmem %s2059_s2, %s2088_s11 }
  0x60   : > { %558 = sbr.rel (%p1293_p4) target bundleno = 104 (0x68), region = 97 }
  0x65   : > { %v1654_v4 = vmov 0.0  }
  0x66   : > { %559 = vst [vmem:[#allocation2 + $0x10] sm:$0xff] %v1654_v4  ;;  %560 = vst [vmem:[#allocation2] sm:$0xff] %v1654_v4 }
  0x67   : > { %561 = vst [vmem:[#allocation2 + $0x18] sm:$0xff] %v1654_v4  ;;  %562 = vst [vmem:[#allocation2 + $0x8] sm:$0xff] %v1654_v4 }
  0x68 PF: > { %v1464_v5 = vld [vmem:[%s1935_s6 + $0x74] ss:$8 sps:$4 sm:$0xff]   ;;  %v1468_v7 = vld [vmem:[%s1935_s6 + $0x70] ss:$8 sps:$4 sm:$0xff]   ;;  %v1470_v9 = vld [vmem:[%s1935_s6 + $0x64] ss:$8 sps:$4 sm:$0xff]  }
  0x69   : > { %v1466_v6 = vld [vmem:[%s1935_s6 + $0x174] ss:$8 sps:$4 sm:$0xff]   ;;  %975 = vmatprep.subr.bf16.mxu0 %v1464_v5  ;;  %v1469_v8 = vld [vmem:[%s1935_s6 + $0x170] ss:$8 sps:$4 sm:$0xff]   ;;  %v1472_v10 = vld [vmem:[%s1935_s6 + $0x164] ss:$8 sps:$4 sm:$0xff]  }
  0x6a   : > { %1018 = vmatprep.subr.bf16.mxu1 %v1466_v6  ;;  %976 = vmatpush1.bf16.msra.mxu0 %v1468_v7  ;;  %v1474_v11 = vld [vmem:[%s1935_s6 + $0x60] ss:$8 sps:$4 sm:$0xff]   ;;  %v1476_v13 = vld [vmem:[%s1935_s6 + $0x54] ss:$8 sps:$4 sm:$0xff]   ;;  %v1480_v15 = vld [vmem:[%s1935_s6 + $0x50] ss:$8 sps:$4 sm:$0xff]  }
  0x6b   : > { %1019 = vmatpush1.bf16.msra.mxu1 %v1469_v8  ;;  %977 = vmatprep.subr.bf16.mxu0 %v1470_v9  ;;  %v1475_v12 = vld [vmem:[%s1935_s6 + $0x160] ss:$8 sps:$4 sm:$0xff]   ;;  %v1478_v14 = vld [vmem:[%s1935_s6 + $0x154] ss:$8 sps:$4 sm:$0xff]   ;;  %v1481_v16 = vld [vmem:[%s1935_s6 + $0x150] ss:$8 sps:$4 sm:$0xff]  }
  0x6c   : > { %1020 = vmatprep.subr.bf16.mxu1 %v1472_v10  ;;  %v1482_v17 = vld [vmem:[%s1935_s6 + $0x44] ss:$8 sps:$4 sm:$0xff]   ;;  %v1486_v19 = vld [vmem:[%s1935_s6 + $0x40] ss:$8 sps:$4 sm:$0xff]   ;;  %v1488_v21 = vld [vmem:[%s1935_s6 + $0x34] ss:$8 sps:$4 sm:$0xff]  }
  0x6d   : > { %v1484_v18 = vld [vmem:[%s1935_s6 + $0x144] ss:$8 sps:$4 sm:$0xff]   ;;  %v1487_v20 = vld [vmem:[%s1935_s6 + $0x140] ss:$8 sps:$4 sm:$0xff]   ;;  %v1490_v22 = vld [vmem:[%s1935_s6 + $0x134] ss:$8 sps:$4 sm:$0xff]  }
  0x6e   : > { %978 = vmatpush1.bf16.msra.mxu0 %v1474_v11  ;;  %v1492_v23 = vld [vmem:[%s1935_s6 + $0x30] ss:$8 sps:$4 sm:$0xff]   ;;  %v1494_v25 = vld [vmem:[%s1935_s6 + $0x24] ss:$8 sps:$4 sm:$0xff]   ;;  %v1498_v27 = vld [vmem:[%s1935_s6 + $0x20] ss:$8 sps:$4 sm:$0xff]  }
  0x6f   : > { %1021 = vmatpush1.bf16.msra.mxu1 %v1475_v12  ;;  %979 = vmatprep.subr.bf16.mxu0 %v1476_v13  ;;  %v1493_v24 = vld [vmem:[%s1935_s6 + $0x130] ss:$8 sps:$4 sm:$0xff]   ;;  %v1496_v26 = vld [vmem:[%s1935_s6 + $0x124] ss:$8 sps:$4 sm:$0xff]   ;;  %v1499_v28 = vld [vmem:[%s1935_s6 + $0x120] ss:$8 sps:$4 sm:$0xff]  }
  0x70   : > { %1022 = vmatprep.subr.bf16.mxu1 %v1478_v14  ;;  %v1500_v29 = vld [vmem:[%s1935_s6 + $0x14] ss:$8 sps:$4 sm:$0xff]   ;;  %v1504_v31 = vld [vmem:[%s1935_s6 + $0x10] ss:$8 sps:$4 sm:$0xff]   ;;  %v1506_v33 = vld [vmem:[%s1935_s6 + $0x4] ss:$8 sps:$4 sm:$0xff]  }
  0x71   : > { %v1502_v30 = vld [vmem:[%s1935_s6 + $0x114] ss:$8 sps:$4 sm:$0xff]   ;;  %v1505_v32 = vld [vmem:[%s1935_s6 + $0x110] ss:$8 sps:$4 sm:$0xff]   ;;  %v1508_v34 = vld [vmem:[%s1935_s6 + $0x104] ss:$8 sps:$4 sm:$0xff]  }
  0x72   : > { %980 = vmatpush1.bf16.msra.mxu0 %v1480_v15  ;;  %v1510_v35 = vld [vmem:[%s1935_s6] ss:$8 sps:$4 sm:$0xff]   ;;  %v1512_v37 = vld [vmem:[%s1935_s6 + $0xf4] ss:$8 sps:$4 sm:$0xff]   ;;  %v1516_v39 = vld [vmem:[%s1935_s6 + $0xf0] ss:$8 sps:$4 sm:$0xff]  }
  0x73   : > { %1023 = vmatpush1.bf16.msra.mxu1 %v1481_v16  ;;  %981 = vmatprep.subr.bf16.mxu0 %v1482_v17  ;;  %v1511_v36 = vld [vmem:[%s1935_s6 + $0x100] ss:$8 sps:$4 sm:$0xff]   ;;  %v1514_v38 = vld [vmem:[%s1935_s6 + $0x1f4] ss:$8 sps:$4 sm:$0xff]   ;;  %v1517_v40 = vld [vmem:[%s1935_s6 + $0x1f0] ss:$8 sps:$4 sm:$0xff]  }
  0x74   : > { %1024 = vmatprep.subr.bf16.mxu1 %v1484_v18  ;;  %v1518_v41 = vld [vmem:[%s1935_s6 + $0xe4] ss:$8 sps:$4 sm:$0xff]   ;;  %v1522_v43 = vld [vmem:[%s1935_s6 + $0xe0] ss:$8 sps:$4 sm:$0xff]   ;;  %v1524_v45 = vld [vmem:[%s1935_s6 + $0xd4] ss:$8 sps:$4 sm:$0xff]  }
  0x75   : > { %v1520_v42 = vld [vmem:[%s1935_s6 + $0x1e4] ss:$8 sps:$4 sm:$0xff]   ;;  %v1523_v44 = vld [vmem:[%s1935_s6 + $0x1e0] ss:$8 sps:$4 sm:$0xff]   ;;  %v1526_v46 = vld [vmem:[%s1935_s6 + $0x1d4] ss:$8 sps:$4 sm:$0xff]  }
  0x76   : > { %982 = vmatpush1.bf16.msra.mxu0 %v1486_v19  ;;  %v1528_v47 = vld [vmem:[%s1935_s6 + $0xd0] ss:$8 sps:$4 sm:$0xff]   ;;  %v1530_v49 = vld [vmem:[%s1935_s6 + $0xc4] ss:$8 sps:$4 sm:$0xff]   ;;  %v1534_v51 = vld [vmem:[%s1935_s6 + $0xc0] ss:$8 sps:$4 sm:$0xff]  }
  0x77   : > { %1025 = vmatpush1.bf16.msra.mxu1 %v1487_v20  ;;  %983 = vmatprep.subr.bf16.mxu0 %v1488_v21  ;;  %v1529_v48 = vld [vmem:[%s1935_s6 + $0x1d0] ss:$8 sps:$4 sm:$0xff]   ;;  %v1532_v50 = vld [vmem:[%s1935_s6 + $0x1c4] ss:$8 sps:$4 sm:$0xff]   ;;  %v1535_v53 = vld [vmem:[%s1935_s6 + $0x1c0] ss:$8 sps:$4 sm:$0xff]  }
  0x78   : > { %1026 = vmatprep.subr.bf16.mxu1 %v1490_v22  ;;  %v1562_v52 = vld [vmem:[%s1933_s27 + $0x4] ss:$16 sps:$4 sm:$0xff]   ;;  %v1565_v56 = vld [vmem:[%s1933_s27 + $0xc] ss:$16 sps:$4 sm:$0xff]   ;;  %v1540_v57 = vld [vmem:[%s1935_s6 + $0xb0] ss:$8 sps:$4 sm:$0xff]  }
  0x79   : > { %v1536_v54 = vld [vmem:[%s1935_s6 + $0xb4] ss:$8 sps:$4 sm:$0xff]   ;;  %1007 = vmatprep.mubr.bf16.mxu0 %v1562_v52  ;;  %1050 = vmatprep.mubr.bf16.mxu1 %v1565_v56  ;;  %v1541_v58 = vld [vmem:[%s1935_s6 + $0x1b0] ss:$8 sps:$4 sm:$0xff]   ;;  %v1542_v59 = vld [vmem:[%s1935_s6 + $0xa4] ss:$8 sps:$4 sm:$0xff]  }
  0x7a   : > { %984 = vmatpush1.bf16.msra.mxu0 %v1492_v23  ;;  %v1538_v55 = vld [vmem:[%s1935_s6 + $0x1b4] ss:$8 sps:$4 sm:$0xff]   ;;  %v1544_v60 = vld [vmem:[%s1935_s6 + $0x1a4] ss:$8 sps:$4 sm:$0xff]   ;;  %v1546_v61 = vld [vmem:[%s1935_s6 + $0xa0] ss:$8 sps:$4 sm:$0xff]  }
  0x7b   : > { %1027 = vmatpush1.bf16.msra.mxu1 %v1493_v24  ;;  %985 = vmatprep.subr.bf16.mxu0 %v1494_v25  ;;  %v1547_v62 = vld [vmem:[%s1935_s6 + $0x1a0] ss:$8 sps:$4 sm:$0xff]   ;;  %v1548_v63 = vld [vmem:[%s1935_s6 + $0x94] ss:$8 sps:$4 sm:$0xff]   ;;  %v1552_v1 = vld [vmem:[%s1935_s6 + $0x90] ss:$8 sps:$4 sm:$0xff]  }
  0x7c   : > { %1028 = vmatprep.subr.bf16.mxu1 %v1496_v26  ;;  %v1550_v0 = vld [vmem:[%s1935_s6 + $0x194] ss:$8 sps:$4 sm:$0xff]   ;;  %v1553_v2 = vld [vmem:[%s1935_s6 + $0x190] ss:$8 sps:$4 sm:$0xff]   ;;  %v1554_v3 = vld [vmem:[%s1935_s6 + $0x84] ss:$8 sps:$4 sm:$0xff]  }
  0x7d   : > { %v1556_v4 = vld [vmem:[%s1935_s6 + $0x184] ss:$8 sps:$4 sm:$0xff]   ;;  %v1558_v5 = vld [vmem:[%s1935_s6 + $0x80] ss:$8 sps:$4 sm:$0xff]   ;;  %v563_v10 = vld [vmem:[#allocation2 + $0x10] sm:$0xff]  ;;  %p1362_p5 = scmp.ne.s32.totalorder %s1636_s18, 3 }
  0x7e   : > { %986 = vmatpush1.bf16.msra.mxu0 %v1498_v27  ;;  %v1559_v6 = vld [vmem:[%s1935_s6 + $0x180] ss:$8 sps:$4 sm:$0xff]   ;;  %v565_v19 = vld [vmem:[#allocation2 + $0x18] sm:$0xff] }
  0x7f   : > { %1029 = vmatpush1.bf16.msra.mxu1 %v1499_v28  ;;  %987 = vmatprep.subr.bf16.mxu0 %v1500_v29  ;;  %v1560_v7 = vld [vmem:[%s1933_s27] ss:$16 sps:$4 sm:$0xff]   ;;  %v1563_v8 = vld [vmem:[%s1933_s27 + $0x8] ss:$16 sps:$4 sm:$0xff]  }
  0x80   : > { %1030 = vmatprep.subr.bf16.mxu1 %v1502_v30  ;;  %v564_v14 = vld [vmem:[#allocation2] sm:$0xff]  ;;  %v566_v24 = vld [vmem:[#allocation2 + $0x8] sm:$0xff] }
  0x82   : > { %988 = vmatpush1.bf16.msra.mxu0 %v1504_v31 }
  0x83   : > { %1031 = vmatpush1.bf16.msra.mxu1 %v1505_v32  ;;  %989 = vmatprep.subr.bf16.mxu0 %v1506_v33 }
  0x84   : > { %1032 = vmatprep.subr.bf16.mxu1 %v1508_v34 }
  0x86   : > { %990 = vmatpush1.bf16.msra.mxu0 %v1510_v35 }
  0x87   : > { %1033 = vmatpush1.bf16.msra.mxu1 %v1511_v36  ;;  %991 = vmatprep.subr.bf16.mxu0 %v1512_v37 }
  0x88   : > { %1034 = vmatprep.subr.bf16.mxu1 %v1514_v38 }
  0x8a   : > { %992 = vmatpush2.bf16.msra.mxu0 %v1516_v39 }
  0x8b   : > { %1035 = vmatpush2.bf16.msra.mxu1 %v1517_v40  ;;  %993 = vmatprep.subr.bf16.mxu0 %v1518_v41 }
  0x8c   : > { %1036 = vmatprep.subr.bf16.mxu1 %v1520_v42 }
  0x8e   : > { %994 = vmatpush2.bf16.msra.mxu0 %v1522_v43 }
  0x8f   : > { %1037 = vmatpush2.bf16.msra.mxu1 %v1523_v44  ;;  %995 = vmatprep.subr.bf16.mxu0 %v1524_v45 }
  0x90   : > { %1038 = vmatprep.subr.bf16.mxu1 %v1526_v46 }
  0x92   : > { %996 = vmatpush2.bf16.msra.mxu0 %v1528_v47 }
  0x93   : > { %1039 = vmatpush2.bf16.msra.mxu1 %v1529_v48  ;;  %997 = vmatprep.subr.bf16.mxu0 %v1530_v49 }
  0x94   : > { %1040 = vmatprep.subr.bf16.mxu1 %v1532_v50 }
  0x96   : > { %998 = vmatpush2.bf16.msra.mxu0 %v1534_v51 }
  0x97   : > { %1041 = vmatpush2.bf16.msra.mxu1 %v1535_v53  ;;  %999 = vmatprep.subr.bf16.mxu0 %v1536_v54 }
  0x98   : > { %1042 = vmatprep.subr.bf16.mxu1 %v1538_v55 }
  0x9a   : > { %1000 = vmatpush2.bf16.msra.mxu0 %v1540_v57 }
  0x9b   : > { %1043 = vmatpush2.bf16.msra.mxu1 %v1541_v58  ;;  %1001 = vmatprep.subr.bf16.mxu0 %v1542_v59 }
  0x9c   : > { %1044 = vmatprep.subr.bf16.mxu1 %v1544_v60 }
  0x9e   : > { %1002 = vmatpush2.bf16.msra.mxu0 %v1546_v61 }
  0x9f   : > { %1045 = vmatpush2.bf16.msra.mxu1 %v1547_v62  ;;  %1003 = vmatprep.subr.bf16.mxu0 %v1548_v63 }
  0xa0   : > { %1046 = vmatprep.subr.bf16.mxu1 %v1550_v0 }
  0xa2   : > { %1004 = vmatpush2.bf16.msra.mxu0 %v1552_v1 }
  0xa3   : > { %1047 = vmatpush2.bf16.msra.mxu1 %v1553_v2  ;;  %1005 = vmatprep.subr.bf16.mxu0 %v1554_v3 }
  0xa4   : > { %1048 = vmatprep.subr.bf16.mxu1 %v1556_v4 }
  0xa6   : > { %1006 = vmatpush2.bf16.msra.mxu0 %v1558_v5 }
  0xa7   : > { %1049 = vmatpush2.bf16.msra.mxu1 %v1559_v6 }
  0xa9   : > { %1008 = vmatmul.mubr.bf16.vlgmr.msra.gmra.mxu0 %v1560_v7 }
  0xaa   : > { %1051 = vmatmul.mubr.bf16.vlgmr.msra.gmra.mxu1 %v1563_v8 }
 0x169   : > { %v1009_v9 = vpop.f32.mrf.mxu0 }
 0x16a   : > { %v1052_v11 = vpop.f32.mrf.mxu1 }
 0x16b   : > { %v1053_v12 = vadd.f32 %v1052_v11, %v1009_v9  ;;  %v1011_v13 = vpop.f32.mrf.mxu0 }
 0x16c   : > { %v1054_v15 = vpop.f32.mrf.mxu1 }
 0x16d   : > { %v1061_v16 = vadd.f32 %v1053_v12, %v563_v10  ;;  %v1055_v17 = vadd.f32 %v1054_v15, %v1011_v13  ;;  %v1013_v18 = vpop.f32.mrf.mxu0 }
 0x16e   : > { %v1056_v20 = vpop.f32.mrf.mxu1 }
 0x16f   : > { %1065 = vst [vmem:[#allocation2 + $0x10] sm:$0xff] %v1061_v16  ;;  %v1062_v21 = vadd.f32 %v1055_v17, %v564_v14  ;;  %v1057_v22 = vadd.f32 %v1056_v20, %v1013_v18  ;;  %v1015_v23 = vpop.f32.mrf.mxu0 }
 0x170   : > { %v1058_v25 = vpop.f32.mrf.mxu1 }
 0x171   : > { %1066 = vst [vmem:[#allocation2] sm:$0xff] %v1062_v21  ;;  %v1063_v26 = vadd.f32 %v1057_v22, %v565_v19  ;;  %v1059_v27 = vadd.f32 %v1058_v25, %v1015_v23  ;;  %1072 = sbr.rel (%p1362_p5) target bundleno = 391 (0x187), region = 101 }
 0x173   : > { %1067 = vst [vmem:[#allocation2 + $0x18] sm:$0xff] %v1063_v26  ;;  %v1064_v28 = vadd.f32 %v1059_v27, %v566_v24 }
 0x175   : > { %1068 = vst [vmem:[#allocation2 + $0x8] sm:$0xff] %v1064_v28 }
 0x176   : > { %v1079_v29 = vlaneseq  ;;  %v1077_v31 = vld [vmem:[%s551_s4] sm:$0x3]  ;;  %v1073_v32 = vld [vmem:[#allocation2 + $0x10] sm:$0xff] }
 0x178   : > { %v1080_v30 = vshrl.u32 %v1079_v29, 7  ;;  %v1074_v35 = vld [vmem:[#allocation2] sm:$0xff] }
 0x17a   : > { %v1081_v33 = vsub.s32 0, %v1080_v30  ;;  %v1085_v34 = vsub.s32 1, %v1080_v30  ;;  %v1075_v36 = vld [vmem:[#allocation2 + $0x18] sm:$0xff] }
 0x17c   : > { %v1076_v37 = vld [vmem:[#allocation2 + $0x8] sm:$0xff]  ;;  %v1082_v38 = vrot.slane %v1077_v31, %v1081_v33  ;;  %v1086_v39 = vrot.slane %v1077_v31, %v1085_v34 }
 0x17e   : > { %v1089_v40 = vadd.f32 %v1082_v38, %v1073_v32  ;;  %v1090_v41 = vadd.f32 %v1086_v39, %v1074_v35  ;;  %v1091_v42 = vadd.f32 %v1082_v38, %v1075_v36  ;;  %v1092_v43 = vadd.f32 %v1086_v39, %v1076_v37 }
 0x180   : > { %vm1093_vm0 = vcmp.ge.f32.partialorder %v1089_v40, 0.0  ;;  %vm1094_vm1 = vcmp.ge.f32.partialorder %v1090_v41, 0.0  ;;  %v1097_v44 = vmul.f32 0.0, %v1089_v40  ;;  %v1098_v45 = vmul.f32 0.0, %v1090_v41 }
 0x181   : > { %vm1095_vm2 = vcmp.ge.f32.partialorder %v1091_v42, 0.0  ;;  %vm1096_vm3 = vcmp.ge.f32.partialorder %v1092_v43, 0.0  ;;  %v1099_v46 = vmul.f32 0.0, %v1091_v42  ;;  %v1100_v47 = vmul.f32 0.0, %v1092_v43 }
 0x182   : > { %v1101_v48 = vsel %vm1093_vm0, %v1089_v40, %v1097_v44  ;;  %v1102_v49 = vsel %vm1094_vm1, %v1090_v41, %v1098_v45 }
 0x183   : > { %v1372_v50 = vpack.c.bf16 %v1102_v49, %v1101_v48  ;;  %v1103_v51 = vsel %vm1095_vm2, %v1091_v42, %v1099_v46  ;;  %v1104_v52 = vsel %vm1096_vm3, %v1092_v43, %v1100_v47 }
 0x184   : > { %v1373_v53 = vpack.c.bf16 %v1104_v52, %v1103_v51 }
 0x185   : > { %1117 = vst [vmem:[%s1937_s1] sm:$0xff] %v1372_v50 }
 0x186   : > { %1118 = vst [vmem:[%s1937_s1 + $0x8] sm:$0xff] %v1373_v53 }
 0x187 PF: > { %1125 = sbr.rel (!%p1769_p12) target bundleno = 399 (0x18f), region = 105  ;;  %s1374_s16 = sshll.u32 (%p1769_p12), %s1640_s19, 3 }
 0x188   : > { %s1131_s5 = scalar_lea.vmem (%p1769_p12), %s2060_s3, %s1374_s16 }
 0x18c   : > { %v1162_v54 = vld [vmem:[%s1937_s1] sm:$0xff] }
 0x18d   : > { %v1164_v55 = vld [vmem:[%s1937_s1 + $0x8] sm:$0xff]  ;;  %1163 = vst [vmem:[%s1131_s5] sm:$0xff] %v1162_v54 }
 0x18e   : > { %1165 = vst [vmem:[%s1131_s5 + $0x10] sm:$0xff] %v1164_v55 }
 0x18f PF: > { %s13_s22 = sadd.s32 1, %s1652_s22   ;;  %s2070_s1 = sld [smem:[#allocation6_spill]] }
 0x190   : > { %p10_p6 = scmp.ge.s32.totalorder %s13_s22, 10   ;;  %s2071_s12 = smov %s1616_s13 }
 0x191   : > { %s2072_s13 = smov %s1767_s9  ;;  %s2073_s14 = smov %s1624_s15 }
 0x192   : > { %s2074_s15 = smov %s1764_s8  ;;  %s2075_s16 = smov %s1632_s17 }
 0x193   : > { %s2076_s17 = smov %s1750_s30  ;;  %s2077_s18 = smov %s1644_s20 }
 0x194   : > { %s2078_s19 = smov %s1648_s21  ;;  %s2079_s20 = smov %s2082_s24 }
 0x195   : > { %s2080_s21 = smov %s2070_s1  ;;  %12 = sbr.rel (!%p10_p6) target bundleno = 9 (0x9), region = 185 }

// kernel: pix2pix_forward.46
= control target key start
LH: loop header
LB: loop body
LE: loop exit
PB: predicated region body
PF: predicated region fallthrough
CT: control target
= control target key end

     0   :  { %s1174_s9 = smov 0   ;;  %s1176_s10 = smov 0   ;;  %s1325_s0 = inlined_call_operand.vmem [shape: bf16[16,4096], index: 0, kind: input, shape index: {}]   ;;  %s1326_s1 = inlined_call_operand.vmem [shape: bf16[4096,256], index: 1, kind: input, shape index: {}]   ;;  %s1327_s2 = inlined_call_operand.vmem [shape: f32[16,256], index: 2, kind: output, shape index: {}]  }
   0x1   :  { %s1178_s11 = smov 0   ;;  %s1180_s12 = smov 0  }
   0x2   :  { %s1182_s13 = smov 0  }
   0x3 LB: > { %s24_s14 = sadd.s32 1, %s1152_s12  ;;  %p47_p1 = scmp.ne.s32.totalorder %s1144_s10, %s1140_s9  ;;  %s1156_s13 = sphi %s1182_s13, %s12_s13   ;;  %s1152_s12 = sphi %s1180_s12, %s1331_s12   ;;  %s1148_s11 = sphi %s1178_s11, %s1330_s11   ;;  %s1144_s10 = sphi %s1176_s10, %s1329_s10   ;;  %s1140_s9 = sphi %s1174_s9, %s1328_s9  }
   0x4   : > { %p25_p0 = scmp.ge.s32.totalorder %s24_s14, 8  ;;  %p48_p2 = scmp.eq.s32.totalorder %s1156_s13, 0 }
   0x5   : > { %s40_s16 = sadd.s32 1, %s1144_s10  ;;  %p890_p5 = scmp.ge.s32.totalorder %s1156_s13, 8 }
   0x6   : > { %s1333_s14 = smov (%p25_p0, %s24_s14), 0  ;;  %p49_p3 = por %p48_p2, %p47_p1 }
   0x7   : > { %s36_s15 = ssub.s32 %s1152_s12, %s1333_s14  ;;  %129 = sbr.rel (%p890_p5) target bundleno = 18 (0x12), region = 16 }
   0x8   : > { %p38_p4 = scmp.eq.s32.totalorder %s36_s15, 0 }
   0xa   : > { %s1209_s17 = scalar_select %p38_p4, %s1144_s10, %s40_s16  }
   0xc   : > { %132 = sbr.rel (!%p49_p3) target bundleno = 18 (0x12), region = 20  ;;  %s134_s18 = sand.u32 (%p49_p3), 1, %s1144_s10  }
   0xd   : > { %s973_s19 = sshll.u32 (%p49_p3), %s1152_s12, 4  ;;  %s891_s20 = sshll.u32 (%p49_p3), %s134_s18, 5 }
   0xe   : > { %s142_s23 = scalar_lea.vmem (%p49_p3), %s1325_s0, %s973_s19  ;;  %s136_s24 = scalar_lea.vmem (%p49_p3), [#allocation3], %s891_s20 }
   0xf   : > { %v155_v0 = vld [vmem:[%s142_s23] sm:$0xff] (%p49_p3)  ;;  %v157_v1 = vld [vmem:[%s142_s23 + $0x8] sm:$0xff] (%p49_p3) }
  0x10   : > { %v159_v2 = vld [vmem:[%s142_s23 + $0x80] sm:$0xff] (%p49_p3)  ;;  %156 = vst [vmem:[%s136_s24] sm:$0xff] (%p49_p3), %v155_v0  ;;  %158 = vst [vmem:[%s136_s24 + $0x8] sm:$0xff] (%p49_p3), %v157_v1  ;;  %v161_v3 = vld [vmem:[%s142_s23 + $0x88] sm:$0xff] (%p49_p3) }
  0x11   : > { %160 = vst [vmem:[%s136_s24 + $0x10] sm:$0xff] %v159_v2  ;;  %162 = vst [vmem:[%s136_s24 + $0x18] sm:$0xff] %v161_v3 }
  0x12 PF: > { %p894_p6 = scmp.ge.s32.totalorder %s1156_s13, 1  ;;  %p182_p7 = scmp.lt.s32.totalorder %s1156_s13, 9 }
  0x14   : > { %p183_p8 = pnand %p894_p6, %p182_p7 }
  0x15   : > { %s189_s25 = sand.u32 (!%p183_p8), 1, %s1140_s9   ;;  %s896_s26 = sshll.u32 (!%p183_p8), %s1148_s11, 6 }
  0x16   : > { %186 = sbr.rel (%p183_p8) target bundleno = 313 (0x139), region = 47  ;;  %s895_s27 = sshll.u32 (!%p183_p8), %s189_s25, 5 }
  0x17   : > { %p229_p9 = scmp.lt.s32.totalorder (!%p183_p8), %s896_s26, 511  ;;  %s1226_s4 = scalar_lea.vmem (!%p183_p8), [#allocation3], %s895_s27 }
  0x18   : > { %p899_p10 = scmp.ne.s32.totalorder (!%p183_p8), %s1148_s11, 0 }
  0x1b   : > { %s1335_s26 = smov (!%p229_p9, %s896_s26), 511  ;;  %254 = sbr.rel (%p899_p10) target bundleno = 35 (0x23), region = 55 }
  0x1c   : > { %s974_s28 = sshll.u32 %s1335_s26, 3 }
  0x1d   : > { %s1224_s3 = scalar_lea.vmem %s1326_s1, %s974_s28 }
  0x20   : > { %v1158_v4 = vmov 0.0  }
  0x21   : > { %255 = vst [vmem:[#allocation2 + $0x10] sm:$0xff] %v1158_v4  ;;  %256 = vst [vmem:[#allocation2] sm:$0xff] %v1158_v4 }
  0x22   : > { %257 = vst [vmem:[#allocation2 + $0x18] sm:$0xff] %v1158_v4  ;;  %258 = vst [vmem:[#allocation2 + $0x8] sm:$0xff] %v1158_v4 }
  0x23 PF: > { %v1016_v5 = vld [vmem:[%s1224_s3 + $0x74] ss:$8 sps:$4 sm:$0xff]   ;;  %v1020_v7 = vld [vmem:[%s1224_s3 + $0x70] ss:$8 sps:$4 sm:$0xff]   ;;  %v1022_v9 = vld [vmem:[%s1224_s3 + $0x64] ss:$8 sps:$4 sm:$0xff]  }
  0x24   : > { %v1018_v6 = vld [vmem:[%s1224_s3 + $0x174] ss:$8 sps:$4 sm:$0xff]   ;;  %671 = vmatprep.subr.bf16.mxu0 %v1016_v5  ;;  %v1021_v8 = vld [vmem:[%s1224_s3 + $0x170] ss:$8 sps:$4 sm:$0xff]   ;;  %v1024_v10 = vld [vmem:[%s1224_s3 + $0x164] ss:$8 sps:$4 sm:$0xff]  }
  0x25   : > { %714 = vmatprep.subr.bf16.mxu1 %v1018_v6  ;;  %672 = vmatpush1.bf16.msra.mxu0 %v1020_v7  ;;  %v1026_v11 = vld [vmem:[%s1224_s3 + $0x60] ss:$8 sps:$4 sm:$0xff]   ;;  %v1028_v13 = vld [vmem:[%s1224_s3 + $0x54] ss:$8 sps:$4 sm:$0xff]   ;;  %v1032_v15 = vld [vmem:[%s1224_s3 + $0x50] ss:$8 sps:$4 sm:$0xff]  }
  0x26   : > { %715 = vmatpush1.bf16.msra.mxu1 %v1021_v8  ;;  %673 = vmatprep.subr.bf16.mxu0 %v1022_v9  ;;  %v1027_v12 = vld [vmem:[%s1224_s3 + $0x160] ss:$8 sps:$4 sm:$0xff]   ;;  %v1030_v14 = vld [vmem:[%s1224_s3 + $0x154] ss:$8 sps:$4 sm:$0xff]   ;;  %v1033_v16 = vld [vmem:[%s1224_s3 + $0x150] ss:$8 sps:$4 sm:$0xff]  }
  0x27   : > { %716 = vmatprep.subr.bf16.mxu1 %v1024_v10  ;;  %v1034_v17 = vld [vmem:[%s1224_s3 + $0x44] ss:$8 sps:$4 sm:$0xff]   ;;  %v1038_v19 = vld [vmem:[%s1224_s3 + $0x40] ss:$8 sps:$4 sm:$0xff]   ;;  %v1040_v21 = vld [vmem:[%s1224_s3 + $0x34] ss:$8 sps:$4 sm:$0xff]  }
  0x28   : > { %v1036_v18 = vld [vmem:[%s1224_s3 + $0x144] ss:$8 sps:$4 sm:$0xff]   ;;  %v1039_v20 = vld [vmem:[%s1224_s3 + $0x140] ss:$8 sps:$4 sm:$0xff]   ;;  %v1042_v22 = vld [vmem:[%s1224_s3 + $0x134] ss:$8 sps:$4 sm:$0xff]  }
  0x29   : > { %674 = vmatpush1.bf16.msra.mxu0 %v1026_v11  ;;  %v1044_v23 = vld [vmem:[%s1224_s3 + $0x30] ss:$8 sps:$4 sm:$0xff]   ;;  %v1046_v25 = vld [vmem:[%s1224_s3 + $0x24] ss:$8 sps:$4 sm:$0xff]   ;;  %v1050_v27 = vld [vmem:[%s1224_s3 + $0x20] ss:$8 sps:$4 sm:$0xff]  }
  0x2a   : > { %717 = vmatpush1.bf16.msra.mxu1 %v1027_v12  ;;  %675 = vmatprep.subr.bf16.mxu0 %v1028_v13  ;;  %v1045_v24 = vld [vmem:[%s1224_s3 + $0x130] ss:$8 sps:$4 sm:$0xff]   ;;  %v1048_v26 = vld [vmem:[%s1224_s3 + $0x124] ss:$8 sps:$4 sm:$0xff]   ;;  %v1051_v28 = vld [vmem:[%s1224_s3 + $0x120] ss:$8 sps:$4 sm:$0xff]  }
  0x2b   : > { %718 = vmatprep.subr.bf16.mxu1 %v1030_v14  ;;  %v1052_v29 = vld [vmem:[%s1224_s3 + $0x14] ss:$8 sps:$4 sm:$0xff]   ;;  %v1056_v31 = vld [vmem:[%s1224_s3 + $0x10] ss:$8 sps:$4 sm:$0xff]   ;;  %v1058_v33 = vld [vmem:[%s1224_s3 + $0x4] ss:$8 sps:$4 sm:$0xff]  }
  0x2c   : > { %v1054_v30 = vld [vmem:[%s1224_s3 + $0x114] ss:$8 sps:$4 sm:$0xff]   ;;  %v1057_v32 = vld [vmem:[%s1224_s3 + $0x110] ss:$8 sps:$4 sm:$0xff]   ;;  %v1060_v34 = vld [vmem:[%s1224_s3 + $0x104] ss:$8 sps:$4 sm:$0xff]  }
  0x2d   : > { %676 = vmatpush1.bf16.msra.mxu0 %v1032_v15  ;;  %v1062_v35 = vld [vmem:[%s1224_s3] ss:$8 sps:$4 sm:$0xff]   ;;  %v1064_v37 = vld [vmem:[%s1224_s3 + $0xf4] ss:$8 sps:$4 sm:$0xff]   ;;  %v1068_v39 = vld [vmem:[%s1224_s3 + $0xf0] ss:$8 sps:$4 sm:$0xff]  }
  0x2e   : > { %719 = vmatpush1.bf16.msra.mxu1 %v1033_v16  ;;  %677 = vmatprep.subr.bf16.mxu0 %v1034_v17  ;;  %v1063_v36 = vld [vmem:[%s1224_s3 + $0x100] ss:$8 sps:$4 sm:$0xff]   ;;  %v1066_v38 = vld [vmem:[%s1224_s3 + $0x1f4] ss:$8 sps:$4 sm:$0xff]   ;;  %v1069_v40 = vld [vmem:[%s1224_s3 + $0x1f0] ss:$8 sps:$4 sm:$0xff]  }
  0x2f   : > { %720 = vmatprep.subr.bf16.mxu1 %v1036_v18  ;;  %v1070_v41 = vld [vmem:[%s1224_s3 + $0xe4] ss:$8 sps:$4 sm:$0xff]   ;;  %v1074_v43 = vld [vmem:[%s1224_s3 + $0xe0] ss:$8 sps:$4 sm:$0xff]   ;;  %v1076_v45 = vld [vmem:[%s1224_s3 + $0xd4] ss:$8 sps:$4 sm:$0xff]  }
  0x30   : > { %v1072_v42 = vld [vmem:[%s1224_s3 + $0x1e4] ss:$8 sps:$4 sm:$0xff]   ;;  %v1075_v44 = vld [vmem:[%s1224_s3 + $0x1e0] ss:$8 sps:$4 sm:$0xff]   ;;  %v1078_v46 = vld [vmem:[%s1224_s3 + $0x1d4] ss:$8 sps:$4 sm:$0xff]  }
  0x31   : > { %678 = vmatpush1.bf16.msra.mxu0 %v1038_v19  ;;  %v1080_v47 = vld [vmem:[%s1224_s3 + $0xd0] ss:$8 sps:$4 sm:$0xff]   ;;  %v1082_v49 = vld [vmem:[%s1224_s3 + $0xc4] ss:$8 sps:$4 sm:$0xff]   ;;  %v1086_v51 = vld [vmem:[%s1224_s3 + $0xc0] ss:$8 sps:$4 sm:$0xff]  }
  0x32   : > { %721 = vmatpush1.bf16.msra.mxu1 %v1039_v20  ;;  %679 = vmatprep.subr.bf16.mxu0 %v1040_v21  ;;  %v1081_v48 = vld [vmem:[%s1224_s3 + $0x1d0] ss:$8 sps:$4 sm:$0xff]   ;;  %v1084_v50 = vld [vmem:[%s1224_s3 + $0x1c4] ss:$8 sps:$4 sm:$0xff]   ;;  %v1087_v53 = vld [vmem:[%s1224_s3 + $0x1c0] ss:$8 sps:$4 sm:$0xff]  }
  0x33   : > { %722 = vmatprep.subr.bf16.mxu1 %v1042_v22  ;;  %v1114_v52 = vld [vmem:[%s1226_s4 + $0x4] ss:$16 sps:$4 sm:$0xff]   ;;  %v1117_v56 = vld [vmem:[%s1226_s4 + $0xc] ss:$16 sps:$4 sm:$0xff]   ;;  %v1092_v57 = vld [vmem:[%s1224_s3 + $0xb0] ss:$8 sps:$4 sm:$0xff]  }
  0x34   : > { %v1088_v54 = vld [vmem:[%s1224_s3 + $0xb4] ss:$8 sps:$4 sm:$0xff]   ;;  %703 = vmatprep.mubr.bf16.mxu0 %v1114_v52  ;;  %746 = vmatprep.mubr.bf16.mxu1 %v1117_v56  ;;  %v1093_v58 = vld [vmem:[%s1224_s3 + $0x1b0] ss:$8 sps:$4 sm:$0xff]   ;;  %v1094_v59 = vld [vmem:[%s1224_s3 + $0xa4] ss:$8 sps:$4 sm:$0xff]  }
  0x35   : > { %680 = vmatpush1.bf16.msra.mxu0 %v1044_v23  ;;  %v1090_v55 = vld [vmem:[%s1224_s3 + $0x1b4] ss:$8 sps:$4 sm:$0xff]   ;;  %v1096_v60 = vld [vmem:[%s1224_s3 + $0x1a4] ss:$8 sps:$4 sm:$0xff]   ;;  %v1098_v61 = vld [vmem:[%s1224_s3 + $0xa0] ss:$8 sps:$4 sm:$0xff]  }
  0x36   : > { %723 = vmatpush1.bf16.msra.mxu1 %v1045_v24  ;;  %681 = vmatprep.subr.bf16.mxu0 %v1046_v25  ;;  %v1099_v62 = vld [vmem:[%s1224_s3 + $0x1a0] ss:$8 sps:$4 sm:$0xff]   ;;  %v1100_v63 = vld [vmem:[%s1224_s3 + $0x94] ss:$8 sps:$4 sm:$0xff]   ;;  %v1104_v1 = vld [vmem:[%s1224_s3 + $0x90] ss:$8 sps:$4 sm:$0xff]  }
  0x37   : > { %724 = vmatprep.subr.bf16.mxu1 %v1048_v26  ;;  %v1102_v0 = vld [vmem:[%s1224_s3 + $0x194] ss:$8 sps:$4 sm:$0xff]   ;;  %v1105_v2 = vld [vmem:[%s1224_s3 + $0x190] ss:$8 sps:$4 sm:$0xff]   ;;  %v1106_v3 = vld [vmem:[%s1224_s3 + $0x84] ss:$8 sps:$4 sm:$0xff]  }
  0x38   : > { %v1108_v4 = vld [vmem:[%s1224_s3 + $0x184] ss:$8 sps:$4 sm:$0xff]   ;;  %v1110_v5 = vld [vmem:[%s1224_s3 + $0x80] ss:$8 sps:$4 sm:$0xff]   ;;  %v259_v10 = vld [vmem:[#allocation2 + $0x10] sm:$0xff]  ;;  %p968_p11 = scmp.ne.s32.totalorder %s1148_s11, 7 }
  0x39   : > { %682 = vmatpush1.bf16.msra.mxu0 %v1050_v27  ;;  %v1111_v6 = vld [vmem:[%s1224_s3 + $0x180] ss:$8 sps:$4 sm:$0xff]   ;;  %v261_v19 = vld [vmem:[#allocation2 + $0x18] sm:$0xff] }
  0x3a   : > { %725 = vmatpush1.bf16.msra.mxu1 %v1051_v28  ;;  %683 = vmatprep.subr.bf16.mxu0 %v1052_v29  ;;  %v1112_v7 = vld [vmem:[%s1226_s4] ss:$16 sps:$4 sm:$0xff]   ;;  %v1115_v8 = vld [vmem:[%s1226_s4 + $0x8] ss:$16 sps:$4 sm:$0xff]  }
  0x3b   : > { %726 = vmatprep.subr.bf16.mxu1 %v1054_v30  ;;  %v260_v14 = vld [vmem:[#allocation2] sm:$0xff]  ;;  %v262_v24 = vld [vmem:[#allocation2 + $0x8] sm:$0xff] }
  0x3d   : > { %684 = vmatpush1.bf16.msra.mxu0 %v1056_v31 }
  0x3e   : > { %727 = vmatpush1.bf16.msra.mxu1 %v1057_v32  ;;  %685 = vmatprep.subr.bf16.mxu0 %v1058_v33 }
  0x3f   : > { %728 = vmatprep.subr.bf16.mxu1 %v1060_v34 }
  0x41   : > { %686 = vmatpush1.bf16.msra.mxu0 %v1062_v35 }
  0x42   : > { %729 = vmatpush1.bf16.msra.mxu1 %v1063_v36  ;;  %687 = vmatprep.subr.bf16.mxu0 %v1064_v37 }
  0x43   : > { %730 = vmatprep.subr.bf16.mxu1 %v1066_v38 }
  0x45   : > { %688 = vmatpush2.bf16.msra.mxu0 %v1068_v39 }
  0x46   : > { %731 = vmatpush2.bf16.msra.mxu1 %v1069_v40  ;;  %689 = vmatprep.subr.bf16.mxu0 %v1070_v41 }
  0x47   : > { %732 = vmatprep.subr.bf16.mxu1 %v1072_v42 }
  0x49   : > { %690 = vmatpush2.bf16.msra.mxu0 %v1074_v43 }
  0x4a   : > { %733 = vmatpush2.bf16.msra.mxu1 %v1075_v44  ;;  %691 = vmatprep.subr.bf16.mxu0 %v1076_v45 }
  0x4b   : > { %734 = vmatprep.subr.bf16.mxu1 %v1078_v46 }
  0x4d   : > { %692 = vmatpush2.bf16.msra.mxu0 %v1080_v47 }
  0x4e   : > { %735 = vmatpush2.bf16.msra.mxu1 %v1081_v48  ;;  %693 = vmatprep.subr.bf16.mxu0 %v1082_v49 }
  0x4f   : > { %736 = vmatprep.subr.bf16.mxu1 %v1084_v50 }
  0x51   : > { %694 = vmatpush2.bf16.msra.mxu0 %v1086_v51 }
  0x52   : > { %737 = vmatpush2.bf16.msra.mxu1 %v1087_v53  ;;  %695 = vmatprep.subr.bf16.mxu0 %v1088_v54 }
  0x53   : > { %738 = vmatprep.subr.bf16.mxu1 %v1090_v55 }
  0x55   : > { %696 = vmatpush2.bf16.msra.mxu0 %v1092_v57 }
  0x56   : > { %739 = vmatpush2.bf16.msra.mxu1 %v1093_v58  ;;  %697 = vmatprep.subr.bf16.mxu0 %v1094_v59 }
  0x57   : > { %740 = vmatprep.subr.bf16.mxu1 %v1096_v60 }
  0x59   : > { %698 = vmatpush2.bf16.msra.mxu0 %v1098_v61 }
  0x5a   : > { %741 = vmatpush2.bf16.msra.mxu1 %v1099_v62  ;;  %699 = vmatprep.subr.bf16.mxu0 %v1100_v63 }
  0x5b   : > { %742 = vmatprep.subr.bf16.mxu1 %v1102_v0 }
  0x5d   : > { %700 = vmatpush2.bf16.msra.mxu0 %v1104_v1 }
  0x5e   : > { %743 = vmatpush2.bf16.msra.mxu1 %v1105_v2  ;;  %701 = vmatprep.subr.bf16.mxu0 %v1106_v3 }
  0x5f   : > { %744 = vmatprep.subr.bf16.mxu1 %v1108_v4 }
  0x61   : > { %702 = vmatpush2.bf16.msra.mxu0 %v1110_v5 }
  0x62   : > { %745 = vmatpush2.bf16.msra.mxu1 %v1111_v6 }
  0x64   : > { %704 = vmatmul.mubr.bf16.vlgmr.msra.gmra.mxu0 %v1112_v7 }
  0x65   : > { %747 = vmatmul.mubr.bf16.vlgmr.msra.gmra.mxu1 %v1115_v8 }
 0x124   : > { %v705_v9 = vpop.f32.mrf.mxu0 }
 0x125   : > { %v748_v11 = vpop.f32.mrf.mxu1 }
 0x126   : > { %v749_v12 = vadd.f32 %v748_v11, %v705_v9  ;;  %v707_v13 = vpop.f32.mrf.mxu0 }
 0x127   : > { %v750_v15 = vpop.f32.mrf.mxu1 }
 0x128   : > { %v757_v16 = vadd.f32 %v749_v12, %v259_v10  ;;  %v751_v17 = vadd.f32 %v750_v15, %v707_v13  ;;  %v709_v18 = vpop.f32.mrf.mxu0 }
 0x129   : > { %v752_v20 = vpop.f32.mrf.mxu1 }
 0x12a   : > { %761 = vst [vmem:[#allocation2 + $0x10] sm:$0xff] %v757_v16  ;;  %v758_v21 = vadd.f32 %v751_v17, %v260_v14  ;;  %v753_v22 = vadd.f32 %v752_v20, %v709_v18  ;;  %v711_v23 = vpop.f32.mrf.mxu0 }
 0x12b   : > { %v754_v25 = vpop.f32.mrf.mxu1 }
 0x12c   : > { %762 = vst [vmem:[#allocation2] sm:$0xff] %v758_v21  ;;  %v759_v26 = vadd.f32 %v753_v22, %v261_v19  ;;  %v755_v27 = vadd.f32 %v754_v25, %v711_v23  ;;  %768 = sbr.rel (%p968_p11) target bundleno = 313 (0x139), region = 59 }
 0x12e   : > { %763 = vst [vmem:[#allocation2 + $0x18] sm:$0xff] %v759_v26  ;;  %v760_v28 = vadd.f32 %v755_v27, %v262_v24 }
 0x130   : > { %764 = vst [vmem:[#allocation2 + $0x8] sm:$0xff] %v760_v28 }
 0x131   : > { %v769_v29 = vld [vmem:[#allocation2 + $0x10] sm:$0xff] }
 0x132   : > { %773 = vst [vmem:[%s1327_s2] sm:$0xff] %v769_v29 }
 0x133   : > { %v770_v30 = vld [vmem:[#allocation2] sm:$0xff] }
 0x134   : > { %774 = vst [vmem:[%s1327_s2 + $0x8] sm:$0xff] %v770_v30 }
 0x135   : > { %v771_v31 = vld [vmem:[#allocation2 + $0x18] sm:$0xff] }
 0x136   : > { %775 = vst [vmem:[%s1327_s2 + $0x10] sm:$0xff] %v771_v31 }
 0x137   : > { %v772_v32 = vld [vmem:[#allocation2 + $0x8] sm:$0xff] }
 0x138   : > { %776 = vst [vmem:[%s1327_s2 + $0x18] sm:$0xff] %v772_v32 }
 0x139 PF: > { %s12_s13 = sadd.s32 1, %s1156_s13   ;;  %s1328_s9 = smov %s1144_s10 }
 0x13a   : > { %p9_p12 = scmp.ge.s32.totalorder %s12_s13, 10   ;;  %s1329_s10 = smov %s1209_s17 }
 0x13b   : > { %s1330_s11 = smov %s1152_s12  ;;  %s1331_s12 = smov %s1333_s14 }
 0x13c   :  { %11 = sbr.rel (!%p9_p12) target bundleno = 3 (0x3), region = 97 }

// kernel: pix2pix_forward.51
= control target key start
LH: loop header
LB: loop body
LE: loop exit
PB: predicated region body
PF: predicated region fallthrough
CT: control target
= control target key end

     0   :  { %v24_v0 = vlaneseq  ;;  %s188_s1 = inlined_call_operand.vmem [shape: f32[1,256], index: 1, kind: input, shape index: {}]   ;;  %s189_s2 = inlined_call_operand.vmem [shape: f32[1,256], index: 2, kind: input, shape index: {}]   ;;  %s190_s0 = inlined_call_operand.vmem [shape: f32[32,256], index: 0, kind: input, shape index: {}]   ;;  %s191_s3 = inlined_call_operand.vmem [shape: bf16[32,256], index: 3, kind: output, shape index: {}]  }
   0x1   :  { %v22_v2 = vld [vmem:[%s188_s1] sm:$0x3]  ;;  %v15_v5 = vld [vmem:[%s190_s0 + $0x8] sm:$0xff]  ;;  %v16_v8 = vld [vmem:[%s190_s0 + $0x10] sm:$0xff] }
   0x2   :  { %v25_v1 = vshrl.u32 %v24_v0, 7  ;;  %v42_v3 = vld [vmem:[%s189_s2] sm:$0x3]  ;;  %v17_v9 = vld [vmem:[%s190_s0 + $0x18] sm:$0xff]  ;;  %v19_v15 = vld [vmem:[%s190_s0 + $0x28] sm:$0xff] }
   0x3   :  { %v14_v4 = vld [vmem:[%s190_s0] sm:$0xff]  ;;  %v20_v16 = vld [vmem:[%s190_s0 + $0x30] sm:$0xff]  ;;  %v21_v17 = vld [vmem:[%s190_s0 + $0x38] sm:$0xff] }
   0x4   :  { %v26_v6 = vsub.s32 0, %v25_v1  ;;  %v30_v7 = vsub.s32 1, %v25_v1  ;;  %v18_v10 = vld [vmem:[%s190_s0 + $0x20] sm:$0xff] }
   0x6   :  { %v27_v11 = vrot.slane %v22_v2, %v26_v6  ;;  %v31_v12 = vrot.slane %v22_v2, %v30_v7  ;;  %v47_v13 = vrot.slane %v42_v3, %v26_v6  ;;  %v51_v14 = vrot.slane %v42_v3, %v30_v7 }
   0x8   :  { %v34_v18 = vmul.f32 %v27_v11, %v14_v4  ;;  %v35_v19 = vmul.f32 %v31_v12, %v15_v5  ;;  %v36_v20 = vmul.f32 %v27_v11, %v16_v8  ;;  %v37_v21 = vmul.f32 %v31_v12, %v17_v9 }
   0x9   :  { %v38_v22 = vmul.f32 %v27_v11, %v18_v10  ;;  %v39_v23 = vmul.f32 %v31_v12, %v19_v15  ;;  %v40_v24 = vmul.f32 %v27_v11, %v20_v16  ;;  %v41_v25 = vmul.f32 %v31_v12, %v21_v17 }
   0xa   :  { %v54_v26 = vadd.f32 %v47_v13, %v34_v18  ;;  %v55_v27 = vadd.f32 %v51_v14, %v35_v19  ;;  %v56_v28 = vadd.f32 %v47_v13, %v36_v20  ;;  %v57_v29 = vadd.f32 %v51_v14, %v37_v21 }
   0xb   :  { %v58_v30 = vadd.f32 %v47_v13, %v38_v22  ;;  %v59_v31 = vadd.f32 %v51_v14, %v39_v23  ;;  %v60_v32 = vadd.f32 %v47_v13, %v40_v24  ;;  %v61_v33 = vadd.f32 %v51_v14, %v41_v25 }
   0xc   :  { %vm62_vm0 = vcmp.ge.f32.partialorder %v54_v26, 0.0  ;;  %vm63_vm1 = vcmp.ge.f32.partialorder %v55_v27, 0.0  ;;  %v70_v34 = vmul.f32 0.0, %v54_v26  ;;  %v71_v35 = vmul.f32 0.0, %v55_v27 }
   0xd   :  { %vm64_vm2 = vcmp.ge.f32.partialorder %v56_v28, 0.0  ;;  %vm65_vm3 = vcmp.ge.f32.partialorder %v57_v29, 0.0  ;;  %v72_v36 = vmul.f32 0.0, %v56_v28  ;;  %v73_v37 = vmul.f32 0.0, %v57_v29 }
   0xe   :  { %v78_v38 = vsel %vm62_vm0, %v54_v26, %v70_v34  ;;  %v79_v39 = vsel %vm63_vm1, %v55_v27, %v71_v35  ;;  %vm66_vm4 = vcmp.ge.f32.partialorder %v58_v30, 0.0  ;;  %vm67_vm5 = vcmp.ge.f32.partialorder %v59_v31, 0.0 }
   0xf   :  { %v122_v40 = vpack.c.bf16 %v79_v39, %v78_v38  ;;  %v80_v41 = vsel %vm64_vm2, %v56_v28, %v72_v36  ;;  %v81_v42 = vsel %vm65_vm3, %v57_v29, %v73_v37  ;;  %v74_v43 = vmul.f32 0.0, %v58_v30 }
  0x10   :  { %v123_v44 = vpack.c.bf16 %v81_v42, %v80_v41  ;;  %v75_v45 = vmul.f32 0.0, %v59_v31  ;;  %vm68_vm6 = vcmp.ge.f32.partialorder %v60_v32, 0.0  ;;  %vm69_vm7 = vcmp.ge.f32.partialorder %v61_v33, 0.0 }
  0x11   :  { %110 = vst [vmem:[%s191_s3] sm:$0xff] %v122_v40  ;;  %v82_v46 = vsel %vm66_vm4, %v58_v30, %v74_v43  ;;  %v76_v47 = vmul.f32 0.0, %v60_v32  ;;  %v77_v48 = vmul.f32 0.0, %v61_v33 }
  0x12   :  { %111 = vst [vmem:[%s191_s3 + $0x8] sm:$0xff] %v123_v44  ;;  %v83_v49 = vsel %vm67_vm5, %v59_v31, %v75_v45 }
  0x13   :  { %v124_v50 = vpack.c.bf16 %v83_v49, %v82_v46  ;;  %v84_v51 = vsel %vm68_vm6, %v60_v32, %v76_v47  ;;  %v85_v52 = vsel %vm69_vm7, %v61_v33, %v77_v48 }
  0x14   :  { %v125_v53 = vpack.c.bf16 %v85_v52, %v84_v51 }
  0x15   :  { %112 = vst [vmem:[%s191_s3 + $0x10] sm:$0xff] %v124_v50 }
  0x16   :  { %113 = vst [vmem:[%s191_s3 + $0x18] sm:$0xff] %v125_v53 }

// kernel: pix2pix_forward.52
= control target key start
LH: loop header
LB: loop body
LE: loop exit
PB: predicated region body
PF: predicated region fallthrough
CT: control target
= control target key end

     0   :  { %s1034_s9 = smov 0   ;;  %s1036_s10 = smov 0   ;;  %s1157_s0 = inlined_call_operand.vmem [shape: bf16[32,2048], index: 0, kind: input, shape index: {}]   ;;  %s1158_s1 = inlined_call_operand.vmem [shape: bf16[2048,128], index: 1, kind: input, shape index: {}]   ;;  %s1159_s2 = inlined_call_operand.vmem [shape: f32[32,128], index: 2, kind: output, shape index: {}]  }
   0x1   :  { %s1038_s11 = smov 0   ;;  %s1040_s12 = smov 0  }
   0x2   :  { %s1042_s13 = smov 0  }
   0x3 LB: > { %s24_s14 = sadd.s32 1, %s1012_s12  ;;  %p47_p1 = scmp.ne.s32.totalorder %s1004_s10, %s1000_s9  ;;  %s1016_s13 = sphi %s1042_s13, %s12_s13   ;;  %s1012_s12 = sphi %s1040_s12, %s1163_s12   ;;  %s1008_s11 = sphi %s1038_s11, %s1162_s11   ;;  %s1004_s10 = sphi %s1036_s10, %s1161_s10   ;;  %s1000_s9 = sphi %s1034_s9, %s1160_s9  }
   0x4   : > { %p25_p0 = scmp.ge.s32.totalorder %s24_s14, 4  ;;  %p48_p2 = scmp.eq.s32.totalorder %s1016_s13, 0 }
   0x5   : > { %s40_s16 = sadd.s32 1, %s1004_s10  ;;  %p782_p5 = scmp.ge.s32.totalorder %s1016_s13, 4 }
   0x6   : > { %s1165_s14 = smov (%p25_p0, %s24_s14), 0  ;;  %p49_p3 = por %p48_p2, %p47_p1 }
   0x7   : > { %s36_s15 = ssub.s32 %s1012_s12, %s1165_s14  ;;  %129 = sbr.rel (%p782_p5) target bundleno = 20 (0x14), region = 16 }
   0x8   : > { %p38_p4 = scmp.eq.s32.totalorder %s36_s15, 0 }
   0xa   : > { %s1069_s17 = scalar_select %p38_p4, %s1004_s10, %s40_s16  }
   0xc   : > { %132 = sbr.rel (!%p49_p3) target bundleno = 20 (0x14), region = 20  ;;  %s134_s18 = sand.u32 (%p49_p3), 1, %s1004_s10  }
   0xd   : > { %s836_s19 = sshll.u32 (%p49_p3), %s1012_s12, 4  ;;  %s783_s20 = sshll.u32 (%p49_p3), %s134_s18, 6 }
   0xe   : > { %s142_s23 = scalar_lea.vmem (%p49_p3), %s1157_s0, %s836_s19  ;;  %s136_s24 = scalar_lea.vmem (%p49_p3), [#allocation3], %s783_s20 }
   0xf   : > { %v155_v0 = vld [vmem:[%s142_s23] sm:$0xff] (%p49_p3)  ;;  %v157_v1 = vld [vmem:[%s142_s23 + $0x8] sm:$0xff] (%p49_p3) }
  0x10   : > { %v159_v2 = vld [vmem:[%s142_s23 + $0x40] sm:$0xff] (%p49_p3)  ;;  %156 = vst [vmem:[%s136_s24] sm:$0xff] (%p49_p3), %v155_v0  ;;  %158 = vst [vmem:[%s136_s24 + $0x8] sm:$0xff] (%p49_p3), %v157_v1  ;;  %v161_v3 = vld [vmem:[%s142_s23 + $0x48] sm:$0xff] (%p49_p3) }
  0x11   : > { %160 = vst [vmem:[%s136_s24 + $0x10] sm:$0xff] %v159_v2  ;;  %v163_v4 = vld [vmem:[%s142_s23 + $0x80] sm:$0xff]  ;;  %v165_v5 = vld [vmem:[%s142_s23 + $0x88] sm:$0xff]  ;;  %162 = vst [vmem:[%s136_s24 + $0x18] sm:$0xff] %v161_v3 }
  0x12   : > { %164 = vst [vmem:[%s136_s24 + $0x20] sm:$0xff] %v163_v4  ;;  %166 = vst [vmem:[%s136_s24 + $0x28] sm:$0xff] %v165_v5  ;;  %v167_v6 = vld [vmem:[%s142_s23 + $0xc0] sm:$0xff]  ;;  %v169_v7 = vld [vmem:[%s142_s23 + $0xc8] sm:$0xff] }
  0x13   : > { %168 = vst [vmem:[%s136_s24 + $0x30] sm:$0xff] %v167_v6  ;;  %170 = vst [vmem:[%s136_s24 + $0x38] sm:$0xff] %v169_v7 }
  0x14 PF: > { %p786_p6 = scmp.ge.s32.totalorder %s1016_s13, 1  ;;  %p187_p7 = scmp.lt.s32.totalorder %s1016_s13, 5 }
  0x16   : > { %p188_p8 = pnand %p786_p6, %p187_p7 }
  0x17   : > { %s194_s25 = sand.u32 (!%p188_p8), 1, %s1000_s9   ;;  %s788_s26 = sshll.u32 (!%p188_p8), %s1008_s11, 6 }
  0x18   : > { %191 = sbr.rel (%p188_p8) target bundleno = 294 (0x126), region = 47  ;;  %s787_s27 = sshll.u32 (!%p188_p8), %s194_s25, 6 }
  0x19   : > { %p229_p9 = scmp.lt.s32.totalorder (!%p188_p8), %s788_s26, 255  ;;  %s1086_s4 = scalar_lea.vmem (!%p188_p8), [#allocation3], %s787_s27 }
  0x1a   : > { %p790_p10 = scmp.ne.s32.totalorder (!%p188_p8), %s1008_s11, 0 }
  0x1d   : > { %s1167_s26 = smov (!%p229_p9, %s788_s26), 255  ;;  %250 = sbr.rel (%p790_p10) target bundleno = 37 (0x25), region = 55 }
  0x1e   : > { %s789_s28 = sshll.u32 %s1167_s26, 2 }
  0x1f   : > { %s1084_s3 = scalar_lea.vmem %s1158_s1, %s789_s28 }
  0x22   : > { %v1018_v8 = vmov 0.0  }
  0x23   : > { %251 = vst [vmem:[#allocation2 + $0x10] sm:$0xff] %v1018_v8  ;;  %252 = vst [vmem:[#allocation2] sm:$0xff] %v1018_v8 }
  0x24   : > { %253 = vst [vmem:[#allocation2 + $0x18] sm:$0xff] %v1018_v8  ;;  %254 = vst [vmem:[#allocation2 + $0x8] sm:$0xff] %v1018_v8 }
  0x25 PF: > { %v934_v9 = vld [vmem:[%s1084_s3 + $0x78] sm:$0xff]   ;;  %v938_v13 = vld [vmem:[%s1084_s3 + $0x70] sm:$0xff]   ;;  %v942_v17 = vld [vmem:[%s1084_s3 + $0x68] sm:$0xff]   ;;  %p831_p11 = scmp.ne.s32.totalorder %s1008_s11, 3 }
  0x26   : > { %v935_v10 = vld [vmem:[%s1084_s3 + $0xf8] sm:$0xff]   ;;  %837 = vmatprep.subr.bf16.mxu0 %v934_v9  ;;  %v939_v14 = vld [vmem:[%s1084_s3 + $0xf0] sm:$0xff]   ;;  %v943_v18 = vld [vmem:[%s1084_s3 + $0xe8] sm:$0xff]  }
  0x27   : > { %v936_v11 = vld [vmem:[%s1084_s3 + $0x38] sm:$0xff]   ;;  %865 = vmatprep.subr.bf16.mxu1 %v935_v10  ;;  %v940_v15 = vld [vmem:[%s1084_s3 + $0x30] sm:$0xff]   ;;  %v944_v19 = vld [vmem:[%s1084_s3 + $0x28] sm:$0xff]  }
  0x28   : > { %v937_v12 = vld [vmem:[%s1084_s3 + $0xb8] sm:$0xff]   ;;  %838 = vmatpush3.bf16.msra.mxu0 %v936_v11  ;;  %v941_v16 = vld [vmem:[%s1084_s3 + $0xb0] sm:$0xff]   ;;  %v945_v20 = vld [vmem:[%s1084_s3 + $0xa8] sm:$0xff]  }
  0x29   : > { %866 = vmatpush3.bf16.msra.mxu1 %v937_v12  ;;  %839 = vmatprep.subr.bf16.mxu0 %v938_v13  ;;  %v946_v21 = vld [vmem:[%s1084_s3 + $0x60] sm:$0xff]   ;;  %v950_v25 = vld [vmem:[%s1084_s3 + $0x58] sm:$0xff]   ;;  %v954_v29 = vld [vmem:[%s1084_s3 + $0x50] sm:$0xff]  }
  0x2a   : > { %867 = vmatprep.subr.bf16.mxu1 %v939_v14  ;;  %v947_v22 = vld [vmem:[%s1084_s3 + $0xe0] sm:$0xff]   ;;  %v951_v26 = vld [vmem:[%s1084_s3 + $0xd8] sm:$0xff]   ;;  %v955_v30 = vld [vmem:[%s1084_s3 + $0xd0] sm:$0xff]  }
  0x2b   : > { %v948_v23 = vld [vmem:[%s1084_s3 + $0x20] sm:$0xff]   ;;  %v952_v27 = vld [vmem:[%s1084_s3 + $0x18] sm:$0xff]   ;;  %v956_v31 = vld [vmem:[%s1084_s3 + $0x10] sm:$0xff]  }
  0x2c   : > { %840 = vmatpush3.bf16.msra.mxu0 %v940_v15  ;;  %v949_v24 = vld [vmem:[%s1084_s3 + $0xa0] sm:$0xff]   ;;  %v953_v28 = vld [vmem:[%s1084_s3 + $0x98] sm:$0xff]   ;;  %v957_v32 = vld [vmem:[%s1084_s3 + $0x90] sm:$0xff]  }
  0x2d   : > { %868 = vmatpush3.bf16.msra.mxu1 %v941_v16  ;;  %841 = vmatprep.subr.bf16.mxu0 %v942_v17  ;;  %v958_v33 = vld [vmem:[%s1084_s3 + $0x48] sm:$0xff]   ;;  %v962_v37 = vld [vmem:[%s1084_s3 + $0x40] sm:$0xff]   ;;  %v255_v56 = vld [vmem:[#allocation2 + $0x10] sm:$0xff] }
  0x2e   : > { %869 = vmatprep.subr.bf16.mxu1 %v943_v18  ;;  %v959_v34 = vld [vmem:[%s1084_s3 + $0xc8] sm:$0xff]   ;;  %v963_v38 = vld [vmem:[%s1084_s3 + $0xc0] sm:$0xff]   ;;  %v257_v10 = vld [vmem:[#allocation2 + $0x18] sm:$0xff] }
  0x2f   : > { %v960_v35 = vld [vmem:[%s1084_s3 + $0x8] sm:$0xff]   ;;  %v964_v39 = vld [vmem:[%s1084_s3] sm:$0xff]  }
  0x30   : > { %842 = vmatpush3.bf16.msra.mxu0 %v944_v19  ;;  %v961_v36 = vld [vmem:[%s1084_s3 + $0x88] sm:$0xff]   ;;  %v965_v40 = vld [vmem:[%s1084_s3 + $0x80] sm:$0xff]  }
  0x31   : > { %870 = vmatpush3.bf16.msra.mxu1 %v945_v20  ;;  %843 = vmatprep.subr.bf16.mxu0 %v946_v21  ;;  %v966_v41 = vld [vmem:[%s1086_s4] ss:$16 sps:$4 sm:$0xff]   ;;  %v968_v42 = vld [vmem:[%s1086_s4 + $0x4] ss:$16 sps:$4 sm:$0xff]   ;;  %v969_v43 = vld [vmem:[%s1086_s4 + $0x8] ss:$16 sps:$4 sm:$0xff]  }
  0x32   : > { %871 = vmatprep.subr.bf16.mxu1 %v947_v22  ;;  %v971_v44 = vld [vmem:[%s1086_s4 + $0xc] ss:$16 sps:$4 sm:$0xff]   ;;  %595 = vmatprep.mubr.bf16.mxu0 %v968_v42  ;;  %v972_v45 = vld [vmem:[%s1086_s4 + $0x24] ss:$16 sps:$4 sm:$0xff]   ;;  %v976_v47 = vld [vmem:[%s1086_s4 + $0x20] ss:$16 sps:$4 sm:$0xff]  }
  0x33   : > { %644 = vmatprep.mubr.bf16.mxu1 %v971_v44  ;;  %v974_v46 = vld [vmem:[%s1086_s4 + $0x2c] ss:$16 sps:$4 sm:$0xff]   ;;  %v977_v48 = vld [vmem:[%s1086_s4 + $0x28] ss:$16 sps:$4 sm:$0xff]   ;;  %v256_v1 = vld [vmem:[#allocation2] sm:$0xff] }
  0x34   : > { %844 = vmatpush3.bf16.msra.mxu0 %v948_v23  ;;  %v258_v18 = vld [vmem:[#allocation2 + $0x8] sm:$0xff] }
  0x35   : > { %872 = vmatpush3.bf16.msra.mxu1 %v949_v24  ;;  %845 = vmatprep.subr.bf16.mxu0 %v950_v25 }
  0x36   : > { %873 = vmatprep.subr.bf16.mxu1 %v951_v26 }
  0x38   : > { %846 = vmatpush3.bf16.msra.mxu0 %v952_v27 }
  0x39   : > { %874 = vmatpush3.bf16.msra.mxu1 %v953_v28  ;;  %847 = vmatprep.subr.bf16.mxu0 %v954_v29 }
  0x3a   : > { %875 = vmatprep.subr.bf16.mxu1 %v955_v30 }
  0x3c   : > { %848 = vmatpush3.bf16.msra.mxu0 %v956_v31 }
  0x3d   : > { %876 = vmatpush3.bf16.msra.mxu1 %v957_v32  ;;  %849 = vmatprep.subr.bf16.mxu0 %v958_v33 }
  0x3e   : > { %877 = vmatprep.subr.bf16.mxu1 %v959_v34 }
  0x40   : > { %850 = vmatpush3.bf16.msra.mxu0 %v960_v35 }
  0x41   : > { %878 = vmatpush3.bf16.msra.mxu1 %v961_v36  ;;  %851 = vmatprep.subr.bf16.mxu0 %v962_v37 }
  0x42   : > { %879 = vmatprep.subr.bf16.mxu1 %v963_v38 }
  0x44   : > { %852 = vmatpush3.bf16.msra.mxu0 %v964_v39 }
  0x45   : > { %880 = vmatpush3.bf16.msra.mxu1 %v965_v40 }
  0x47   : > { %596 = vmatmul.mubr.bf16.vlgmr.msra.gmra.mxu0 %v966_v41 }
  0x48   : > { %645 = vmatmul.mubr.bf16.vlgmr.msra.gmra.mxu1 %v969_v43  ;;  %603 = vmatprep.mubr.bf16.mxu0 %v972_v45 }
  0x49   : > { %652 = vmatprep.mubr.bf16.mxu1 %v974_v46 }
  0x4f   : > { %604 = vmatmul.mubr.bf16.gmra.mxu0 %v976_v47 }
  0x50   : > { %653 = vmatmul.mubr.bf16.gmra.mxu1 %v977_v48 }
 0x107   : > { %v853_v49 = vpop.f32.mrf.mxu0 }
 0x108   : > { %v881_v50 = vpop.f32.mrf.mxu1 }
 0x109   : > { %v854_v51 = vpop.f32.mrf.mxu0 }
 0x10a   : > { %v855_v52 = vadd.f32 %v854_v51, %v853_v49  ;;  %v882_v53 = vpop.f32.mrf.mxu1 }
 0x10b   : > { %v883_v54 = vadd.f32 %v882_v53, %v881_v50  ;;  %v856_v55 = vpop.f32.mrf.mxu0 }
 0x10c   : > { %v884_v57 = vpop.f32.mrf.mxu1 }
 0x10d   : > { %v647_v58 = vadd.f32 %v883_v54, %v855_v52  ;;  %v857_v59 = vpop.f32.mrf.mxu0 }
 0x10e   : > { %v858_v60 = vadd.f32 %v857_v59, %v856_v55  ;;  %v885_v61 = vpop.f32.mrf.mxu1 }
 0x10f   : > { %v661_v62 = vadd.f32 %v647_v58, %v255_v56  ;;  %v886_v63 = vadd.f32 %v885_v61, %v884_v57  ;;  %v859_v0 = vpop.f32.mrf.mxu0 }
 0x110   : > { %v887_v2 = vpop.f32.mrf.mxu1 }
 0x111   : > { %665 = vst [vmem:[#allocation2 + $0x10] sm:$0xff] %v661_v62  ;;  %v650_v3 = vadd.f32 %v886_v63, %v858_v60  ;;  %v860_v4 = vpop.f32.mrf.mxu0 }
 0x112   : > { %v861_v5 = vadd.f32 %v860_v4, %v859_v0  ;;  %v888_v6 = vpop.f32.mrf.mxu1 }
 0x113   : > { %v662_v7 = vadd.f32 %v650_v3, %v256_v1  ;;  %v889_v8 = vadd.f32 %v888_v6, %v887_v2  ;;  %v862_v9 = vpop.f32.mrf.mxu0 }
 0x114   : > { %v890_v11 = vpop.f32.mrf.mxu1 }
 0x115   : > { %666 = vst [vmem:[#allocation2] sm:$0xff] %v662_v7  ;;  %v655_v12 = vadd.f32 %v889_v8, %v861_v5  ;;  %v863_v13 = vpop.f32.mrf.mxu0 }
 0x116   : > { %v864_v14 = vadd.f32 %v863_v13, %v862_v9  ;;  %v891_v15 = vpop.f32.mrf.mxu1 }
 0x117   : > { %v663_v16 = vadd.f32 %v655_v12, %v257_v10  ;;  %v892_v17 = vadd.f32 %v891_v15, %v890_v11 }
 0x119   : > { %667 = vst [vmem:[#allocation2 + $0x18] sm:$0xff] %v663_v16  ;;  %v658_v19 = vadd.f32 %v892_v17, %v864_v14  ;;  %672 = sbr.rel (%p831_p11) target bundleno = 294 (0x126), region = 59 }
 0x11b   : > { %v664_v20 = vadd.f32 %v658_v19, %v258_v18 }
 0x11d   : > { %668 = vst [vmem:[#allocation2 + $0x8] sm:$0xff] %v664_v20 }
 0x11e   : > { %v673_v21 = vld [vmem:[#allocation2 + $0x10] sm:$0xff]  ;;  %v674_v22 = vld [vmem:[#allocation2] sm:$0xff] }
 0x11f   : > { %677 = vst [vmem:[%s1159_s2] sm:$0xff] %v673_v21  ;;  %678 = vst [vmem:[%s1159_s2 + $0x8] sm:$0xff] %v674_v22 }
 0x120   : > { %v675_v23 = vld [vmem:[#allocation2 + $0x18] sm:$0xff] }
 0x121   : > { %679 = vst [vmem:[%s1159_s2 + $0x10] sm:$0xff] %v675_v23 }
 0x124   : > { %v676_v24 = vld [vmem:[#allocation2 + $0x8] sm:$0xff] }
 0x125   : > { %680 = vst [vmem:[%s1159_s2 + $0x18] sm:$0xff] %v676_v24 }
 0x126 PF: > { %s12_s13 = sadd.s32 1, %s1016_s13   ;;  %s1160_s9 = smov %s1004_s10 }
 0x127   : > { %p9_p12 = scmp.ge.s32.totalorder %s12_s13, 6   ;;  %s1161_s10 = smov %s1069_s17 }
 0x128   : > { %s1162_s11 = smov %s1012_s12  ;;  %s1163_s12 = smov %s1165_s14 }
 0x129   :  { %11 = sbr.rel (!%p9_p12) target bundleno = 3 (0x3), region = 97 }

// kernel: pix2pix_forward.56
= control target key start
LH: loop header
LB: loop body
LE: loop exit
PB: predicated region body
PF: predicated region fallthrough
CT: control target
= control target key end

     0   :  { %v105_v0 = vmov 0.0   ;;  %s187_s1 = inlined_call_operand.vmem [shape: f32[1,128], index: 1, kind: output, shape index: {0}]   ;;  %s188_s2 = inlined_call_operand.vmem [shape: f32[1,128], index: 2, kind: output, shape index: {1}]   ;;  %s189_s0 = inlined_call_operand.vmem [shape: f32[128,128], index: 0, kind: input, shape index: {}]  }
   0x1   :  { %14 = vst [vmem:[%s187_s1] sm:$0x1] %v105_v0  ;;  %15 = vst [vmem:[%s188_s2] sm:$0x1] %v105_v0  ;;  %v16_v1 = vld [vmem:[%s189_s0] sm:$0xff]  ;;  %v17_v2 = vld [vmem:[%s189_s0 + $0x8] sm:$0xff] }
   0x2   :  { %v18_v3 = vld [vmem:[%s189_s0 + $0x10] sm:$0xff]  ;;  %v19_v4 = vld [vmem:[%s189_s0 + $0x18] sm:$0xff]  ;;  %v33_v5 = vadd.f32 %v17_v2, %v16_v1  ;;  %v57_v6 = vmul.f32 %v16_v1, %v16_v1  ;;  %v58_v7 = vmul.f32 %v17_v2, %v17_v2  ;;  %v20_v9 = vld [vmem:[%s189_s0 + $0x20] sm:$0xff] }
   0x3   :  { %v59_v8 = vmul.f32 %v18_v3, %v18_v3  ;;  %v60_v11 = vmul.f32 %v19_v4, %v19_v4  ;;  %v21_v13 = vld [vmem:[%s189_s0 + $0x28] sm:$0xff]  ;;  %v61_v15 = vmul.f32 %v20_v9, %v20_v9  ;;  %v22_v17 = vld [vmem:[%s189_s0 + $0x30] sm:$0xff]  ;;  %v23_v21 = vld [vmem:[%s189_s0 + $0x38] sm:$0xff] }
   0x4   :  { %v34_v10 = vadd.f32 %v33_v5, %v18_v3  ;;  %v73_v12 = vadd.f32 %v58_v7, %v57_v6  ;;  %v62_v19 = vmul.f32 %v21_v13, %v21_v13  ;;  %v63_v23 = vmul.f32 %v22_v17, %v22_v17  ;;  %v24_v25 = vld [vmem:[%s189_s0 + $0x40] sm:$0xff]  ;;  %v25_v29 = vld [vmem:[%s189_s0 + $0x48] sm:$0xff]  ;;  %v26_v33 = vld [vmem:[%s189_s0 + $0x50] sm:$0xff] }
   0x5   :  { %v64_v27 = vmul.f32 %v23_v21, %v23_v21  ;;  %v65_v31 = vmul.f32 %v24_v25, %v24_v25  ;;  %v66_v35 = vmul.f32 %v25_v29, %v25_v29  ;;  %v27_v37 = vld [vmem:[%s189_s0 + $0x58] sm:$0xff]  ;;  %v67_v39 = vmul.f32 %v26_v33, %v26_v33  ;;  %v28_v41 = vld [vmem:[%s189_s0 + $0x60] sm:$0xff]  ;;  %v29_v45 = vld [vmem:[%s189_s0 + $0x68] sm:$0xff] }
   0x6   :  { %v35_v14 = vadd.f32 %v34_v10, %v19_v4  ;;  %v74_v16 = vadd.f32 %v73_v12, %v59_v8  ;;  %v68_v43 = vmul.f32 %v27_v37, %v27_v37  ;;  %v69_v47 = vmul.f32 %v28_v41, %v28_v41  ;;  %v30_v49 = vld [vmem:[%s189_s0 + $0x70] sm:$0xff]  ;;  %v31_v53 = vld [vmem:[%s189_s0 + $0x78] sm:$0xff] }
   0x7   :  { %v70_v51 = vmul.f32 %v29_v45, %v29_v45  ;;  %v71_v55 = vmul.f32 %v30_v49, %v30_v49  ;;  %v72_v58 = vmul.f32 %v31_v53, %v31_v53 }
   0x8   :  { %v36_v18 = vadd.f32 %v35_v14, %v20_v9  ;;  %v75_v20 = vadd.f32 %v74_v16, %v60_v11  ;;  %v32_v7 = vld [vmem:[%s187_s1] sm:$0x1] }
   0x9   :  { %v56_v12 = vld [vmem:[%s188_s2] sm:$0x1] }
   0xa   :  { %v37_v22 = vadd.f32 %v36_v18, %v21_v13  ;;  %v76_v24 = vadd.f32 %v75_v20, %v61_v15 }
   0xc   :  { %v38_v26 = vadd.f32 %v37_v22, %v22_v17  ;;  %v77_v28 = vadd.f32 %v76_v24, %v62_v19 }
   0xe   :  { %v39_v30 = vadd.f32 %v38_v26, %v23_v21  ;;  %v78_v32 = vadd.f32 %v77_v28, %v63_v23 }
  0x10   :  { %v40_v34 = vadd.f32 %v39_v30, %v24_v25  ;;  %v79_v36 = vadd.f32 %v78_v32, %v64_v27 }
  0x12   :  { %v41_v38 = vadd.f32 %v40_v34, %v25_v29  ;;  %v80_v40 = vadd.f32 %v79_v36, %v65_v31 }
  0x14   :  { %v42_v42 = vadd.f32 %v41_v38, %v26_v33  ;;  %v81_v44 = vadd.f32 %v80_v40, %v66_v35 }
  0x16   :  { %v43_v46 = vadd.f32 %v42_v42, %v27_v37  ;;  %v82_v48 = vadd.f32 %v81_v44, %v67_v39 }
  0x18   :  { %v44_v50 = vadd.f32 %v43_v46, %v28_v41  ;;  %v83_v52 = vadd.f32 %v82_v48, %v68_v43 }
  0x1a   :  { %v45_v54 = vadd.f32 %v44_v50, %v29_v45  ;;  %v84_v56 = vadd.f32 %v83_v52, %v69_v47 }
  0x1c   :  { %v46_v57 = vadd.f32 %v45_v54, %v30_v49  ;;  %v85_v59 = vadd.f32 %v84_v56, %v70_v51 }
  0x1e   :  { %v47_v60 = vadd.f32 %v46_v57, %v31_v53  ;;  %v86_v61 = vadd.f32 %v85_v59, %v71_v55 }
  0x20   :  { %v48_v62 = vrot.slane %v47_v60, 4  ;;  %v87_v63 = vadd.f32 %v86_v61, %v72_v58 }
  0x22   :  { %v49_v0 = vadd.f32 %v48_v62, %v47_v60  ;;  %v88_v1 = vrot.slane %v87_v63, 4 }
  0x24   :  { %v50_v2 = vrot.slane %v49_v0, 2  ;;  %v89_v3 = vadd.f32 %v88_v1, %v87_v63 }
  0x26   :  { %v51_v4 = vadd.f32 %v50_v2, %v49_v0  ;;  %v90_v5 = vrot.slane %v89_v3, 2 }
  0x28   :  { %v52_v6 = vrot.slane %v51_v4, 1  ;;  %v91_v8 = vadd.f32 %v90_v5, %v89_v3 }
  0x2a   :  { %v53_v9 = vadd.f32 %v52_v6, %v51_v4  ;;  %v92_v10 = vrot.slane %v91_v8, 1 }
  0x2c   :  { %v54_v11 = vadd.f32 %v53_v9, %v32_v7  ;;  %v93_v13 = vadd.f32 %v92_v10, %v91_v8 }
  0x2e   :  { %55 = vst [vmem:[%s187_s1] sm:$0x1] %v54_v11  ;;  %v94_v14 = vadd.f32 %v93_v13, %v56_v12 }
  0x30   :  { %95 = vst [vmem:[%s188_s2] sm:$0x1] %v94_v14 }

// kernel: pix2pix_forward.57
= control target key start
LH: loop header
LB: loop body
LE: loop exit
PB: predicated region body
PF: predicated region fallthrough
CT: control target
= control target key end

     0   :  { %s423_s0 = inlined_call_operand.vmem [shape: f32[128,128], index: 0, kind: input, shape index: {}]   ;;  %s424_s1 = inlined_call_operand.vmem [shape: f32[1,128], index: 1, kind: input, shape index: {}]   ;;  %s425_s2 = inlined_call_operand.vmem [shape: f32[1,128], index: 2, kind: input, shape index: {}]   ;;  %s426_s3 = inlined_call_operand.vmem [shape: bf16[128,128], index: 3, kind: output, shape index: {}]  }
   0x1   :  { %v14_v0 = vld [vmem:[%s423_s0] sm:$0xff]  ;;  %v15_v1 = vld [vmem:[%s423_s0 + $0x8] sm:$0xff]  ;;  %v16_v6 = vld [vmem:[%s423_s0 + $0x10] sm:$0xff] }
   0x2   :  { %v318_v2 = vld [vmem:[%s424_s1] ss:$0 sm:$0xff]  ;;  %v17_v7 = vld [vmem:[%s423_s0 + $0x18] sm:$0xff]  ;;  %v19_v11 = vld [vmem:[%s423_s0 + $0x28] sm:$0xff] }
   0x3   :  { %v37_v3 = vmul.f32 %v318_v2, %v14_v0  ;;  %v38_v4 = vmul.f32 %v318_v2, %v15_v1  ;;  %v325_v5 = vld [vmem:[%s425_s2] ss:$0 sm:$0xff]  ;;  %v39_v8 = vmul.f32 %v318_v2, %v16_v6  ;;  %v40_v9 = vmul.f32 %v318_v2, %v17_v7  ;;  %v20_v12 = vld [vmem:[%s423_s0 + $0x30] sm:$0xff]  ;;  %v21_v17 = vld [vmem:[%s423_s0 + $0x38] sm:$0xff] }
   0x4   :  { %v18_v10 = vld [vmem:[%s423_s0 + $0x20] sm:$0xff]  ;;  %v42_v16 = vmul.f32 %v318_v2, %v19_v11  ;;  %v43_v20 = vmul.f32 %v318_v2, %v20_v12  ;;  %v44_v21 = vmul.f32 %v318_v2, %v21_v17  ;;  %v23_v35 = vld [vmem:[%s423_s0 + $0x48] sm:$0xff]  ;;  %v24_v36 = vld [vmem:[%s423_s0 + $0x50] sm:$0xff] }
   0x5   :  { %v60_v13 = vadd.f32 %v325_v5, %v37_v3  ;;  %v61_v14 = vadd.f32 %v325_v5, %v38_v4  ;;  %v41_v15 = vmul.f32 %v318_v2, %v18_v10  ;;  %v62_v18 = vadd.f32 %v325_v5, %v39_v8  ;;  %v22_v34 = vld [vmem:[%s423_s0 + $0x40] sm:$0xff]  ;;  %v25_v42 = vld [vmem:[%s423_s0 + $0x58] sm:$0xff]  ;;  %v27_v48 = vld [vmem:[%s423_s0 + $0x68] sm:$0xff] }
   0x6   :  { %v63_v19 = vadd.f32 %v325_v5, %v40_v9  ;;  %v65_v29 = vadd.f32 %v325_v5, %v42_v16  ;;  %v66_v33 = vadd.f32 %v325_v5, %v43_v20  ;;  %v67_v40 = vadd.f32 %v325_v5, %v44_v21  ;;  %v26_v47 = vld [vmem:[%s423_s0 + $0x60] sm:$0xff]  ;;  %v28_v60 = vld [vmem:[%s423_s0 + $0x70] sm:$0xff]  ;;  %v29_v7 = vld [vmem:[%s423_s0 + $0x78] sm:$0xff] }
   0x7   :  { %vm76_vm0 = vcmp.ge.f32.partialorder %v60_v13, 0.0  ;;  %vm77_vm1 = vcmp.ge.f32.partialorder %v61_v14, 0.0  ;;  %v92_v22 = vmul.f32 0.0, %v60_v13  ;;  %v93_v23 = vmul.f32 0.0, %v61_v14 }
   0x8   :  { %vm78_vm2 = vcmp.ge.f32.partialorder %v62_v18, 0.0  ;;  %vm79_vm3 = vcmp.ge.f32.partialorder %v63_v19, 0.0  ;;  %v94_v24 = vmul.f32 0.0, %v62_v18  ;;  %v95_v25 = vmul.f32 0.0, %v63_v19 }
   0x9   :  { %v108_v26 = vsel %vm76_vm0, %v60_v13, %v92_v22  ;;  %v109_v27 = vsel %vm77_vm1, %v61_v14, %v93_v23  ;;  %v64_v28 = vadd.f32 %v325_v5, %v41_v15  ;;  %vm81_vm5 = vcmp.ge.f32.partialorder %v65_v29, 0.0 }
   0xa   :  { %v245_v30 = vpack.c.bf16 %v109_v27, %v108_v26  ;;  %v110_v31 = vsel %vm78_vm2, %v62_v18, %v94_v24  ;;  %v111_v32 = vsel %vm79_vm3, %v63_v19, %v95_v25  ;;  %v97_v39 = vmul.f32 0.0, %v65_v29 }
   0xb   :  { %v250_v37 = vpack.c.bf16 %v111_v32, %v110_v31  ;;  %vm80_vm4 = vcmp.ge.f32.partialorder %v64_v28, 0.0  ;;  %v96_v38 = vmul.f32 0.0, %v64_v28  ;;  %vm82_vm6 = vcmp.ge.f32.partialorder %v66_v33, 0.0 }
   0xc   :  { %246 = vst [vmem:[%s426_s3] sm:$0xff] %v245_v30   ;;  %v98_v41 = vmul.f32 0.0, %v66_v33  ;;  %v45_v44 = vmul.f32 %v318_v2, %v22_v34  ;;  %v46_v45 = vmul.f32 %v318_v2, %v23_v35  ;;  %v47_v46 = vmul.f32 %v318_v2, %v24_v36 }
   0xd   :  { %282 = vst [vmem:[%s426_s3 + $0x8] sm:$0xff] %v250_v37   ;;  %v112_v43 = vsel %vm80_vm4, %v64_v28, %v96_v38  ;;  %v113_v49 = vsel %vm81_vm5, %v65_v29, %v97_v39  ;;  %vm83_vm7 = vcmp.ge.f32.partialorder %v67_v40, 0.0  ;;  %v99_v50 = vmul.f32 0.0, %v67_v40 }
   0xe   :  { %v114_v51 = vsel %vm82_vm6, %v66_v33, %v98_v41  ;;  %v255_v52 = vpack.c.bf16 %v113_v49, %v112_v43  ;;  %v68_v53 = vadd.f32 %v325_v5, %v45_v44  ;;  %v69_v54 = vadd.f32 %v325_v5, %v46_v45 }
   0xf   :  { %v48_v55 = vmul.f32 %v318_v2, %v25_v42  ;;  %v115_v56 = vsel %vm83_vm7, %v67_v40, %v99_v50  ;;  %v70_v57 = vadd.f32 %v325_v5, %v47_v46  ;;  %v49_v58 = vmul.f32 %v318_v2, %v26_v47 }
  0x10   :  { %v50_v59 = vmul.f32 %v318_v2, %v27_v48  ;;  %283 = vst [vmem:[%s426_s3 + $0x10] sm:$0xff] %v255_v52   ;;  %v260_v61 = vpack.c.bf16 %v115_v56, %v114_v51  ;;  %vm84_vm8 = vcmp.ge.f32.partialorder %v68_v53, 0.0  ;;  %vm85_vm9 = vcmp.ge.f32.partialorder %v69_v54, 0.0 }
  0x11   :  { %v100_v62 = vmul.f32 0.0, %v68_v53  ;;  %v101_v63 = vmul.f32 0.0, %v69_v54  ;;  %v71_v0 = vadd.f32 %v325_v5, %v48_v55  ;;  %vm86_vm10 = vcmp.ge.f32.partialorder %v70_v57, 0.0 }
  0x12   :  { %v102_v1 = vmul.f32 0.0, %v70_v57  ;;  %284 = vst [vmem:[%s426_s3 + $0x18] sm:$0xff] %v260_v61   ;;  %v72_v4 = vadd.f32 %v325_v5, %v49_v58  ;;  %v73_v6 = vadd.f32 %v325_v5, %v50_v59  ;;  %v51_v8 = vmul.f32 %v318_v2, %v28_v60 }
  0x13   :  { %v116_v3 = vsel %vm84_vm8, %v68_v53, %v100_v62  ;;  %v117_v9 = vsel %vm85_vm9, %v69_v54, %v101_v63  ;;  %vm87_vm11 = vcmp.ge.f32.partialorder %v71_v0, 0.0  ;;  %v103_v10 = vmul.f32 0.0, %v71_v0 }
  0x14   :  { %v118_v11 = vsel %vm86_vm10, %v70_v57, %v102_v1  ;;  %v265_v12 = vpack.c.bf16 %v117_v9, %v116_v3  ;;  %vm88_vm12 = vcmp.ge.f32.partialorder %v72_v4, 0.0  ;;  %vm89_vm13 = vcmp.ge.f32.partialorder %v73_v6, 0.0 }
  0x15   :  { %v104_v13 = vmul.f32 0.0, %v72_v4  ;;  %v119_v14 = vsel %vm87_vm11, %v71_v0, %v103_v10  ;;  %v105_v15 = vmul.f32 0.0, %v73_v6  ;;  %v52_v16 = vmul.f32 %v318_v2, %v29_v7 }
  0x16   :  { %v74_v17 = vadd.f32 %v325_v5, %v51_v8  ;;  %285 = vst [vmem:[%s426_s3 + $0x20] sm:$0xff] %v265_v12   ;;  %v270_v18 = vpack.c.bf16 %v119_v14, %v118_v11 }
  0x17   :  { %v120_v19 = vsel %vm88_vm12, %v72_v4, %v104_v13  ;;  %v121_v20 = vsel %vm89_vm13, %v73_v6, %v105_v15  ;;  %v75_v21 = vadd.f32 %v325_v5, %v52_v16 }
  0x18   :  { %vm90_vm14 = vcmp.ge.f32.partialorder %v74_v17, 0.0  ;;  %v106_v22 = vmul.f32 0.0, %v74_v17  ;;  %286 = vst [vmem:[%s426_s3 + $0x28] sm:$0xff] %v270_v18   ;;  %v275_v23 = vpack.c.bf16 %v121_v20, %v120_v19 }
  0x19   :  { %vm91_vm15 = vcmp.ge.f32.partialorder %v75_v21, 0.0  ;;  %v107_v2 = vmul.f32 0.0, %v75_v21 }
  0x1a   :  { %v122_v24 = vsel %vm90_vm14, %v74_v17, %v106_v22  ;;  %287 = vst [vmem:[%s426_s3 + $0x30] sm:$0xff] %v275_v23  }
  0x1b   :  { %v123_v25 = vsel %vm91_vm15, %v75_v21, %v107_v2 }
  0x1c   :  { %v280_v26 = vpack.c.bf16 %v123_v25, %v122_v24 }
  0x1e   :  { %288 = vst [vmem:[%s426_s3 + $0x38] sm:$0xff] %v280_v26  }

// kernel: pix2pix_forward.62
= control target key start
LH: loop header
LB: loop body
LE: loop exit
PB: predicated region body
PF: predicated region fallthrough
CT: control target
= control target key end

     0   :  { %v297_v0 = vmov 0.0   ;;  %s523_s0 = inlined_call_operand.vmem [shape: f32[512,128], index: 0, kind: input, shape index: {}]   ;;  %s524_s1 = inlined_call_operand.vmem [shape: f32[1,128], index: 1, kind: output, shape index: {0}]   ;;  %s525_s2 = inlined_call_operand.vmem [shape: f32[1,128], index: 2, kind: output, shape index: {1}]  }
   0x1   :  { %14 = vst [vmem:[%s524_s1] sm:$0x1] %v297_v0  ;;  %15 = vst [vmem:[%s525_s2] sm:$0x1] %v297_v0  ;;  %v16_v1 = vld [vmem:[%s523_s0] sm:$0xff]  ;;  %v17_v2 = vld [vmem:[%s523_s0 + $0x8] sm:$0xff] }
   0x2   :  { %v18_v3 = vld [vmem:[%s523_s0 + $0x10] sm:$0xff]  ;;  %v19_v4 = vld [vmem:[%s523_s0 + $0x18] sm:$0xff]  ;;  %v81_v5 = vadd.f32 %v17_v2, %v16_v1  ;;  %v153_v6 = vmul.f32 %v16_v1, %v16_v1  ;;  %v154_v7 = vmul.f32 %v17_v2, %v17_v2  ;;  %v20_v9 = vld [vmem:[%s523_s0 + $0x20] sm:$0xff] }
   0x3   :  { %v155_v8 = vmul.f32 %v18_v3, %v18_v3  ;;  %v156_v11 = vmul.f32 %v19_v4, %v19_v4  ;;  %v21_v13 = vld [vmem:[%s523_s0 + $0x28] sm:$0xff]  ;;  %v157_v15 = vmul.f32 %v20_v9, %v20_v9  ;;  %v22_v17 = vld [vmem:[%s523_s0 + $0x30] sm:$0xff]  ;;  %v23_v21 = vld [vmem:[%s523_s0 + $0x38] sm:$0xff] }
   0x4   :  { %v82_v10 = vadd.f32 %v81_v5, %v18_v3  ;;  %v217_v12 = vadd.f32 %v154_v7, %v153_v6  ;;  %v158_v19 = vmul.f32 %v21_v13, %v21_v13  ;;  %v159_v23 = vmul.f32 %v22_v17, %v22_v17  ;;  %v24_v25 = vld [vmem:[%s523_s0 + $0x40] sm:$0xff]  ;;  %v25_v29 = vld [vmem:[%s523_s0 + $0x48] sm:$0xff]  ;;  %v26_v33 = vld [vmem:[%s523_s0 + $0x50] sm:$0xff] }
   0x5   :  { %v160_v27 = vmul.f32 %v23_v21, %v23_v21  ;;  %v161_v31 = vmul.f32 %v24_v25, %v24_v25  ;;  %v162_v35 = vmul.f32 %v25_v29, %v25_v29  ;;  %v27_v37 = vld [vmem:[%s523_s0 + $0x58] sm:$0xff]  ;;  %v163_v39 = vmul.f32 %v26_v33, %v26_v33  ;;  %v28_v41 = vld [vmem:[%s523_s0 + $0x60] sm:$0xff]  ;;  %v29_v45 = vld [vmem:[%s523_s0 + $0x68] sm:$0xff] }
   0x6   :  { %v83_v14 = vadd.f32 %v82_v10, %v19_v4  ;;  %v218_v16 = vadd.f32 %v217_v12, %v155_v8  ;;  %v164_v43 = vmul.f32 %v27_v37, %v27_v37  ;;  %v165_v47 = vmul.f32 %v28_v41, %v28_v41  ;;  %v30_v49 = vld [vmem:[%s523_s0 + $0x70] sm:$0xff]  ;;  %v31_v53 = vld [vmem:[%s523_s0 + $0x78] sm:$0xff]  ;;  %v32_v57 = vld [vmem:[%s523_s0 + $0x80] sm:$0xff] }
   0x7   :  { %v166_v51 = vmul.f32 %v29_v45, %v29_v45  ;;  %v167_v55 = vmul.f32 %v30_v49, %v30_v49  ;;  %v168_v59 = vmul.f32 %v31_v53, %v31_v53  ;;  %v33_v61 = vld [vmem:[%s523_s0 + $0x88] sm:$0xff]  ;;  %v169_v63 = vmul.f32 %v32_v57, %v32_v57  ;;  %v34_v1 = vld [vmem:[%s523_s0 + $0x90] sm:$0xff]  ;;  %v35_v5 = vld [vmem:[%s523_s0 + $0x98] sm:$0xff] }
   0x8   :  { %v84_v18 = vadd.f32 %v83_v14, %v20_v9  ;;  %v219_v20 = vadd.f32 %v218_v16, %v156_v11  ;;  %v170_v3 = vmul.f32 %v33_v61, %v33_v61  ;;  %v171_v7 = vmul.f32 %v34_v1, %v34_v1  ;;  %v36_v9 = vld [vmem:[%s523_s0 + $0xa0] sm:$0xff] }
   0x9   :  { %v172_v11 = vmul.f32 %v35_v5, %v35_v5 }
   0xa   :  { %v85_v22 = vadd.f32 %v84_v18, %v21_v13  ;;  %v220_v24 = vadd.f32 %v219_v20, %v157_v15  ;;  %v37_v13 = vld [vmem:[%s523_s0 + $0xa8] sm:$0xff]  ;;  %v173_v15 = vmul.f32 %v36_v9, %v36_v9 }
   0xc   :  { %v86_v26 = vadd.f32 %v85_v22, %v22_v17  ;;  %v221_v28 = vadd.f32 %v220_v24, %v158_v19  ;;  %v38_v17 = vld [vmem:[%s523_s0 + $0xb0] sm:$0xff]  ;;  %v174_v19 = vmul.f32 %v37_v13, %v37_v13 }
   0xe   :  { %v87_v30 = vadd.f32 %v86_v26, %v23_v21  ;;  %v222_v32 = vadd.f32 %v221_v28, %v159_v23  ;;  %v39_v21 = vld [vmem:[%s523_s0 + $0xb8] sm:$0xff]  ;;  %v175_v23 = vmul.f32 %v38_v17, %v38_v17 }
  0x10   :  { %v88_v34 = vadd.f32 %v87_v30, %v24_v25  ;;  %v223_v36 = vadd.f32 %v222_v32, %v160_v27  ;;  %v40_v25 = vld [vmem:[%s523_s0 + $0xc0] sm:$0xff]  ;;  %v176_v27 = vmul.f32 %v39_v21, %v39_v21 }
  0x12   :  { %v89_v38 = vadd.f32 %v88_v34, %v25_v29  ;;  %v224_v40 = vadd.f32 %v223_v36, %v161_v31  ;;  %v41_v29 = vld [vmem:[%s523_s0 + $0xc8] sm:$0xff]  ;;  %v177_v31 = vmul.f32 %v40_v25, %v40_v25 }
  0x14   :  { %v90_v42 = vadd.f32 %v89_v38, %v26_v33  ;;  %v225_v44 = vadd.f32 %v224_v40, %v162_v35  ;;  %v42_v33 = vld [vmem:[%s523_s0 + $0xd0] sm:$0xff]  ;;  %v178_v35 = vmul.f32 %v41_v29, %v41_v29 }
  0x16   :  { %v91_v46 = vadd.f32 %v90_v42, %v27_v37  ;;  %v226_v48 = vadd.f32 %v225_v44, %v163_v39  ;;  %v43_v37 = vld [vmem:[%s523_s0 + $0xd8] sm:$0xff]  ;;  %v179_v39 = vmul.f32 %v42_v33, %v42_v33 }
  0x18   :  { %v92_v50 = vadd.f32 %v91_v46, %v28_v41  ;;  %v227_v52 = vadd.f32 %v226_v48, %v164_v43  ;;  %v44_v41 = vld [vmem:[%s523_s0 + $0xe0] sm:$0xff]  ;;  %v180_v43 = vmul.f32 %v43_v37, %v43_v37 }
  0x1a   :  { %v93_v54 = vadd.f32 %v92_v50, %v29_v45  ;;  %v228_v56 = vadd.f32 %v227_v52, %v165_v47  ;;  %v45_v45 = vld [vmem:[%s523_s0 + $0xe8] sm:$0xff]  ;;  %v181_v47 = vmul.f32 %v44_v41, %v44_v41 }
  0x1c   :  { %v94_v58 = vadd.f32 %v93_v54, %v30_v49  ;;  %v229_v60 = vadd.f32 %v228_v56, %v166_v51  ;;  %v46_v49 = vld [vmem:[%s523_s0 + $0xf0] sm:$0xff]  ;;  %v182_v51 = vmul.f32 %v45_v45, %v45_v45 }
  0x1e   :  { %v95_v62 = vadd.f32 %v94_v58, %v31_v53  ;;  %v230_v0 = vadd.f32 %v229_v60, %v167_v55  ;;  %v47_v53 = vld [vmem:[%s523_s0 + $0xf8] sm:$0xff]  ;;  %v183_v55 = vmul.f32 %v46_v49, %v46_v49 }
  0x20   :  { %v96_v2 = vadd.f32 %v95_v62, %v32_v57  ;;  %v231_v4 = vadd.f32 %v230_v0, %v168_v59  ;;  %v48_v57 = vld [vmem:[%s523_s0 + $0x100] sm:$0xff]  ;;  %v184_v59 = vmul.f32 %v47_v53, %v47_v53 }
  0x22   :  { %v97_v6 = vadd.f32 %v96_v2, %v33_v61  ;;  %v232_v8 = vadd.f32 %v231_v4, %v169_v63  ;;  %v49_v61 = vld [vmem:[%s523_s0 + $0x108] sm:$0xff]  ;;  %v185_v63 = vmul.f32 %v48_v57, %v48_v57 }
  0x24   :  { %v98_v10 = vadd.f32 %v97_v6, %v34_v1  ;;  %v233_v12 = vadd.f32 %v232_v8, %v170_v3  ;;  %v50_v1 = vld [vmem:[%s523_s0 + $0x110] sm:$0xff]  ;;  %v186_v3 = vmul.f32 %v49_v61, %v49_v61 }
  0x26   :  { %v99_v14 = vadd.f32 %v98_v10, %v35_v5  ;;  %v234_v16 = vadd.f32 %v233_v12, %v171_v7  ;;  %v51_v5 = vld [vmem:[%s523_s0 + $0x118] sm:$0xff]  ;;  %v187_v7 = vmul.f32 %v50_v1, %v50_v1 }
  0x28   :  { %v100_v18 = vadd.f32 %v99_v14, %v36_v9  ;;  %v235_v20 = vadd.f32 %v234_v16, %v172_v11  ;;  %v52_v9 = vld [vmem:[%s523_s0 + $0x120] sm:$0xff]  ;;  %v188_v11 = vmul.f32 %v51_v5, %v51_v5 }
  0x2a   :  { %v101_v22 = vadd.f32 %v100_v18, %v37_v13  ;;  %v236_v24 = vadd.f32 %v235_v20, %v173_v15  ;;  %v53_v13 = vld [vmem:[%s523_s0 + $0x128] sm:$0xff]  ;;  %v189_v15 = vmul.f32 %v52_v9, %v52_v9 }
  0x2c   :  { %v102_v26 = vadd.f32 %v101_v22, %v38_v17  ;;  %v237_v28 = vadd.f32 %v236_v24, %v174_v19  ;;  %v54_v17 = vld [vmem:[%s523_s0 + $0x130] sm:$0xff]  ;;  %v190_v19 = vmul.f32 %v53_v13, %v53_v13 }
  0x2e   :  { %v103_v30 = vadd.f32 %v102_v26, %v39_v21  ;;  %v238_v32 = vadd.f32 %v237_v28, %v175_v23  ;;  %v55_v21 = vld [vmem:[%s523_s0 + $0x138] sm:$0xff]  ;;  %v191_v23 = vmul.f32 %v54_v17, %v54_v17 }
  0x30   :  { %v104_v34 = vadd.f32 %v103_v30, %v40_v25  ;;  %v239_v36 = vadd.f32 %v238_v32, %v176_v27  ;;  %v56_v25 = vld [vmem:[%s523_s0 + $0x140] sm:$0xff]  ;;  %v192_v27 = vmul.f32 %v55_v21, %v55_v21 }
  0x32   :  { %v105_v38 = vadd.f32 %v104_v34, %v41_v29  ;;  %v240_v40 = vadd.f32 %v239_v36, %v177_v31  ;;  %v57_v29 = vld [vmem:[%s523_s0 + $0x148] sm:$0xff]  ;;  %v193_v31 = vmul.f32 %v56_v25, %v56_v25 }
  0x34   :  { %v106_v42 = vadd.f32 %v105_v38, %v42_v33  ;;  %v241_v44 = vadd.f32 %v240_v40, %v178_v35  ;;  %v58_v33 = vld [vmem:[%s523_s0 + $0x150] sm:$0xff]  ;;  %v194_v35 = vmul.f32 %v57_v29, %v57_v29 }
  0x36   :  { %v107_v46 = vadd.f32 %v106_v42, %v43_v37  ;;  %v242_v48 = vadd.f32 %v241_v44, %v179_v39  ;;  %v59_v37 = vld [vmem:[%s523_s0 + $0x158] sm:$0xff]  ;;  %v195_v39 = vmul.f32 %v58_v33, %v58_v33 }
  0x38   :  { %v108_v50 = vadd.f32 %v107_v46, %v44_v41  ;;  %v243_v52 = vadd.f32 %v242_v48, %v180_v43  ;;  %v60_v41 = vld [vmem:[%s523_s0 + $0x160] sm:$0xff]  ;;  %v196_v43 = vmul.f32 %v59_v37, %v59_v37 }
  0x3a   :  { %v109_v54 = vadd.f32 %v108_v50, %v45_v45  ;;  %v244_v56 = vadd.f32 %v243_v52, %v181_v47  ;;  %v61_v45 = vld [vmem:[%s523_s0 + $0x168] sm:$0xff]  ;;  %v197_v47 = vmul.f32 %v60_v41, %v60_v41 }
  0x3c   :  { %v110_v58 = vadd.f32 %v109_v54, %v46_v49  ;;  %v245_v60 = vadd.f32 %v244_v56, %v182_v51  ;;  %v62_v49 = vld [vmem:[%s523_s0 + $0x170] sm:$0xff]  ;;  %v198_v51 = vmul.f32 %v61_v45, %v61_v45 }
  0x3e   :  { %v111_v62 = vadd.f32 %v110_v58, %v47_v53  ;;  %v246_v0 = vadd.f32 %v245_v60, %v183_v55  ;;  %v63_v53 = vld [vmem:[%s523_s0 + $0x178] sm:$0xff]  ;;  %v199_v55 = vmul.f32 %v62_v49, %v62_v49 }
  0x40   :  { %v112_v2 = vadd.f32 %v111_v62, %v48_v57  ;;  %v247_v4 = vadd.f32 %v246_v0, %v184_v59  ;;  %v64_v57 = vld [vmem:[%s523_s0 + $0x180] sm:$0xff]  ;;  %v200_v59 = vmul.f32 %v63_v53, %v63_v53 }
  0x42   :  { %v113_v6 = vadd.f32 %v112_v2, %v49_v61  ;;  %v248_v8 = vadd.f32 %v247_v4, %v185_v63  ;;  %v65_v61 = vld [vmem:[%s523_s0 + $0x188] sm:$0xff]  ;;  %v201_v63 = vmul.f32 %v64_v57, %v64_v57 }
  0x44   :  { %v114_v10 = vadd.f32 %v113_v6, %v50_v1  ;;  %v249_v12 = vadd.f32 %v248_v8, %v186_v3  ;;  %v66_v1 = vld [vmem:[%s523_s0 + $0x190] sm:$0xff]  ;;  %v202_v3 = vmul.f32 %v65_v61, %v65_v61 }
  0x46   :  { %v115_v14 = vadd.f32 %v114_v10, %v51_v5  ;;  %v250_v16 = vadd.f32 %v249_v12, %v187_v7  ;;  %v67_v5 = vld [vmem:[%s523_s0 + $0x198] sm:$0xff]  ;;  %v203_v7 = vmul.f32 %v66_v1, %v66_v1 }
  0x48   :  { %v116_v18 = vadd.f32 %v115_v14, %v52_v9  ;;  %v251_v20 = vadd.f32 %v250_v16, %v188_v11  ;;  %v68_v9 = vld [vmem:[%s523_s0 + $0x1a0] sm:$0xff]  ;;  %v204_v11 = vmul.f32 %v67_v5, %v67_v5 }
  0x4a   :  { %v117_v22 = vadd.f32 %v116_v18, %v53_v13  ;;  %v252_v24 = vadd.f32 %v251_v20, %v189_v15  ;;  %v69_v13 = vld [vmem:[%s523_s0 + $0x1a8] sm:$0xff]  ;;  %v205_v15 = vmul.f32 %v68_v9, %v68_v9 }
  0x4c   :  { %v118_v26 = vadd.f32 %v117_v22, %v54_v17  ;;  %v253_v28 = vadd.f32 %v252_v24, %v190_v19  ;;  %v70_v17 = vld [vmem:[%s523_s0 + $0x1b0] sm:$0xff]  ;;  %v206_v19 = vmul.f32 %v69_v13, %v69_v13 }
  0x4e   :  { %v119_v30 = vadd.f32 %v118_v26, %v55_v21  ;;  %v254_v32 = vadd.f32 %v253_v28, %v191_v23  ;;  %v71_v21 = vld [vmem:[%s523_s0 + $0x1b8] sm:$0xff]  ;;  %v207_v23 = vmul.f32 %v70_v17, %v70_v17 }
  0x50   :  { %v120_v34 = vadd.f32 %v119_v30, %v56_v25  ;;  %v255_v36 = vadd.f32 %v254_v32, %v192_v27  ;;  %v72_v25 = vld [vmem:[%s523_s0 + $0x1c0] sm:$0xff]  ;;  %v208_v27 = vmul.f32 %v71_v21, %v71_v21 }
  0x52   :  { %v121_v38 = vadd.f32 %v120_v34, %v57_v29  ;;  %v256_v40 = vadd.f32 %v255_v36, %v193_v31  ;;  %v73_v29 = vld [vmem:[%s523_s0 + $0x1c8] sm:$0xff]  ;;  %v209_v31 = vmul.f32 %v72_v25, %v72_v25 }
  0x54   :  { %v122_v42 = vadd.f32 %v121_v38, %v58_v33  ;;  %v257_v44 = vadd.f32 %v256_v40, %v194_v35  ;;  %v74_v33 = vld [vmem:[%s523_s0 + $0x1d0] sm:$0xff]  ;;  %v210_v35 = vmul.f32 %v73_v29, %v73_v29 }
  0x56   :  { %v123_v46 = vadd.f32 %v122_v42, %v59_v37  ;;  %v258_v48 = vadd.f32 %v257_v44, %v195_v39  ;;  %v75_v37 = vld [vmem:[%s523_s0 + $0x1d8] sm:$0xff]  ;;  %v211_v39 = vmul.f32 %v74_v33, %v74_v33 }
  0x58   :  { %v124_v50 = vadd.f32 %v123_v46, %v60_v41  ;;  %v259_v52 = vadd.f32 %v258_v48, %v196_v43  ;;  %v76_v41 = vld [vmem:[%s523_s0 + $0x1e0] sm:$0xff]  ;;  %v212_v43 = vmul.f32 %v75_v37, %v75_v37 }
  0x5a   :  { %v125_v54 = vadd.f32 %v124_v50, %v61_v45  ;;  %v260_v56 = vadd.f32 %v259_v52, %v197_v47  ;;  %v77_v45 = vld [vmem:[%s523_s0 + $0x1e8] sm:$0xff]  ;;  %v213_v47 = vmul.f32 %v76_v41, %v76_v41 }
  0x5c   :  { %v126_v58 = vadd.f32 %v125_v54, %v62_v49  ;;  %v261_v60 = vadd.f32 %v260_v56, %v198_v51  ;;  %v78_v49 = vld [vmem:[%s523_s0 + $0x1f0] sm:$0xff]  ;;  %v214_v51 = vmul.f32 %v77_v45, %v77_v45 }
  0x5e   :  { %v127_v62 = vadd.f32 %v126_v58, %v63_v53  ;;  %v262_v0 = vadd.f32 %v261_v60, %v199_v55  ;;  %v79_v53 = vld [vmem:[%s523_s0 + $0x1f8] sm:$0xff]  ;;  %v215_v55 = vmul.f32 %v78_v49, %v78_v49 }
  0x5f   :  { %v216_v58 = vmul.f32 %v79_v53, %v79_v53 }
  0x60   :  { %v128_v2 = vadd.f32 %v127_v62, %v64_v57  ;;  %v263_v4 = vadd.f32 %v262_v0, %v200_v59 }
  0x62   :  { %v129_v6 = vadd.f32 %v128_v2, %v65_v61  ;;  %v264_v8 = vadd.f32 %v263_v4, %v201_v63 }
  0x64   :  { %v130_v10 = vadd.f32 %v129_v6, %v66_v1  ;;  %v265_v12 = vadd.f32 %v264_v8, %v202_v3 }
  0x66   :  { %v131_v14 = vadd.f32 %v130_v10, %v67_v5  ;;  %v266_v16 = vadd.f32 %v265_v12, %v203_v7  ;;  %v80_v7 = vld [vmem:[%s524_s1] sm:$0x1] }
  0x67   :  { %v152_v12 = vld [vmem:[%s525_s2] sm:$0x1] }
  0x68   :  { %v132_v18 = vadd.f32 %v131_v14, %v68_v9  ;;  %v267_v20 = vadd.f32 %v266_v16, %v204_v11 }
  0x6a   :  { %v133_v22 = vadd.f32 %v132_v18, %v69_v13  ;;  %v268_v24 = vadd.f32 %v267_v20, %v205_v15 }
  0x6c   :  { %v134_v26 = vadd.f32 %v133_v22, %v70_v17  ;;  %v269_v28 = vadd.f32 %v268_v24, %v206_v19 }
  0x6e   :  { %v135_v30 = vadd.f32 %v134_v26, %v71_v21  ;;  %v270_v32 = vadd.f32 %v269_v28, %v207_v23 }
  0x70   :  { %v136_v34 = vadd.f32 %v135_v30, %v72_v25  ;;  %v271_v36 = vadd.f32 %v270_v32, %v208_v27 }
  0x72   :  { %v137_v38 = vadd.f32 %v136_v34, %v73_v29  ;;  %v272_v40 = vadd.f32 %v271_v36, %v209_v31 }
  0x74   :  { %v138_v42 = vadd.f32 %v137_v38, %v74_v33  ;;  %v273_v44 = vadd.f32 %v272_v40, %v210_v35 }
  0x76   :  { %v139_v46 = vadd.f32 %v138_v42, %v75_v37  ;;  %v274_v48 = vadd.f32 %v273_v44, %v211_v39 }
  0x78   :  { %v140_v50 = vadd.f32 %v139_v46, %v76_v41  ;;  %v275_v52 = vadd.f32 %v274_v48, %v212_v43 }
  0x7a   :  { %v141_v54 = vadd.f32 %v140_v50, %v77_v45  ;;  %v276_v56 = vadd.f32 %v275_v52, %v213_v47 }
  0x7c   :  { %v142_v57 = vadd.f32 %v141_v54, %v78_v49  ;;  %v277_v59 = vadd.f32 %v276_v56, %v214_v51 }
  0x7e   :  { %v143_v60 = vadd.f32 %v142_v57, %v79_v53  ;;  %v278_v61 = vadd.f32 %v277_v59, %v215_v55 }
  0x80   :  { %v144_v62 = vrot.slane %v143_v60, 4  ;;  %v279_v63 = vadd.f32 %v278_v61, %v216_v58 }
  0x82   :  { %v145_v0 = vadd.f32 %v144_v62, %v143_v60  ;;  %v280_v1 = vrot.slane %v279_v63, 4 }
  0x84   :  { %v146_v2 = vrot.slane %v145_v0, 2  ;;  %v281_v3 = vadd.f32 %v280_v1, %v279_v63 }
  0x86   :  { %v147_v4 = vadd.f32 %v146_v2, %v145_v0  ;;  %v282_v5 = vrot.slane %v281_v3, 2 }
  0x88   :  { %v148_v6 = vrot.slane %v147_v4, 1  ;;  %v283_v8 = vadd.f32 %v282_v5, %v281_v3 }
  0x8a   :  { %v149_v9 = vadd.f32 %v148_v6, %v147_v4  ;;  %v284_v10 = vrot.slane %v283_v8, 1 }
  0x8c   :  { %v150_v11 = vadd.f32 %v149_v9, %v80_v7  ;;  %v285_v13 = vadd.f32 %v284_v10, %v283_v8 }
  0x8e   :  { %151 = vst [vmem:[%s524_s1] sm:$0x1] %v150_v11  ;;  %v286_v14 = vadd.f32 %v285_v13, %v152_v12 }
  0x90   :  { %287 = vst [vmem:[%s525_s2] sm:$0x1] %v286_v14 }

// kernel: pix2pix_forward.58
= control target key start
LH: loop header
LB: loop body
LE: loop exit
PB: predicated region body
PF: predicated region fallthrough
CT: control target
= control target key end

     0   :  { %s1526_s9 = smov 0   ;;  %s1528_s10 = smov 0   ;;  %s1777_s0 = inlined_call_operand.vmem [shape: bf16[128,1024], index: 0, kind: input, shape index: {}]   ;;  %s1778_s1 = inlined_call_operand.vmem [shape: bf16[1024,128], index: 1, kind: input, shape index: {}]   ;;  %s1779_s2 = inlined_call_operand.vmem [shape: f32[128,128], index: 2, kind: output, shape index: {}]  }
   0x1   :  { %s1530_s11 = smov 0   ;;  %s1532_s12 = smov 0  }
   0x2   :  { %s1534_s13 = smov 0  }
   0x3 LB: > { %s24_s14 = sadd.s32 1, %s1504_s12  ;;  %p47_p1 = scmp.ne.s32.totalorder %s1496_s10, %s1492_s9  ;;  %s1508_s13 = sphi %s1534_s13, %s12_s13   ;;  %s1504_s12 = sphi %s1532_s12, %s1783_s12   ;;  %s1500_s11 = sphi %s1530_s11, %s1782_s11   ;;  %s1496_s10 = sphi %s1528_s10, %s1781_s10   ;;  %s1492_s9 = sphi %s1526_s9, %s1780_s9  }
   0x4   : > { %p25_p0 = scmp.ge.s32.totalorder %s24_s14, 2  ;;  %p48_p2 = scmp.eq.s32.totalorder %s1508_s13, 0 }
   0x5   : > { %s40_s16 = sadd.s32 1, %s1496_s10  ;;  %p1142_p5 = scmp.ge.s32.totalorder %s1508_s13, 2 }
   0x6   : > { %s1785_s14 = smov (%p25_p0, %s24_s14), 0  ;;  %p49_p3 = por %p48_p2, %p47_p1 }
   0x7   : > { %s36_s15 = ssub.s32 %s1504_s12, %s1785_s14  ;;  %129 = sbr.rel (%p1142_p5) target bundleno = 32 (0x20), region = 16 }
   0x8   : > { %p38_p4 = scmp.eq.s32.totalorder %s36_s15, 0 }
   0xa   : > { %s1561_s17 = scalar_select %p38_p4, %s1496_s10, %s40_s16  }
   0xc   : > { %132 = sbr.rel (!%p49_p3) target bundleno = 32 (0x20), region = 20  ;;  %s134_s18 = sand.u32 (%p49_p3), 1, %s1496_s10  }
   0xd   : > { %s1220_s19 = sshll.u32 (%p49_p3), %s1504_s12, 4  ;;  %s1143_s20 = sshll.u32 (%p49_p3), %s134_s18, 8 }
   0xe   : > { %s1569_s23 = scalar_lea.vmem (%p49_p3), %s1777_s0, %s1220_s19  ;;  %s1574_s24 = scalar_lea.vmem (%p49_p3), [#allocation3], %s1143_s20 }
   0xf   : > { %v155_v0 = vld [vmem:[%s1569_s23] sm:$0xff] (%p49_p3)  ;;  %v157_v1 = vld [vmem:[%s1569_s23 + $0x8] sm:$0xff] (%p49_p3) }
  0x10   : > { %v159_v2 = vld [vmem:[%s1569_s23 + $0x20] sm:$0xff] (%p49_p3)  ;;  %156 = vst [vmem:[%s1574_s24] sm:$0xff] (%p49_p3), %v155_v0  ;;  %158 = vst [vmem:[%s1574_s24 + $0x8] sm:$0xff] (%p49_p3), %v157_v1  ;;  %v161_v3 = vld [vmem:[%s1569_s23 + $0x28] sm:$0xff] (%p49_p3) }
  0x11   : > { %160 = vst [vmem:[%s1574_s24 + $0x10] sm:$0xff] %v159_v2  ;;  %v163_v4 = vld [vmem:[%s1569_s23 + $0x40] sm:$0xff]  ;;  %v165_v5 = vld [vmem:[%s1569_s23 + $0x48] sm:$0xff]  ;;  %162 = vst [vmem:[%s1574_s24 + $0x18] sm:$0xff] %v161_v3 }
  0x12   : > { %164 = vst [vmem:[%s1574_s24 + $0x20] sm:$0xff] %v163_v4  ;;  %166 = vst [vmem:[%s1574_s24 + $0x28] sm:$0xff] %v165_v5  ;;  %v167_v6 = vld [vmem:[%s1569_s23 + $0x60] sm:$0xff]  ;;  %v169_v7 = vld [vmem:[%s1569_s23 + $0x68] sm:$0xff] }
  0x13   : > { %v171_v8 = vld [vmem:[%s1569_s23 + $0x80] sm:$0xff]  ;;  %168 = vst [vmem:[%s1574_s24 + $0x30] sm:$0xff] %v167_v6  ;;  %170 = vst [vmem:[%s1574_s24 + $0x38] sm:$0xff] %v169_v7  ;;  %v173_v9 = vld [vmem:[%s1569_s23 + $0x88] sm:$0xff] }
  0x14   : > { %172 = vst [vmem:[%s1574_s24 + $0x40] sm:$0xff] %v171_v8  ;;  %v175_v10 = vld [vmem:[%s1569_s23 + $0xa0] sm:$0xff]  ;;  %v177_v11 = vld [vmem:[%s1569_s23 + $0xa8] sm:$0xff]  ;;  %174 = vst [vmem:[%s1574_s24 + $0x48] sm:$0xff] %v173_v9 }
  0x15   : > { %176 = vst [vmem:[%s1574_s24 + $0x50] sm:$0xff] %v175_v10  ;;  %178 = vst [vmem:[%s1574_s24 + $0x58] sm:$0xff] %v177_v11  ;;  %v179_v12 = vld [vmem:[%s1569_s23 + $0xc0] sm:$0xff]  ;;  %v181_v13 = vld [vmem:[%s1569_s23 + $0xc8] sm:$0xff] }
  0x16   : > { %v183_v14 = vld [vmem:[%s1569_s23 + $0xe0] sm:$0xff]  ;;  %180 = vst [vmem:[%s1574_s24 + $0x60] sm:$0xff] %v179_v12  ;;  %182 = vst [vmem:[%s1574_s24 + $0x68] sm:$0xff] %v181_v13  ;;  %v185_v15 = vld [vmem:[%s1569_s23 + $0xe8] sm:$0xff] }
  0x17   : > { %184 = vst [vmem:[%s1574_s24 + $0x70] sm:$0xff] %v183_v14  ;;  %v187_v16 = vld [vmem:[%s1569_s23 + $0x100] sm:$0xff]  ;;  %v189_v17 = vld [vmem:[%s1569_s23 + $0x108] sm:$0xff]  ;;  %186 = vst [vmem:[%s1574_s24 + $0x78] sm:$0xff] %v185_v15 }
  0x18   : > { %188 = vst [vmem:[%s1574_s24 + $0x80] sm:$0xff] %v187_v16  ;;  %190 = vst [vmem:[%s1574_s24 + $0x88] sm:$0xff] %v189_v17  ;;  %v191_v18 = vld [vmem:[%s1569_s23 + $0x120] sm:$0xff]  ;;  %v193_v19 = vld [vmem:[%s1569_s23 + $0x128] sm:$0xff] }
  0x19   : > { %v195_v20 = vld [vmem:[%s1569_s23 + $0x140] sm:$0xff]  ;;  %192 = vst [vmem:[%s1574_s24 + $0x90] sm:$0xff] %v191_v18  ;;  %194 = vst [vmem:[%s1574_s24 + $0x98] sm:$0xff] %v193_v19  ;;  %v197_v21 = vld [vmem:[%s1569_s23 + $0x148] sm:$0xff] }
  0x1a   : > { %196 = vst [vmem:[%s1574_s24 + $0xa0] sm:$0xff] %v195_v20  ;;  %v199_v22 = vld [vmem:[%s1569_s23 + $0x160] sm:$0xff]  ;;  %v201_v23 = vld [vmem:[%s1569_s23 + $0x168] sm:$0xff]  ;;  %198 = vst [vmem:[%s1574_s24 + $0xa8] sm:$0xff] %v197_v21 }
  0x1b   : > { %200 = vst [vmem:[%s1574_s24 + $0xb0] sm:$0xff] %v199_v22  ;;  %202 = vst [vmem:[%s1574_s24 + $0xb8] sm:$0xff] %v201_v23  ;;  %v203_v24 = vld [vmem:[%s1569_s23 + $0x180] sm:$0xff]  ;;  %v205_v25 = vld [vmem:[%s1569_s23 + $0x188] sm:$0xff] }
  0x1c   : > { %v207_v26 = vld [vmem:[%s1569_s23 + $0x1a0] sm:$0xff]  ;;  %204 = vst [vmem:[%s1574_s24 + $0xc0] sm:$0xff] %v203_v24  ;;  %206 = vst [vmem:[%s1574_s24 + $0xc8] sm:$0xff] %v205_v25  ;;  %v209_v27 = vld [vmem:[%s1569_s23 + $0x1a8] sm:$0xff] }
  0x1d   : > { %208 = vst [vmem:[%s1574_s24 + $0xd0] sm:$0xff] %v207_v26  ;;  %v211_v28 = vld [vmem:[%s1569_s23 + $0x1c0] sm:$0xff]  ;;  %v213_v29 = vld [vmem:[%s1569_s23 + $0x1c8] sm:$0xff]  ;;  %210 = vst [vmem:[%s1574_s24 + $0xd8] sm:$0xff] %v209_v27 }
  0x1e   : > { %212 = vst [vmem:[%s1574_s24 + $0xe0] sm:$0xff] %v211_v28  ;;  %214 = vst [vmem:[%s1574_s24 + $0xe8] sm:$0xff] %v213_v29  ;;  %v215_v30 = vld [vmem:[%s1569_s23 + $0x1e0] sm:$0xff]  ;;  %v217_v31 = vld [vmem:[%s1569_s23 + $0x1e8] sm:$0xff] }
  0x1f   : > { %216 = vst [vmem:[%s1574_s24 + $0xf0] sm:$0xff] %v215_v30  ;;  %218 = vst [vmem:[%s1574_s24 + $0xf8] sm:$0xff] %v217_v31 }
  0x20 PF: > { %p1146_p6 = scmp.ge.s32.totalorder %s1508_s13, 1  ;;  %p235_p7 = scmp.lt.s32.totalorder %s1508_s13, 3 }
  0x22   : > { %p236_p8 = pnand %p1146_p6, %p235_p7 }
  0x23   : > { %s242_s25 = sand.u32 (!%p236_p8), 1, %s1492_s9   ;;  %s1148_s26 = sshll.u32 (!%p236_p8), %s1500_s11, 6 }
  0x24   : > { %239 = sbr.rel (%p236_p8) target bundleno = 361 (0x169), region = 47  ;;  %s1147_s27 = sshll.u32 (!%p236_p8), %s242_s25, 8 }
  0x25   : > { %p277_p9 = scmp.lt.s32.totalorder (!%p236_p8), %s1148_s26, 127  ;;  %s1646_s4 = scalar_lea.vmem (!%p236_p8), [#allocation3], %s1147_s27 }
  0x26   : > { %p1150_p10 = scmp.ne.s32.totalorder (!%p236_p8), %s1500_s11, 0 }
  0x29   : > { %s1787_s26 = smov (!%p277_p9, %s1148_s26), 127  ;;  %298 = sbr.rel (%p1150_p10) target bundleno = 55 (0x37), region = 55 }
  0x2a   : > { %s1149_s28 = sshll.u32 %s1787_s26, 2 }
  0x2b   : > { %s1644_s3 = scalar_lea.vmem %s1778_s1, %s1149_s28 }
  0x2e   : > { %v1510_v32 = vmov 0.0  }
  0x2f   : > { %299 = vst [vmem:[#allocation2 + $0x30] sm:$0xff] %v1510_v32  ;;  %300 = vst [vmem:[#allocation2] sm:$0xff] %v1510_v32 }
  0x30   : > { %301 = vst [vmem:[#allocation2 + $0x58] sm:$0xff] %v1510_v32  ;;  %302 = vst [vmem:[#allocation2 + $0x18] sm:$0xff] %v1510_v32 }
  0x31   : > { %303 = vst [vmem:[#allocation2 + $0x50] sm:$0xff] %v1510_v32  ;;  %304 = vst [vmem:[#allocation2 + $0x68] sm:$0xff] %v1510_v32 }
  0x32   : > { %305 = vst [vmem:[#allocation2 + $0x8] sm:$0xff] %v1510_v32  ;;  %306 = vst [vmem:[#allocation2 + $0x48] sm:$0xff] %v1510_v32 }
  0x33   : > { %307 = vst [vmem:[#allocation2 + $0x40] sm:$0xff] %v1510_v32  ;;  %308 = vst [vmem:[#allocation2 + $0x20] sm:$0xff] %v1510_v32 }
  0x34   : > { %309 = vst [vmem:[#allocation2 + $0x10] sm:$0xff] %v1510_v32  ;;  %310 = vst [vmem:[#allocation2 + $0x38] sm:$0xff] %v1510_v32 }
  0x35   : > { %311 = vst [vmem:[#allocation2 + $0x60] sm:$0xff] %v1510_v32  ;;  %312 = vst [vmem:[#allocation2 + $0x70] sm:$0xff] %v1510_v32 }
  0x36   : > { %313 = vst [vmem:[#allocation2 + $0x78] sm:$0xff] %v1510_v32  ;;  %314 = vst [vmem:[#allocation2 + $0x28] sm:$0xff] %v1510_v32 }
  0x37 PF: > { %v1390_v33 = vld [vmem:[%s1644_s3 + $0x78] sm:$0xff]   ;;  %v1394_v37 = vld [vmem:[%s1644_s3 + $0x70] sm:$0xff]   ;;  %v1398_v41 = vld [vmem:[%s1644_s3 + $0x68] sm:$0xff]   ;;  %p1215_p11 = scmp.ne.s32.totalorder %s1500_s11, 1 }
  0x38   : > { %v1391_v34 = vld [vmem:[%s1644_s3 + $0xf8] sm:$0xff]   ;;  %1221 = vmatprep.subr.bf16.mxu0 %v1390_v33  ;;  %v1395_v38 = vld [vmem:[%s1644_s3 + $0xf0] sm:$0xff]   ;;  %v1399_v42 = vld [vmem:[%s1644_s3 + $0xe8] sm:$0xff]  }
  0x39   : > { %v1392_v35 = vld [vmem:[%s1644_s3 + $0x38] sm:$0xff]   ;;  %1285 = vmatprep.subr.bf16.mxu1 %v1391_v34  ;;  %v1396_v39 = vld [vmem:[%s1644_s3 + $0x30] sm:$0xff]   ;;  %v1400_v43 = vld [vmem:[%s1644_s3 + $0x28] sm:$0xff]  }
  0x3a   : > { %v1393_v36 = vld [vmem:[%s1644_s3 + $0xb8] sm:$0xff]   ;;  %1222 = vmatpush3.bf16.msra.mxu0 %v1392_v35  ;;  %v1397_v40 = vld [vmem:[%s1644_s3 + $0xb0] sm:$0xff]   ;;  %v1401_v44 = vld [vmem:[%s1644_s3 + $0xa8] sm:$0xff]  }
  0x3b   : > { %1286 = vmatpush3.bf16.msra.mxu1 %v1393_v36  ;;  %1223 = vmatprep.subr.bf16.mxu0 %v1394_v37  ;;  %v1402_v45 = vld [vmem:[%s1644_s3 + $0x60] sm:$0xff]   ;;  %v1406_v49 = vld [vmem:[%s1644_s3 + $0x58] sm:$0xff]   ;;  %v1410_v53 = vld [vmem:[%s1644_s3 + $0x50] sm:$0xff]  }
  0x3c   : > { %1287 = vmatprep.subr.bf16.mxu1 %v1395_v38  ;;  %v1403_v46 = vld [vmem:[%s1644_s3 + $0xe0] sm:$0xff]   ;;  %v1407_v50 = vld [vmem:[%s1644_s3 + $0xd8] sm:$0xff]   ;;  %v1411_v54 = vld [vmem:[%s1644_s3 + $0xd0] sm:$0xff]  }
  0x3d   : > { %v1404_v47 = vld [vmem:[%s1644_s3 + $0x20] sm:$0xff]   ;;  %v1408_v51 = vld [vmem:[%s1644_s3 + $0x18] sm:$0xff]   ;;  %v1412_v55 = vld [vmem:[%s1644_s3 + $0x10] sm:$0xff]  }
  0x3e   : > { %1224 = vmatpush3.bf16.msra.mxu0 %v1396_v39  ;;  %v1405_v48 = vld [vmem:[%s1644_s3 + $0xa0] sm:$0xff]   ;;  %v1409_v52 = vld [vmem:[%s1644_s3 + $0x98] sm:$0xff]   ;;  %v1413_v56 = vld [vmem:[%s1644_s3 + $0x90] sm:$0xff]  }
  0x3f   : > { %1288 = vmatpush3.bf16.msra.mxu1 %v1397_v40  ;;  %1225 = vmatprep.subr.bf16.mxu0 %v1398_v41  ;;  %v1414_v57 = vld [vmem:[%s1644_s3 + $0x48] sm:$0xff]   ;;  %v1418_v61 = vld [vmem:[%s1644_s3 + $0x40] sm:$0xff]   ;;  %v315_v40 = vld [vmem:[#allocation2 + $0x30] sm:$0xff] }
  0x40   : > { %1289 = vmatprep.subr.bf16.mxu1 %v1399_v42  ;;  %v1415_v58 = vld [vmem:[%s1644_s3 + $0xc8] sm:$0xff]   ;;  %v1419_v62 = vld [vmem:[%s1644_s3 + $0xc0] sm:$0xff]  }
  0x41   : > { %v1416_v59 = vld [vmem:[%s1644_s3 + $0x8] sm:$0xff]   ;;  %v1420_v63 = vld [vmem:[%s1644_s3] sm:$0xff]  }
  0x42   : > { %1226 = vmatpush3.bf16.msra.mxu0 %v1400_v43  ;;  %v1417_v60 = vld [vmem:[%s1644_s3 + $0x88] sm:$0xff]   ;;  %v1421_v0 = vld [vmem:[%s1644_s3 + $0x80] sm:$0xff]  }
  0x43   : > { %1290 = vmatpush3.bf16.msra.mxu1 %v1401_v44  ;;  %1227 = vmatprep.subr.bf16.mxu0 %v1402_v45  ;;  %v1422_v1 = vld [vmem:[%s1646_s4] ss:$16 sps:$4 sm:$0xff]   ;;  %v1424_v2 = vld [vmem:[%s1646_s4 + $0x4] ss:$16 sps:$4 sm:$0xff]   ;;  %v1425_v3 = vld [vmem:[%s1646_s4 + $0x8] ss:$16 sps:$4 sm:$0xff]  }
  0x44   : > { %1291 = vmatprep.subr.bf16.mxu1 %v1403_v46  ;;  %v1427_v4 = vld [vmem:[%s1646_s4 + $0xc] ss:$16 sps:$4 sm:$0xff]   ;;  %811 = vmatprep.mubr.bf16.mxu0 %v1424_v2  ;;  %v1428_v5 = vld [vmem:[%s1646_s4 + $0x24] ss:$16 sps:$4 sm:$0xff]   ;;  %v1432_v7 = vld [vmem:[%s1646_s4 + $0x20] ss:$16 sps:$4 sm:$0xff]  }
  0x45   : > { %908 = vmatprep.mubr.bf16.mxu1 %v1427_v4  ;;  %v1430_v6 = vld [vmem:[%s1646_s4 + $0x2c] ss:$16 sps:$4 sm:$0xff]   ;;  %v1433_v8 = vld [vmem:[%s1646_s4 + $0x28] ss:$16 sps:$4 sm:$0xff]   ;;  %v1434_v9 = vld [vmem:[%s1646_s4 + $0x44] ss:$16 sps:$4 sm:$0xff]  }
  0x46   : > { %1228 = vmatpush3.bf16.msra.mxu0 %v1404_v47  ;;  %v1436_v10 = vld [vmem:[%s1646_s4 + $0x4c] ss:$16 sps:$4 sm:$0xff]   ;;  %v1438_v11 = vld [vmem:[%s1646_s4 + $0x40] ss:$16 sps:$4 sm:$0xff]   ;;  %v1439_v12 = vld [vmem:[%s1646_s4 + $0x48] ss:$16 sps:$4 sm:$0xff]  }
  0x47   : > { %1292 = vmatpush3.bf16.msra.mxu1 %v1405_v48  ;;  %1229 = vmatprep.subr.bf16.mxu0 %v1406_v49  ;;  %v1440_v13 = vld [vmem:[%s1646_s4 + $0x64] ss:$16 sps:$4 sm:$0xff]   ;;  %v1442_v14 = vld [vmem:[%s1646_s4 + $0x6c] ss:$16 sps:$4 sm:$0xff]   ;;  %v1444_v15 = vld [vmem:[%s1646_s4 + $0x60] ss:$16 sps:$4 sm:$0xff]  }
  0x48   : > { %1293 = vmatprep.subr.bf16.mxu1 %v1407_v50  ;;  %v1445_v16 = vld [vmem:[%s1646_s4 + $0x68] ss:$16 sps:$4 sm:$0xff]   ;;  %v1446_v17 = vld [vmem:[%s1646_s4 + $0x84] ss:$16 sps:$4 sm:$0xff]   ;;  %v1448_v18 = vld [vmem:[%s1646_s4 + $0x8c] ss:$16 sps:$4 sm:$0xff]  }
  0x49   : > { %v1450_v19 = vld [vmem:[%s1646_s4 + $0x80] ss:$16 sps:$4 sm:$0xff]   ;;  %v1451_v20 = vld [vmem:[%s1646_s4 + $0x88] ss:$16 sps:$4 sm:$0xff]   ;;  %v1452_v21 = vld [vmem:[%s1646_s4 + $0xa4] ss:$16 sps:$4 sm:$0xff]  }
  0x4a   : > { %1230 = vmatpush3.bf16.msra.mxu0 %v1408_v51  ;;  %v1454_v22 = vld [vmem:[%s1646_s4 + $0xac] ss:$16 sps:$4 sm:$0xff]   ;;  %v1456_v23 = vld [vmem:[%s1646_s4 + $0xa0] ss:$16 sps:$4 sm:$0xff]   ;;  %v1457_v24 = vld [vmem:[%s1646_s4 + $0xa8] ss:$16 sps:$4 sm:$0xff]  }
  0x4b   : > { %1294 = vmatpush3.bf16.msra.mxu1 %v1409_v52  ;;  %1231 = vmatprep.subr.bf16.mxu0 %v1410_v53  ;;  %v1458_v25 = vld [vmem:[%s1646_s4 + $0xc4] ss:$16 sps:$4 sm:$0xff]   ;;  %v1460_v26 = vld [vmem:[%s1646_s4 + $0xcc] ss:$16 sps:$4 sm:$0xff]   ;;  %v1462_v27 = vld [vmem:[%s1646_s4 + $0xc0] ss:$16 sps:$4 sm:$0xff]  }
  0x4c   : > { %1295 = vmatprep.subr.bf16.mxu1 %v1411_v54  ;;  %v1463_v28 = vld [vmem:[%s1646_s4 + $0xc8] ss:$16 sps:$4 sm:$0xff]   ;;  %v1464_v29 = vld [vmem:[%s1646_s4 + $0xe4] ss:$16 sps:$4 sm:$0xff]   ;;  %v1466_v30 = vld [vmem:[%s1646_s4 + $0xec] ss:$16 sps:$4 sm:$0xff]  }
  0x4d   : > { %v1468_v31 = vld [vmem:[%s1646_s4 + $0xe0] ss:$16 sps:$4 sm:$0xff]   ;;  %v1469_v32 = vld [vmem:[%s1646_s4 + $0xe8] ss:$16 sps:$4 sm:$0xff]  }
  0x4e   : > { %1232 = vmatpush3.bf16.msra.mxu0 %v1412_v55  ;;  %v316_v49 = vld [vmem:[#allocation2] sm:$0xff] }
  0x4f   : > { %1296 = vmatpush3.bf16.msra.mxu1 %v1413_v56  ;;  %1233 = vmatprep.subr.bf16.mxu0 %v1414_v57 }
  0x50   : > { %1297 = vmatprep.subr.bf16.mxu1 %v1415_v58  ;;  %v317_v58 = vld [vmem:[#allocation2 + $0x58] sm:$0xff] }
  0x52   : > { %1234 = vmatpush3.bf16.msra.mxu0 %v1416_v59 }
  0x53   : > { %1298 = vmatpush3.bf16.msra.mxu1 %v1417_v60  ;;  %1235 = vmatprep.subr.bf16.mxu0 %v1418_v61 }
  0x54   : > { %1299 = vmatprep.subr.bf16.mxu1 %v1419_v62 }
  0x56   : > { %1236 = vmatpush3.bf16.msra.mxu0 %v1420_v63 }
  0x57   : > { %1300 = vmatpush3.bf16.msra.mxu1 %v1421_v0 }
  0x59   : > { %812 = vmatmul.mubr.bf16.vlgmr.msra.gmra.mxu0 %v1422_v1 }
  0x5a   : > { %909 = vmatmul.mubr.bf16.vlgmr.msra.gmra.mxu1 %v1425_v3  ;;  %819 = vmatprep.mubr.bf16.mxu0 %v1428_v5  ;;  %v318_v3 = vld [vmem:[#allocation2 + $0x18] sm:$0xff] }
  0x5b   : > { %916 = vmatprep.mubr.bf16.mxu1 %v1430_v6 }
  0x61   : > { %820 = vmatmul.mubr.bf16.gmra.mxu0 %v1432_v7 }
  0x62   : > { %917 = vmatmul.mubr.bf16.gmra.mxu1 %v1433_v8  ;;  %827 = vmatprep.mubr.bf16.mxu0 %v1434_v9 }
  0x63   : > { %924 = vmatprep.mubr.bf16.mxu1 %v1436_v10 }
  0x69   : > { %828 = vmatmul.mubr.bf16.gmra.mxu0 %v1438_v11 }
  0x6a   : > { %925 = vmatmul.mubr.bf16.gmra.mxu1 %v1439_v12  ;;  %835 = vmatprep.mubr.bf16.mxu0 %v1440_v13  ;;  %v319_v12 = vld [vmem:[#allocation2 + $0x50] sm:$0xff] }
  0x6b   : > { %932 = vmatprep.mubr.bf16.mxu1 %v1442_v14 }
  0x71   : > { %836 = vmatmul.mubr.bf16.gmra.mxu0 %v1444_v15 }
  0x72   : > { %933 = vmatmul.mubr.bf16.gmra.mxu1 %v1445_v16  ;;  %843 = vmatprep.mubr.bf16.mxu0 %v1446_v17 }
  0x73   : > { %940 = vmatprep.mubr.bf16.mxu1 %v1448_v18 }
  0x79   : > { %844 = vmatmul.mubr.bf16.gmra.mxu0 %v1450_v19 }
  0x7a   : > { %941 = vmatmul.mubr.bf16.gmra.mxu1 %v1451_v20  ;;  %851 = vmatprep.mubr.bf16.mxu0 %v1452_v21  ;;  %v320_v21 = vld [vmem:[#allocation2 + $0x68] sm:$0xff] }
  0x7b   : > { %948 = vmatprep.mubr.bf16.mxu1 %v1454_v22 }
  0x81   : > { %852 = vmatmul.mubr.bf16.gmra.mxu0 %v1456_v23 }
  0x82   : > { %949 = vmatmul.mubr.bf16.gmra.mxu1 %v1457_v24  ;;  %859 = vmatprep.mubr.bf16.mxu0 %v1458_v25 }
  0x83   : > { %956 = vmatprep.mubr.bf16.mxu1 %v1460_v26 }
  0x89   : > { %860 = vmatmul.mubr.bf16.gmra.mxu0 %v1462_v27 }
  0x8a   : > { %957 = vmatmul.mubr.bf16.gmra.mxu1 %v1463_v28  ;;  %867 = vmatprep.mubr.bf16.mxu0 %v1464_v29 }
  0x8b   : > { %964 = vmatprep.mubr.bf16.mxu1 %v1466_v30  ;;  %v321_v30 = vld [vmem:[#allocation2 + $0x8] sm:$0xff] }
  0x91   : > { %868 = vmatmul.mubr.bf16.gmra.mxu0 %v1468_v31 }
  0x92   : > { %965 = vmatmul.mubr.bf16.gmra.mxu1 %v1469_v32 }
 0x119   : > { %v1237_v33 = vpop.f32.mrf.mxu0 }
 0x11a   : > { %v1301_v34 = vpop.f32.mrf.mxu1 }
 0x11b   : > { %v1238_v35 = vpop.f32.mrf.mxu0 }
 0x11c   : > { %v1239_v36 = vadd.f32 %v1238_v35, %v1237_v33  ;;  %v1302_v37 = vpop.f32.mrf.mxu1 }
 0x11d   : > { %v1303_v38 = vadd.f32 %v1302_v37, %v1301_v34  ;;  %v1240_v39 = vpop.f32.mrf.mxu0 }
 0x11e   : > { %v1304_v41 = vpop.f32.mrf.mxu1 }
 0x11f   : > { %v911_v42 = vadd.f32 %v1303_v38, %v1239_v36  ;;  %v1241_v43 = vpop.f32.mrf.mxu0 }
 0x120   : > { %v1242_v44 = vadd.f32 %v1241_v43, %v1240_v39  ;;  %v1305_v45 = vpop.f32.mrf.mxu1  ;;  %v322_v39 = vld [vmem:[#allocation2 + $0x48] sm:$0xff] }
 0x121   : > { %v973_v46 = vadd.f32 %v911_v42, %v315_v40  ;;  %v1306_v47 = vadd.f32 %v1305_v45, %v1304_v41  ;;  %v1243_v48 = vpop.f32.mrf.mxu0 }
 0x122   : > { %v1307_v50 = vpop.f32.mrf.mxu1 }
 0x123   : > { %989 = vst [vmem:[#allocation2 + $0x30] sm:$0xff] %v973_v46  ;;  %v914_v51 = vadd.f32 %v1306_v47, %v1242_v44  ;;  %v1244_v52 = vpop.f32.mrf.mxu0 }
 0x124   : > { %v1245_v53 = vadd.f32 %v1244_v52, %v1243_v48  ;;  %v1308_v54 = vpop.f32.mrf.mxu1  ;;  %v323_v48 = vld [vmem:[#allocation2 + $0x40] sm:$0xff] }
 0x125   : > { %v974_v55 = vadd.f32 %v914_v51, %v316_v49  ;;  %v1309_v56 = vadd.f32 %v1308_v54, %v1307_v50  ;;  %v1246_v57 = vpop.f32.mrf.mxu0 }
 0x126   : > { %v1310_v59 = vpop.f32.mrf.mxu1 }
 0x127   : > { %990 = vst [vmem:[#allocation2] sm:$0xff] %v974_v55  ;;  %v919_v60 = vadd.f32 %v1309_v56, %v1245_v53  ;;  %v1247_v61 = vpop.f32.mrf.mxu0 }
 0x128   : > { %v1248_v62 = vadd.f32 %v1247_v61, %v1246_v57  ;;  %v1311_v63 = vpop.f32.mrf.mxu1  ;;  %v324_v57 = vld [vmem:[#allocation2 + $0x20] sm:$0xff] }
 0x129   : > { %v975_v0 = vadd.f32 %v919_v60, %v317_v58  ;;  %v1312_v1 = vadd.f32 %v1311_v63, %v1310_v59  ;;  %v1249_v2 = vpop.f32.mrf.mxu0 }
 0x12a   : > { %v1313_v4 = vpop.f32.mrf.mxu1 }
 0x12b   : > { %991 = vst [vmem:[#allocation2 + $0x58] sm:$0xff] %v975_v0  ;;  %v922_v5 = vadd.f32 %v1312_v1, %v1248_v62  ;;  %v1250_v6 = vpop.f32.mrf.mxu0 }
 0x12c   : > { %v1251_v7 = vadd.f32 %v1250_v6, %v1249_v2  ;;  %v1314_v8 = vpop.f32.mrf.mxu1  ;;  %v325_v2 = vld [vmem:[#allocation2 + $0x10] sm:$0xff] }
 0x12d   : > { %v976_v9 = vadd.f32 %v922_v5, %v318_v3  ;;  %v1315_v10 = vadd.f32 %v1314_v8, %v1313_v4  ;;  %v1252_v11 = vpop.f32.mrf.mxu0 }
 0x12e   : > { %v1316_v13 = vpop.f32.mrf.mxu1 }
 0x12f   : > { %992 = vst [vmem:[#allocation2 + $0x18] sm:$0xff] %v976_v9  ;;  %v927_v14 = vadd.f32 %v1315_v10, %v1251_v7  ;;  %v1253_v15 = vpop.f32.mrf.mxu0 }
 0x130   : > { %v1254_v16 = vadd.f32 %v1253_v15, %v1252_v11  ;;  %v1317_v17 = vpop.f32.mrf.mxu1  ;;  %v326_v11 = vld [vmem:[#allocation2 + $0x38] sm:$0xff] }
 0x131   : > { %v977_v18 = vadd.f32 %v927_v14, %v319_v12  ;;  %v1318_v19 = vadd.f32 %v1317_v17, %v1316_v13  ;;  %v1255_v20 = vpop.f32.mrf.mxu0 }
 0x132   : > { %v1319_v22 = vpop.f32.mrf.mxu1 }
 0x133   : > { %993 = vst [vmem:[#allocation2 + $0x50] sm:$0xff] %v977_v18  ;;  %v930_v23 = vadd.f32 %v1318_v19, %v1254_v16  ;;  %v1256_v24 = vpop.f32.mrf.mxu0 }
 0x134   : > { %v1257_v25 = vadd.f32 %v1256_v24, %v1255_v20  ;;  %v1320_v26 = vpop.f32.mrf.mxu1  ;;  %v327_v20 = vld [vmem:[#allocation2 + $0x60] sm:$0xff] }
 0x135   : > { %v978_v27 = vadd.f32 %v930_v23, %v320_v21  ;;  %v1321_v28 = vadd.f32 %v1320_v26, %v1319_v22  ;;  %v1258_v29 = vpop.f32.mrf.mxu0 }
 0x136   : > { %v1322_v31 = vpop.f32.mrf.mxu1 }
 0x137   : > { %994 = vst [vmem:[#allocation2 + $0x68] sm:$0xff] %v978_v27  ;;  %v935_v32 = vadd.f32 %v1321_v28, %v1257_v25  ;;  %v1259_v33 = vpop.f32.mrf.mxu0 }
 0x138   : > { %v1260_v34 = vadd.f32 %v1259_v33, %v1258_v29  ;;  %v1323_v35 = vpop.f32.mrf.mxu1  ;;  %v328_v29 = vld [vmem:[#allocation2 + $0x70] sm:$0xff] }
 0x139   : > { %v979_v36 = vadd.f32 %v935_v32, %v321_v30  ;;  %v1324_v37 = vadd.f32 %v1323_v35, %v1322_v31  ;;  %v1261_v38 = vpop.f32.mrf.mxu0 }
 0x13a   : > { %v1325_v40 = vpop.f32.mrf.mxu1 }
 0x13b   : > { %995 = vst [vmem:[#allocation2 + $0x8] sm:$0xff] %v979_v36  ;;  %v938_v41 = vadd.f32 %v1324_v37, %v1260_v34  ;;  %v1262_v42 = vpop.f32.mrf.mxu0 }
 0x13c   : > { %v1263_v43 = vadd.f32 %v1262_v42, %v1261_v38  ;;  %v1326_v44 = vpop.f32.mrf.mxu1  ;;  %v329_v38 = vld [vmem:[#allocation2 + $0x78] sm:$0xff] }
 0x13d   : > { %v980_v45 = vadd.f32 %v938_v41, %v322_v39  ;;  %v1327_v46 = vadd.f32 %v1326_v44, %v1325_v40  ;;  %v1264_v47 = vpop.f32.mrf.mxu0 }
 0x13e   : > { %v1328_v49 = vpop.f32.mrf.mxu1 }
 0x13f   : > { %996 = vst [vmem:[#allocation2 + $0x48] sm:$0xff] %v980_v45  ;;  %v943_v50 = vadd.f32 %v1327_v46, %v1263_v43  ;;  %v1265_v51 = vpop.f32.mrf.mxu0  ;;  %v330_v46 = vld [vmem:[#allocation2 + $0x28] sm:$0xff] }
 0x140   : > { %v1266_v52 = vadd.f32 %v1265_v51, %v1264_v47  ;;  %v1329_v53 = vpop.f32.mrf.mxu1 }
 0x141   : > { %v981_v54 = vadd.f32 %v943_v50, %v323_v48  ;;  %v1330_v55 = vadd.f32 %v1329_v53, %v1328_v49  ;;  %v1267_v56 = vpop.f32.mrf.mxu0 }
 0x142   : > { %v1331_v58 = vpop.f32.mrf.mxu1 }
 0x143   : > { %997 = vst [vmem:[#allocation2 + $0x40] sm:$0xff] %v981_v54  ;;  %v946_v59 = vadd.f32 %v1330_v55, %v1266_v52  ;;  %v1268_v60 = vpop.f32.mrf.mxu0 }
 0x144   : > { %v1269_v61 = vadd.f32 %v1268_v60, %v1267_v56  ;;  %v1332_v62 = vpop.f32.mrf.mxu1 }
 0x145   : > { %v982_v63 = vadd.f32 %v946_v59, %v324_v57  ;;  %v1333_v0 = vadd.f32 %v1332_v62, %v1331_v58  ;;  %v1270_v1 = vpop.f32.mrf.mxu0 }
 0x146   : > { %v1334_v3 = vpop.f32.mrf.mxu1 }
 0x147   : > { %998 = vst [vmem:[#allocation2 + $0x20] sm:$0xff] %v982_v63  ;;  %v951_v4 = vadd.f32 %v1333_v0, %v1269_v61  ;;  %v1271_v5 = vpop.f32.mrf.mxu0 }
 0x148   : > { %v1272_v6 = vadd.f32 %v1271_v5, %v1270_v1  ;;  %v1335_v7 = vpop.f32.mrf.mxu1 }
 0x149   : > { %v983_v8 = vadd.f32 %v951_v4, %v325_v2  ;;  %v1336_v9 = vadd.f32 %v1335_v7, %v1334_v3  ;;  %v1273_v10 = vpop.f32.mrf.mxu0 }
 0x14a   : > { %v1337_v12 = vpop.f32.mrf.mxu1 }
 0x14b   : > { %999 = vst [vmem:[#allocation2 + $0x10] sm:$0xff] %v983_v8  ;;  %v954_v13 = vadd.f32 %v1336_v9, %v1272_v6  ;;  %v1274_v14 = vpop.f32.mrf.mxu0 }
 0x14c   : > { %v1275_v15 = vadd.f32 %v1274_v14, %v1273_v10  ;;  %v1338_v16 = vpop.f32.mrf.mxu1 }
 0x14d   : > { %v984_v17 = vadd.f32 %v954_v13, %v326_v11  ;;  %v1339_v18 = vadd.f32 %v1338_v16, %v1337_v12  ;;  %v1276_v19 = vpop.f32.mrf.mxu0 }
 0x14e   : > { %v1340_v21 = vpop.f32.mrf.mxu1 }
 0x14f   : > { %1000 = vst [vmem:[#allocation2 + $0x38] sm:$0xff] %v984_v17  ;;  %v959_v22 = vadd.f32 %v1339_v18, %v1275_v15  ;;  %v1277_v23 = vpop.f32.mrf.mxu0 }
 0x150   : > { %v1278_v24 = vadd.f32 %v1277_v23, %v1276_v19  ;;  %v1341_v25 = vpop.f32.mrf.mxu1 }
 0x151   : > { %v985_v26 = vadd.f32 %v959_v22, %v327_v20  ;;  %v1342_v27 = vadd.f32 %v1341_v25, %v1340_v21  ;;  %v1279_v28 = vpop.f32.mrf.mxu0 }
 0x152   : > { %v1343_v30 = vpop.f32.mrf.mxu1 }
 0x153   : > { %1001 = vst [vmem:[#allocation2 + $0x60] sm:$0xff] %v985_v26  ;;  %v962_v31 = vadd.f32 %v1342_v27, %v1278_v24  ;;  %v1280_v32 = vpop.f32.mrf.mxu0 }
 0x154   : > { %v1281_v33 = vadd.f32 %v1280_v32, %v1279_v28  ;;  %v1344_v34 = vpop.f32.mrf.mxu1 }
 0x155   : > { %v986_v35 = vadd.f32 %v962_v31, %v328_v29  ;;  %v1345_v36 = vadd.f32 %v1344_v34, %v1343_v30  ;;  %v1282_v37 = vpop.f32.mrf.mxu0 }
 0x156   : > { %v1346_v39 = vpop.f32.mrf.mxu1 }
 0x157   : > { %1002 = vst [vmem:[#allocation2 + $0x70] sm:$0xff] %v986_v35  ;;  %v967_v40 = vadd.f32 %v1345_v36, %v1281_v33  ;;  %v1283_v41 = vpop.f32.mrf.mxu0 }
 0x158   : > { %v1284_v42 = vadd.f32 %v1283_v41, %v1282_v37  ;;  %v1347_v43 = vpop.f32.mrf.mxu1 }
 0x159   : > { %v987_v44 = vadd.f32 %v967_v40, %v329_v38  ;;  %v1348_v45 = vadd.f32 %v1347_v43, %v1346_v39 }
 0x15b   : > { %1003 = vst [vmem:[#allocation2 + $0x78] sm:$0xff] %v987_v44  ;;  %v970_v47 = vadd.f32 %v1348_v45, %v1284_v42  ;;  %1008 = sbr.rel (%p1215_p11) target bundleno = 361 (0x169), region = 59 }
 0x15d   : > { %v988_v48 = vadd.f32 %v970_v47, %v330_v46 }
 0x15f   : > { %1004 = vst [vmem:[#allocation2 + $0x28] sm:$0xff] %v988_v48 }
 0x160   : > { %v1009_v49 = vld [vmem:[#allocation2 + $0x30] sm:$0xff]  ;;  %v1010_v50 = vld [vmem:[#allocation2] sm:$0xff]  ;;  %v1011_v51 = vld [vmem:[#allocation2 + $0x58] sm:$0xff] }
 0x161   : > { %1025 = vst [vmem:[%s1779_s2] sm:$0xff] %v1009_v49  ;;  %1026 = vst [vmem:[%s1779_s2 + $0x8] sm:$0xff] %v1010_v50  ;;  %v1012_v52 = vld [vmem:[#allocation2 + $0x18] sm:$0xff]  ;;  %v1013_v53 = vld [vmem:[#allocation2 + $0x50] sm:$0xff] }
 0x162   : > { %1027 = vst [vmem:[%s1779_s2 + $0x10] sm:$0xff] %v1011_v51  ;;  %v1014_v54 = vld [vmem:[#allocation2 + $0x68] sm:$0xff]  ;;  %1028 = vst [vmem:[%s1779_s2 + $0x18] sm:$0xff] %v1012_v52  ;;  %v1017_v57 = vld [vmem:[#allocation2 + $0x40] sm:$0xff] }
 0x163   : > { %1029 = vst [vmem:[%s1779_s2 + $0x20] sm:$0xff] %v1013_v53  ;;  %1030 = vst [vmem:[%s1779_s2 + $0x28] sm:$0xff] %v1014_v54  ;;  %v1015_v55 = vld [vmem:[#allocation2 + $0x8] sm:$0xff]  ;;  %v1018_v58 = vld [vmem:[#allocation2 + $0x20] sm:$0xff] }
 0x164   : > { %v1016_v56 = vld [vmem:[#allocation2 + $0x48] sm:$0xff]  ;;  %1031 = vst [vmem:[%s1779_s2 + $0x30] sm:$0xff] %v1015_v55  ;;  %1033 = vst [vmem:[%s1779_s2 + $0x40] sm:$0xff] %v1017_v57  ;;  %v1019_v59 = vld [vmem:[#allocation2 + $0x10] sm:$0xff] }
 0x165   : > { %1032 = vst [vmem:[%s1779_s2 + $0x38] sm:$0xff] %v1016_v56  ;;  %v1020_v60 = vld [vmem:[#allocation2 + $0x38] sm:$0xff]  ;;  %1034 = vst [vmem:[%s1779_s2 + $0x48] sm:$0xff] %v1018_v58  ;;  %v1021_v61 = vld [vmem:[#allocation2 + $0x60] sm:$0xff] }
 0x166   : > { %1035 = vst [vmem:[%s1779_s2 + $0x50] sm:$0xff] %v1019_v59  ;;  %1036 = vst [vmem:[%s1779_s2 + $0x58] sm:$0xff] %v1020_v60  ;;  %v1022_v62 = vld [vmem:[#allocation2 + $0x70] sm:$0xff]  ;;  %v1023_v63 = vld [vmem:[#allocation2 + $0x78] sm:$0xff] }
 0x167   : > { %1037 = vst [vmem:[%s1779_s2 + $0x60] sm:$0xff] %v1021_v61  ;;  %1038 = vst [vmem:[%s1779_s2 + $0x68] sm:$0xff] %v1022_v62  ;;  %v1024_v0 = vld [vmem:[#allocation2 + $0x28] sm:$0xff] }
 0x168   : > { %1039 = vst [vmem:[%s1779_s2 + $0x70] sm:$0xff] %v1023_v63  ;;  %1040 = vst [vmem:[%s1779_s2 + $0x78] sm:$0xff] %v1024_v0 }
 0x169 PF: > { %s12_s13 = sadd.s32 1, %s1508_s13   ;;  %s1780_s9 = smov %s1496_s10 }
 0x16a   : > { %p9_p12 = scmp.ge.s32.totalorder %s12_s13, 4   ;;  %s1781_s10 = smov %s1561_s17 }
 0x16b   : > { %s1782_s11 = smov %s1504_s12  ;;  %s1783_s12 = smov %s1785_s14 }
 0x16c   :  { %11 = sbr.rel (!%p9_p12) target bundleno = 3 (0x3), region = 97 }

// kernel: pix2pix_forward.63
= control target key start
LH: loop header
LB: loop body
LE: loop exit
PB: predicated region body
PF: predicated region fallthrough
CT: control target
= control target key end

     0   :  { %s1031_s0 = inlined_call_operand.vmem [shape: f32[512,128], index: 0, kind: input, shape index: {}]   ;;  %s1032_s1 = inlined_call_operand.vmem [shape: f32[1,128], index: 1, kind: input, shape index: {}]   ;;  %s1033_s2 = inlined_call_operand.vmem [shape: f32[1,128], index: 2, kind: input, shape index: {}]   ;;  %s1034_s3 = inlined_call_operand.vmem [shape: f32[512,128], index: 3, kind: output, shape index: {}]  }
   0x1   :  { %v14_v0 = vld [vmem:[%s1031_s0] sm:$0xff]  ;;  %v15_v4 = vld [vmem:[%s1031_s0 + $0x8] sm:$0xff]  ;;  %v16_v5 = vld [vmem:[%s1031_s0 + $0x10] sm:$0xff] }
   0x2   :  { %v508_v1 = vld [vmem:[%s1032_s1] ss:$0 sm:$0xff]  ;;  %v17_v6 = vld [vmem:[%s1031_s0 + $0x18] sm:$0xff]  ;;  %v19_v11 = vld [vmem:[%s1031_s0 + $0x28] sm:$0xff] }
   0x3   :  { %v513_v2 = vld [vmem:[%s1033_s2] ss:$0 sm:$0xff]  ;;  %v85_v3 = vmul.f32 %v508_v1, %v14_v0  ;;  %v86_v7 = vmul.f32 %v508_v1, %v15_v4  ;;  %v87_v8 = vmul.f32 %v508_v1, %v16_v5  ;;  %v88_v9 = vmul.f32 %v508_v1, %v17_v6  ;;  %v20_v12 = vld [vmem:[%s1031_s0 + $0x30] sm:$0xff]  ;;  %v21_v17 = vld [vmem:[%s1031_s0 + $0x38] sm:$0xff] }
   0x4   :  { %v18_v10 = vld [vmem:[%s1031_s0 + $0x20] sm:$0xff]  ;;  %v90_v15 = vmul.f32 %v508_v1, %v19_v11  ;;  %v91_v16 = vmul.f32 %v508_v1, %v20_v12  ;;  %v92_v21 = vmul.f32 %v508_v1, %v21_v17  ;;  %v23_v30 = vld [vmem:[%s1031_s0 + $0x48] sm:$0xff]  ;;  %v24_v31 = vld [vmem:[%s1031_s0 + $0x50] sm:$0xff] }
   0x5   :  { %v156_v13 = vadd.f32 %v513_v2, %v85_v3  ;;  %v89_v14 = vmul.f32 %v508_v1, %v18_v10  ;;  %v157_v18 = vadd.f32 %v513_v2, %v86_v7  ;;  %v158_v19 = vadd.f32 %v513_v2, %v87_v8  ;;  %v22_v29 = vld [vmem:[%s1031_s0 + $0x40] sm:$0xff]  ;;  %v25_v43 = vld [vmem:[%s1031_s0 + $0x58] sm:$0xff]  ;;  %v27_v45 = vld [vmem:[%s1031_s0 + $0x68] sm:$0xff] }
   0x6   :  { %v159_v20 = vadd.f32 %v513_v2, %v88_v9  ;;  %v161_v24 = vadd.f32 %v513_v2, %v90_v15  ;;  %v162_v37 = vadd.f32 %v513_v2, %v91_v16  ;;  %v163_v38 = vadd.f32 %v513_v2, %v92_v21  ;;  %v26_v44 = vld [vmem:[%s1031_s0 + $0x60] sm:$0xff]  ;;  %v28_v56 = vld [vmem:[%s1031_s0 + $0x70] sm:$0xff]  ;;  %v29_v4 = vld [vmem:[%s1031_s0 + $0x78] sm:$0xff] }
   0x7   :  { %vm220_vm0 = vcmp.ge.f32.partialorder %v156_v13, 0.0  ;;  %v284_v22 = vmul.f32 0.0, %v156_v13  ;;  %v160_v23 = vadd.f32 %v513_v2, %v89_v14  ;;  %vm221_vm1 = vcmp.ge.f32.partialorder %v157_v18, 0.0  ;;  %v30_v5 = vld [vmem:[%s1031_s0 + $0x80] sm:$0xff]  ;;  %v31_v9 = vld [vmem:[%s1031_s0 + $0x88] sm:$0xff]  ;;  %v32_v10 = vld [vmem:[%s1031_s0 + $0x90] sm:$0xff] }
   0x8   :  { %v285_v25 = vmul.f32 0.0, %v157_v18  ;;  %vm222_vm2 = vcmp.ge.f32.partialorder %v158_v19, 0.0  ;;  %v286_v26 = vmul.f32 0.0, %v158_v19  ;;  %vm223_vm3 = vcmp.ge.f32.partialorder %v159_v20, 0.0  ;;  %v33_v17 = vld [vmem:[%s1031_s0 + $0x98] sm:$0xff] }
   0x9   :  { %v348_v27 = vsel %vm220_vm0, %v156_v13, %v284_v22  ;;  %v287_v28 = vmul.f32 0.0, %v159_v20  ;;  %vm224_vm4 = vcmp.ge.f32.partialorder %v160_v23, 0.0  ;;  %v288_v34 = vmul.f32 0.0, %v160_v23 }
   0xa   :  { %412 = vst [vmem:[%s1034_s3] sm:$0xff] %v348_v27  ;;  %v349_v32 = vsel %vm221_vm1, %v157_v18, %v285_v25  ;;  %v350_v33 = vsel %vm222_vm2, %v158_v19, %v286_v26  ;;  %vm225_vm5 = vcmp.ge.f32.partialorder %v161_v24, 0.0  ;;  %v289_v36 = vmul.f32 0.0, %v161_v24  ;;  %v34_v18 = vld [vmem:[%s1031_s0 + $0xa0] sm:$0xff] }
   0xb   :  { %413 = vst [vmem:[%s1034_s3 + $0x8] sm:$0xff] %v349_v32  ;;  %414 = vst [vmem:[%s1034_s3 + $0x10] sm:$0xff] %v350_v33  ;;  %v351_v35 = vsel %vm223_vm3, %v159_v20, %v287_v28  ;;  %v352_v39 = vsel %vm224_vm4, %v160_v23, %v288_v34  ;;  %v93_v40 = vmul.f32 %v508_v1, %v22_v29  ;;  %vm226_vm6 = vcmp.ge.f32.partialorder %v162_v37, 0.0  ;;  %v35_v32 = vld [vmem:[%s1031_s0 + $0xa8] sm:$0xff]  ;;  %v36_v33 = vld [vmem:[%s1031_s0 + $0xb0] sm:$0xff] }
   0xc   :  { %415 = vst [vmem:[%s1034_s3 + $0x18] sm:$0xff] %v351_v35  ;;  %v94_v41 = vmul.f32 %v508_v1, %v23_v30  ;;  %v95_v42 = vmul.f32 %v508_v1, %v24_v31  ;;  %416 = vst [vmem:[%s1034_s3 + $0x20] sm:$0xff] %v352_v39  ;;  %v353_v46 = vsel %vm225_vm5, %v161_v24, %v289_v36  ;;  %v290_v47 = vmul.f32 0.0, %v162_v37 }
   0xd   :  { %vm227_vm7 = vcmp.ge.f32.partialorder %v163_v38, 0.0  ;;  %417 = vst [vmem:[%s1034_s3 + $0x28] sm:$0xff] %v353_v46  ;;  %v291_v48 = vmul.f32 0.0, %v163_v38  ;;  %v164_v49 = vadd.f32 %v513_v2, %v93_v40  ;;  %v96_v53 = vmul.f32 %v508_v1, %v25_v43  ;;  %v37_v40 = vld [vmem:[%s1031_s0 + $0xb8] sm:$0xff]  ;;  %v39_v46 = vld [vmem:[%s1031_s0 + $0xc8] sm:$0xff] }
   0xe   :  { %v165_v50 = vadd.f32 %v513_v2, %v94_v41  ;;  %v166_v51 = vadd.f32 %v513_v2, %v95_v42  ;;  %v354_v52 = vsel %vm226_vm6, %v162_v37, %v290_v47  ;;  %v97_v54 = vmul.f32 %v508_v1, %v26_v44  ;;  %v40_v47 = vld [vmem:[%s1031_s0 + $0xd0] sm:$0xff] }
   0xf   :  { %v98_v55 = vmul.f32 %v508_v1, %v27_v45  ;;  %418 = vst [vmem:[%s1034_s3 + $0x30] sm:$0xff] %v354_v52  ;;  %v355_v57 = vsel %vm227_vm7, %v163_v38, %v291_v48  ;;  %vm228_vm8 = vcmp.ge.f32.partialorder %v164_v49, 0.0  ;;  %v292_v58 = vmul.f32 0.0, %v164_v49  ;;  %v38_v45 = vld [vmem:[%s1031_s0 + $0xc0] sm:$0xff] }
  0x10   :  { %vm229_vm9 = vcmp.ge.f32.partialorder %v165_v50, 0.0  ;;  %419 = vst [vmem:[%s1034_s3 + $0x38] sm:$0xff] %v355_v57  ;;  %v293_v59 = vmul.f32 0.0, %v165_v50  ;;  %vm230_vm10 = vcmp.ge.f32.partialorder %v166_v51, 0.0  ;;  %v294_v60 = vmul.f32 0.0, %v166_v51 }
  0x11   :  { %v167_v61 = vadd.f32 %v513_v2, %v96_v53  ;;  %v356_v62 = vsel %vm228_vm8, %v164_v49, %v292_v58  ;;  %v168_v63 = vadd.f32 %v513_v2, %v97_v54  ;;  %v169_v0 = vadd.f32 %v513_v2, %v98_v55  ;;  %v41_v58 = vld [vmem:[%s1031_s0 + $0xd8] sm:$0xff] }
  0x12   :  { %v99_v3 = vmul.f32 %v508_v1, %v28_v56  ;;  %420 = vst [vmem:[%s1034_s3 + $0x40] sm:$0xff] %v356_v62  ;;  %v357_v6 = vsel %vm229_vm9, %v165_v50, %v293_v59  ;;  %v358_v7 = vsel %vm230_vm10, %v166_v51, %v294_v60  ;;  %v100_v15 = vmul.f32 %v508_v1, %v29_v4  ;;  %v42_v59 = vld [vmem:[%s1031_s0 + $0xe0] sm:$0xff] }
  0x13   :  { %vm231_vm11 = vcmp.ge.f32.partialorder %v167_v61, 0.0  ;;  %v295_v8 = vmul.f32 0.0, %v167_v61  ;;  %421 = vst [vmem:[%s1034_s3 + $0x48] sm:$0xff] %v357_v6  ;;  %422 = vst [vmem:[%s1034_s3 + $0x50] sm:$0xff] %v358_v7  ;;  %vm232_vm12 = vcmp.ge.f32.partialorder %v168_v63, 0.0  ;;  %v296_v11 = vmul.f32 0.0, %v168_v63 }
  0x14   :  { %vm233_vm13 = vcmp.ge.f32.partialorder %v169_v0, 0.0  ;;  %v297_v12 = vmul.f32 0.0, %v169_v0  ;;  %v170_v14 = vadd.f32 %v513_v2, %v99_v3  ;;  %v101_v16 = vmul.f32 %v508_v1, %v30_v5 }
  0x15   :  { %v359_v13 = vsel %vm231_vm11, %v167_v61, %v295_v8  ;;  %v360_v19 = vsel %vm232_vm12, %v168_v63, %v296_v11  ;;  %v102_v21 = vmul.f32 %v508_v1, %v31_v9  ;;  %v103_v22 = vmul.f32 %v508_v1, %v32_v10  ;;  %v43_v10 = vld [vmem:[%s1031_s0 + $0xe8] sm:$0xff]  ;;  %v44_v11 = vld [vmem:[%s1031_s0 + $0xf0] sm:$0xff] }
  0x16   :  { %423 = vst [vmem:[%s1034_s3 + $0x58] sm:$0xff] %v359_v13  ;;  %v361_v20 = vsel %vm233_vm13, %v169_v0, %v297_v12  ;;  %424 = vst [vmem:[%s1034_s3 + $0x60] sm:$0xff] %v360_v19  ;;  %vm234_vm14 = vcmp.ge.f32.partialorder %v170_v14, 0.0  ;;  %v298_v23 = vmul.f32 0.0, %v170_v14  ;;  %v171_v24 = vadd.f32 %v513_v2, %v100_v15 }
  0x17   :  { %425 = vst [vmem:[%s1034_s3 + $0x68] sm:$0xff] %v361_v20  ;;  %v172_v25 = vadd.f32 %v513_v2, %v101_v16  ;;  %v173_v26 = vadd.f32 %v513_v2, %v102_v21  ;;  %v174_v27 = vadd.f32 %v513_v2, %v103_v22  ;;  %v104_v28 = vmul.f32 %v508_v1, %v33_v17 }
  0x18   :  { %v105_v29 = vmul.f32 %v508_v1, %v34_v18  ;;  %v362_v30 = vsel %vm234_vm14, %v170_v14, %v298_v23  ;;  %vm235_vm15 = vcmp.ge.f32.partialorder %v171_v24, 0.0  ;;  %v299_v31 = vmul.f32 0.0, %v171_v24  ;;  %v45_v18 = vld [vmem:[%s1031_s0 + $0xf8] sm:$0xff]  ;;  %v46_v23 = vld [vmem:[%s1031_s0 + $0x100] sm:$0xff] }
  0x19   :  { %vm236_vm0 = vcmp.ge.f32.partialorder %v172_v25, 0.0  ;;  %426 = vst [vmem:[%s1034_s3 + $0x70] sm:$0xff] %v362_v30  ;;  %v300_v34 = vmul.f32 0.0, %v172_v25  ;;  %vm237_vm1 = vcmp.ge.f32.partialorder %v173_v26, 0.0  ;;  %v301_v35 = vmul.f32 0.0, %v173_v26 }
  0x1a   :  { %vm238_vm2 = vcmp.ge.f32.partialorder %v174_v27, 0.0  ;;  %v363_v36 = vsel %vm235_vm15, %v171_v24, %v299_v31  ;;  %v302_v37 = vmul.f32 0.0, %v174_v27  ;;  %v175_v38 = vadd.f32 %v513_v2, %v104_v28  ;;  %v47_v24 = vld [vmem:[%s1031_s0 + $0x108] sm:$0xff] }
  0x1b   :  { %v176_v39 = vadd.f32 %v513_v2, %v105_v29  ;;  %427 = vst [vmem:[%s1034_s3 + $0x78] sm:$0xff] %v363_v36  ;;  %v364_v41 = vsel %vm236_vm0, %v172_v25, %v300_v34  ;;  %v365_v42 = vsel %vm237_vm1, %v173_v26, %v301_v35  ;;  %v106_v43 = vmul.f32 %v508_v1, %v35_v32  ;;  %v48_v25 = vld [vmem:[%s1031_s0 + $0x110] sm:$0xff]  ;;  %v49_v36 = vld [vmem:[%s1031_s0 + $0x118] sm:$0xff] }
  0x1c   :  { %v107_v44 = vmul.f32 %v508_v1, %v36_v33  ;;  %428 = vst [vmem:[%s1034_s3 + $0x80] sm:$0xff] %v364_v41  ;;  %429 = vst [vmem:[%s1034_s3 + $0x88] sm:$0xff] %v365_v42  ;;  %v366_v48 = vsel %vm238_vm2, %v174_v27, %v302_v37  ;;  %vm239_vm3 = vcmp.ge.f32.partialorder %v175_v38, 0.0  ;;  %v303_v49 = vmul.f32 0.0, %v175_v38  ;;  %v50_v37 = vld [vmem:[%s1031_s0 + $0x120] sm:$0xff] }
  0x1d   :  { %vm240_vm4 = vcmp.ge.f32.partialorder %v176_v39, 0.0  ;;  %430 = vst [vmem:[%s1034_s3 + $0x90] sm:$0xff] %v366_v48  ;;  %v304_v50 = vmul.f32 0.0, %v176_v39  ;;  %v177_v51 = vadd.f32 %v513_v2, %v106_v43  ;;  %v108_v53 = vmul.f32 %v508_v1, %v37_v40 }
  0x1e   :  { %v178_v52 = vadd.f32 %v513_v2, %v107_v44  ;;  %v367_v54 = vsel %vm239_vm3, %v175_v38, %v303_v49  ;;  %v109_v55 = vmul.f32 %v508_v1, %v38_v45  ;;  %v110_v56 = vmul.f32 %v508_v1, %v39_v46 }
  0x1f   :  { %v111_v57 = vmul.f32 %v508_v1, %v40_v47  ;;  %431 = vst [vmem:[%s1034_s3 + $0x98] sm:$0xff] %v367_v54  ;;  %v368_v60 = vsel %vm240_vm4, %v176_v39, %v304_v50  ;;  %vm241_vm5 = vcmp.ge.f32.partialorder %v177_v51, 0.0  ;;  %v305_v61 = vmul.f32 0.0, %v177_v51  ;;  %v51_v50 = vld [vmem:[%s1031_s0 + $0x128] sm:$0xff] }
  0x20   :  { %vm242_vm6 = vcmp.ge.f32.partialorder %v178_v52, 0.0  ;;  %432 = vst [vmem:[%s1034_s3 + $0xa0] sm:$0xff] %v368_v60  ;;  %v306_v62 = vmul.f32 0.0, %v178_v52  ;;  %v179_v63 = vadd.f32 %v513_v2, %v108_v53  ;;  %v180_v0 = vadd.f32 %v513_v2, %v109_v55 }
  0x21   :  { %v181_v3 = vadd.f32 %v513_v2, %v110_v56  ;;  %v369_v4 = vsel %vm241_vm5, %v177_v51, %v305_v61  ;;  %v182_v5 = vadd.f32 %v513_v2, %v111_v57  ;;  %v112_v6 = vmul.f32 %v508_v1, %v41_v58  ;;  %v52_v51 = vld [vmem:[%s1031_s0 + $0x130] sm:$0xff]  ;;  %v53_v58 = vld [vmem:[%s1031_s0 + $0x138] sm:$0xff] }
  0x22   :  { %v113_v7 = vmul.f32 %v508_v1, %v42_v59  ;;  %433 = vst [vmem:[%s1034_s3 + $0xa8] sm:$0xff] %v369_v4  ;;  %v370_v8 = vsel %vm242_vm6, %v178_v52, %v306_v62  ;;  %vm243_vm7 = vcmp.ge.f32.partialorder %v179_v63, 0.0  ;;  %v307_v9 = vmul.f32 0.0, %v179_v63 }
  0x23   :  { %vm244_vm8 = vcmp.ge.f32.partialorder %v180_v0, 0.0  ;;  %434 = vst [vmem:[%s1034_s3 + $0xb0] sm:$0xff] %v370_v8  ;;  %v308_v12 = vmul.f32 0.0, %v180_v0  ;;  %vm245_vm9 = vcmp.ge.f32.partialorder %v181_v3, 0.0  ;;  %v309_v13 = vmul.f32 0.0, %v181_v3 }
  0x24   :  { %vm246_vm10 = vcmp.ge.f32.partialorder %v182_v5, 0.0  ;;  %v371_v14 = vsel %vm243_vm7, %v179_v63, %v307_v9  ;;  %v310_v15 = vmul.f32 0.0, %v182_v5  ;;  %v183_v16 = vadd.f32 %v513_v2, %v112_v6  ;;  %v54_v63 = vld [vmem:[%s1031_s0 + $0x140] sm:$0xff] }
  0x25   :  { %v184_v17 = vadd.f32 %v513_v2, %v113_v7  ;;  %435 = vst [vmem:[%s1034_s3 + $0xb8] sm:$0xff] %v371_v14  ;;  %v372_v19 = vsel %vm244_vm8, %v180_v0, %v308_v12  ;;  %v373_v20 = vsel %vm245_vm9, %v181_v3, %v309_v13  ;;  %v114_v21 = vmul.f32 %v508_v1, %v43_v10  ;;  %v55_v0 = vld [vmem:[%s1031_s0 + $0x148] sm:$0xff]  ;;  %v56_v3 = vld [vmem:[%s1031_s0 + $0x150] sm:$0xff]  ;;  %v57_v14 = vld [vmem:[%s1031_s0 + $0x158] sm:$0xff] }
  0x26   :  { %v115_v22 = vmul.f32 %v508_v1, %v44_v11  ;;  %436 = vst [vmem:[%s1034_s3 + $0xc0] sm:$0xff] %v372_v19  ;;  %437 = vst [vmem:[%s1034_s3 + $0xc8] sm:$0xff] %v373_v20  ;;  %v374_v26 = vsel %vm246_vm10, %v182_v5, %v310_v15  ;;  %vm247_vm11 = vcmp.ge.f32.partialorder %v183_v16, 0.0  ;;  %v311_v27 = vmul.f32 0.0, %v183_v16  ;;  %v58_v15 = vld [vmem:[%s1031_s0 + $0x160] sm:$0xff] }
  0x27   :  { %vm248_vm12 = vcmp.ge.f32.partialorder %v184_v17, 0.0  ;;  %438 = vst [vmem:[%s1034_s3 + $0xd0] sm:$0xff] %v374_v26  ;;  %v312_v28 = vmul.f32 0.0, %v184_v17  ;;  %v185_v29 = vadd.f32 %v513_v2, %v114_v21  ;;  %v116_v31 = vmul.f32 %v508_v1, %v45_v18 }
  0x28   :  { %v186_v30 = vadd.f32 %v513_v2, %v115_v22  ;;  %v375_v32 = vsel %vm247_vm11, %v183_v16, %v311_v27  ;;  %v117_v33 = vmul.f32 %v508_v1, %v46_v23  ;;  %v118_v34 = vmul.f32 %v508_v1, %v47_v24 }
  0x29   :  { %v119_v35 = vmul.f32 %v508_v1, %v48_v25  ;;  %439 = vst [vmem:[%s1034_s3 + $0xd8] sm:$0xff] %v375_v32  ;;  %v376_v38 = vsel %vm248_vm12, %v184_v17, %v312_v28  ;;  %vm249_vm13 = vcmp.ge.f32.partialorder %v185_v29, 0.0  ;;  %v313_v39 = vmul.f32 0.0, %v185_v29  ;;  %v59_v28 = vld [vmem:[%s1031_s0 + $0x168] sm:$0xff] }
  0x2a   :  { %vm250_vm14 = vcmp.ge.f32.partialorder %v186_v30, 0.0  ;;  %440 = vst [vmem:[%s1034_s3 + $0xe0] sm:$0xff] %v376_v38  ;;  %v314_v40 = vmul.f32 0.0, %v186_v30  ;;  %v187_v41 = vadd.f32 %v513_v2, %v116_v31  ;;  %v188_v42 = vadd.f32 %v513_v2, %v117_v33 }
  0x2b   :  { %v189_v43 = vadd.f32 %v513_v2, %v118_v34  ;;  %v377_v44 = vsel %vm249_vm13, %v185_v29, %v313_v39  ;;  %v190_v45 = vadd.f32 %v513_v2, %v119_v35  ;;  %v120_v46 = vmul.f32 %v508_v1, %v49_v36  ;;  %v60_v29 = vld [vmem:[%s1031_s0 + $0x170] sm:$0xff]  ;;  %v61_v36 = vld [vmem:[%s1031_s0 + $0x178] sm:$0xff] }
  0x2c   :  { %v121_v47 = vmul.f32 %v508_v1, %v50_v37  ;;  %441 = vst [vmem:[%s1034_s3 + $0xe8] sm:$0xff] %v377_v44  ;;  %v378_v48 = vsel %vm250_vm14, %v186_v30, %v314_v40  ;;  %vm251_vm15 = vcmp.ge.f32.partialorder %v187_v41, 0.0  ;;  %v315_v49 = vmul.f32 0.0, %v187_v41 }
  0x2d   :  { %vm252_vm0 = vcmp.ge.f32.partialorder %v188_v42, 0.0  ;;  %442 = vst [vmem:[%s1034_s3 + $0xf0] sm:$0xff] %v378_v48  ;;  %v316_v52 = vmul.f32 0.0, %v188_v42  ;;  %vm253_vm1 = vcmp.ge.f32.partialorder %v189_v43, 0.0  ;;  %v317_v53 = vmul.f32 0.0, %v189_v43 }
  0x2e   :  { %vm254_vm2 = vcmp.ge.f32.partialorder %v190_v45, 0.0  ;;  %v379_v54 = vsel %vm251_vm15, %v187_v41, %v315_v49  ;;  %v318_v55 = vmul.f32 0.0, %v190_v45  ;;  %v191_v56 = vadd.f32 %v513_v2, %v120_v46  ;;  %v62_v41 = vld [vmem:[%s1031_s0 + $0x180] sm:$0xff] }
  0x2f   :  { %v192_v57 = vadd.f32 %v513_v2, %v121_v47  ;;  %443 = vst [vmem:[%s1034_s3 + $0xf8] sm:$0xff] %v379_v54  ;;  %v380_v59 = vsel %vm252_vm0, %v188_v42, %v316_v52  ;;  %v381_v60 = vsel %vm253_vm1, %v189_v43, %v317_v53  ;;  %v122_v61 = vmul.f32 %v508_v1, %v51_v50  ;;  %v63_v42 = vld [vmem:[%s1031_s0 + $0x188] sm:$0xff]  ;;  %v64_v43 = vld [vmem:[%s1031_s0 + $0x190] sm:$0xff]  ;;  %v65_v54 = vld [vmem:[%s1031_s0 + $0x198] sm:$0xff] }
  0x30   :  { %v123_v62 = vmul.f32 %v508_v1, %v52_v51  ;;  %444 = vst [vmem:[%s1034_s3 + $0x100] sm:$0xff] %v380_v59  ;;  %445 = vst [vmem:[%s1034_s3 + $0x108] sm:$0xff] %v381_v60  ;;  %v382_v4 = vsel %vm254_vm2, %v190_v45, %v318_v55  ;;  %vm255_vm3 = vcmp.ge.f32.partialorder %v191_v56, 0.0  ;;  %v319_v5 = vmul.f32 0.0, %v191_v56  ;;  %v66_v55 = vld [vmem:[%s1031_s0 + $0x1a0] sm:$0xff] }
  0x31   :  { %vm256_vm4 = vcmp.ge.f32.partialorder %v192_v57, 0.0  ;;  %446 = vst [vmem:[%s1034_s3 + $0x110] sm:$0xff] %v382_v4  ;;  %v320_v6 = vmul.f32 0.0, %v192_v57  ;;  %v193_v7 = vadd.f32 %v513_v2, %v122_v61  ;;  %v124_v9 = vmul.f32 %v508_v1, %v53_v58 }
  0x32   :  { %v194_v8 = vadd.f32 %v513_v2, %v123_v62  ;;  %v383_v10 = vsel %vm255_vm3, %v191_v56, %v319_v5  ;;  %v125_v11 = vmul.f32 %v508_v1, %v54_v63  ;;  %v126_v12 = vmul.f32 %v508_v1, %v55_v0 }
  0x33   :  { %v127_v13 = vmul.f32 %v508_v1, %v56_v3  ;;  %447 = vst [vmem:[%s1034_s3 + $0x118] sm:$0xff] %v383_v10  ;;  %v384_v16 = vsel %vm256_vm4, %v192_v57, %v320_v6  ;;  %vm257_vm5 = vcmp.ge.f32.partialorder %v193_v7, 0.0  ;;  %v321_v17 = vmul.f32 0.0, %v193_v7  ;;  %v67_v6 = vld [vmem:[%s1031_s0 + $0x1a8] sm:$0xff] }
  0x34   :  { %vm258_vm6 = vcmp.ge.f32.partialorder %v194_v8, 0.0  ;;  %448 = vst [vmem:[%s1034_s3 + $0x120] sm:$0xff] %v384_v16  ;;  %v322_v18 = vmul.f32 0.0, %v194_v8  ;;  %v195_v19 = vadd.f32 %v513_v2, %v124_v9  ;;  %v196_v20 = vadd.f32 %v513_v2, %v125_v11 }
  0x35   :  { %v197_v21 = vadd.f32 %v513_v2, %v126_v12  ;;  %v385_v22 = vsel %vm257_vm5, %v193_v7, %v321_v17  ;;  %v198_v23 = vadd.f32 %v513_v2, %v127_v13  ;;  %v128_v24 = vmul.f32 %v508_v1, %v57_v14  ;;  %v68_v7 = vld [vmem:[%s1031_s0 + $0x1b0] sm:$0xff]  ;;  %v69_v14 = vld [vmem:[%s1031_s0 + $0x1b8] sm:$0xff] }
  0x36   :  { %v129_v25 = vmul.f32 %v508_v1, %v58_v15  ;;  %449 = vst [vmem:[%s1034_s3 + $0x128] sm:$0xff] %v385_v22  ;;  %v386_v26 = vsel %vm258_vm6, %v194_v8, %v322_v18  ;;  %vm259_vm7 = vcmp.ge.f32.partialorder %v195_v19, 0.0  ;;  %v323_v27 = vmul.f32 0.0, %v195_v19 }
  0x37   :  { %vm260_vm8 = vcmp.ge.f32.partialorder %v196_v20, 0.0  ;;  %450 = vst [vmem:[%s1034_s3 + $0x130] sm:$0xff] %v386_v26  ;;  %v324_v30 = vmul.f32 0.0, %v196_v20  ;;  %vm261_vm9 = vcmp.ge.f32.partialorder %v197_v21, 0.0  ;;  %v325_v31 = vmul.f32 0.0, %v197_v21 }
  0x38   :  { %vm262_vm10 = vcmp.ge.f32.partialorder %v198_v23, 0.0  ;;  %v387_v32 = vsel %vm259_vm7, %v195_v19, %v323_v27  ;;  %v326_v33 = vmul.f32 0.0, %v198_v23  ;;  %v199_v34 = vadd.f32 %v513_v2, %v128_v24  ;;  %v70_v19 = vld [vmem:[%s1031_s0 + $0x1c0] sm:$0xff] }
  0x39   :  { %v200_v35 = vadd.f32 %v513_v2, %v129_v25  ;;  %451 = vst [vmem:[%s1034_s3 + $0x138] sm:$0xff] %v387_v32  ;;  %v388_v37 = vsel %vm260_vm8, %v196_v20, %v324_v30  ;;  %v389_v38 = vsel %vm261_vm9, %v197_v21, %v325_v31  ;;  %v130_v39 = vmul.f32 %v508_v1, %v59_v28  ;;  %v71_v20 = vld [vmem:[%s1031_s0 + $0x1c8] sm:$0xff]  ;;  %v72_v21 = vld [vmem:[%s1031_s0 + $0x1d0] sm:$0xff]  ;;  %v73_v32 = vld [vmem:[%s1031_s0 + $0x1d8] sm:$0xff] }
  0x3a   :  { %v131_v40 = vmul.f32 %v508_v1, %v60_v29  ;;  %452 = vst [vmem:[%s1034_s3 + $0x140] sm:$0xff] %v388_v37  ;;  %453 = vst [vmem:[%s1034_s3 + $0x148] sm:$0xff] %v389_v38  ;;  %v390_v44 = vsel %vm262_vm10, %v198_v23, %v326_v33  ;;  %vm263_vm11 = vcmp.ge.f32.partialorder %v199_v34, 0.0  ;;  %v327_v45 = vmul.f32 0.0, %v199_v34  ;;  %v74_v33 = vld [vmem:[%s1031_s0 + $0x1e0] sm:$0xff] }
  0x3b   :  { %vm264_vm12 = vcmp.ge.f32.partialorder %v200_v35, 0.0  ;;  %454 = vst [vmem:[%s1034_s3 + $0x150] sm:$0xff] %v390_v44  ;;  %v328_v46 = vmul.f32 0.0, %v200_v35  ;;  %v201_v47 = vadd.f32 %v513_v2, %v130_v39  ;;  %v132_v49 = vmul.f32 %v508_v1, %v61_v36 }
  0x3c   :  { %v202_v48 = vadd.f32 %v513_v2, %v131_v40  ;;  %v391_v50 = vsel %vm263_vm11, %v199_v34, %v327_v45  ;;  %v133_v51 = vmul.f32 %v508_v1, %v62_v41  ;;  %v134_v52 = vmul.f32 %v508_v1, %v63_v42 }
  0x3d   :  { %v135_v53 = vmul.f32 %v508_v1, %v64_v43  ;;  %455 = vst [vmem:[%s1034_s3 + $0x158] sm:$0xff] %v391_v50  ;;  %v392_v56 = vsel %vm264_vm12, %v200_v35, %v328_v46  ;;  %vm265_vm13 = vcmp.ge.f32.partialorder %v201_v47, 0.0  ;;  %v329_v57 = vmul.f32 0.0, %v201_v47  ;;  %v75_v46 = vld [vmem:[%s1031_s0 + $0x1e8] sm:$0xff] }
  0x3e   :  { %vm266_vm14 = vcmp.ge.f32.partialorder %v202_v48, 0.0  ;;  %456 = vst [vmem:[%s1034_s3 + $0x160] sm:$0xff] %v392_v56  ;;  %v330_v58 = vmul.f32 0.0, %v202_v48  ;;  %v203_v59 = vadd.f32 %v513_v2, %v132_v49  ;;  %v204_v60 = vadd.f32 %v513_v2, %v133_v51 }
  0x3f   :  { %v205_v61 = vadd.f32 %v513_v2, %v134_v52  ;;  %v393_v62 = vsel %vm265_vm13, %v201_v47, %v329_v57  ;;  %v206_v63 = vadd.f32 %v513_v2, %v135_v53  ;;  %v136_v0 = vmul.f32 %v508_v1, %v65_v54  ;;  %v76_v47 = vld [vmem:[%s1031_s0 + $0x1f0] sm:$0xff]  ;;  %v77_v54 = vld [vmem:[%s1031_s0 + $0x1f8] sm:$0xff] }
  0x40   :  { %v137_v3 = vmul.f32 %v508_v1, %v66_v55  ;;  %457 = vst [vmem:[%s1034_s3 + $0x168] sm:$0xff] %v393_v62  ;;  %v394_v4 = vsel %vm266_vm14, %v202_v48, %v330_v58  ;;  %vm267_vm15 = vcmp.ge.f32.partialorder %v203_v59, 0.0  ;;  %v331_v5 = vmul.f32 0.0, %v203_v59 }
  0x41   :  { %vm268_vm0 = vcmp.ge.f32.partialorder %v204_v60, 0.0  ;;  %458 = vst [vmem:[%s1034_s3 + $0x170] sm:$0xff] %v394_v4  ;;  %v332_v8 = vmul.f32 0.0, %v204_v60  ;;  %vm269_vm1 = vcmp.ge.f32.partialorder %v205_v61, 0.0  ;;  %v333_v9 = vmul.f32 0.0, %v205_v61 }
  0x42   :  { %vm270_vm2 = vcmp.ge.f32.partialorder %v206_v63, 0.0  ;;  %v395_v10 = vsel %vm267_vm15, %v203_v59, %v331_v5  ;;  %v334_v11 = vmul.f32 0.0, %v206_v63  ;;  %v207_v12 = vadd.f32 %v513_v2, %v136_v0 }
  0x43   :  { %v208_v13 = vadd.f32 %v513_v2, %v137_v3  ;;  %459 = vst [vmem:[%s1034_s3 + $0x178] sm:$0xff] %v395_v10  ;;  %v396_v15 = vsel %vm268_vm0, %v204_v60, %v332_v8  ;;  %v397_v16 = vsel %vm269_vm1, %v205_v61, %v333_v9  ;;  %v138_v17 = vmul.f32 %v508_v1, %v67_v6 }
  0x44   :  { %v139_v18 = vmul.f32 %v508_v1, %v68_v7  ;;  %460 = vst [vmem:[%s1034_s3 + $0x180] sm:$0xff] %v396_v15  ;;  %461 = vst [vmem:[%s1034_s3 + $0x188] sm:$0xff] %v397_v16  ;;  %v398_v22 = vsel %vm270_vm2, %v206_v63, %v334_v11  ;;  %vm271_vm3 = vcmp.ge.f32.partialorder %v207_v12, 0.0  ;;  %v335_v23 = vmul.f32 0.0, %v207_v12 }
  0x45   :  { %vm272_vm4 = vcmp.ge.f32.partialorder %v208_v13, 0.0  ;;  %462 = vst [vmem:[%s1034_s3 + $0x190] sm:$0xff] %v398_v22  ;;  %v336_v24 = vmul.f32 0.0, %v208_v13  ;;  %v209_v25 = vadd.f32 %v513_v2, %v138_v17  ;;  %v140_v27 = vmul.f32 %v508_v1, %v69_v14 }
  0x46   :  { %v210_v26 = vadd.f32 %v513_v2, %v139_v18  ;;  %v399_v28 = vsel %vm271_vm3, %v207_v12, %v335_v23  ;;  %v141_v29 = vmul.f32 %v508_v1, %v70_v19  ;;  %v142_v30 = vmul.f32 %v508_v1, %v71_v20 }
  0x47   :  { %v143_v31 = vmul.f32 %v508_v1, %v72_v21  ;;  %463 = vst [vmem:[%s1034_s3 + $0x198] sm:$0xff] %v399_v28  ;;  %v400_v34 = vsel %vm272_vm4, %v208_v13, %v336_v24  ;;  %vm273_vm5 = vcmp.ge.f32.partialorder %v209_v25, 0.0  ;;  %v337_v35 = vmul.f32 0.0, %v209_v25 }
  0x48   :  { %vm274_vm6 = vcmp.ge.f32.partialorder %v210_v26, 0.0  ;;  %464 = vst [vmem:[%s1034_s3 + $0x1a0] sm:$0xff] %v400_v34  ;;  %v338_v36 = vmul.f32 0.0, %v210_v26  ;;  %v211_v37 = vadd.f32 %v513_v2, %v140_v27  ;;  %v212_v38 = vadd.f32 %v513_v2, %v141_v29 }
  0x49   :  { %v213_v39 = vadd.f32 %v513_v2, %v142_v30  ;;  %v401_v40 = vsel %vm273_vm5, %v209_v25, %v337_v35  ;;  %v214_v41 = vadd.f32 %v513_v2, %v143_v31  ;;  %v144_v42 = vmul.f32 %v508_v1, %v73_v32 }
  0x4a   :  { %v145_v43 = vmul.f32 %v508_v1, %v74_v33  ;;  %465 = vst [vmem:[%s1034_s3 + $0x1a8] sm:$0xff] %v401_v40  ;;  %v402_v44 = vsel %vm274_vm6, %v210_v26, %v338_v36  ;;  %vm275_vm7 = vcmp.ge.f32.partialorder %v211_v37, 0.0  ;;  %v339_v45 = vmul.f32 0.0, %v211_v37 }
  0x4b   :  { %vm276_vm8 = vcmp.ge.f32.partialorder %v212_v38, 0.0  ;;  %466 = vst [vmem:[%s1034_s3 + $0x1b0] sm:$0xff] %v402_v44  ;;  %v340_v48 = vmul.f32 0.0, %v212_v38  ;;  %vm277_vm9 = vcmp.ge.f32.partialorder %v213_v39, 0.0  ;;  %v341_v49 = vmul.f32 0.0, %v213_v39 }
  0x4c   :  { %vm278_vm10 = vcmp.ge.f32.partialorder %v214_v41, 0.0  ;;  %v403_v50 = vsel %vm275_vm7, %v211_v37, %v339_v45  ;;  %v342_v51 = vmul.f32 0.0, %v214_v41  ;;  %v215_v52 = vadd.f32 %v513_v2, %v144_v42 }
  0x4d   :  { %v216_v53 = vadd.f32 %v513_v2, %v145_v43  ;;  %467 = vst [vmem:[%s1034_s3 + $0x1b8] sm:$0xff] %v403_v50  ;;  %v404_v55 = vsel %vm276_vm8, %v212_v38, %v340_v48  ;;  %v405_v56 = vsel %vm277_vm9, %v213_v39, %v341_v49  ;;  %v146_v57 = vmul.f32 %v508_v1, %v75_v46 }
  0x4e   :  { %v147_v58 = vmul.f32 %v508_v1, %v76_v47  ;;  %468 = vst [vmem:[%s1034_s3 + $0x1c0] sm:$0xff] %v404_v55  ;;  %469 = vst [vmem:[%s1034_s3 + $0x1c8] sm:$0xff] %v405_v56  ;;  %v406_v59 = vsel %vm278_vm10, %v214_v41, %v342_v51  ;;  %vm279_vm11 = vcmp.ge.f32.partialorder %v215_v52, 0.0  ;;  %v343_v60 = vmul.f32 0.0, %v215_v52 }
  0x4f   :  { %vm280_vm12 = vcmp.ge.f32.partialorder %v216_v53, 0.0  ;;  %470 = vst [vmem:[%s1034_s3 + $0x1d0] sm:$0xff] %v406_v59  ;;  %v344_v61 = vmul.f32 0.0, %v216_v53  ;;  %v217_v62 = vadd.f32 %v513_v2, %v146_v57  ;;  %v148_v0 = vmul.f32 %v508_v1, %v77_v54 }
  0x50   :  { %v218_v63 = vadd.f32 %v513_v2, %v147_v58  ;;  %v407_v3 = vsel %vm279_vm11, %v215_v52, %v343_v60 }
  0x51   :  { %471 = vst [vmem:[%s1034_s3 + $0x1d8] sm:$0xff] %v407_v3  ;;  %v408_v4 = vsel %vm280_vm12, %v216_v53, %v344_v61  ;;  %vm281_vm13 = vcmp.ge.f32.partialorder %v217_v62, 0.0  ;;  %v345_v5 = vmul.f32 0.0, %v217_v62  ;;  %v219_v7 = vadd.f32 %v513_v2, %v148_v0 }
  0x52   :  { %vm282_vm14 = vcmp.ge.f32.partialorder %v218_v63, 0.0  ;;  %472 = vst [vmem:[%s1034_s3 + $0x1e0] sm:$0xff] %v408_v4  ;;  %v346_v6 = vmul.f32 0.0, %v218_v63 }
  0x53   :  { %v409_v8 = vsel %vm281_vm13, %v217_v62, %v345_v5  ;;  %vm283_vm15 = vcmp.ge.f32.partialorder %v219_v7, 0.0  ;;  %v347_v9 = vmul.f32 0.0, %v219_v7 }
  0x54   :  { %473 = vst [vmem:[%s1034_s3 + $0x1e8] sm:$0xff] %v409_v8  ;;  %v410_v1 = vsel %vm282_vm14, %v218_v63, %v346_v6 }
  0x55   :  { %474 = vst [vmem:[%s1034_s3 + $0x1f0] sm:$0xff] %v410_v1  ;;  %v411_v10 = vsel %vm283_vm15, %v219_v7, %v347_v9 }
  0x56   :  { %475 = vst [vmem:[%s1034_s3 + $0x1f8] sm:$0xff] %v411_v10 }

</bundles_post_ra>
